<compile_context>
chip_gen: v7x
topology: tpu7x:2x2x1
jax: 0.10.0
libtpu: 0.0.40
codegen_flags: <defaults>
</compile_context>

<pallas_src>
import jax
import jax.numpy as jnp
import numpy as np
from jax import lax
from jax.experimental import pallas as pl
from jax.experimental.pallas import tpu as pltpu

EPS = 1e-5
_HI = lax.Precision.HIGHEST


# ----------------------------------------------------------------------------
# Host-side weight transforms -> lane-dense matmul operands.
# Built with exact 0/1 masks, so weights stay bit-exact f32 (only the BN-scale
# fold introduces one extra f32 rounding per weight).
# ----------------------------------------------------------------------------
def _fused_conv_weight(w_hwio, W, bn_scale):
    """(kh, kw, Ci, Co) conv weight + per-Co BN scale -> (kh*W*Ci, W*Co) weight.

    Folds the kw taps + width zero-padding (Toeplitz / block-banded) and the BN
    scale into the weight, and concatenates the kh (dy) taps along K so the conv
    is ONE matmul against an im2col'd LHS of shape (M, kh*W*Ci)."""
    kh, kw, Ci, Co = w_hwio.shape
    pw = kw // 2
    idx = jnp.arange(W)
    # sel[x, i, w] = 1 iff input col i feeds output col w through tap x (pad=pw)
    sel = (idx[None, :, None] ==
           idx[None, None, :] + jnp.arange(kw)[:, None, None] - pw
           ).astype(jnp.float32)                                    # (kw, Win, Wout)
    w = w_hwio.astype(jnp.float32) * bn_scale.astype(jnp.float32)[None, None, None, :]
    big = (sel[None, :, :, None, :, None] *
           w[:, :, None, :, None, :]).sum(axis=1)                   # (kh, Win, Ci, Wout, Co)
    return big.reshape(kh * W * Ci, W * Co)


def _blockdiag_weight(w_1x1, W):
    """1x1-conv weight (Ci, Co) -> block-diagonal (W*Ci, W*Co) lane-dense matrix."""
    Ci, Co = w_1x1.shape
    eye = jnp.eye(W, dtype=jnp.float32)
    big = eye[:, None, :, None] * w_1x1.astype(jnp.float32)[None, :, None, :]
    return big.reshape(W * Ci, W * Co)


def _pool_matrices(H, W, C, kh, kw):
    """AvgPool2d(kh,kw) as two matmuls: prow (Ho, H) and pcol (W*C, Wo*C)."""
    Ho, Wo = H // kh, W // kw
    inv = 1.0 / float(kh * kw)
    prow = (jnp.arange(H)[None, :] // kh ==
            jnp.arange(Ho)[:, None]).astype(jnp.float32) * inv       # (Ho, H)
    csel = (jnp.arange(W)[:, None] // kw ==
            jnp.arange(Wo)[None, :]).astype(jnp.float32)             # (W, Wo)
    eyec = jnp.eye(C, dtype=jnp.float32)
    pcol = (csel[:, None, :, None] * eyec[None, :, None, :]).reshape(W * C, Wo * C)
    return prow, pcol


# ----------------------------------------------------------------------------
# Fused Pallas kernel: all ConvBlockRes blocks + AvgPool, whole batch, one step.
# ----------------------------------------------------------------------------
def _make_kernel(shortcut_flags, N, H, W, Cin, Cout, pool_hw, precision):
    n_blocks = len(shortcut_flags)
    need_im_in = (Cin != Cout)
    has_pool = pool_hw is not None
    if has_pool:
        Ho, Wo = H // pool_hw[0], W // pool_hw[1]

    def dot(a, b):
        return jnp.dot(a, b, preferred_element_type=jnp.float32, precision=precision)

    def kernel(*refs):
        refs = list(refs)
        x_ref = refs.pop(0)
        wrefs = []
        for sc in shortcut_flags:
            k = 3 if sc else 2
            wrefs.append(tuple(refs[:k]))
            del refs[:k]
        bias_ref = refs.pop(0)                 # (n_bias_rows, W*Cout)
        if has_pool:
            prow_ref = refs.pop(0)
            pcol_ref = refs.pop(0)
            pooled_ref = refs.pop(0)
        feat_ref = refs.pop(0)
        im_main = refs.pop(0)                  # (N*H, 3*W*Cout) im2col scratch
        im_in = refs.pop(0) if need_im_in else im_main

        # Zero the im2col scratch ONCE.  The halo rows (output row 0 reading a
        # row above the image / output row H-1 reading a row below) are never
        # written afterwards, so this single zeroing covers every conv in every
        # block -- no per-conv re-zeroing (grid has one step, so once per call).
        im_main[...] = jnp.zeros(im_main.shape, jnp.float32)
        if need_im_in:
            im_in[...] = jnp.zeros(im_in.shape, jnp.float32)

        def conv_bn_relu(y, im_ref, w_ref, bias_row):
            # y: (N*H, W*Ci) lane-dense activation slab (batch stacked in M).
            WC = y.shape[1]
            assert im_ref.shape == (N * H, 3 * WC)
            for n in range(N):                          # static, unrolled
                r0 = n * H
                # K block [WC:2WC]  <- input row h      (center tap)
                im_ref[r0:r0 + H, WC:2 * WC] = y[r0:r0 + H, :]
                if H > 1:
                    # K block [0:WC]   <- input row h-1 (top tap); row r0 stays zero
                    im_ref[r0 + 1:r0 + H, 0:WC] = y[r0:r0 + H - 1, :]
                    # K block [2WC:3WC] <- input row h+1 (bottom tap); row r0+H-1 stays zero
                    im_ref[r0:r0 + H - 1, 2 * WC:3 * WC] = y[r0 + 1:r0 + H, :]
            # ONE matmul per conv: (N*H, 3*W*Ci) @ (3*W*Ci, W*Co); BN scale is
            # already folded into the weight columns, so only bias + ReLU remain.
            acc = dot(im_ref[...], w_ref[...])
            return jnp.maximum(acc + bias_row, 0.0)

        y = x_ref[...]                         # (N*H, W*Cin)
        bi = 0
        for b in range(n_blocks):
            if shortcut_flags[b]:
                w1_ref, w2_ref, wsc_ref = wrefs[b]
            else:
                w1_ref, w2_ref = wrefs[b]
            im1 = im_in if (b == 0 and need_im_in) else im_main

            h = conv_bn_relu(y, im1, w1_ref, bias_ref[bi:bi + 1, :]); bi += 1
            h = conv_bn_relu(h, im_main, w2_ref, bias_ref[bi:bi + 1, :]); bi += 1

            if shortcut_flags[b]:
                # 1x1 shortcut conv == block-diagonal lane-dense matmul (+ bias)
                sc = dot(y, wsc_ref[...]) + bias_ref[bi:bi + 1, :]
                bi += 1
            else:
                sc = y
            y = h + sc

        feat_ref[...] = y                      # lane-dense (N*H, W*Cout) store

        if has_pool:
            WoC = Wo * Cout
            for n in range(N):
                t = dot(prow_ref[...], y[n * H:(n + 1) * H, :])      # (Ho, W*Cout)
                # pack images side-by-side in lanes -> 128-lane-dense HBM writeback
                pooled_ref[:, n * WoC:(n + 1) * WoC] = dot(t, pcol_ref[...])

    return kernel


# ----------------------------------------------------------------------------
# NHWC (lane-dense, channels-last) entry point -- no layout transposes.
# ----------------------------------------------------------------------------
def res_encoder_block_nhwc(x_nhwc, block_params, kernel_size, *, precision=_HI):
    N, H, W, Cin = x_nhwc.shape
    Cout = block_params[0]["w1"].shape[-1]
    if kernel_size is not None and not isinstance(kernel_size, (tuple, list)):
        kernel_size = (kernel_size, kernel_size)
    has_pool = kernel_size is not None

    # Fold batch into the matmul M dimension: one (N*H, W*Cin) slab, one grid step.
    x_slab = x_nhwc.astype(jnp.float32).reshape(N * H, W * Cin)

    zmap = lambda i: (0, 0)

    def spec(a):
        return pl.BlockSpec(a.shape, zmap)

    args, in_specs = [x_slab], [spec(x_slab)]
    shortcut_flags, bias_rows = [], []
    for p in block_params:
        has_sc = "wsc" in p
        shortcut_flags.append(has_sc)
        wf1 = _fused_conv_weight(p["w1"], W, p["s1"][0])   # BN1 scale folded in
        wf2 = _fused_conv_weight(p["w2"], W, p["s2"][0])   # BN2 scale folded in
        args += [wf1, wf2]
        in_specs += [spec(wf1), spec(wf2)]
        bias_rows += [jnp.tile(p["b1"], (1, W))[0], jnp.tile(p["b2"], (1, W))[0]]
        if has_sc:
            wsc = _blockdiag_weight(p["wsc"], W)
            args.append(wsc)
            in_specs.append(spec(wsc))
            bias_rows.append(jnp.tile(p["bsc"], (1, W))[0])
    # All per-block biases in one (k, W*Cout) input instead of k tiny inputs.
    bias_all = jnp.stack(bias_rows, axis=0)
    args.append(bias_all)
    in_specs.append(spec(bias_all))

    if has_pool:
        kh, kw = kernel_size
        Ho, Wo = H // kh, W // kw
        prow, pcol = _pool_matrices(H, W, Cout, kh, kw)
        args += [prow, pcol]
        in_specs += [spec(prow), spec(pcol)]

    out_shapes, out_specs = [], []
    if has_pool:
        # Pooled output packed lane-dense: (Ho, N*Wo*Cout), images along lanes.
        out_shapes.append(jax.ShapeDtypeStruct((Ho, N * Wo * Cout), jnp.float32))
        out_specs.append(pl.BlockSpec((Ho, N * Wo * Cout), zmap))
    out_shapes.append(jax.ShapeDtypeStruct((N * H, W * Cout), jnp.float32))
    out_specs.append(pl.BlockSpec((N * H, W * Cout), zmap))

    # Single im2col scratch reused by every conv; a second (narrower) one only
    # for block-0 conv1 when Cin != Cout.
    scratch = [pltpu.VMEM((N * H, 3 * W * Cout), jnp.float32)]
    if Cin != Cout:
        scratch.append(pltpu.VMEM((N * H, 3 * W * Cin), jnp.float32))

    kernel = _make_kernel(tuple(shortcut_flags), N, H, W, Cin, Cout,
                          kernel_size if has_pool else None, precision)

    outs = pl.pallas_call(
        kernel,
        out_shape=tuple(out_shapes),
        grid_spec=pltpu.PrefetchScalarGridSpec(
            num_scalar_prefetch=0,
            grid=(1,),                      # whole batch in one step (M = N*H)
            in_specs=in_specs,
            out_specs=tuple(out_specs),
            scratch_shapes=scratch,
        ),
        compiler_params=pltpu.CompilerParams(
            dimension_semantics=("arbitrary",),
            vmem_limit_bytes=48 * 1024 * 1024,   # explicit scoped-VMEM budget
        ),
    )(*args)

    if has_pool:
        pooled_slab, feat_slab = outs
    else:
        feat_slab = outs[0] if isinstance(outs, (tuple, list)) else outs
        pooled_slab = None

    feat_nhwc = feat_slab.reshape(N, H, W, Cout)
    if has_pool:
        pooled_nhwc = pooled_slab.reshape(Ho, N, Wo, Cout).transpose(1, 0, 2, 3)
    else:
        pooled_nhwc = feat_nhwc
    return pooled_nhwc, feat_nhwc


def res_encoder_block(x_nchw, block_params, kernel_size, *, precision=_HI):
    """NCHW shim for PyTorch-interface parity (testing); prefer the NHWC entry
    point so the layout transposes (extra HBM round trips) are not paid."""
    x_nhwc = jnp.transpose(x_nchw, (0, 2, 3, 1))
    pooled, feat = res_encoder_block_nhwc(x_nhwc, block_params, kernel_size,
                                          precision=precision)
    return (jnp.transpose(pooled, (0, 3, 1, 2)),
            jnp.transpose(feat, (0, 3, 1, 2)))


# ----------------------------------------------------------------------------
# Deterministic parameter init (synthetic; BN folded into per-channel scale/bias)
# ----------------------------------------------------------------------------
def init_conv_block_params(key, cin, cout):
    ks = jax.random.split(key, 12)

    def bn_fold(kg, kb, km, kv, c):
        gamma = jax.random.uniform(kg, (c,), minval=0.5, maxval=1.5)
        beta = jax.random.normal(kb, (c,)) * 0.1
        rmean = jax.random.normal(km, (c,)) * 0.1
        rvar = jax.random.uniform(kv, (c,), minval=0.5, maxval=1.5)
        scale = gamma / jnp.sqrt(rvar + EPS)
        bias = beta - rmean * scale
        return (scale.reshape(1, c).astype(jnp.float32),
                bias.reshape(1, c).astype(jnp.float32))

    p = {}
    p["w1"] = (jax.random.normal(ks[0], (3, 3, cin, cout)) * 0.1).astype(jnp.float32)
    p["s1"], p["b1"] = bn_fold(ks[1], ks[2], ks[3], ks[4], cout)
    p["w2"] = (jax.random.normal(ks[5], (3, 3, cout, cout)) * 0.1).astype(jnp.float32)
    p["s2"], p["b2"] = bn_fold(ks[6], ks[7], ks[8], ks[9], cout)
    if cin != cout:
        p["wsc"] = (jax.random.normal(ks[10], (cin, cout)) * 0.1).astype(jnp.float32)
        p["bsc"] = (jax.random.normal(ks[11], (cout,)) * 0.1).reshape(1, cout).astype(jnp.float32)
    return p


# ----------------------------------------------------------------------------
# Pure-JAX reference (correctness check)
# ----------------------------------------------------------------------------
def _conv3x3_ref(x, w):  # x: NHWC, w: HWIO
    return lax.conv_general_dilated(
        x, w, window_strides=(1, 1), padding="SAME",
        dimension_numbers=("NHWC", "HWIO", "NHWC"), precision=_HI)


def _conv_block_res_ref(x, p):
    h = jnp.maximum(_conv3x3_ref(x, p["w1"]) * p["s1"][0] + p["b1"][0], 0.0)
    h = jnp.maximum(_conv3x3_ref(h, p["w2"]) * p["s2"][0] + p["b2"][0], 0.0)
    if "wsc" in p:
        sc = jnp.einsum("nhwc,cd->nhwd", x, p["wsc"], precision=_HI) + p["bsc"][0]
    else:
        sc = x
    return h + sc


def _res_encoder_block_ref(x_nchw, block_params, kernel_size):
    x = jnp.transpose(x_nchw, (0, 2, 3, 1)).astype(jnp.float32)
    for p in block_params:
        x = _conv_block_res_ref(x, p)
    kh, kw = kernel_size
    N, H, W, C = x.shape
    pooled = x.reshape(N, H // kh, kh, W // kw, kw, C).mean(axis=(2, 4))
    return (jnp.transpose(pooled, (0, 3, 1, 2)),
            jnp.transpose(x, (0, 3, 1, 2)))


# ----------------------------------------------------------------------------
if __name__ == "__main__":
    key = jax.random.PRNGKey(0)
    k_x, k_p0, k_p1 = jax.random.split(key, 3)

    # ResEncoderBlock(in_channels=4, out_channels=8, kernel_size=(2,2), n_blocks=2)
    N, Cin, H, W = 2, 4, 16, 16
    Cout = 8
    pool_ks = (2, 2)

    x_nchw = jax.random.normal(k_x, (N, Cin, H, W), dtype=jnp.float32)

    block_params = [
        init_conv_block_params(k_p0, Cin, Cout),   # block 0: has 1x1 shortcut
        init_conv_block_params(k_p1, Cout, Cout),  # block 1: identity shortcut
    ]

    # precision=HIGHEST so the tight f32 parity check below holds; pass
    # lax.Precision.DEFAULT (or bf16 operands) for production throughput.
    pooled, feat = res_encoder_block(x_nchw, block_params, pool_ks, precision=_HI)
    jax.block_until_ready(pooled)
    jax.block_until_ready(feat)

    pooled_ref, feat_ref = _res_encoder_block_ref(x_nchw, block_params, pool_ks)

    np.testing.assert_allclose(np.asarray(feat), np.asarray(feat_ref),
                               rtol=1e-4, atol=1e-4)
    np.testing.assert_allclose(np.asarray(pooled), np.asarray(pooled_ref),
                               rtol=1e-4, atol=1e-4)

    assert pooled.shape == (N, Cout, H // 2, W // 2)
    assert feat.shape == (N, Cout, H, W)
    print("KERNEL_OK")
</pallas_src>

<mosaic_0001>
module attributes {stable_mosaic.version = 11 : i64} {
  func.func @kernel(%arg0: i32, %arg1: memref<32x64xf32, #tpu.memory_space<vmem>>, %arg2: memref<192x128xf32, #tpu.memory_space<vmem>>, %arg3: memref<384x128xf32, #tpu.memory_space<vmem>>, %arg4: memref<64x128xf32, #tpu.memory_space<vmem>>, %arg5: memref<384x128xf32, #tpu.memory_space<vmem>>, %arg6: memref<384x128xf32, #tpu.memory_space<vmem>>, %arg7: memref<5x128xf32, #tpu.memory_space<vmem>>, %arg8: memref<8x16xf32, #tpu.memory_space<vmem>>, %arg9: memref<128x64xf32, #tpu.memory_space<vmem>>, %arg10: memref<8x128xf32, #tpu.memory_space<vmem>>, %arg11: memref<32x128xf32, #tpu.memory_space<vmem>>, %arg12: memref<32x384xf32, #tpu.memory_space<vmem>>, %arg13: memref<32x192xf32, #tpu.memory_space<vmem>>) attributes {dimension_semantics = [#tpu.dimension_semantics<arbitrary>], iteration_bounds = array<i64: 1>, scalar_prefetch = 0 : i64, scratch_operands = 2 : i64, tpu.core_type = #tpu.core_type<tc>, window_params = [{pipeline_mode = #tpu.pipeline_mode<synchronous>, transform_indices = @transform_0, window_bounds = array<i64: 32, 64>}, {pipeline_mode = #tpu.pipeline_mode<synchronous>, transform_indices = @transform_1, window_bounds = array<i64: 192, 128>}, {pipeline_mode = #tpu.pipeline_mode<synchronous>, transform_indices = @transform_2, window_bounds = array<i64: 384, 128>}, {pipeline_mode = #tpu.pipeline_mode<synchronous>, transform_indices = @transform_3, window_bounds = array<i64: 64, 128>}, {pipeline_mode = #tpu.pipeline_mode<synchronous>, transform_indices = @transform_4, window_bounds = array<i64: 384, 128>}, {pipeline_mode = #tpu.pipeline_mode<synchronous>, transform_indices = @transform_5, window_bounds = array<i64: 384, 128>}, {pipeline_mode = #tpu.pipeline_mode<synchronous>, transform_indices = @transform_6, window_bounds = array<i64: 5, 128>}, {pipeline_mode = #tpu.pipeline_mode<synchronous>, transform_indices = @transform_7, window_bounds = array<i64: 8, 16>}, {pipeline_mode = #tpu.pipeline_mode<synchronous>, transform_indices = @transform_8, window_bounds = array<i64: 128, 64>}, {pipeline_mode = #tpu.pipeline_mode<synchronous>, transform_indices = @transform_9, window_bounds = array<i64: 8, 128>}, {pipeline_mode = #tpu.pipeline_mode<synchronous>, transform_indices = @transform_10, window_bounds = array<i64: 32, 128>}]} {
    %cst = arith.constant 0.000000e+00 : f32
    %0 = vector.broadcast %cst : f32 to vector<32x384xf32>
    %c0 = arith.constant 0 : index
    %c0_0 = arith.constant 0 : index
    %1 = vector.load %arg12[%c0, %c0_0] : memref<32x384xf32, #tpu.memory_space<vmem>>, vector<32x384xf32>
    tpu.vector_store %arg12[%c0, %c0_0], %0 {strides = array<i32>} : memref<32x384xf32, #tpu.memory_space<vmem>>, vector<32x384xf32>,
    %cst_1 = arith.constant 0.000000e+00 : f32
    %2 = vector.broadcast %cst_1 : f32 to vector<32x192xf32>
    %c0_2 = arith.constant 0 : index
    %c0_3 = arith.constant 0 : index
    %3 = vector.load %arg13[%c0_2, %c0_3] : memref<32x192xf32, #tpu.memory_space<vmem>>, vector<32x192xf32>
    tpu.vector_store %arg13[%c0_2, %c0_3], %2 {strides = array<i32>} : memref<32x192xf32, #tpu.memory_space<vmem>>, vector<32x192xf32>,
    %c0_4 = arith.constant 0 : index
    %c0_5 = arith.constant 0 : index
    %4 = vector.load %arg1[%c0_4, %c0_5] : memref<32x64xf32, #tpu.memory_space<vmem>>, vector<32x64xf32>
    %c0_6 = arith.constant 0 : index
    %c0_7 = arith.constant 0 : index
    %5 = vector.load %arg7[%c0_6, %c0_7] : memref<5x128xf32, #tpu.memory_space<vmem>>, vector<1x128xf32>
    %6 = vector.extract_strided_slice %4 {offsets = [0, 0], sizes = [16, 64], strides = [1, 1]} : vector<32x64xf32> to vector<16x64xf32>
    %c0_8 = arith.constant 0 : index
    %c64 = arith.constant 64 : index
    %7 = vector.load %arg13[%c0_8, %c64] : memref<32x192xf32, #tpu.memory_space<vmem>>, vector<16x64xf32>
    tpu.vector_store %arg13[%c0_8, %c64], %6 {strides = array<i32>} : memref<32x192xf32, #tpu.memory_space<vmem>>, vector<16x64xf32>,
    %8 = vector.extract_strided_slice %4 {offsets = [0, 0], sizes = [15, 64], strides = [1, 1]} : vector<32x64xf32> to vector<15x64xf32>
    %c1 = arith.constant 1 : index
    %c0_9 = arith.constant 0 : index
    %9 = vector.load %arg13[%c1, %c0_9] : memref<32x192xf32, #tpu.memory_space<vmem>>, vector<15x64xf32>
    tpu.vector_store %arg13[%c1, %c0_9], %8 {strides = array<i32>} : memref<32x192xf32, #tpu.memory_space<vmem>>, vector<15x64xf32>,
    %10 = vector.extract_strided_slice %4 {offsets = [1, 0], sizes = [15, 64], strides = [1, 1]} : vector<32x64xf32> to vector<15x64xf32>
    %c0_10 = arith.constant 0 : index
    %c128 = arith.constant 128 : index
    %11 = vector.load %arg13[%c0_10, %c128] : memref<32x192xf32, #tpu.memory_space<vmem>>, vector<15x64xf32>
    tpu.vector_store %arg13[%c0_10, %c128], %10 {strides = array<i32>} : memref<32x192xf32, #tpu.memory_space<vmem>>, vector<15x64xf32>,
    %12 = vector.extract_strided_slice %4 {offsets = [16, 0], sizes = [16, 64], strides = [1, 1]} : vector<32x64xf32> to vector<16x64xf32>
    %c16 = arith.constant 16 : index
    %c64_11 = arith.constant 64 : index
    %13 = vector.load %arg13[%c16, %c64_11] : memref<32x192xf32, #tpu.memory_space<vmem>>, vector<16x64xf32>
    tpu.vector_store %arg13[%c16, %c64_11], %12 {strides = array<i32>} : memref<32x192xf32, #tpu.memory_space<vmem>>, vector<16x64xf32>,
    %14 = vector.extract_strided_slice %4 {offsets = [16, 0], sizes = [15, 64], strides = [1, 1]} : vector<32x64xf32> to vector<15x64xf32>
    %c17 = arith.constant 17 : index
    %c0_12 = arith.constant 0 : index
    %15 = vector.load %arg13[%c17, %c0_12] : memref<32x192xf32, #tpu.memory_space<vmem>>, vector<15x64xf32>
    tpu.vector_store %arg13[%c17, %c0_12], %14 {strides = array<i32>} : memref<32x192xf32, #tpu.memory_space<vmem>>, vector<15x64xf32>,
    %16 = vector.extract_strided_slice %4 {offsets = [17, 0], sizes = [15, 64], strides = [1, 1]} : vector<32x64xf32> to vector<15x64xf32>
    %c16_13 = arith.constant 16 : index
    %c128_14 = arith.constant 128 : index
    %17 = vector.load %arg13[%c16_13, %c128_14] : memref<32x192xf32, #tpu.memory_space<vmem>>, vector<15x64xf32>
    tpu.vector_store %arg13[%c16_13, %c128_14], %16 {strides = array<i32>} : memref<32x192xf32, #tpu.memory_space<vmem>>, vector<15x64xf32>,
    %c0_15 = arith.constant 0 : index
    %c0_16 = arith.constant 0 : index
    %18 = vector.load %arg13[%c0_15, %c0_16] : memref<32x192xf32, #tpu.memory_space<vmem>>, vector<32x192xf32>
    %c0_17 = arith.constant 0 : index
    %c0_18 = arith.constant 0 : index
    %19 = vector.load %arg2[%c0_17, %c0_18] : memref<192x128xf32, #tpu.memory_space<vmem>>, vector<192x128xf32>
    %cst_19 = arith.constant dense<0.000000e+00> : vector<32x128xf32>
    %20 = tpu.matmul %18, %19, %cst_19 {dimension_numbers = #tpu.dot_dimension_numbers<[1], [0], [0], [1], [0, 0, 1, 1], [], []>, precision = #tpu.contract_precision<fp32>} : vector<32x192xf32>, vector<192x128xf32>, vector<32x128xf32> -> vector<32x128xf32>
    %21 = vector.broadcast %5 : vector<1x128xf32> to vector<32x128xf32>
    %22 = arith.addf %20, %21 : vector<32x128xf32>
    %cst_20 = arith.constant 0.000000e+00 : f32
    %23 = vector.broadcast %cst_20 : f32 to vector<32x128xf32>
    %24 = arith.maximumf %22, %23 : vector<32x128xf32>
    %c1_21 = arith.constant 1 : index
    %c0_22 = arith.constant 0 : index
    %25 = vector.load %arg7[%c1_21, %c0_22] : memref<5x128xf32, #tpu.memory_space<vmem>>, vector<1x128xf32>
    %26 = vector.extract_strided_slice %24 {offsets = [0, 0], sizes = [16, 128], strides = [1, 1]} : vector<32x128xf32> to vector<16x128xf32>
    %c0_23 = arith.constant 0 : index
    %c128_24 = arith.constant 128 : index
    %27 = vector.load %arg12[%c0_23, %c128_24] : memref<32x384xf32, #tpu.memory_space<vmem>>, vector<16x128xf32>
    tpu.vector_store %arg12[%c0_23, %c128_24], %26 {strides = array<i32>} : memref<32x384xf32, #tpu.memory_space<vmem>>, vector<16x128xf32>,
    %28 = vector.extract_strided_slice %24 {offsets = [0, 0], sizes = [15, 128], strides = [1, 1]} : vector<32x128xf32> to vector<15x128xf32>
    %c1_25 = arith.constant 1 : index
    %c0_26 = arith.constant 0 : index
    %29 = vector.load %arg12[%c1_25, %c0_26] : memref<32x384xf32, #tpu.memory_space<vmem>>, vector<15x128xf32>
    tpu.vector_store %arg12[%c1_25, %c0_26], %28 {strides = array<i32>} : memref<32x384xf32, #tpu.memory_space<vmem>>, vector<15x128xf32>,
    %30 = vector.extract_strided_slice %24 {offsets = [1, 0], sizes = [15, 128], strides = [1, 1]} : vector<32x128xf32> to vector<15x128xf32>
    %c0_27 = arith.constant 0 : index
    %c256 = arith.constant 256 : index
    %31 = vector.load %arg12[%c0_27, %c256] : memref<32x384xf32, #tpu.memory_space<vmem>>, vector<15x128xf32>
    tpu.vector_store %arg12[%c0_27, %c256], %30 {strides = array<i32>} : memref<32x384xf32, #tpu.memory_space<vmem>>, vector<15x128xf32>,
    %32 = vector.extract_strided_slice %24 {offsets = [16, 0], sizes = [16, 128], strides = [1, 1]} : vector<32x128xf32> to vector<16x128xf32>
    %c16_28 = arith.constant 16 : index
    %c128_29 = arith.constant 128 : index
    %33 = vector.load %arg12[%c16_28, %c128_29] : memref<32x384xf32, #tpu.memory_space<vmem>>, vector<16x128xf32>
    tpu.vector_store %arg12[%c16_28, %c128_29], %32 {strides = array<i32>} : memref<32x384xf32, #tpu.memory_space<vmem>>, vector<16x128xf32>,
    %34 = vector.extract_strided_slice %24 {offsets = [16, 0], sizes = [15, 128], strides = [1, 1]} : vector<32x128xf32> to vector<15x128xf32>
    %c17_30 = arith.constant 17 : index
    %c0_31 = arith.constant 0 : index
    %35 = vector.load %arg12[%c17_30, %c0_31] : memref<32x384xf32, #tpu.memory_space<vmem>>, vector<15x128xf32>
    tpu.vector_store %arg12[%c17_30, %c0_31], %34 {strides = array<i32>} : memref<32x384xf32, #tpu.memory_space<vmem>>, vector<15x128xf32>,
    %36 = vector.extract_strided_slice %24 {offsets = [17, 0], sizes = [15, 128], strides = [1, 1]} : vector<32x128xf32> to vector<15x128xf32>
    %c16_32 = arith.constant 16 : index
    %c256_33 = arith.constant 256 : index
    %37 = vector.load %arg12[%c16_32, %c256_33] : memref<32x384xf32, #tpu.memory_space<vmem>>, vector<15x128xf32>
    tpu.vector_store %arg12[%c16_32, %c256_33], %36 {strides = array<i32>} : memref<32x384xf32, #tpu.memory_space<vmem>>, vector<15x128xf32>,
    %c0_34 = arith.constant 0 : index
    %c0_35 = arith.constant 0 : index
    %38 = vector.load %arg12[%c0_34, %c0_35] : memref<32x384xf32, #tpu.memory_space<vmem>>, vector<32x384xf32>
    %c0_36 = arith.constant 0 : index
    %c0_37 = arith.constant 0 : index
    %39 = vector.load %arg3[%c0_36, %c0_37] : memref<384x128xf32, #tpu.memory_space<vmem>>, vector<384x128xf32>
    %cst_38 = arith.constant dense<0.000000e+00> : vector<32x128xf32>
    %40 = tpu.matmul %38, %39, %cst_38 {dimension_numbers = #tpu.dot_dimension_numbers<[1], [0], [0], [1], [0, 0, 1, 1], [], []>, precision = #tpu.contract_precision<fp32>} : vector<32x384xf32>, vector<384x128xf32>, vector<32x128xf32> -> vector<32x128xf32>
    %41 = vector.broadcast %25 : vector<1x128xf32> to vector<32x128xf32>
    %42 = arith.addf %40, %41 : vector<32x128xf32>
    %cst_39 = arith.constant 0.000000e+00 : f32
    %43 = vector.broadcast %cst_39 : f32 to vector<32x128xf32>
    %44 = arith.maximumf %42, %43 : vector<32x128xf32>
    %c0_40 = arith.constant 0 : index
    %c0_41 = arith.constant 0 : index
    %45 = vector.load %arg4[%c0_40, %c0_41] : memref<64x128xf32, #tpu.memory_space<vmem>>, vector<64x128xf32>
    %cst_42 = arith.constant dense<0.000000e+00> : vector<32x128xf32>
    %46 = tpu.matmul %4, %45, %cst_42 {dimension_numbers = #tpu.dot_dimension_numbers<[1], [0], [0], [1], [0, 0, 1, 1], [], []>, precision = #tpu.contract_precision<fp32>} : vector<32x64xf32>, vector<64x128xf32>, vector<32x128xf32> -> vector<32x128xf32>
    %c2 = arith.constant 2 : index
    %c0_43 = arith.constant 0 : index
    %47 = vector.load %arg7[%c2, %c0_43] : memref<5x128xf32, #tpu.memory_space<vmem>>, vector<1x128xf32>
    %48 = vector.broadcast %47 : vector<1x128xf32> to vector<32x128xf32>
    %49 = arith.addf %46, %48 : vector<32x128xf32>
    %50 = arith.addf %44, %49 : vector<32x128xf32>
    %c3 = arith.constant 3 : index
    %c0_44 = arith.constant 0 : index
    %51 = vector.load %arg7[%c3, %c0_44] : memref<5x128xf32, #tpu.memory_space<vmem>>, vector<1x128xf32>
    %52 = vector.extract_strided_slice %50 {offsets = [0, 0], sizes = [16, 128], strides = [1, 1]} : vector<32x128xf32> to vector<16x128xf32>
    %c0_45 = arith.constant 0 : index
    %c128_46 = arith.constant 128 : index
    %53 = vector.load %arg12[%c0_45, %c128_46] : memref<32x384xf32, #tpu.memory_space<vmem>>, vector<16x128xf32>
    tpu.vector_store %arg12[%c0_45, %c128_46], %52 {strides = array<i32>} : memref<32x384xf32, #tpu.memory_space<vmem>>, vector<16x128xf32>,
    %54 = vector.extract_strided_slice %50 {offsets = [0, 0], sizes = [15, 128], strides = [1, 1]} : vector<32x128xf32> to vector<15x128xf32>
    %c1_47 = arith.constant 1 : index
    %c0_48 = arith.constant 0 : index
    %55 = vector.load %arg12[%c1_47, %c0_48] : memref<32x384xf32, #tpu.memory_space<vmem>>, vector<15x128xf32>
    tpu.vector_store %arg12[%c1_47, %c0_48], %54 {strides = array<i32>} : memref<32x384xf32, #tpu.memory_space<vmem>>, vector<15x128xf32>,
    %56 = vector.extract_strided_slice %50 {offsets = [1, 0], sizes = [15, 128], strides = [1, 1]} : vector<32x128xf32> to vector<15x128xf32>
    %c0_49 = arith.constant 0 : index
    %c256_50 = arith.constant 256 : index
    %57 = vector.load %arg12[%c0_49, %c256_50] : memref<32x384xf32, #tpu.memory_space<vmem>>, vector<15x128xf32>
    tpu.vector_store %arg12[%c0_49, %c256_50], %56 {strides = array<i32>} : memref<32x384xf32, #tpu.memory_space<vmem>>, vector<15x128xf32>,
    %58 = vector.extract_strided_slice %50 {offsets = [16, 0], sizes = [16, 128], strides = [1, 1]} : vector<32x128xf32> to vector<16x128xf32>
    %c16_51 = arith.constant 16 : index
    %c128_52 = arith.constant 128 : index
    %59 = vector.load %arg12[%c16_51, %c128_52] : memref<32x384xf32, #tpu.memory_space<vmem>>, vector<16x128xf32>
    tpu.vector_store %arg12[%c16_51, %c128_52], %58 {strides = array<i32>} : memref<32x384xf32, #tpu.memory_space<vmem>>, vector<16x128xf32>,
    %60 = vector.extract_strided_slice %50 {offsets = [16, 0], sizes = [15, 128], strides = [1, 1]} : vector<32x128xf32> to vector<15x128xf32>
    %c17_53 = arith.constant 17 : index
    %c0_54 = arith.constant 0 : index
    %61 = vector.load %arg12[%c17_53, %c0_54] : memref<32x384xf32, #tpu.memory_space<vmem>>, vector<15x128xf32>
    tpu.vector_store %arg12[%c17_53, %c0_54], %60 {strides = array<i32>} : memref<32x384xf32, #tpu.memory_space<vmem>>, vector<15x128xf32>,
    %62 = vector.extract_strided_slice %50 {offsets = [17, 0], sizes = [15, 128], strides = [1, 1]} : vector<32x128xf32> to vector<15x128xf32>
    %c16_55 = arith.constant 16 : index
    %c256_56 = arith.constant 256 : index
    %63 = vector.load %arg12[%c16_55, %c256_56] : memref<32x384xf32, #tpu.memory_space<vmem>>, vector<15x128xf32>
    tpu.vector_store %arg12[%c16_55, %c256_56], %62 {strides = array<i32>} : memref<32x384xf32, #tpu.memory_space<vmem>>, vector<15x128xf32>,
    %c0_57 = arith.constant 0 : index
    %c0_58 = arith.constant 0 : index
    %64 = vector.load %arg12[%c0_57, %c0_58] : memref<32x384xf32, #tpu.memory_space<vmem>>, vector<32x384xf32>
    %c0_59 = arith.constant 0 : index
    %c0_60 = arith.constant 0 : index
    %65 = vector.load %arg5[%c0_59, %c0_60] : memref<384x128xf32, #tpu.memory_space<vmem>>, vector<384x128xf32>
    %cst_61 = arith.constant dense<0.000000e+00> : vector<32x128xf32>
    %66 = tpu.matmul %64, %65, %cst_61 {dimension_numbers = #tpu.dot_dimension_numbers<[1], [0], [0], [1], [0, 0, 1, 1], [], []>, precision = #tpu.contract_precision<fp32>} : vector<32x384xf32>, vector<384x128xf32>, vector<32x128xf32> -> vector<32x128xf32>
    %67 = vector.broadcast %51 : vector<1x128xf32> to vector<32x128xf32>
    %68 = arith.addf %66, %67 : vector<32x128xf32>
    %cst_62 = arith.constant 0.000000e+00 : f32
    %69 = vector.broadcast %cst_62 : f32 to vector<32x128xf32>
    %70 = arith.maximumf %68, %69 : vector<32x128xf32>
    %c4 = arith.constant 4 : index
    %c0_63 = arith.constant 0 : index
    %71 = vector.load %arg7[%c4, %c0_63] : memref<5x128xf32, #tpu.memory_space<vmem>>, vector<1x128xf32>
    %72 = vector.extract_strided_slice %70 {offsets = [0, 0], sizes = [16, 128], strides = [1, 1]} : vector<32x128xf32> to vector<16x128xf32>
    %c0_64 = arith.constant 0 : index
    %c128_65 = arith.constant 128 : index
    %73 = vector.load %arg12[%c0_64, %c128_65] : memref<32x384xf32, #tpu.memory_space<vmem>>, vector<16x128xf32>
    tpu.vector_store %arg12[%c0_64, %c128_65], %72 {strides = array<i32>} : memref<32x384xf32, #tpu.memory_space<vmem>>, vector<16x128xf32>,
    %74 = vector.extract_strided_slice %70 {offsets = [0, 0], sizes = [15, 128], strides = [1, 1]} : vector<32x128xf32> to vector<15x128xf32>
    %c1_66 = arith.constant 1 : index
    %c0_67 = arith.constant 0 : index
    %75 = vector.load %arg12[%c1_66, %c0_67] : memref<32x384xf32, #tpu.memory_space<vmem>>, vector<15x128xf32>
    tpu.vector_store %arg12[%c1_66, %c0_67], %74 {strides = array<i32>} : memref<32x384xf32, #tpu.memory_space<vmem>>, vector<15x128xf32>,
    %76 = vector.extract_strided_slice %70 {offsets = [1, 0], sizes = [15, 128], strides = [1, 1]} : vector<32x128xf32> to vector<15x128xf32>
    %c0_68 = arith.constant 0 : index
    %c256_69 = arith.constant 256 : index
    %77 = vector.load %arg12[%c0_68, %c256_69] : memref<32x384xf32, #tpu.memory_space<vmem>>, vector<15x128xf32>
    tpu.vector_store %arg12[%c0_68, %c256_69], %76 {strides = array<i32>} : memref<32x384xf32, #tpu.memory_space<vmem>>, vector<15x128xf32>,
    %78 = vector.extract_strided_slice %70 {offsets = [16, 0], sizes = [16, 128], strides = [1, 1]} : vector<32x128xf32> to vector<16x128xf32>
    %c16_70 = arith.constant 16 : index
    %c128_71 = arith.constant 128 : index
    %79 = vector.load %arg12[%c16_70, %c128_71] : memref<32x384xf32, #tpu.memory_space<vmem>>, vector<16x128xf32>
    tpu.vector_store %arg12[%c16_70, %c128_71], %78 {strides = array<i32>} : memref<32x384xf32, #tpu.memory_space<vmem>>, vector<16x128xf32>,
    %80 = vector.extract_strided_slice %70 {offsets = [16, 0], sizes = [15, 128], strides = [1, 1]} : vector<32x128xf32> to vector<15x128xf32>
    %c17_72 = arith.constant 17 : index
    %c0_73 = arith.constant 0 : index
    %81 = vector.load %arg12[%c17_72, %c0_73] : memref<32x384xf32, #tpu.memory_space<vmem>>, vector<15x128xf32>
    tpu.vector_store %arg12[%c17_72, %c0_73], %80 {strides = array<i32>} : memref<32x384xf32, #tpu.memory_space<vmem>>, vector<15x128xf32>,
    %82 = vector.extract_strided_slice %70 {offsets = [17, 0], sizes = [15, 128], strides = [1, 1]} : vector<32x128xf32> to vector<15x128xf32>
    %c16_74 = arith.constant 16 : index
    %c256_75 = arith.constant 256 : index
    %83 = vector.load %arg12[%c16_74, %c256_75] : memref<32x384xf32, #tpu.memory_space<vmem>>, vector<15x128xf32>
    tpu.vector_store %arg12[%c16_74, %c256_75], %82 {strides = array<i32>} : memref<32x384xf32, #tpu.memory_space<vmem>>, vector<15x128xf32>,
    %c0_76 = arith.constant 0 : index
    %c0_77 = arith.constant 0 : index
    %84 = vector.load %arg12[%c0_76, %c0_77] : memref<32x384xf32, #tpu.memory_space<vmem>>, vector<32x384xf32>
    %c0_78 = arith.constant 0 : index
    %c0_79 = arith.constant 0 : index
    %85 = vector.load %arg6[%c0_78, %c0_79] : memref<384x128xf32, #tpu.memory_space<vmem>>, vector<384x128xf32>
    %cst_80 = arith.constant dense<0.000000e+00> : vector<32x128xf32>
    %86 = tpu.matmul %84, %85, %cst_80 {dimension_numbers = #tpu.dot_dimension_numbers<[1], [0], [0], [1], [0, 0, 1, 1], [], []>, precision = #tpu.contract_precision<fp32>} : vector<32x384xf32>, vector<384x128xf32>, vector<32x128xf32> -> vector<32x128xf32>
    %87 = vector.broadcast %71 : vector<1x128xf32> to vector<32x128xf32>
    %88 = arith.addf %86, %87 : vector<32x128xf32>
    %cst_81 = arith.constant 0.000000e+00 : f32
    %89 = vector.broadcast %cst_81 : f32 to vector<32x128xf32>
    %90 = arith.maximumf %88, %89 : vector<32x128xf32>
    %91 = arith.addf %90, %50 : vector<32x128xf32>
    %c0_82 = arith.constant 0 : index
    %c0_83 = arith.constant 0 : index
    %92 = vector.load %arg11[%c0_82, %c0_83] : memref<32x128xf32, #tpu.memory_space<vmem>>, vector<32x128xf32>
    tpu.vector_store %arg11[%c0_82, %c0_83], %91 {strides = array<i32>} : memref<32x128xf32, #tpu.memory_space<vmem>>, vector<32x128xf32>,
    %c0_84 = arith.constant 0 : index
    %c0_85 = arith.constant 0 : index
    %93 = vector.load %arg8[%c0_84, %c0_85] : memref<8x16xf32, #tpu.memory_space<vmem>>, vector<8x16xf32>
    %94 = vector.extract_strided_slice %91 {offsets = [0, 0], sizes = [16, 128], strides = [1, 1]} : vector<32x128xf32> to vector<16x128xf32>
    %cst_86 = arith.constant dense<0.000000e+00> : vector<8x128xf32>
    %95 = tpu.matmul %93, %94, %cst_86 {dimension_numbers = #tpu.dot_dimension_numbers<[1], [0], [0], [1], [0, 0, 1, 1], [], []>, precision = #tpu.contract_precision<fp32>} : vector<8x16xf32>, vector<16x128xf32>, vector<8x128xf32> -> vector<8x128xf32>
    %c0_87 = arith.constant 0 : index
    %c0_88 = arith.constant 0 : index
    %96 = vector.load %arg9[%c0_87, %c0_88] : memref<128x64xf32, #tpu.memory_space<vmem>>, vector<128x64xf32>
    %cst_89 = arith.constant dense<0.000000e+00> : vector<8x64xf32>
    %97 = tpu.matmul %95, %96, %cst_89 {dimension_numbers = #tpu.dot_dimension_numbers<[1], [0], [0], [1], [0, 0, 1, 1], [], []>, precision = #tpu.contract_precision<fp32>} : vector<8x128xf32>, vector<128x64xf32>, vector<8x64xf32> -> vector<8x64xf32>
    %c0_90 = arith.constant 0 : index
    %c0_91 = arith.constant 0 : index
    %98 = vector.load %arg10[%c0_90, %c0_91] : memref<8x128xf32, #tpu.memory_space<vmem>>, vector<8x64xf32>
    tpu.vector_store %arg10[%c0_90, %c0_91], %97 {strides = array<i32>} : memref<8x128xf32, #tpu.memory_space<vmem>>, vector<8x64xf32>,
    %c0_92 = arith.constant 0 : index
    %c0_93 = arith.constant 0 : index
    %99 = vector.load %arg8[%c0_92, %c0_93] : memref<8x16xf32, #tpu.memory_space<vmem>>, vector<8x16xf32>
    %100 = vector.extract_strided_slice %91 {offsets = [16, 0], sizes = [16, 128], strides = [1, 1]} : vector<32x128xf32> to vector<16x128xf32>
    %cst_94 = arith.constant dense<0.000000e+00> : vector<8x128xf32>
    %101 = tpu.matmul %99, %100, %cst_94 {dimension_numbers = #tpu.dot_dimension_numbers<[1], [0], [0], [1], [0, 0, 1, 1], [], []>, precision = #tpu.contract_precision<fp32>} : vector<8x16xf32>, vector<16x128xf32>, vector<8x128xf32> -> vector<8x128xf32>
    %c0_95 = arith.constant 0 : index
    %c0_96 = arith.constant 0 : index
    %102 = vector.load %arg9[%c0_95, %c0_96] : memref<128x64xf32, #tpu.memory_space<vmem>>, vector<128x64xf32>
    %cst_97 = arith.constant dense<0.000000e+00> : vector<8x64xf32>
    %103 = tpu.matmul %101, %102, %cst_97 {dimension_numbers = #tpu.dot_dimension_numbers<[1], [0], [0], [1], [0, 0, 1, 1], [], []>, precision = #tpu.contract_precision<fp32>} : vector<8x128xf32>, vector<128x64xf32>, vector<8x64xf32> -> vector<8x64xf32>
    %c0_98 = arith.constant 0 : index
    %c64_99 = arith.constant 64 : index
    %104 = vector.load %arg10[%c0_98, %c64_99] : memref<8x128xf32, #tpu.memory_space<vmem>>, vector<8x64xf32>
    tpu.vector_store %arg10[%c0_98, %c64_99], %103 {strides = array<i32>} : memref<8x128xf32, #tpu.memory_space<vmem>>, vector<8x64xf32>,
    return
  }
  func.func @transform_0(%arg0: i32) -> (i32, i32) {
    %c0_i32 = arith.constant 0 : i32
    %c0_i32_0 = arith.constant 0 : i32
    %c0_i32_1 = arith.constant 0 : i32
    return %c0_i32, %c0_i32_0 : i32, i32
  }
  func.func @transform_1(%arg0: i32) -> (i32, i32) {
    %c0_i32 = arith.constant 0 : i32
    %c0_i32_0 = arith.constant 0 : i32
    %c0_i32_1 = arith.constant 0 : i32
    return %c0_i32, %c0_i32_0 : i32, i32
  }
  func.func @transform_2(%arg0: i32) -> (i32, i32) {
    %c0_i32 = arith.constant 0 : i32
    %c0_i32_0 = arith.constant 0 : i32
    %c0_i32_1 = arith.constant 0 : i32
    return %c0_i32, %c0_i32_0 : i32, i32
  }
  func.func @transform_3(%arg0: i32) -> (i32, i32) {
    %c0_i32 = arith.constant 0 : i32
    %c0_i32_0 = arith.constant 0 : i32
    %c0_i32_1 = arith.constant 0 : i32
    return %c0_i32, %c0_i32_0 : i32, i32
  }
  func.func @transform_4(%arg0: i32) -> (i32, i32) {
    %c0_i32 = arith.constant 0 : i32
    %c0_i32_0 = arith.constant 0 : i32
    %c0_i32_1 = arith.constant 0 : i32
    return %c0_i32, %c0_i32_0 : i32, i32
  }
  func.func @transform_5(%arg0: i32) -> (i32, i32) {
    %c0_i32 = arith.constant 0 : i32
    %c0_i32_0 = arith.constant 0 : i32
    %c0_i32_1 = arith.constant 0 : i32
    return %c0_i32, %c0_i32_0 : i32, i32
  }
  func.func @transform_6(%arg0: i32) -> (i32, i32) {
    %c0_i32 = arith.constant 0 : i32
    %c0_i32_0 = arith.constant 0 : i32
    %c0_i32_1 = arith.constant 0 : i32
    return %c0_i32, %c0_i32_0 : i32, i32
  }
  func.func @transform_7(%arg0: i32) -> (i32, i32) {
    %c0_i32 = arith.constant 0 : i32
    %c0_i32_0 = arith.constant 0 : i32
    %c0_i32_1 = arith.constant 0 : i32
    return %c0_i32, %c0_i32_0 : i32, i32
  }
  func.func @transform_8(%arg0: i32) -> (i32, i32) {
    %c0_i32 = arith.constant 0 : i32
    %c0_i32_0 = arith.constant 0 : i32
    %c0_i32_1 = arith.constant 0 : i32
    return %c0_i32, %c0_i32_0 : i32, i32
  }
  func.func @transform_9(%arg0: i32) -> (i32, i32) {
    %c0_i32 = arith.constant 0 : i32
    %c0_i32_0 = arith.constant 0 : i32
    %c0_i32_1 = arith.constant 0 : i32
    return %c0_i32, %c0_i32_0 : i32, i32
  }
  func.func @transform_10(%arg0: i32) -> (i32, i32) {
    %c0_i32 = arith.constant 0 : i32
    %c0_i32_0 = arith.constant 0 : i32
    %c0_i32_1 = arith.constant 0 : i32
    return %c0_i32, %c0_i32_0 : i32, i32
  }
}

</mosaic_0001>

<bundles_post_ra>
// kernel: tpu_custom_call.1
= control target key start
LH: loop header
LB: loop body
LE: loop exit
PB: predicated region body
PF: predicated region fallthrough
CT: control target
= control target key end

     0   :  { %16 = vsyncpa [#allocation5], 0  ;;  %s19559_s0 = inlined_call_operand.hbm [shape: f32[32,64], index: 0, kind: input, shape index: {}]   ;;  %s19560_s1 = inlined_call_operand.vmem [shape: f32[192,128], index: 1, kind: input, shape index: {}]   ;;  %s19561_s2 = inlined_call_operand.hbm [shape: f32[384,128], index: 2, kind: input, shape index: {}]   ;;  %s19562_s3 = inlined_call_operand.hbm [shape: f32[64,128], index: 3, kind: input, shape index: {}]   ;;  %s19563_s4 = inlined_call_operand.hbm [shape: f32[384,128], index: 4, kind: input, shape index: {}]   ;;  %s19564_s5 = inlined_call_operand.hbm [shape: f32[384,128], index: 5, kind: input, shape index: {}]   ;;  %s19565_s6 = inlined_call_operand.vmem [shape: f32[5,128], index: 6, kind: input, shape index: {}]   ;;  %s19566_s7 = inlined_call_operand.vmem [shape: f32[8,16], index: 7, kind: input, shape index: {}]   ;;  %s19567_s8 = inlined_call_operand.vmem [shape: f32[128,64], index: 8, kind: input, shape index: {}]   ;;  %s19568_s9 = inlined_call_operand.hbm [shape: f32[8,128], index: 9, kind: output, shape index: {0}]   ;;  %s19569_s10 = inlined_call_operand.hbm [shape: f32[32,128], index: 10, kind: output, shape index: {1}]  }
   0x1   :  { %17 = vsyncpa [#allocation8], 0 }
   0x2   :  { %18 = vsyncpa [#allocation11], 0 }
   0x3   :  { %19 = vsyncpa [#allocation6], 0 }
   0x4   :  { %20 = vsyncpa [#allocation15], 0  ;;  %s14788_s13 = smov [#allocation7]   ;;  %s14789_s15 = smov [#allocation10]  }
   0x5   :  { %s40_s14 = sshll.u32 %s14788_s13, 4  ;;  %s64_s16 = sshll.u32 %s14789_s15, 4  ;;  %s41_s14 = int_to_ptr.vmem [resolvable:$true] %s40_s14  ;;  %s14856_s16 = int_to_ptr.vmem [resolvable:$true] %s64_s16 }
   0x6   :  { %s14624_s19 = scalar_lea.hbm %s19561_s2, 6144 }
   0x7   :  { %p14625_p0 = scmp.ne.s32.totalorder %s19561_s2, %s14624_s19  ;;  %p14628_p1 = scmp.lt.u32.totalorder %s14624_s19, %s19561_s2 }
   0x9   :  { %p14630_p2 = pnand %p14628_p1, %p14625_p0 }
   0xb   :  { %14633 = shalt.err (!%p14630_p2)
}
   0xc   :  { %s14634_s24 = scalar_lea.vmem %s41_s14, 6144  ;;  %p14639_p4 = scmp.lt.s32.totalorder %s41_s14, %s41_s14 }
   0xd   :  { %p14635_p3 = scmp.ne.s32.totalorder %s41_s14, %s14634_s24  ;;  %p14640_p5 = scmp.lt.s32.totalorder %s14634_s24, %s14634_s24 }
   0xf   :  { %p14641_p6 = por %p14640_p5, %p14639_p4 }
  0x11   :  { %p14642_p7 = pnand %p14641_p6, %p14635_p3 }
  0x13   :  { %14645 = shalt.err (!%p14642_p7)
}
  0x14   :  { %s14790_s25 = smov 128   ;;  %s14791_s26 = smov 8  }
  0x15   :  { %46 = dma.hbm_to_vmem [thread:$0]  %s19561_s2, 6144, %s41_s14, [#allocation8], %s14790_s25, %s14790_s25, %s14791_s26  }
  0x16   :  { %s14646_s11 = scalar_lea.hbm %s19563_s4, 6144 }
  0x17   :  { %p14647_p8 = scmp.ne.s32.totalorder %s19563_s4, %s14646_s11  ;;  %p14650_p9 = scmp.lt.u32.totalorder %s14646_s11, %s19563_s4 }
  0x19   :  { %p14652_p10 = pnand %p14650_p9, %p14647_p8 }
  0x1b   :  { %14655 = shalt.err (!%p14652_p10)
}
  0x1c   :  { %s14656_s18 = scalar_lea.vmem %s14856_s16, 6144  ;;  %p14661_p12 = scmp.lt.s32.totalorder %s14856_s16, %s14856_s16 }
  0x1d   :  { %p14657_p11 = scmp.ne.s32.totalorder %s14856_s16, %s14656_s18  ;;  %p14662_p13 = scmp.lt.s32.totalorder %s14656_s18, %s14656_s18 }
  0x1f   :  { %p14663_p0 = por %p14662_p13, %p14661_p12 }
  0x21   :  { %p14664_p1 = pnand %p14663_p0, %p14657_p11 }
  0x23   :  { %14667 = shalt.err (!%p14664_p1)
}
  0x24   :  { %70 = dma.hbm_to_vmem [thread:$0]  %s19563_s4, 6144, %s14856_s16, [#allocation11], %s14790_s25, %s14790_s25, %s14791_s26  }
  0x25   :  { %s14792_s19 = smov [#allocation4]   ;;  %s14793_s21 = smov [#allocation9]  }
  0x26   :  { %s26_s20 = sshll.u32 %s14792_s19, 4  ;;  %s52_s22 = sshll.u32 %s14793_s21, 4  ;;  %s27_s20 = int_to_ptr.vmem [resolvable:$true] %s26_s20  ;;  %s14893_s22 = int_to_ptr.vmem [resolvable:$true] %s52_s22 }
  0x27   :  { %s14668_s27 = scalar_lea.hbm %s19559_s0, 512 }
  0x28   :  { %p14669_p2 = scmp.ne.s32.totalorder %s19559_s0, %s14668_s27  ;;  %p14672_p3 = scmp.lt.u32.totalorder %s14668_s27, %s19559_s0 }
  0x2a   :  { %p14674_p4 = pnand %p14672_p3, %p14669_p2 }
  0x2c   :  { %14677 = shalt.err (!%p14674_p4)
}
  0x2d   :  { %s14678_s4 = scalar_lea.vmem %s27_s20, 512  ;;  %p14683_p6 = scmp.lt.s32.totalorder %s27_s20, %s27_s20 }
  0x2e   :  { %p14679_p5 = scmp.ne.s32.totalorder %s27_s20, %s14678_s4  ;;  %p14684_p7 = scmp.lt.s32.totalorder %s14678_s4, %s14678_s4 }
  0x30   :  { %p14685_p8 = por %p14684_p7, %p14683_p6 }
  0x32   :  { %p14686_p9 = pnand %p14685_p8, %p14679_p5 }
  0x34   :  { %14689 = shalt.err (!%p14686_p9)
}
  0x35   :  { %32 = dma.hbm_to_vmem [thread:$0]  %s19559_s0, 512, %s27_s20, [#allocation5], %s14790_s25, %s14790_s25, %s14791_s26  }
  0x36   :  { %s14690_s17 = scalar_lea.hbm %s19562_s3, 1024 }
  0x37   :  { %p14691_p10 = scmp.ne.s32.totalorder %s19562_s3, %s14690_s17  ;;  %p14694_p11 = scmp.lt.u32.totalorder %s14690_s17, %s19562_s3 }
  0x39   :  { %p14696_p12 = pnand %p14694_p11, %p14691_p10 }
  0x3b   :  { %14699 = shalt.err (!%p14696_p12)
}
  0x3c   :  { %s14700_s21 = scalar_lea.vmem %s14893_s22, 1024  ;;  %p14705_p0 = scmp.lt.s32.totalorder %s14893_s22, %s14893_s22 }
  0x3d   :  { %p14701_p13 = scmp.ne.s32.totalorder %s14893_s22, %s14700_s21  ;;  %p14706_p1 = scmp.lt.s32.totalorder %s14700_s21, %s14700_s21 }
  0x3f   :  { %p14707_p2 = por %p14706_p1, %p14705_p0 }
  0x41   :  { %p14708_p3 = pnand %p14707_p2, %p14701_p13 }
  0x43   :  { %14711 = shalt.err (!%p14708_p3)
}
  0x44   :  { %58 = dma.hbm_to_vmem [thread:$0]  %s19562_s3, 1024, %s14893_s22, [#allocation8], %s14790_s25, %s14790_s25, %s14791_s26  }
  0x45   :  { %s14794_s23 = smov [#allocation12]   ;;  %s14712_s29 = scalar_lea.hbm %s19564_s5, 6144 }
  0x46   :  { %s76_s24 = sshll.u32 %s14794_s23, 4  ;;  %p14713_p4 = scmp.ne.s32.totalorder %s19564_s5, %s14712_s29  ;;  %s77_s24 = int_to_ptr.vmem [resolvable:$true] %s76_s24 }
  0x47   :  { %p14716_p5 = scmp.lt.u32.totalorder %s14712_s29, %s19564_s5 }
  0x49   :  { %p14718_p6 = pnand %p14716_p5, %p14713_p4 }
  0x4b   :  { %14721 = shalt.err (!%p14718_p6)
}
  0x4c   :  { %s14722_s12 = scalar_lea.vmem %s77_s24, 6144  ;;  %p14727_p8 = scmp.lt.s32.totalorder %s77_s24, %s77_s24 }
  0x4d   :  { %p14723_p7 = scmp.ne.s32.totalorder %s77_s24, %s14722_s12  ;;  %p14728_p9 = scmp.lt.s32.totalorder %s14722_s12, %s14722_s12 }
  0x4f   :  { %p14729_p10 = por %p14728_p9, %p14727_p8 }
  0x51   :  { %p14730_p11 = pnand %p14729_p10, %p14723_p7 }
  0x53   :  { %14733 = shalt.err (!%p14730_p11)
}
  0x54   :  { %82 = dma.hbm_to_vmem [thread:$0]  %s19564_s5, 6144, %s77_s24, [#allocation11], %s14790_s25, %s14790_s25, %s14791_s26  }
  0x55   :  { %14778 = dma.done.wait [#allocation5], 512  }
  0x56   :  { %14779 = vsyncadd [#allocation5], 4294966784 }
  0x57   :  { %14780 = dma.done.wait [#allocation8], 7168  }
  0x58   :  { %14781 = vsyncadd [#allocation8], 4294960128 }
  0x59   :  { %14782 = dma.done.wait [#allocation11], 12288  }
  0x5a   :  { %14783 = vsyncadd [#allocation11], 4294955008  ;;  %vm117_vm0 = vcmask 523264   ;;  %v19570_v0 = vmov 0.0   ;;  %v19598_v1 = vmov 0.0|0.0   ;;  %v14963_v2 = vld [vmem:[#allocation4] sm:$0xff] }
  0x5b   :  { %118 = vst.msk [vmem:[#allocation3 + $0x8] sm:$0xff] %vm117_vm0, %v19570_v0  ;;  %120 = vst.msk [vmem:[#allocation3 + $0x18] sm:$0xff] %vm117_vm0, %v19570_v0  ;;  %12716 = vmatprep.subr.bf16.mxu0 %v19598_v1  ;;  %12644 = vmatprep.subr.bf16.mxu1 %v19598_v1  ;;  %v14965_v3 = vld [vmem:[#allocation4 + $0x10] sm:$0xff]  ;;  %s14797_s5 = smov 64   ;;  %v151_v4 = vrot.slane %v14963_v2, 1  ;;  %v14970_v5 = vld [vmem:[#allocation4 + $0x8] sm:$0xff] }
  0x5c   :  { %104 = vst [vmem:[#allocation2] sm:$0xff] %v19570_v0  ;;  %109 = vst [vmem:[#allocation2 + $0x28] sm:$0xff] %v19570_v0  ;;  %132 = vrot.lane.b32.xlu0 %v14963_v2, %s14797_s5  ;;  %vm150_vm1 = vcmask 1046528   ;;  %vm157_vm2 = vcmask 522240   ;;  %161 = vrot.lane.b32.xlu1 %v14965_v3, %s14797_s5  ;;  %v152_v6 = vrot.slane %v14970_v5, 1  ;;  %v14975_v7 = vld [vmem:[#allocation4 + $0x18] sm:$0xff] }
  0x5d   :  { %110 = vst [vmem:[#allocation2 + $0x30] sm:$0xff] %v19570_v0  ;;  %115 = vst [vmem:[#allocation2 + $0x58] sm:$0xff] %v19570_v0  ;;  %v191_v8 = vld [vmem:[%s19560_s1] sm:$0xff]  ;;  %v192_v9 = vld [vmem:[%s19560_s1 + $0x8] sm:$0xff]  ;;  %v176_v10 = vrot.slane %v14965_v3, 1  ;;  %v177_v13 = vrot.slane %v14975_v7, 1 }
  0x5e   :  { %116 = vst [vmem:[#allocation3] sm:$0xff] %v19570_v0  ;;  %119 = vst [vmem:[#allocation3 + $0x10] sm:$0xff] %v19570_v0  ;;  %v193_v11 = vld [vmem:[%s19560_s1 + $0x10] sm:$0xff]  ;;  %v153_v12 = vsel %vm150_vm1, %v151_v4, %v152_v6  ;;  %v194_v14 = vld [vmem:[%s19560_s1 + $0x18] sm:$0xff]  ;;  %v232_v15 = vand.u32 4294901760, %v191_v8  ;;  %v235_v16 = vand.u32 4294901760, %v192_v9 }
  0x5f   :  { %121 = vst [vmem:[#allocation3 + $0x20] sm:$0xff] %v19570_v0  ;;  %122 = vst.msk [vmem:[#allocation3 + $0x28] sm:$0xff] %vm117_vm0, %v19570_v0  ;;  %v195_v17 = vld [vmem:[%s19560_s1 + $0x20] sm:$0xff]  ;;  %v178_v18 = vsel %vm150_vm1, %v176_v10, %v177_v13  ;;  %v238_v19 = vand.u32 4294901760, %v193_v11  ;;  %v241_v22 = vand.u32 4294901760, %v194_v14  ;;  %v196_v23 = vld [vmem:[%s19560_s1 + $0x28] sm:$0xff] }
  0x60   :  { %123 = vst [vmem:[#allocation3 + $0x30] sm:$0xff] %v19570_v0  ;;  %124 = vst.msk [vmem:[#allocation3 + $0x38] sm:$0xff] %vm117_vm0, %v19570_v0  ;;  %134 = vrot.lane.b32.xlu0 %v14970_v5, %s14797_s5  ;;  %163 = vrot.lane.b32.xlu1 %v14975_v7, %s14797_s5  ;;  %v15004_v20 = vsub.f32 %v191_v8, %v232_v15  ;;  %v15006_v21 = vsub.f32 %v192_v9, %v235_v16  ;;  %v197_v24 = vld [vmem:[%s19560_s1 + $0x30] sm:$0xff]  ;;  %v244_v27 = vand.u32 4294901760, %v195_v17  ;;  %v198_v28 = vld [vmem:[%s19560_s1 + $0x38] sm:$0xff]  ;;  %vm141_vm3 = vcmask 1040384  }
  0x61   :  { %158 = vst.msk [vmem:[#allocation3 + $0x18] sm:$0x7f] %vm157_vm2, %v152_v6  ;;  %182 = vst.msk [vmem:[#allocation3 + $0x38] sm:$0x7f] %vm157_vm2, %v177_v13  ;;  %v15014_v25 = vsub.f32 %v193_v11, %v238_v19  ;;  %v15016_v26 = vpack.c.bf16 %v235_v16, %v232_v15  ;;  %v15023_v30 = vsub.f32 %v194_v14, %v241_v22  ;;  %v247_v31 = vand.u32 4294901760, %v196_v23  ;;  %v199_v34 = vld [vmem:[%s19560_s1 + $0x40] sm:$0xff] }
  0x62   :  { %156 = vst.msk [vmem:[#allocation3 + $0x8] sm:$0xff] %vm117_vm0, %v153_v12  ;;  %181 = vst.msk [vmem:[#allocation3 + $0x28] sm:$0xff] %vm117_vm0, %v178_v18  ;;  %v12717_v29 = vpack.c.bf16 %v15006_v21, %v15004_v20  ;;  %v15026_v32 = vpack.c.bf16 %v241_v22, %v238_v19  ;;  %v250_v33 = vand.u32 4294901760, %v197_v24  ;;  %v200_v35 = vld [vmem:[%s19560_s1 + $0x48] sm:$0xff]  ;;  %v15036_v37 = vsub.f32 %v195_v17, %v244_v27  ;;  %v201_v39 = vld [vmem:[%s19560_s1 + $0x50] sm:$0xff] }
  0x63   :  { %12646 = vmatpush1.bf16.msra.mxu1 %v15016_v26  ;;  %v12720_v36 = vpack.c.bf16 %v15023_v30, %v15014_v25  ;;  %v253_v38 = vand.u32 4294901760, %v198_v28  ;;  %v202_v40 = vld [vmem:[%s19560_s1 + $0x58] sm:$0xff]  ;;  %v15046_v41 = vsub.f32 %v196_v23, %v247_v31  ;;  %v203_v42 = vld [vmem:[%s19560_s1 + $0x60] sm:$0xff]  ;;  %v204_v43 = vld [vmem:[%s19560_s1 + $0x68] sm:$0xff]  ;;  %v256_v44 = vand.u32 4294901760, %v199_v34 }
  0x64   :  { %12718 = vmatpush1.bf16.msra.mxu0 %v12717_v29  ;;  %12647 = vmatprep.subr.bf16.mxu1 %v19598_v1  ;;  %v259_v45 = vand.u32 4294901760, %v200_v35  ;;  %v205_v46 = vld [vmem:[%s19560_s1 + $0x70] sm:$0xff]  ;;  %v206_v47 = vld [vmem:[%s19560_s1 + $0x78] sm:$0xff]  ;;  %v15061_v48 = vsub.f32 %v197_v24, %v250_v33  ;;  %v15063_v49 = vpack.c.bf16 %v247_v31, %v244_v27  ;;  %v262_v50 = vand.u32 4294901760, %v201_v39  ;;  %v207_v59 = vld [vmem:[%s19560_s1 + $0x80] sm:$0xff] }
  0x65   :  { %12719 = vmatprep.subr.bf16.mxu0 %v19598_v1  ;;  %v265_v51 = vand.u32 4294901760, %v202_v40  ;;  %v12723_v52 = vpack.c.bf16 %v15046_v41, %v15036_v37  ;;  %v15067_v53 = vsub.f32 %v198_v28, %v253_v38  ;;  %v268_v54 = vand.u32 4294901760, %v203_v42  ;;  %v208_v4 = vld [vmem:[%s19560_s1 + $0x88] sm:$0xff]  ;;  %v15097_v11 = vld [vmem:[%s19560_s1 + $0x90] sm:$0xff]  ;;  %v15118_v28 = vld [vmem:[%s19560_s1 + $0x98] sm:$0xff] }
  0x66   :  { %v271_v55 = vand.u32 4294901760, %v204_v43  ;;  %v19577_v56 = vrot.slane %v14963_v2, 7  ;;  %v274_v57 = vand.u32 4294901760, %v205_v46  ;;  %v277_v58 = vand.u32 4294901760, %v206_v47 }
  0x67   :  { %12649 = vmatpush1.bf16.msra.mxu1 %v15026_v32  ;;  %v143_v60 = vrot.slane %v14970_v5, 7  ;;  %v15076_v61 = vsub.f32 %v199_v34, %v256_v44  ;;  %v15078_v62 = vsub.f32 %v200_v35, %v259_v45  ;;  %v15080_v63 = vpack.c.bf16 %v253_v38, %v250_v33 }
  0x68   :  { %12721 = vmatpush1.bf16.msra.mxu0 %v12720_v36  ;;  %12650 = vmatprep.subr.bf16.mxu1 %v19598_v1  ;;  %v15086_v6 = vsub.f32 %v201_v39, %v262_v50  ;;  %v15088_v8 = vsub.f32 %v202_v40, %v265_v51  ;;  %v15090_v9 = vsub.f32 %v203_v42, %v268_v54  ;;  %v280_v15 = vand.u32 4294901760, %v207_v59  ;;  %v15133_v36 = vld [vmem:[%s19560_s1 + $0xa0] sm:$0xff]  ;;  %v15145_v42 = vld [vmem:[%s19560_s1 + $0xa8] sm:$0xff] }
  0x69   :  { %12722 = vmatprep.subr.bf16.mxu0 %v19598_v1  ;;  %v15092_v10 = vsub.f32 %v204_v43, %v271_v55  ;;  %v12726_v12 = vpack.c.bf16 %v15067_v53, %v15061_v48  ;;  %v15102_v13 = vsub.f32 %v205_v46, %v274_v57  ;;  %v15104_v14 = vsub.f32 %v206_v47, %v277_v58  ;;  %v184_v22 = vld [vmem:[#allocation3 + $0x8] sm:$0xff] }
  0x6a   :  { %v19582_v16 = vrot.slane %v14965_v3, 7  ;;  %v170_v17 = vrot.slane %v14975_v7, 7  ;;  %v19578_v18 = vand.u32 4294901760, %v15004_v20  ;;  %v283_v19 = vand.u32 4294901760, %v208_v4 }
  0x6b   :  { %12652 = vmatpush1.bf16.msra.mxu1 %v15063_v49  ;;  %v19576_v23 = vand.u32 4294901760, %v15006_v21  ;;  %v12729_v24 = vpack.c.bf16 %v15078_v62, %v15076_v61  ;;  %v15113_v27 = vpack.c.bf16 %v259_v45, %v256_v44  ;;  %v286_v29 = vand.u32 4294901760, %v15097_v11 }
  0x6c   :  { %12724 = vmatpush1.bf16.msra.mxu0 %v12723_v52  ;;  %12653 = vmatprep.subr.bf16.mxu1 %v19598_v1  ;;  %v12732_v31 = vpack.c.bf16 %v15088_v8, %v15086_v6  ;;  %v12735_v33 = vpack.c.bf16 %v15092_v10, %v15090_v9  ;;  %v15126_v34 = vpack.c.bf16 %v265_v51, %v262_v50  ;;  %v220_v43 = vsel %vm117_vm0, %v184_v22, 0 }
  0x6d   :  { %12725 = vmatprep.subr.bf16.mxu0 %v19598_v1  ;;  %v15128_v35 = vpack.c.bf16 %v271_v55, %v268_v54  ;;  %v12738_v38 = vpack.c.bf16 %v15104_v14, %v15102_v13  ;;  %v15138_v39 = vsub.f32 %v207_v59, %v280_v15  ;;  %v15140_v40 = vpack.c.bf16 %v277_v58, %v274_v57 }
  0x6e   :  { %v15149_v44 = vsub.f32 %v208_v4, %v283_v19  ;;  %v289_v45 = vand.u32 4294901760, %v15118_v28  ;;  %v15152_v46 = vpack.c.bf16 %v283_v19, %v280_v15  ;;  %v15154_v47 = vand.u32 4294901760, %v220_v43 }
  0x6f   :  { %12655 = vmatpush1.bf16.msra.mxu1 %v15080_v63  ;;  %20053 = vst [vmem:[#allocation21_spill] sm:$0xff] %v15140_v40  ;;  %v15159_v50 = vsub.f32 %v15097_v11, %v286_v29  ;;  %v19591_v51 = vand.u32 4294901760, %v15133_v36  ;;  %v384_v52 = vsub.f32 %v15004_v20, %v19578_v18  ;;  %v391_v54 = vsub.f32 %v15006_v21, %v19576_v23 }
  0x70   :  { %12727 = vmatpush1.bf16.msra.mxu0 %v12726_v12  ;;  %12656 = vmatprep.subr.bf16.mxu1 %v19598_v1  ;;  %20054 = vst [vmem:[#allocation22_spill] sm:$0xff] %v15152_v46  ;;  %v15171_v57 = vsub.f32 %v220_v43, %v15154_v47  ;;  %v19572_v58 = vand.u32 4294901760, %v15014_v25  ;;  %v19573_v59 = vand.u32 4294901760, %v15023_v30  ;;  %v19574_v15 = vand.u32 4294901760, %v15036_v37 }
  0x71   :  { %12728 = vmatprep.subr.bf16.mxu0 %v19598_v1  ;;  %v385_v4 = vand.u32 4294901760, %v384_v52  ;;  %v392_v12 = vand.u32 4294901760, %v391_v54  ;;  %v19575_v19 = vand.u32 4294901760, %v15046_v41  ;;  %v19584_v23 = vand.u32 4294901760, %v15067_v53 }
  0x72   :  { %707 = vmatprep.mubr.f32.mxu0 %v15171_v57  ;;  %v19579_v22 = vand.u32 4294901760, %v15171_v57  ;;  %v398_v43 = vsub.f32 %v15014_v25, %v19572_v58  ;;  %v412_v54 = vsub.f32 %v15036_v37, %v19574_v15  ;;  %v15200_v58 = vsel %vm141_vm3, %v19577_v56, %v143_v60 }
  0x73   :  { %12658 = vmatpush1.bf16.msra.mxu1 %v15113_v27  ;;  %v15187_v52 = vpack.c.bf16 %v392_v12, %v385_v4  ;;  %v419_v0 = vsub.f32 %v15046_v41, %v19575_v19  ;;  %v19586_v15 = vand.u32 4294901760, %v15061_v48  ;;  %v19581_v60 = vand.u32 4294901760, %v15076_v61 }
  0x74   :  { %12730 = vmatpush1.bf16.msra.mxu0 %v12729_v24  ;;  %12659 = vmatprep.subr.bf16.mxu1 %v19598_v1  ;;  %v405_v24 = vsub.f32 %v15023_v30, %v19573_v59  ;;  %v322_v4 = vsub.f32 %v15171_v57, %v19579_v22  ;;  %v399_v12 = vand.u32 4294901760, %v398_v43  ;;  %v413_v19 = vand.u32 4294901760, %v412_v54 }
  0x75   :  { %12731 = vmatprep.subr.bf16.mxu0 %v19598_v1  ;;  %v420_v5 = vand.u32 4294901760, %v419_v0  ;;  %v426_v43 = vsub.f32 %v15061_v48, %v19586_v15  ;;  %v433_v54 = vsub.f32 %v15067_v53, %v19584_v23  ;;  %v19588_v55 = vand.u32 4294901760, %v15102_v13 }
  0x76   :  { %v406_v59 = vand.u32 4294901760, %v405_v24  ;;  %v323_v56 = vand.u32 4294901760, %v322_v4  ;;  %v19580_v24 = vand.u32 4294901760, %v15078_v62  ;;  %v19583_v4 = vand.u32 4294901760, %v15086_v6 }
  0x77   :  { %12661 = vmatpush1.bf16.msra.mxu1 %v15126_v34  ;;  %v15222_v0 = vpack.c.bf16 %v420_v5, %v413_v19  ;;  %v19585_v19 = vand.u32 4294901760, %v15088_v8  ;;  %v15241_v5 = vsel %vm141_vm3, %v19582_v16, %v170_v17  ;;  %v15302_v11 = vsub.f32 %v15133_v36, %v19591_v51 }
  0x78   :  { %12733 = vmatpush1.bf16.msra.mxu0 %v12732_v31  ;;  %12662 = vmatprep.subr.bf16.mxu1 %v19598_v1  ;;  %v15211_v18 = vpack.c.bf16 %v406_v59, %v399_v12  ;;  %v15220_v31 = vld [vmem:[%s19560_s1 + $0xb0] sm:$0xff]  ;;  %v440_v59 = vsub.f32 %v15076_v61, %v19581_v60  ;;  %v427_v12 = vand.u32 4294901760, %v426_v43  ;;  %v447_v22 = vsub.f32 %v15078_v62, %v19580_v24 }
  0x79   :  { %12734 = vmatprep.subr.bf16.mxu0 %v19598_v1  ;;  %324 = vmatprep.mubr.f32.mxu1 %v323_v56  ;;  %v434_v56 = vand.u32 4294901760, %v433_v54  ;;  %v454_v24 = vsub.f32 %v15086_v6, %v19583_v4  ;;  %v19590_v60 = vand.u32 4294901760, %v15090_v9  ;;  %v461_v16 = vsub.f32 %v15088_v8, %v19585_v19 }
  0x7a   :  { %v441_v43 = vand.u32 4294901760, %v440_v59  ;;  %v448_v17 = vand.u32 4294901760, %v447_v22  ;;  %v12741_v54 = vpack.c.bf16 %v15149_v44, %v15138_v39  ;;  %v15262_v59 = vld [vmem:[%s19560_s1 + $0xb8] sm:$0xff]  ;;  %vm138_vm4 = vcmask 1048064  }
  0x7b   :  { %12664 = vmatpush1.bf16.msra.mxu1 %v15128_v35  ;;  %v15264_v4 = vpack.c.bf16 %v434_v56, %v427_v12  ;;  %v455_v23 = vand.u32 4294901760, %v454_v24  ;;  %v468_v22 = vsub.f32 %v15090_v9, %v19590_v60  ;;  %v462_v15 = vand.u32 4294901760, %v461_v16 }
  0x7c   :  { %12736 = vmatpush1.bf16.msra.mxu0 %v12735_v33  ;;  %12665 = vmatprep.subr.bf16.mxu1 %v19598_v1  ;;  %v19587_v33 = vand.u32 4294901760, %v15092_v10  ;;  %v15270_v19 = vpack.c.bf16 %v448_v17, %v441_v43  ;;  %v15282_v24 = vsub.f32 %v15118_v28, %v289_v45  ;;  %v15289_v16 = vpack.c.bf16 %v289_v45, %v286_v29 }
  0x7d   :  { %12737 = vmatprep.subr.bf16.mxu0 %v19598_v1  ;;  %v469_v12 = vand.u32 4294901760, %v468_v22  ;;  %v19589_v56 = vand.u32 4294901760, %v15104_v14  ;;  %v15294_v43 = vpack.c.bf16 %v462_v15, %v455_v23  ;;  %v19594_v29 = vand.u32 4294901760, %v15138_v39 }
  0x7e   :  { %v475_v7 = vsub.f32 %v15092_v10, %v19587_v33  ;;  %20055 = vst [vmem:[#allocation23_spill] sm:$0xff] %v15289_v16  ;;  %v482_v33 = vsub.f32 %v15102_v13, %v19588_v55  ;;  %v19597_v45 = vand.u32 4294901760, %v15149_v44  ;;  %v20057_v23 = vand.u32 4294901760, %v15145_v42 }
  0x7f   :  { %12667 = vmatpush1.bf16.msra.mxu1 %v15140_v40  ;;  %20056 = vst [vmem:[#allocation24_spill] sm:$0xff] %v15294_v43  ;;  %v489_v28 = vsub.f32 %v15104_v14, %v19589_v56  ;;  %v509_v55 = vand.u32 4294901760, %v15159_v50  ;;  %v12744_v56 = vpack.c.bf16 %v15282_v24, %v15159_v50  ;;  %v496_v51 = vsub.f32 %v15138_v39, %v19594_v29 }
  0x80   :  { %12739 = vmatpush1.bf16.msra.mxu0 %v12738_v38  ;;  %12668 = vmatprep.subr.bf16.mxu1 %v19598_v1  ;;  %v301_v38 = vand.u32 4294901760, %v15262_v59  ;;  %v476_v17 = vand.u32 4294901760, %v475_v7  ;;  %v15313_v15 = vsub.f32 %v15145_v42, %v20057_v23  ;;  %v483_v22 = vand.u32 4294901760, %v482_v33 }
  0x81   :  { %12740 = vmatprep.subr.bf16.mxu0 %v19598_v1  ;;  %v490_v60 = vand.u32 4294901760, %v489_v28  ;;  %v503_v23 = vsub.f32 %v15149_v44, %v19597_v45  ;;  %v20059_v33 = vand.u32 4294901760, %v15220_v31  ;;  %v20060_v45 = vand.u32 4294901760, %v15133_v36 }
  0x82   :  { %v15315_v7 = vpack.c.bf16 %v476_v17, %v469_v12  ;;  %v510_v12 = vsub.f32 %v15159_v50, %v509_v55  ;;  %v516_v17 = vand.u32 4294901760, %v15282_v24  ;;  %v543_v28 = vsub.f32 %v15262_v59, %v301_v38 }
  0x83   :  { %12670 = vmatpush1.bf16.msra.mxu1 %v15152_v46  ;;  %v15334_v46 = vpack.c.bf16 %v490_v60, %v483_v22  ;;  %v504_v29 = vand.u32 4294901760, %v503_v23  ;;  %v12747_v40 = vpack.c.bf16 %v15313_v15, %v15302_v11  ;;  %v20062_v59 = vmov 0.0|0.0  }
  0x84   :  { %20058 = vst [vmem:[#allocation25_spill] sm:$0xff] %v15315_v7  ;;  %12742 = vmatpush1.bf16.msra.mxu0 %v12741_v54  ;;  %12671 = vmatprep.subr.bf16.mxu1 %v19598_v1  ;;  %v536_v54 = vsub.f32 %v15220_v31, %v20059_v33  ;;  %v497_v7 = vand.u32 4294901760, %v496_v51  ;;  %v511_v50 = vand.u32 4294901760, %v510_v12  ;;  %v517_v43 = vsub.f32 %v15282_v24, %v516_v17 }
  0x85   :  { %12743 = vmatprep.subr.bf16.mxu0 %v19598_v1  ;;  %v20061_v1 = vand.u32 4294901760, %v15145_v42  ;;  %v523_v51 = vand.u32 4294901760, %v15302_v11  ;;  %v530_v22 = vand.u32 4294901760, %v15313_v15  ;;  %v20064_v42 = vand.u32 4294901760, %v15004_v20 }
  0x86   :  { %v15347_v60 = vpack.c.bf16 %v504_v29, %v497_v7  ;;  %v537_v23 = vand.u32 4294901760, %v536_v54  ;;  %v518_v36 = vand.u32 4294901760, %v517_v43  ;;  %v544_v7 = vand.u32 4294901760, %v543_v28 }
  0x87   :  { %12673 = vmatpush1.bf16.msra.mxu1 %v15289_v16  ;;  %v15343_v33 = vpack.c.bf16 %v20061_v1, %v20060_v45  ;;  %v20065_v1 = vand.u32 4294901760, %v15006_v21  ;;  %v524_v24 = vsub.f32 %v15302_v11, %v523_v51  ;;  %v12750_v12 = vpack.c.bf16 %v543_v28, %v536_v54 }
  0x88   :  { %12745 = vmatpush1.bf16.msra.mxu0 %v12744_v56  ;;  %12674 = vmatprep.subr.bf16.mxu1 %v20062_v59  ;;  %20063 = vst [vmem:[#allocation26_spill] sm:$0xff] %v15347_v60  ;;  %v531_v56 = vsub.f32 %v15313_v15, %v530_v22  ;;  %v538_v29 = vsub.f32 %v536_v54, %v537_v23  ;;  %v20066_v60 = vand.u32 4294901760, %v15220_v31  ;;  %v20067_v15 = vand.u32 4294901760, %v15014_v25 }
  0x89   :  { %12746 = vmatprep.subr.bf16.mxu0 %v20062_v59  ;;  %v15356_v45 = vpack.c.bf16 %v20065_v1, %v20064_v42  ;;  %v15365_v43 = vpack.c.bf16 %v518_v36, %v511_v50  ;;  %v525_v20 = vand.u32 4294901760, %v524_v24  ;;  %v545_v11 = vsub.f32 %v543_v28, %v544_v7 }
  0x8a   :  { %v15363_v16 = vpack.c.bf16 %v301_v38, %v20066_v60  ;;  %v532_v21 = vand.u32 4294901760, %v531_v56  ;;  %v539_v42 = vand.u32 4294901760, %v538_v29  ;;  %v20068_v54 = vand.u32 4294901760, %v15023_v30 }
  0x8b   :  { %12676 = vmatpush1.bf16.msra.mxu1 %v15343_v33  ;;  %v546_v38 = vand.u32 4294901760, %v545_v11  ;;  %v20069_v28 = vand.u32 4294901760, %v15036_v37  ;;  %v20070_v25 = vand.u32 4294901760, %v15046_v41  ;;  %v20071_v30 = vand.u32 4294901760, %v15061_v48 }
  0x8c   :  { %12748 = vmatpush1.bf16.msra.mxu0 %v12747_v40  ;;  %12677 = vmatprep.subr.bf16.mxu1 %v20062_v59  ;;  %v15373_v1 = vpack.c.bf16 %v20068_v54, %v20067_v15  ;;  %v15375_v31 = vpack.c.bf16 %v532_v21, %v525_v20  ;;  %v20072_v60 = vand.u32 4294901760, %v15067_v53  ;;  %v20073_v24 = vand.u32 4294901760, %v15076_v61 }
  0x8d   :  { %12749 = vmatprep.subr.bf16.mxu0 %v20062_v59  ;;  %v15379_v40 = vpack.c.bf16 %v546_v38, %v539_v42  ;;  %v15386_v50 = vpack.c.bf16 %v20070_v25, %v20069_v28  ;;  %v20074_v56 = vand.u32 4294901760, %v15078_v62  ;;  %v20076_v37 = vand.u32 4294901760, %v15088_v8 }
  0x8e   :  { %v15392_v36 = vpack.c.bf16 %v20072_v60, %v20071_v30  ;;  %v20077_v41 = vand.u32 4294901760, %v15090_v9  ;;  %v20078_v48 = vand.u32 4294901760, %v15092_v10  ;;  %v20079_v53 = vand.u32 4294901760, %v15102_v13  ;;  %v186_v10 = vld [vmem:[#allocation3 + $0x18] sm:$0xff] }
  0x8f   :  { %12679 = vmatpush1.bf16.msra.mxu1 %v15363_v16  ;;  %v15398_v29 = vpack.c.bf16 %v20074_v56, %v20073_v24  ;;  %v20080_v61 = vand.u32 4294901760, %v15104_v14  ;;  %v20081_v62 = vand.u32 4294901760, %v15138_v39  ;;  %v15424_v8 = vpack.c.bf16 %v516_v17, %v509_v55  ;;  %v188_v14 = vld [vmem:[#allocation3 + $0x28] sm:$0xff] }
  0x90   :  { %12751 = vmatpush1.bf16.msra.mxu0 %v12750_v12  ;;  %12680 = vmatprep.subr.bf16.mxu1 %v20062_v59  ;;  %v20075_v12 = vand.u32 4294901760, %v15086_v6  ;;  %v15410_v21 = vpack.c.bf16 %v20078_v48, %v20077_v41  ;;  %v20082_v6 = vand.u32 4294901760, %v15149_v44  ;;  %v15426_v15 = vpack.c.bf16 %v530_v22, %v523_v51  ;;  %v190_v51 = vld [vmem:[#allocation3 + $0x38] sm:$0xff] }
  0x91   :  { %12752 = vmatprep.subr.bf16.mxu0 %v20062_v59  ;;  %v15416_v42 = vpack.c.bf16 %v20080_v61, %v20079_v53  ;;  %v15428_v9 = vpack.c.bf16 %v544_v7, %v537_v23  ;;  %v223_v13 = vsel %vm117_vm0, %v186_v10, 0  ;;  %vm147_vm5 = vcmask 523265  }
  0x92   :  { %v15404_v20 = vpack.c.bf16 %v20076_v37, %v20075_v12  ;;  %v15422_v11 = vpack.c.bf16 %v20082_v6, %v20081_v62  ;;  %v15433_v39 = vand.u32 4294901760, %v223_v13  ;;  %v20083_v44 = vrot.slane %v14963_v2, 7 }
  0x93   :  { %v20084_v55 = vrot.slane %v14965_v3, 7  ;;  %v226_v17 = vsel %vm117_vm0, %v188_v14, 0  ;;  %v229_v2 = vsel %vm117_vm0, %v190_v51, 0  ;;  %vm14798_vm6 = vmmov 0  }
  0x94   :  { %v15443_v7 = vsub.f32 %v223_v13, %v15433_v39  ;;  %v15445_v28 = vand.u32 4294901760, %v226_v17  ;;  %v15456_v24 = vand.u32 4294901760, %v229_v2  ;;  %vm7576_vm7 = vcmask 130048  }
  0x96   :  { %v336_v25 = vand.u32 4294901760, %v15443_v7  ;;  %v15454_v30 = vsub.f32 %v226_v17, %v15445_v28  ;;  %v15473_v53 = vsub.f32 %v229_v2, %v15456_v24 }
  0x98   :  { %v337_v41 = vsub.f32 %v15443_v7, %v336_v25  ;;  %v351_v48 = vand.u32 4294901760, %v15454_v30  ;;  %v366_v17 = vand.u32 4294901760, %v15473_v53 }
  0xce   :  { %v133_v54 = vpop.permute.xlu0 %132  ;;  %v162_v38 = vpop.permute.xlu1 %161 }
  0xcf   :  { %139 = vst.msk [vmem:[#allocation3] sm:$0xff] %vm138_vm4, %v133_v54  ;;  %167 = vst.msk [vmem:[#allocation3 + $0x20] sm:$0xff] %vm138_vm4, %v162_v38 }
  0xd0   :  { %148 = vst.msk [vmem:[#allocation3] sm:$0xfe] %vm147_vm5, %v20083_v44  ;;  %174 = vst.msk [vmem:[#allocation3 + $0x20] sm:$0xfe] %vm147_vm5, %v20084_v55  ;;  %v338_v44 = vand.u32 4294901760, %v337_v41  ;;  %v352_v55 = vsub.f32 %v15454_v30, %v351_v48 }
  0xd2   :  { %v135_v22 = vpop.permute.xlu0 %134  ;;  %v164_v23 = vpop.permute.xlu1 %163 }
  0xd3   :  { %140 = vst.msk [vmem:[#allocation3 + $0x10] sm:$0xff] %vm138_vm4, %v135_v22  ;;  %168 = vst.msk [vmem:[#allocation3 + $0x30] sm:$0xff] %vm138_vm4, %v164_v23 }
  0xd4   :  { %149 = vst.msk [vmem:[#allocation3 + $0x10] sm:$0xff] %vm117_vm0, %v15200_v58  ;;  %175 = vst.msk [vmem:[#allocation3 + $0x30] sm:$0xff] %vm117_vm0, %v15241_v5 }
  0xd7   :  { %v183_v3 = vld [vmem:[#allocation3] sm:$0xff] }
  0xd8   :  { %v187_v60 = vld [vmem:[#allocation3 + $0x20] sm:$0xff]  ;;  %v15458_v56 = vand.u32 4294901760, %v183_v3 }
  0xd9   :  { %v15460_v12 = vand.u32 4294901760, %v187_v60 }
  0xda   :  { %v15463_v58 = vsub.f32 %v183_v3, %v15458_v56 }
  0xdb   :  { %v15466_v5 = vsub.f32 %v187_v60, %v15460_v12  ;;  %v185_v37 = vld [vmem:[#allocation3 + $0x10] sm:$0xff]  ;;  %v353_v60 = vand.u32 4294901760, %v352_v55 }
  0xdc   :  { %v189_v61 = vld [vmem:[#allocation3 + $0x30] sm:$0xff]  ;;  %710 = vmatmul.mubr.f32.vlgmr.msra.gmra.mrb[0].mxu0 %v15463_v58  ;;  %v327_v62 = vand.u32 4294901760, %v15463_v58  ;;  %v15477_v6 = vand.u32 4294901760, %v185_v37 }
  0xdd   :  { %v15479_v10 = vand.u32 4294901760, %v189_v61  ;;  %12754 = vmatpush1.bf16.msra.mxu0 %v15016_v26  ;;  %716 = vmatprep.mubr.f32.mxu0 %v15443_v7  ;;  %v357_v54 = vand.u32 4294901760, %v15466_v5 }
  0xde   :  { %12755 = vmatprep.subr.bf16.mxu0 %v20062_v59  ;;  %v328_v13 = vsub.f32 %v15463_v58, %v327_v62  ;;  %v15488_v14 = vsub.f32 %v185_v37, %v15477_v6  ;;  %v367_v37 = vsub.f32 %v15473_v53, %v366_v17 }
  0xdf   :  { %v15492_v38 = vsub.f32 %v189_v61, %v15479_v10  ;;  %v358_v2 = vsub.f32 %v15466_v5, %v357_v54 }
  0xe0   :  { %v329_v51 = vand.u32 4294901760, %v328_v13  ;;  %719 = vmatmul.mubr.f32.gmra.mrb[2].mxu0 %v15488_v14  ;;  %v342_v22 = vand.u32 4294901760, %v15488_v14  ;;  %v368_v13 = vand.u32 4294901760, %v367_v37 }
  0xe1   :  { %12757 = vmatpush1.bf16.msra.mxu0 %v15026_v32  ;;  %725 = vmatprep.mubr.f32.mxu0 %v15454_v30  ;;  %v372_v3 = vand.u32 4294901760, %v15492_v38  ;;  %v359_v61 = vand.u32 4294901760, %v358_v2 }
  0xe2   :  { %330 = vmatmul.mubr.f32.vlgmr.msra.gmra.mrb[0].mxu1 %v329_v51  ;;  %12758 = vmatprep.subr.bf16.mxu0 %v20062_v59  ;;  %v343_v23 = vsub.f32 %v15488_v14, %v342_v22  ;;  %v20091_v51 = vld [vmem:[#allocation26_spill] sm:$0xff] }
  0xe3   :  { %12682 = vmatpush1.bf16.msra.mxu1 %v15187_v52  ;;  %339 = vmatprep.mubr.f32.mxu1 %v338_v44  ;;  %v373_v52 = vsub.f32 %v15492_v38, %v372_v3  ;;  %v20085_v44 = vand.u32 4294901760, %v15171_v57  ;;  %v20087_v57 = vld [vmem:[#allocation21_spill] sm:$0xff] }
  0xe4   :  { %12683 = vmatprep.subr.bf16.mxu1 %v20062_v59  ;;  %v344_v41 = vand.u32 4294901760, %v343_v23  ;;  %728 = vmatmul.mubr.f32.gmra.mrb[4].mxu0 %v15466_v5 }
  0xe5   :  { %12760 = vmatpush1.bf16.msra.mxu0 %v15063_v49  ;;  %734 = vmatprep.mubr.f32.mxu0 %v15473_v53  ;;  %v374_v55 = vand.u32 4294901760, %v373_v52  ;;  %v1219_v52 = vld [vmem:[#allocation7 + $0x48] sm:$0xff] }
  0xe6   :  { %12761 = vmatprep.subr.bf16.mxu0 %v20062_v59  ;;  %345 = vmatmul.mubr.f32.gmra.mrb[2].mxu1 %v344_v41 }
  0xe7   :  { %12685 = vmatpush1.bf16.msra.mxu1 %v15211_v18  ;;  %354 = vmatprep.mubr.f32.mxu1 %v353_v60  ;;  %v20086_v18 = vld [vmem:[#allocation24_spill] sm:$0xff]  ;;  %v1235_v60 = vld [vmem:[#allocation7 + $0xc8] sm:$0xff] }
  0xe8   :  { %12686 = vmatprep.subr.bf16.mxu1 %v20062_v59  ;;  %737 = vmatmul.mubr.f32.gmra.mrb[6].mxu0 %v15492_v38  ;;  %v1217_v38 = vld [vmem:[#allocation7 + $0x38] sm:$0xff]  ;;  %v1338_v41 = vand.u32 4294901760, %v1235_v60 }
  0xe9   :  { %12763 = vmatpush1.bf16.msra.mxu0 %v15080_v63  ;;  %833 = vmatprep.mubr.f32.mxu0 %v20085_v44  ;;  %v1290_v44 = vand.u32 4294901760, %v1219_v52 }
  0xea   :  { %12764 = vmatprep.subr.bf16.mxu0 %v20062_v59  ;;  %360 = vmatmul.mubr.f32.gmra.mrb[4].mxu1 %v359_v61  ;;  %v1218_v61 = vld [vmem:[#allocation7 + $0x40] sm:$0xff] }
  0xeb   :  { %12688 = vmatpush1.bf16.msra.mxu1 %v15222_v0  ;;  %369 = vmatprep.mubr.f32.mxu1 %v368_v13  ;;  %v20088_v0 = vld [vmem:[#allocation25_spill] sm:$0xff]  ;;  %v1287_v13 = vand.u32 4294901760, %v1218_v61 }
  0xec   :  { %12689 = vmatprep.subr.bf16.mxu1 %v20062_v59 }
  0xed   :  { %12766 = vmatpush1.bf16.msra.mxu0 %v15113_v27 }
  0xee   :  { %12767 = vmatprep.subr.bf16.mxu0 %v20062_v59  ;;  %375 = vmatmul.mubr.f32.gmra.mrb[6].mxu1 %v374_v55 }
  0xef   :  { %12691 = vmatpush1.bf16.msra.mxu1 %v15264_v4  ;;  %565 = vmatprep.mubr.f32.mxu1 %v15154_v47  ;;  %v20089_v4 = vld [vmem:[#allocation22_spill] sm:$0xff] }
  0xf0   :  { %12692 = vmatprep.subr.bf16.mxu1 %v20062_v59 }
  0xf1   :  { %12769 = vmatpush1.bf16.msra.mxu0 %v15126_v34 }
  0xf2   :  { %12770 = vmatprep.subr.bf16.mxu0 %v20062_v59 }
  0xf3   :  { %12694 = vmatpush1.bf16.msra.mxu1 %v15270_v19  ;;  %v20090_v19 = vld [vmem:[#allocation23_spill] sm:$0xff] }
  0xf4   :  { %12695 = vmatprep.subr.bf16.mxu1 %v20062_v59 }
  0xf5   :  { %12772 = vmatpush1.bf16.msra.mxu0 %v15128_v35 }
  0xf6   :  { %12773 = vmatprep.subr.bf16.mxu0 %v20062_v59 }
  0xf7   :  { %12697 = vmatpush1.bf16.msra.mxu1 %v20086_v18 }
  0xf8   :  { %12698 = vmatprep.subr.bf16.mxu1 %v20062_v59 }
  0xf9   :  { %12775 = vmatpush1.bf16.msra.mxu0 %v20087_v57 }
  0xfa   :  { %12776 = vmatprep.subr.bf16.mxu0 %v20062_v59 }
  0xfb   :  { %12700 = vmatpush1.bf16.msra.mxu1 %v20088_v0 }
  0xfc   :  { %12701 = vmatprep.subr.bf16.mxu1 %v20062_v59 }
  0xfd   :  { %12778 = vmatpush1.bf16.msra.mxu0 %v20089_v4 }
  0xfe   :  { %12779 = vmatprep.subr.bf16.mxu0 %v20062_v59 }
  0xff   :  { %12703 = vmatpush1.bf16.msra.mxu1 %v15334_v46  ;;  %v1210_v46 = vld [vmem:[#allocation7] sm:$0xff] }
 0x100   :  { %12704 = vmatprep.subr.bf16.mxu1 %v20062_v59 }
 0x101   :  { %12781 = vmatpush1.bf16.msra.mxu0 %v20090_v19 }
 0x102   :  { %12782 = vmatprep.subr.bf16.mxu0 %v20062_v59 }
 0x103   :  { %12706 = vmatpush1.bf16.msra.mxu1 %v20091_v51  ;;  %v1237_v51 = vld [vmem:[#allocation7 + $0xd8] sm:$0xff] }
 0x104   :  { %12707 = vmatprep.subr.bf16.mxu1 %v20062_v59 }
 0x105   :  { %12784 = vmatpush1.bf16.msra.mxu0 %v15343_v33 }
 0x106   :  { %12785 = vmatprep.subr.bf16.mxu0 %v20062_v59 }
 0x107   :  { %12709 = vmatpush1.bf16.msra.mxu1 %v15365_v43  ;;  %v1229_v43 = vld [vmem:[#allocation7 + $0x98] sm:$0xff] }
 0x108   :  { %12710 = vmatprep.subr.bf16.mxu1 %v20062_v59 }
 0x109   :  { %12787 = vmatpush1.bf16.msra.mxu0 %v15363_v16 }
 0x10a   :  { %12788 = vmatprep.subr.bf16.mxu0 %v20062_v59 }
 0x10b   :  { %12712 = vmatpush1.bf16.msra.mxu1 %v15375_v31  ;;  %v1212_v31 = vld [vmem:[#allocation7 + $0x10] sm:$0xff] }
 0x10c   :  { %837 = vmatmul.mubr.f32.vlgmr.msra.gmra.mrb[0].mxu0 %v327_v62  ;;  %12713 = vmatprep.subr.bf16.mxu1 %v20062_v59  ;;  %v1232_v62 = vld [vmem:[#allocation7 + $0xb0] sm:$0xff] }
 0x10d   :  { %12790 = vmatpush1.bf16.msra.mxu0 %v15356_v45  ;;  %844 = vmatprep.mubr.f32.mxu0 %v336_v25  ;;  %v1231_v25 = vld [vmem:[#allocation7 + $0xa8] sm:$0xff] }
 0x10e   :  { %12791 = vmatprep.subr.bf16.mxu0 %v20062_v59 }
 0x10f   :  { %12715 = vmatpush1.bf16.msra.mxu1 %v15379_v40  ;;  %v1213_v40 = vld [vmem:[#allocation7 + $0x18] sm:$0xff] }
 0x110   :  { %848 = vmatmul.mubr.f32.gmra.mrb[2].mxu0 %v342_v22  ;;  %v1284_v22 = vand.u32 4294901760, %v1217_v38 }
 0x111   :  { %12793 = vmatpush1.bf16.msra.mxu0 %v15373_v1  ;;  %855 = vmatprep.mubr.f32.mxu0 %v351_v48 }
 0x112   :  { %567 = vmatmul.mubr.f32.vlgmr.msra.gmra.mrb[0].mxu1 %v15458_v56  ;;  %12794 = vmatprep.subr.bf16.mxu0 %v20062_v59 }
 0x113   :  { %572 = vmatprep.mubr.f32.mxu1 %v15433_v39 }
 0x114   :  { %859 = vmatmul.mubr.f32.gmra.mrb[4].mxu0 %v357_v54  ;;  %v1216_v54 = vld [vmem:[#allocation7 + $0x30] sm:$0xff] }
 0x115   :  { %12796 = vmatpush1.bf16.msra.mxu0 %v15386_v50  ;;  %866 = vmatprep.mubr.f32.mxu0 %v366_v17  ;;  %v1320_v50 = vand.u32 4294901760, %v1229_v43  ;;  %v1281_v17 = vand.u32 4294901760, %v1216_v54 }
 0x116   :  { %574 = vmatmul.mubr.f32.gmra.mrb[2].mxu1 %v15477_v6  ;;  %12797 = vmatprep.subr.bf16.mxu0 %v20062_v59 }
 0x117   :  { %579 = vmatprep.mubr.f32.mxu1 %v15445_v28  ;;  %v15685_v2 = vpack.c.bf16 %v1284_v22, %v1281_v17 }
 0x118   :  { %870 = vmatmul.mubr.f32.gmra.mrb[6].mxu0 %v372_v3  ;;  %v1234_v3 = vld [vmem:[#allocation7 + $0xc0] sm:$0xff] }
 0x119   :  { %12799 = vmatpush1.bf16.msra.mxu0 %v15392_v36  ;;  %1012 = vmatprep.mubr.f32.mxu0 %v15154_v47  ;;  %v1269_v36 = vand.u32 4294901760, %v1212_v31  ;;  %20099 = vst [vmem:[#allocation28_spill] sm:$0xff] %v15685_v2  ;;  %v1335_v37 = vand.u32 4294901760, %v1234_v3 }
 0x11a   :  { %581 = vmatmul.mubr.f32.gmra.mrb[4].mxu1 %v15460_v12  ;;  %12800 = vmatprep.subr.bf16.mxu0 %v20062_v59 }
 0x11b   :  { %586 = vmatprep.mubr.f32.mxu1 %v15456_v24  ;;  %v15689_v55 = vpack.c.bf16 %v1338_v41, %v1335_v37 }
 0x11d   :  { %12802 = vmatpush1.bf16.msra.mxu0 %v15398_v29  ;;  %v1272_v29 = vand.u32 4294901760, %v1213_v40  ;;  %20100 = vst [vmem:[#allocation29_spill] sm:$0xff] %v15689_v55 }
 0x11e   :  { %12803 = vmatprep.subr.bf16.mxu0 %v20062_v59  ;;  %588 = vmatmul.mubr.f32.gmra.mrb[6].mxu1 %v15479_v10 }
 0x11f   :  { %v15672_v7 = vsub.f32 %v1213_v40, %v1272_v29  ;;  %v1238_v40 = vld [vmem:[#allocation7 + $0xe0] sm:$0xff] }
 0x121   :  { %12805 = vmatpush1.bf16.msra.mxu0 %v15404_v20 }
 0x122   :  { %12806 = vmatprep.subr.bf16.mxu0 %v20062_v59 }
 0x125   :  { %12808 = vmatpush1.bf16.msra.mxu0 %v15410_v21 }
 0x126   :  { %12809 = vmatprep.subr.bf16.mxu0 %v20062_v59 }
 0x129   :  { %12811 = vmatpush1.bf16.msra.mxu0 %v15416_v42 }
 0x12a   :  { %12812 = vmatprep.subr.bf16.mxu0 %v20062_v59 }
 0x12d   :  { %12814 = vmatpush1.bf16.msra.mxu0 %v15422_v11 }
 0x12e   :  { %12815 = vmatprep.subr.bf16.mxu0 %v20062_v59 }
 0x131   :  { %12817 = vmatpush1.bf16.msra.mxu0 %v15424_v8 }
 0x132   :  { %12818 = vmatprep.subr.bf16.mxu0 %v20062_v59 }
 0x135   :  { %12820 = vmatpush1.bf16.msra.mxu0 %v15426_v15  ;;  %v15665_v15 = vsub.f32 %v1229_v43, %v1320_v50 }
 0x136   :  { %12821 = vmatprep.subr.bf16.mxu0 %v20062_v59 }
 0x139   :  { %12823 = vmatpush1.bf16.msra.mxu0 %v15428_v9  ;;  %v15667_v9 = vsub.f32 %v1212_v31, %v1269_v36  ;;  %v15711_v31 = vsub.f32 %v1217_v38, %v1284_v22  ;;  %v1224_v22 = vld [vmem:[#allocation7 + $0x70] sm:$0xff] }
 0x13a   :  { %12824 = vmatprep.subr.bf16.mxu0 %v20062_v59 }
 0x13c   :  { %1014 = vmatmul.mubr.f32.vlgmr.msra.gmra.mrb[0].mxu0 %v15458_v56 }
 0x13d   :  { %12826 = vmatpush1.bf16.msra.mxu0 %v15016_v26  ;;  %1019 = vmatprep.mubr.f32.mxu0 %v15433_v39  ;;  %v1226_v26 = vld [vmem:[#allocation7 + $0x80] sm:$0xff] }
 0x13e   :  { %12827 = vmatprep.subr.bf16.mxu0 %v20062_v59 }
 0x140   :  { %1021 = vmatmul.mubr.f32.gmra.mrb[2].mxu0 %v15477_v6 }
 0x141   :  { %12829 = vmatpush1.bf16.msra.mxu0 %v15026_v32  ;;  %1026 = vmatprep.mubr.f32.mxu0 %v15445_v28  ;;  %v1227_v32 = vld [vmem:[#allocation7 + $0x88] sm:$0xff] }
 0x142   :  { %12830 = vmatprep.subr.bf16.mxu0 %v20062_v59 }
 0x144   :  { %1028 = vmatmul.mubr.f32.gmra.mrb[4].mxu0 %v15460_v12 }
 0x145   :  { %12832 = vmatpush1.bf16.msra.mxu0 %v15063_v49  ;;  %1033 = vmatprep.mubr.f32.mxu0 %v15456_v24  ;;  %v1311_v49 = vand.u32 4294901760, %v1226_v26 }
 0x146   :  { %12833 = vmatprep.subr.bf16.mxu0 %v20062_v59 }
 0x148   :  { %1035 = vmatmul.mubr.f32.gmra.mrb[6].mxu0 %v15479_v10 }
 0x149   :  { %12835 = vmatpush1.bf16.msra.mxu0 %v15080_v63  ;;  %1129 = vmatprep.mubr.f32.mxu0 %v15154_v47  ;;  %v1314_v63 = vand.u32 4294901760, %v1227_v32  ;;  %v1211_v47 = vld [vmem:[#allocation7 + $0x8] sm:$0xff] }
 0x14a   :  { %12836 = vmatprep.subr.bf16.mxu0 %v20062_v59  ;;  %v1266_v45 = vand.u32 4294901760, %v1211_v47 }
 0x14c   :  { %v15659_v42 = vsub.f32 %v1211_v47, %v1266_v45 }
 0x14d   :  { %12838 = vmatpush1.bf16.msra.mxu0 %v15113_v27  ;;  %v15646_v27 = vpack.c.bf16 %v1314_v63, %v1311_v49 }
 0x14e   :  { %12839 = vmatprep.subr.bf16.mxu0 %v20062_v59 }
 0x14f   :  { %20092 = vst [vmem:[#allocation24_spill] sm:$0xff] %v15646_v27  ;;  %12861 = vmatprep.subr.bf16.mxu1 %v15646_v27 }
 0x151   :  { %12841 = vmatpush1.bf16.msra.mxu0 %v15126_v34  ;;  %v15648_v34 = vsub.f32 %v1226_v26, %v1311_v49  ;;  %v15700_v26 = vpack.c.bf16 %v1290_v44, %v1287_v13  ;;  %v1344_v49 = vand.u32 4294901760, %v1237_v51 }
 0x152   :  { %12842 = vmatprep.subr.bf16.mxu0 %v20062_v59 }
 0x153   :  { %20101 = vst [vmem:[#allocation30_spill] sm:$0xff] %v15700_v26 }
 0x155   :  { %12844 = vmatpush1.bf16.msra.mxu0 %v15128_v35  ;;  %v15650_v35 = vsub.f32 %v1227_v32, %v1314_v63  ;;  %v1220_v63 = vld [vmem:[#allocation7 + $0x50] sm:$0xff] }
 0x156   :  { %12845 = vmatprep.subr.bf16.mxu0 %v20062_v59  ;;  %v1293_v47 = vand.u32 4294901760, %v1220_v63 }
 0x159   :  { %12847 = vmatpush1.bf16.msra.mxu0 %v20087_v57 }
 0x15a   :  { %12848 = vmatprep.subr.bf16.mxu0 %v20062_v59 }
 0x15d   :  { %12850 = vmatpush1.bf16.msra.mxu0 %v20089_v4 }
 0x15e   :  { %12851 = vmatprep.subr.bf16.mxu0 %v20062_v59 }
 0x161   :  { %12853 = vmatpush1.bf16.msra.mxu0 %v20090_v19  ;;  %v1236_v19 = vld [vmem:[#allocation7 + $0xd0] sm:$0xff] }
 0x162   :  { %12854 = vmatprep.subr.bf16.mxu0 %v20062_v59  ;;  %v1341_v32 = vand.u32 4294901760, %v1236_v19 }
 0x165   :  { %12856 = vmatpush1.bf16.msra.mxu0 %v15343_v33  ;;  %v1263_v33 = vand.u32 4294901760, %v1210_v46 }
 0x166   :  { %12857 = vmatprep.subr.bf16.mxu0 %v20062_v59  ;;  %v1225_v59 = vld [vmem:[#allocation7 + $0x78] sm:$0xff] }
 0x167   :  { %v15655_v20 = vpack.c.bf16 %v1266_v45, %v1263_v33  ;;  %v15657_v21 = vsub.f32 %v1210_v46, %v1263_v33  ;;  %v1221_v46 = vld [vmem:[#allocation7 + $0x58] sm:$0xff]  ;;  %v15703_v33 = vpack.c.bf16 %v1344_v49, %v1341_v32 }
 0x169   :  { %12859 = vmatpush1.bf16.msra.mxu0 %v15363_v16  ;;  %v1228_v16 = vld [vmem:[#allocation7 + $0x90] sm:$0xff]  ;;  %20093 = vst [vmem:[#allocation21_spill] sm:$0xff] %v15655_v20  ;;  %12863 = vmatpush3.bf16.msra.mxu1 %v15655_v20  ;;  %20102 = vst [vmem:[#allocation31_spill] sm:$0xff] %v15703_v33 }
 0x16a   :  { %v1317_v1 = vand.u32 4294901760, %v1228_v16 }
 0x16c   :  { %1131 = vmatmul.mubr.f32.vlgmr.msra.gmra.mrb[0].mxu0 %v15458_v56  ;;  %v15661_v11 = vsub.f32 %v1228_v16, %v1317_v1  ;;  %v15663_v8 = vpack.c.bf16 %v1320_v50, %v1317_v1  ;;  %v1214_v56 = vld [vmem:[#allocation7 + $0x20] sm:$0xff]  ;;  %v1296_v16 = vand.u32 4294901760, %v1221_v46  ;;  %v15709_v1 = vsub.f32 %v1216_v54, %v1281_v17  ;;  %v1239_v50 = vld [vmem:[#allocation7 + $0xe8] sm:$0xff] }
 0x16d   :  { %1136 = vmatprep.mubr.f32.mxu0 %v15433_v39  ;;  %v15670_v39 = vpack.c.bf16 %v1272_v29, %v1269_v36  ;;  %v1275_v58 = vand.u32 4294901760, %v1214_v56  ;;  %v1347_v29 = vand.u32 4294901760, %v1238_v40 }
 0x16e   :  { %20094 = vst [vmem:[#allocation25_spill] sm:$0xff] %v15663_v8  ;;  %12865 = vmatprep.subr.bf16.mxu1 %v15663_v8  ;;  %v15714_v36 = vpack.c.bf16 %v1296_v16, %v1293_v47 }
 0x16f   :  { %20095 = vst [vmem:[#allocation22_spill] sm:$0xff] %v15670_v39  ;;  %12867 = vmatpush3.bf16.msra.mxu1 %v15670_v39  ;;  %v15695_v0 = vsub.f32 %v1214_v56, %v1275_v58 }
 0x170   :  { %1138 = vmatmul.mubr.f32.gmra.mrb[2].mxu0 %v15477_v6  ;;  %v1233_v6 = vld [vmem:[#allocation7 + $0xb8] sm:$0xff]  ;;  %20103 = vst [vmem:[#allocation32_spill] sm:$0xff] %v15714_v36 }
 0x171   :  { %1143 = vmatprep.mubr.f32.mxu0 %v15445_v28  ;;  %v1230_v28 = vld [vmem:[#allocation7 + $0xa0] sm:$0xff]  ;;  %v1332_v14 = vand.u32 4294901760, %v1233_v6 }
 0x172   :  { %v1323_v30 = vand.u32 4294901760, %v1230_v28 }
 0x173   :  { %v15707_v43 = vsub.f32 %v1233_v6, %v1332_v14  ;;  %v15725_v6 = vsub.f32 %v1219_v52, %v1290_v44  ;;  %v19633_v52 = vand.u32 4294901760, %v15657_v21  ;;  %v15740_v44 = vsub.f32 %v1236_v19, %v1341_v32 }
 0x174   :  { %1145 = vmatmul.mubr.f32.gmra.mrb[4].mxu0 %v15460_v12  ;;  %v1215_v12 = vld [vmem:[#allocation7 + $0x28] sm:$0xff]  ;;  %v15691_v18 = vsub.f32 %v1230_v28, %v1323_v30  ;;  %v1350_v28 = vand.u32 4294901760, %v1239_v50 }
 0x175   :  { %1150 = vmatprep.mubr.f32.mxu0 %v15456_v24  ;;  %v1326_v24 = vand.u32 4294901760, %v1231_v25  ;;  %v1278_v5 = vand.u32 4294901760, %v1215_v12 }
 0x177   :  { %v15677_v48 = vpack.c.bf16 %v1326_v24, %v1323_v30  ;;  %v15679_v53 = vpack.c.bf16 %v1278_v5, %v1275_v58  ;;  %v15693_v57 = vsub.f32 %v1231_v25, %v1326_v24  ;;  %v15697_v4 = vsub.f32 %v1215_v12, %v1278_v5  ;;  %v1222_v25 = vld [vmem:[#allocation7 + $0x60] sm:$0xff]  ;;  %v1223_v30 = vld [vmem:[#allocation7 + $0x68] sm:$0xff] }
 0x178   :  { %1152 = vmatmul.mubr.f32.gmra.mrb[6].mxu0 %v15479_v10  ;;  %v1329_v10 = vand.u32 4294901760, %v1232_v62  ;;  %v1299_v24 = vand.u32 4294901760, %v1222_v25  ;;  %v1302_v56 = vand.u32 4294901760, %v1223_v30  ;;  %v15717_v12 = vpack.c.bf16 %v1350_v28, %v1347_v29 }
 0x179   :  { %20096 = vst [vmem:[#allocation23_spill] sm:$0xff] %v15677_v48  ;;  %20097 = vst [vmem:[#allocation26_spill] sm:$0xff] %v15679_v53  ;;  %12869 = vmatprep.subr.bf16.mxu1 %v15677_v48  ;;  %v15719_v58 = vsub.f32 %v1234_v3, %v1335_v37  ;;  %v15721_v5 = vsub.f32 %v1235_v60, %v1338_v41  ;;  %v1305_v3 = vand.u32 4294901760, %v1224_v22  ;;  %v1308_v37 = vand.u32 4294901760, %v1225_v59 }
 0x17a   :  { %12871 = vmatpush3.bf16.msra.mxu1 %v15679_v53  ;;  %v15683_v23 = vpack.c.bf16 %v1332_v14, %v1329_v10  ;;  %v15705_v45 = vsub.f32 %v1232_v62, %v1329_v10  ;;  %20104 = vst [vmem:[#allocation33_spill] sm:$0xff] %v15717_v12  ;;  %v15723_v62 = vsub.f32 %v1218_v61, %v1287_v13  ;;  %v1240_v10 = vld [vmem:[#allocation7 + $0xf0] sm:$0xff]  ;;  %v1241_v14 = vld [vmem:[#allocation7 + $0xf8] sm:$0xff]  ;;  %v19631_v13 = vand.u32 4294901760, %v15659_v42 }
 0x17b   :  { %v15728_v54 = vpack.c.bf16 %v1302_v56, %v1299_v24  ;;  %v1353_v38 = vand.u32 4294901760, %v1240_v10  ;;  %v1356_v17 = vand.u32 4294901760, %v1241_v14  ;;  %v15748_v60 = vsub.f32 %v1238_v40, %v1347_v29 }
 0x17c   :  { %20098 = vst [vmem:[#allocation27_spill] sm:$0xff] %v15683_v23  ;;  %12873 = vmatprep.subr.bf16.mxu1 %v15683_v23  ;;  %v15763_v32 = vsub.f32 %v1224_v22, %v1305_v3  ;;  %v1430_v40 = vsub.f32 %v15659_v42, %v19631_v13  ;;  %v19622_v29 = vand.u32 4294901760, %v15667_v9  ;;  %v19621_v22 = vand.u32 4294901760, %v15691_v18 }
 0x17d   :  { %20105 = vst [vmem:[#allocation34_spill] sm:$0xff] %v15728_v54  ;;  %v15733_v41 = vpack.c.bf16 %v1356_v17, %v1353_v38  ;;  %20110 = vst [vmem:[#allocation39_spill] sm:$0xff] %v15748_v60  ;;  %v15759_v19 = vsub.f32 %v1241_v14, %v1356_v17 }
 0x17e   :  { %12875 = vmatpush3.bf16.msra.mxu1 %v15685_v2  ;;  %v15754_v2 = vsub.f32 %v1223_v30, %v1302_v56  ;;  %20117 = vst [vmem:[#allocation46_spill] sm:$0xff] %v15763_v32  ;;  %v19618_v30 = vand.u32 4294901760, %v15672_v7  ;;  %v1437_v14 = vsub.f32 %v15667_v9, %v19622_v29 }
 0x17f   :  { %12877 = vmatprep.subr.bf16.mxu1 %v15689_v55  ;;  %20106 = vst [vmem:[#allocation35_spill] sm:$0xff] %v15733_v41  ;;  %v15752_v55 = vsub.f32 %v1222_v25, %v1299_v24  ;;  %20115 = vst [vmem:[#allocation44_spill] sm:$0xff] %v15759_v19  ;;  %v1431_v24 = vand.u32 4294901760, %v1430_v40  ;;  %v1563_v40 = vsub.f32 %v15691_v18, %v19621_v22 }
 0x180   :  { %20113 = vst [vmem:[#allocation42_spill] sm:$0xff] %v15754_v2  ;;  %v1444_v17 = vsub.f32 %v15672_v7, %v19618_v30 }
 0x181   :  { %20112 = vst [vmem:[#allocation41_spill] sm:$0xff] %v15752_v55 }
 0x182   :  { %12879 = vmatpush3.bf16.msra.mxu1 %v15700_v26  ;;  %v15746_v26 = vsub.f32 %v1221_v46, %v1296_v16  ;;  %v20119_v46 = vand.u32 4294901760, %v15650_v35  ;;  %v1423_v16 = vsub.f32 %v15657_v21, %v19633_v52 }
 0x183   :  { %12881 = vmatprep.subr.bf16.mxu1 %v15703_v33  ;;  %v15744_v33 = vsub.f32 %v1220_v63, %v1293_v47 }
 0x184   :  { %20109 = vst [vmem:[#allocation38_spill] sm:$0xff] %v15746_v26  ;;  %v1542_v47 = vsub.f32 %v15650_v35, %v20119_v46  ;;  %v1424_v25 = vand.u32 4294901760, %v1423_v16  ;;  %v1445_v16 = vand.u32 4294901760, %v1444_v17 }
 0x185   :  { %20108 = vst [vmem:[#allocation37_spill] sm:$0xff] %v15744_v33 }
 0x186   :  { %12883 = vmatpush3.bf16.msra.mxu1 %v15714_v36  ;;  %v19617_v36 = vand.u32 4294901760, %v15648_v34 }
 0x187   :  { %12885 = vmatprep.subr.bf16.mxu1 %v15717_v12  ;;  %v15742_v12 = vsub.f32 %v1237_v51, %v1344_v49  ;;  %v15761_v51 = vpack.c.bf16 %v1308_v37, %v1305_v3  ;;  %v15765_v49 = vsub.f32 %v1225_v59, %v1308_v37  ;;  %v19626_v59 = vand.u32 4294901760, %v15665_v15 }
 0x188   :  { %v1535_v61 = vsub.f32 %v15648_v34, %v19617_v36  ;;  %v15757_v36 = vsub.f32 %v1240_v10, %v1353_v38  ;;  %v19619_v3 = vand.u32 4294901760, %v15693_v57  ;;  %v15795_v37 = vpack.c.bf16 %v1431_v24, %v1424_v25 }
 0x189   :  { %20107 = vst [vmem:[#allocation36_spill] sm:$0xff] %v15742_v12  ;;  %20116 = vst [vmem:[#allocation45_spill] sm:$0xff] %v15761_v51  ;;  %v1556_v10 = vsub.f32 %v15665_v15, %v19626_v59  ;;  %v19623_v25 = vand.u32 4294901760, %v15697_v4  ;;  %v19624_v24 = vand.u32 4294901760, %v15705_v45  ;;  %v19632_v59 = vand.u32 4294901760, %v15721_v5 }
 0x18a   :  { %12887 = vmatpush3.bf16.msra.mxu1 %v15728_v54  ;;  %v15750_v54 = vsub.f32 %v1239_v50, %v1350_v28  ;;  %20114 = vst [vmem:[#allocation43_spill] sm:$0xff] %v15757_v36  ;;  %20118 = vst [vmem:[#allocation47_spill] sm:$0xff] %v15765_v49  ;;  %v1536_v63 = vand.u32 4294901760, %v1535_v61  ;;  %v19629_v50 = vand.u32 4294901760, %v15661_v11  ;;  %v1543_v28 = vand.u32 4294901760, %v1542_v47 }
 0x18b   :  { %12889 = vmatprep.subr.bf16.mxu1 %v15733_v41  ;;  %v1557_v46 = vand.u32 4294901760, %v1556_v10  ;;  %v1438_v47 = vand.u32 4294901760, %v1437_v14  ;;  %v1564_v14 = vand.u32 4294901760, %v1563_v40  ;;  %v19644_v41 = vand.u32 4294901760, %v15744_v33 }
 0x18c   :  { %20111 = vst [vmem:[#allocation40_spill] sm:$0xff] %v15750_v54  ;;  %v1549_v56 = vsub.f32 %v15661_v11, %v19629_v50  ;;  %v12892_v38 = vpack.c.bf16 %v1543_v28, %v1536_v63  ;;  %v1570_v63 = vsub.f32 %v15693_v57, %v19619_v3  ;;  %v19620_v28 = vand.u32 4294901760, %v15695_v0 }
 0x18d   :  { %v15809_v10 = vpack.c.bf16 %v1445_v16, %v1438_v47  ;;  %v1458_v3 = vsub.f32 %v15697_v4, %v19623_v25  ;;  %v19627_v47 = vand.u32 4294901760, %v15709_v1 }
 0x18e   :  { %12891 = vmatpush3.bf16.msra.mxu1 %v15761_v51  ;;  %v1550_v61 = vand.u32 4294901760, %v1549_v56  ;;  %v19625_v56 = vand.u32 4294901760, %v15707_v43  ;;  %v1451_v17 = vsub.f32 %v15695_v0, %v19620_v28 }
 0x18f   :  { %12893 = vmatprep.subr.bf16.mxu1 %v12892_v38  ;;  %v1571_v38 = vand.u32 4294901760, %v1570_v63  ;;  %v19628_v63 = vand.u32 4294901760, %v15711_v31  ;;  %v1459_v28 = vand.u32 4294901760, %v1458_v3  ;;  %v1465_v25 = vsub.f32 %v15709_v1, %v19627_v47 }
 0x190   :  { %v15804_v30 = vpack.c.bf16 %v1557_v46, %v1550_v61  ;;  %v1577_v61 = vsub.f32 %v15705_v45, %v19624_v24  ;;  %v1584_v46 = vsub.f32 %v15707_v43, %v19625_v56  ;;  %v1452_v40 = vand.u32 4294901760, %v1451_v17 }
 0x191   :  { %v15824_v16 = vpack.c.bf16 %v1571_v38, %v1564_v14  ;;  %v1472_v24 = vsub.f32 %v15711_v31, %v19628_v63  ;;  %v19630_v56 = vand.u32 4294901760, %v15719_v58  ;;  %v19634_v14 = vand.u32 4294901760, %v15723_v62 }
 0x192   :  { %v1578_v22 = vand.u32 4294901760, %v1577_v61  ;;  %v1585_v29 = vand.u32 4294901760, %v1584_v46  ;;  %v15836_v38 = vpack.c.bf16 %v1459_v28, %v1452_v40  ;;  %v1466_v3 = vand.u32 4294901760, %v1465_v25 }
 0x193   :  { %v19635_v61 = vand.u32 4294901760, %v15725_v6  ;;  %v1473_v46 = vand.u32 4294901760, %v1472_v24  ;;  %v1591_v47 = vsub.f32 %v15719_v58, %v19630_v56  ;;  %v1598_v63 = vsub.f32 %v15721_v5, %v19632_v59 }
 0x194   :  { %v15838_v17 = vpack.c.bf16 %v1585_v29, %v1578_v22  ;;  %v1479_v50 = vsub.f32 %v15723_v62, %v19634_v14  ;;  %v19641_v22 = vand.u32 4294901760, %v15740_v44  ;;  %v19640_v28 = vand.u32 4294901760, %v15742_v12 }
 0x195   :  { %v1486_v29 = vsub.f32 %v15725_v6, %v19635_v61  ;;  %v15857_v24 = vpack.c.bf16 %v1473_v46, %v1466_v3  ;;  %v1592_v40 = vand.u32 4294901760, %v1591_v47  ;;  %v1599_v56 = vand.u32 4294901760, %v1598_v63 }
 0x196   :  { %v1480_v13 = vand.u32 4294901760, %v1479_v50  ;;  %v1605_v14 = vsub.f32 %v15740_v44, %v19641_v22  ;;  %v1612_v61 = vsub.f32 %v15742_v12, %v19640_v28  ;;  %v19645_v3 = vand.u32 4294901760, %v15746_v26 }
 0x197   :  { %v1487_v52 = vand.u32 4294901760, %v1486_v29  ;;  %v15865_v51 = vpack.c.bf16 %v1599_v56, %v1592_v40  ;;  %v1493_v29 = vsub.f32 %v15744_v33, %v19644_v41  ;;  %v19651_v40 = vand.u32 4294901760, %v15750_v54 }
 0x198   :  { %v1606_v47 = vand.u32 4294901760, %v1605_v14  ;;  %v1613_v50 = vand.u32 4294901760, %v1612_v61  ;;  %v1500_v56 = vsub.f32 %v15746_v26, %v19645_v3  ;;  %v19657_v28 = vand.u32 4294901760, %v15752_v55 }
 0x199   :  { %v15869_v46 = vpack.c.bf16 %v1487_v52, %v1480_v13  ;;  %v19656_v14 = vand.u32 4294901760, %v15754_v2  ;;  %v1494_v61 = vand.u32 4294901760, %v1493_v29  ;;  %v1626_v41 = vsub.f32 %v15750_v54, %v19651_v40 }
 0x19a   :  { %v15880_v52 = vpack.c.bf16 %v1613_v50, %v1606_v47  ;;  %v1501_v23 = vand.u32 4294901760, %v1500_v56  ;;  %v1507_v3 = vsub.f32 %v15752_v55, %v19657_v28  ;;  %v19660_v47 = vand.u32 4294901760, %v15757_v36 }
 0x19b   :  { %v19663_v50 = vand.u32 4294901760, %v15759_v19  ;;  %v1627_v56 = vand.u32 4294901760, %v1626_v41  ;;  %v19664_v40 = vand.u32 4294901760, %v15763_v32  ;;  %v19665_v41 = vand.u32 4294901760, %v15765_v49 }
 0x19c   :  { %v15897_v29 = vpack.c.bf16 %v1501_v23, %v1494_v61  ;;  %v1508_v48 = vand.u32 4294901760, %v1507_v3 }
 0x19d   :  { %v1521_v23 = vsub.f32 %v15763_v32, %v19664_v40 }
 0x19f   :  { %v1522_v20 = vand.u32 4294901760, %v1521_v23 }
 0x1e5   :  { %v15855_v25 = vpop.f32.mrb[0].mxu1 }
 0x1e6   :  { %v570_v59 = vpop.f32.mrb[1].mxu1 }
 0x1e7   :  { %v19648_v59 = vand.u32 4294901760, %v15748_v60 }
 0x1e9   :  { %v575_v63 = vpop.f32.mrb[2].mxu1  ;;  %v1619_v13 = vsub.f32 %v15748_v60, %v19648_v59 }
 0x1ea   :  { %v577_v22 = vpop.f32.mrb[3].mxu1 }
 0x1eb   :  { %v1620_v53 = vand.u32 4294901760, %v1619_v13  ;;  %v1514_v22 = vsub.f32 %v15754_v2, %v19656_v14  ;;  %v1633_v13 = vsub.f32 %v15757_v36, %v19660_v47  ;;  %v1640_v14 = vsub.f32 %v15759_v19, %v19663_v50 }
 0x1ec   :  { %v1528_v47 = vsub.f32 %v15765_v49, %v19665_v41 }
 0x1ed   :  { %v582_v59 = vpop.f32.mrb[4].mxu1  ;;  %v1515_v8 = vand.u32 4294901760, %v1514_v22  ;;  %v15906_v28 = vpack.c.bf16 %v1627_v56, %v1620_v53  ;;  %v1641_v61 = vand.u32 4294901760, %v1640_v14 }
 0x1ee   :  { %v584_v39 = vpop.f32.mrb[5].mxu1  ;;  %v1529_v53 = vand.u32 4294901760, %v1528_v47 }
 0x1ef   :  { %v15912_v3 = vpack.c.bf16 %v1515_v8, %v1508_v48  ;;  %v1634_v39 = vand.u32 4294901760, %v1633_v13 }
 0x1f0   :  { %v15919_v56 = vpack.c.bf16 %v1529_v53, %v1522_v20 }
 0x1f1   :  { %v589_v22 = vpop.f32.mrb[6].mxu1  ;;  %v15917_v50 = vpack.c.bf16 %v1641_v61, %v1634_v39  ;;  %v9855_v39 = vld [vmem:[%s19565_s6] ss:$0 sm:$0xff] }
 0x1f2   :  { %v591_v27 = vpop.f32.mrb[7].mxu1  ;;  %v14432_v61 = vadd.f32 %v9855_v39, %v15855_v25  ;;  %v14434_v14 = vadd.f32 %v9855_v39, %v575_v63  ;;  %v14436_v13 = vadd.f32 %v9855_v39, %v582_v59 }
 0x23f   :  { %v1132_v47 = vpop.f32.mrb[0].mxu0 }
 0x240   :  { %v14433_v53 = vadd.f32 %v14432_v61, %v1132_v47  ;;  %v1134_v27 = vpop.f32.mrb[1].mxu0  ;;  %v14438_v61 = vadd.f32 %v9855_v39, %v589_v22 }
 0x242   :  { %v1157_v41 = vmax.f32 %v14433_v53, 0.0 }
 0x243   :  { %v1139_v48 = vpop.f32.mrb[2].mxu0 }
 0x244   :  { %v1166_v8 = vrot.slane %v1157_v41, 7  ;;  %v14435_v20 = vadd.f32 %v14434_v14, %v1139_v48  ;;  %v1141_v40 = vpop.f32.mrb[3].mxu0  ;;  %v15957_v55 = vand.u32 4294901760, %v1157_v41  ;;  %v1173_v49 = vrot.slane %v1157_v41, 1 }
 0x246   :  { %1171 = vst [vmem:[#allocation2] sm:$0xfe] %v1166_v8  ;;  %v1158_v23 = vmax.f32 %v14435_v20, 0.0  ;;  %v15960_v32 = vsub.f32 %v1157_v41, %v15957_v55 }
 0x247   :  { %v1146_v36 = vpop.f32.mrb[4].mxu0 }
 0x248   :  { %v1167_v25 = vrot.slane %v1158_v23, 7  ;;  %v1174_v19 = vrot.slane %v1158_v23, 1  ;;  %v14437_v47 = vadd.f32 %v14436_v13, %v1146_v36  ;;  %v1148_v27 = vpop.f32.mrb[5].mxu0  ;;  %v19676_v63 = vand.u32 4294901760, %v15960_v32 }
 0x249   :  { %v15963_v53 = vand.u32 4294901760, %v1158_v23 }
 0x24a   :  { %v1168_v40 = vsel %vm141_vm3, %v1166_v8, %v1167_v25  ;;  %v15967_v59 = vsel %vm150_vm1, %v1173_v49, %v1174_v19  ;;  %1179 = vst [vmem:[#allocation2 + $0x28] sm:$0x7f] %v1174_v19  ;;  %v1159_v48 = vmax.f32 %v14437_v47, 0.0  ;;  %v1361_v41 = vsub.f32 %v15960_v32, %v19676_v63 }
 0x24b   :  { %20120 = vst [vmem:[#allocation48_spill] sm:$0xff] %v15963_v53  ;;  %20121 = vst [vmem:[#allocation49_spill] sm:$0xff] %v15967_v59  ;;  %v1153_v14 = vpop.f32.mrb[6].mxu0  ;;  %v15973_v36 = vsub.f32 %v1158_v23, %v15963_v53  ;;  %v15975_v20 = vand.u32 4294901760, %v1168_v40 }
 0x24c   :  { %v1184_v22 = vrot.slane %v1159_v48, 7  ;;  %v14439_v13 = vadd.f32 %v14438_v61, %v1153_v14  ;;  %v1155_v39 = vpop.f32.mrb[7].mxu0  ;;  %v1362_v27 = vand.u32 4294901760, %v1361_v41  ;;  %v15977_v25 = vand.u32 4294901760, %v1159_v48 }
 0x24d   :  { %20122 = vst [vmem:[#allocation50_spill] sm:$0xff] %v15973_v36  ;;  %20123 = vst [vmem:[#allocation51_spill] sm:$0xff] %v15975_v20  ;;  %v1198_v8 = vld [vmem:[#allocation2] sm:$0xff]  ;;  %v15982_v47 = vsub.f32 %v1168_v40, %v15975_v20  ;;  %v1191_v63 = vrot.slane %v1159_v48, 1 }
 0x24e   :  { %20124 = vst [vmem:[#allocation52_spill] sm:$0xff] %v15977_v25  ;;  %1189 = vst [vmem:[#allocation2 + $0x30] sm:$0xfe] %v1184_v22  ;;  %v1160_v19 = vmax.f32 %v14439_v13, 0.0  ;;  %1363 = vmatprep.mubr.f32.mxu1 %v1362_v27  ;;  %v15979_v49 = vand.u32 4294901760, %v1198_v8  ;;  %v15986_v59 = vsub.f32 %v1159_v48, %v15977_v25  ;;  %v20128_v48 = vand.u32 4294901760, %v15973_v36 }
 0x24f   :  { %v19690_v23 = vand.u32 4294901760, %v15982_v47 }
 0x250   :  { %20125 = vst [vmem:[#allocation53_spill] sm:$0xff] %v15979_v49  ;;  %v1185_v61 = vrot.slane %v1160_v19, 7  ;;  %v1192_v14 = vrot.slane %v1160_v19, 1  ;;  %v15989_v41 = vsub.f32 %v1198_v8, %v15979_v49  ;;  %v15991_v39 = vand.u32 4294901760, %v1160_v19 }
 0x251   :  { %v1376_v2 = vsub.f32 %v15973_v36, %v20128_v48 }
 0x252   :  { %20126 = vst [vmem:[#allocation54_spill] sm:$0xff] %v15991_v39  ;;  %v1186_v13 = vsel %vm141_vm3, %v1184_v22, %v1185_v61  ;;  %v15995_v27 = vsel %vm150_vm1, %v1191_v63, %v1192_v14  ;;  %1197 = vst [vmem:[#allocation2 + $0x58] sm:$0x7f] %v1192_v14  ;;  %v19689_v40 = vand.u32 4294901760, %v15989_v41  ;;  %v16004_v8 = vsub.f32 %v1160_v19, %v15991_v39 }
 0x253   :  { %20127 = vst [vmem:[#allocation55_spill] sm:$0xff] %v15995_v27  ;;  %v16006_v54 = vand.u32 4294901760, %v1186_v13  ;;  %v1382_v14 = vsub.f32 %v15982_v47, %v19690_v23  ;;  %v1377_v60 = vand.u32 4294901760, %v1376_v2  ;;  %v20131_v19 = vand.u32 4294901760, %v15986_v59 }
 0x254   :  { %v1367_v63 = vsub.f32 %v15989_v41, %v19689_v40  ;;  %v19692_v33 = vand.u32 4294901760, %v16004_v8 }
 0x255   :  { %20129 = vst [vmem:[#allocation56_spill] sm:$0xff] %v16006_v54  ;;  %v1204_v22 = vld [vmem:[#allocation2 + $0x30] sm:$0xff]  ;;  %v16017_v48 = vsub.f32 %v1186_v13, %v16006_v54  ;;  %v1391_v36 = vsub.f32 %v15986_v59, %v20131_v19 }
 0x256   :  { %v1368_v61 = vand.u32 4294901760, %v1367_v63  ;;  %v16014_v27 = vand.u32 4294901760, %v1204_v22  ;;  %v1383_v63 = vand.u32 4294901760, %v1382_v14  ;;  %v1406_v19 = vsub.f32 %v16004_v8, %v19692_v33  ;;  %v20154_v33 = vld [vmem:[#allocation43_spill] sm:$0xff] }
 0x257   :  { %v19691_v2 = vand.u32 4294901760, %v16017_v48  ;;  %v1392_v23 = vand.u32 4294901760, %v1391_v36 }
 0x258   :  { %20130 = vst [vmem:[#allocation57_spill] sm:$0xff] %v16014_v27  ;;  %1369 = vmatmul.mubr.f32.vlgmr.msra.gmra.mrb[8].mxu1 %v1368_v61  ;;  %v16024_v40 = vsub.f32 %v1204_v22, %v16014_v27  ;;  %v20142_v61 = vpack.c.bf16 %v15742_v12, %v15740_v44 }
 0x259   :  { %12895 = vmatpush3.bf16.msra.mxu1 %v15795_v37  ;;  %1378 = vmatprep.mubr.f32.mxu1 %v1377_v60  ;;  %v1407_v37 = vand.u32 4294901760, %v1406_v19 }
 0x25a   :  { %12897 = vmatprep.subr.bf16.mxu1 %v15804_v30  ;;  %v19693_v13 = vand.u32 4294901760, %v16024_v40  ;;  %v1412_v30 = vsub.f32 %v16017_v48, %v19691_v2  ;;  %v3071_v2 = vld [vmem:[#allocation9 + $0x28] sm:$0xff] }
 0x25c   :  { %1384 = vmatmul.mubr.f32.gmra.mrb[10].mxu1 %v1383_v63  ;;  %v1397_v22 = vsub.f32 %v16024_v40, %v19693_v13  ;;  %v1413_v36 = vand.u32 4294901760, %v1412_v30 }
 0x25d   :  { %12899 = vmatpush3.bf16.msra.mxu1 %v15809_v10  ;;  %1393 = vmatprep.mubr.f32.mxu1 %v1392_v23  ;;  %v20132_v10 = vpack.c.bf16 %v15650_v35, %v15648_v34 }
 0x25e   :  { %12901 = vmatprep.subr.bf16.mxu1 %v15824_v16  ;;  %v1398_v60 = vand.u32 4294901760, %v1397_v22  ;;  %v20134_v16 = vpack.c.bf16 %v15665_v15, %v15661_v11  ;;  %v14621_v22 = vld [vmem:[#allocation4] sm:$0xff] }
 0x260   :  { %1399 = vmatmul.mubr.f32.gmra.mrb[12].mxu1 %v1398_v60  ;;  %v3079_v60 = vsel %vm117_vm0, %v14621_v22, 0 }
 0x261   :  { %12903 = vmatpush3.bf16.msra.mxu1 %v15836_v38  ;;  %1408 = vmatprep.mubr.f32.mxu1 %v1407_v37  ;;  %v20135_v38 = vpack.c.bf16 %v15672_v7, %v15667_v9  ;;  %v20143_v37 = vld [vmem:[#allocation37_spill] sm:$0xff] }
 0x262   :  { %12905 = vmatprep.subr.bf16.mxu1 %v15838_v17  ;;  %v20136_v17 = vpack.c.bf16 %v15693_v57, %v15691_v18 }
 0x264   :  { %1414 = vmatmul.mubr.f32.gmra.mrb[14].mxu1 %v1413_v36  ;;  %v20144_v36 = vpack.c.bf16 %v15746_v26, %v20143_v37 }
 0x265   :  { %12907 = vmatpush3.bf16.msra.mxu1 %v15857_v24  ;;  %1644 = vmatprep.mubr.f32.mxu1 %v15957_v55  ;;  %v20138_v24 = vpack.c.bf16 %v15707_v43, %v15705_v45 }
 0x266   :  { %12909 = vmatprep.subr.bf16.mxu1 %v15865_v51  ;;  %v20133_v51 = vpack.c.bf16 %v15659_v42, %v15657_v21 }
 0x269   :  { %12911 = vmatpush3.bf16.msra.mxu1 %v15869_v46  ;;  %v20139_v46 = vpack.c.bf16 %v15711_v31, %v15709_v1 }
 0x26a   :  { %12913 = vmatprep.subr.bf16.mxu1 %v15880_v52  ;;  %v20140_v52 = vpack.c.bf16 %v15721_v5, %v15719_v58 }
 0x26d   :  { %12915 = vmatpush3.bf16.msra.mxu1 %v15897_v29  ;;  %v3066_v29 = vld [vmem:[#allocation9] sm:$0xff] }
 0x26e   :  { %12917 = vmatprep.subr.bf16.mxu1 %v15906_v28  ;;  %v20137_v28 = vpack.c.bf16 %v15697_v4, %v15695_v0  ;;  %v3088_v14 = vand.u32 4294901760, %v3066_v29 }
 0x271   :  { %12919 = vmatpush3.bf16.msra.mxu1 %v15912_v3  ;;  %v3067_v3 = vld [vmem:[#allocation9 + $0x8] sm:$0xff] }
 0x272   :  { %12921 = vmatprep.subr.bf16.mxu1 %v15917_v50  ;;  %v20141_v50 = vpack.c.bf16 %v15725_v6, %v15723_v62  ;;  %v3091_v63 = vand.u32 4294901760, %v3067_v3 }
 0x274   :  { %v16095_v19 = vpack.c.bf16 %v3091_v63, %v3088_v14 }
 0x275   :  { %12923 = vmatpush3.bf16.msra.mxu1 %v15919_v56  ;;  %v14620_v56 = vld [vmem:[#allocation4 + $0x8] sm:$0xff] }
 0x276   :  { %12925 = vmatprep.subr.bf16.mxu1 %v20132_v10  ;;  %v3081_v23 = vsel %vm117_vm0, %v14620_v56, 0  ;;  %v3068_v10 = vld [vmem:[#allocation9 + $0x10] sm:$0xff]  ;;  %13245 = vmatprep.subr.bf16.mxu0 %v16095_v19 }
 0x277   :  { %v16098_v30 = vand.u32 4294901760, %v3081_v23  ;;  %13247 = vmatpush3.bf16.msra.mxu0 %v16095_v19  ;;  %v20150_v56 = vld [vmem:[#allocation42_spill] sm:$0xff] }
 0x278   :  { %1646 = vmatmul.mubr.f32.vlgmr.msra.gmra.mrb[16].mxu1 %v15979_v49  ;;  %v20158_v49 = vld [vmem:[#allocation46_spill] sm:$0xff] }
 0x279   :  { %1651 = vmatprep.mubr.f32.mxu1 %v15963_v53  ;;  %12927 = vmatpush3.bf16.msra.mxu1 %v20133_v51  ;;  %v3069_v51 = vld [vmem:[#allocation9 + $0x18] sm:$0xff] }
 0x27a   :  { %12929 = vmatprep.subr.bf16.mxu1 %v20134_v16  ;;  %v20145_v16 = vld [vmem:[#allocation40_spill] sm:$0xff]  ;;  %v20157_v53 = vld [vmem:[#allocation47_spill] sm:$0xff] }
 0x27c   :  { %1653 = vmatmul.mubr.f32.gmra.mrb[18].mxu1 %v15975_v20  ;;  %v14622_v20 = vld [vmem:[#allocation4 + $0x10] sm:$0xff] }
 0x27d   :  { %1658 = vmatprep.mubr.f32.mxu1 %v15977_v25  ;;  %12931 = vmatpush3.bf16.msra.mxu1 %v20135_v38  ;;  %v20146_v38 = vld [vmem:[#allocation39_spill] sm:$0xff]  ;;  %v16128_v25 = vsub.f32 %v3066_v29, %v3088_v14 }
 0x27e   :  { %12933 = vmatprep.subr.bf16.mxu1 %v20136_v17  ;;  %v20147_v17 = vpack.c.bf16 %v20145_v16, %v20146_v38 }
 0x27f   :  { %v19711_v29 = vand.u32 4294901760, %v16128_v25 }
 0x280   :  { %1660 = vmatmul.mubr.f32.gmra.mrb[20].mxu1 %v16014_v27 }
 0x281   :  { %1665 = vmatprep.mubr.f32.mxu1 %v15991_v39  ;;  %12935 = vmatpush3.bf16.msra.mxu1 %v20137_v28  ;;  %v3094_v28 = vand.u32 4294901760, %v3068_v10  ;;  %v3103_v39 = vand.u32 4294901760, %v3071_v2 }
 0x282   :  { %12937 = vmatprep.subr.bf16.mxu1 %v20138_v24  ;;  %v3097_v24 = vand.u32 4294901760, %v3069_v51 }
 0x283   :  { %v16167_v26 = vsub.f32 %v3068_v10, %v3094_v28  ;;  %v20166_v10 = vld [vmem:[#allocation22_spill] sm:$0xff] }
 0x284   :  { %1667 = vmatmul.mubr.f32.gmra.mrb[22].mxu1 %v16006_v54 }
 0x285   :  { %12939 = vmatpush3.bf16.msra.mxu1 %v20139_v46  ;;  %1802 = vmatprep.mubr.f32.mxu1 %v15960_v32  ;;  %v16108_v46 = vand.u32 4294901760, %v3079_v60 }
 0x286   :  { %12941 = vmatprep.subr.bf16.mxu1 %v20140_v52  ;;  %v16110_v52 = vpack.c.bf16 %v3097_v24, %v3094_v28 }
 0x287   :  { %v16124_v27 = vsub.f32 %v3079_v60, %v16108_v46 }
 0x288   :  { %20148 = vst [vmem:[#allocation58_spill] sm:$0xff] %v16110_v52  ;;  %13249 = vmatprep.subr.bf16.mxu0 %v16110_v52 }
 0x289   :  { %12943 = vmatpush3.bf16.msra.mxu1 %v20141_v50  ;;  %v16113_v50 = vsub.f32 %v3081_v23, %v16098_v30  ;;  %13251 = vmatpush3.bf16.msra.mxu0 %v16110_v52 }
 0x28a   :  { %12945 = vmatprep.subr.bf16.mxu1 %v20142_v61  ;;  %v20151_v61 = vld [vmem:[#allocation41_spill] sm:$0xff] }
 0x28b   :  { %20149 = vst [vmem:[#allocation59_spill] sm:$0xff] %v16113_v50  ;;  %v20152_v22 = vpack.c.bf16 %v20150_v56, %v20151_v61  ;;  %v20160_v56 = vld [vmem:[#allocation24_spill] sm:$0xff] }
 0x28d   :  { %12947 = vmatpush3.bf16.msra.mxu1 %v20144_v36  ;;  %v3070_v36 = vld [vmem:[#allocation9 + $0x20] sm:$0xff] }
 0x28e   :  { %12949 = vmatprep.subr.bf16.mxu1 %v20147_v17  ;;  %v20153_v17 = vld [vmem:[#allocation44_spill] sm:$0xff]  ;;  %v3100_v54 = vand.u32 4294901760, %v3070_v36 }
 0x28f   :  { %v20155_v13 = vpack.c.bf16 %v20153_v17, %v20154_v33  ;;  %v3072_v17 = vld [vmem:[#allocation9 + $0x30] sm:$0xff]  ;;  %v16136_v33 = vld [vmem:[#allocation9 + $0x38] sm:$0xff] }
 0x290   :  { %v16126_v23 = vpack.c.bf16 %v3103_v39, %v3100_v54  ;;  %v3106_v60 = vand.u32 4294901760, %v3072_v17  ;;  %v19710_v61 = vand.u32 4294901760, %v16136_v33 }
 0x291   :  { %12951 = vmatpush3.bf16.msra.mxu1 %v20152_v22  ;;  %v16130_v22 = vsub.f32 %v3067_v3, %v3091_v63  ;;  %v20164_v63 = vld [vmem:[#allocation25_spill] sm:$0xff] }
 0x292   :  { %12953 = vmatprep.subr.bf16.mxu1 %v20155_v13  ;;  %20156 = vst [vmem:[#allocation60_spill] sm:$0xff] %v16126_v23  ;;  %v20159_v13 = vpack.c.bf16 %v20157_v53, %v20158_v49  ;;  %13253 = vmatprep.subr.bf16.mxu0 %v16126_v23  ;;  %v16147_v14 = vpack.c.bf16 %v19710_v61, %v3106_v60  ;;  %v20161_v53 = vld [vmem:[#allocation50_spill] sm:$0xff]  ;;  %v20162_v49 = vld [vmem:[#allocation21_spill] sm:$0xff]  ;;  %v20163_v61 = vand.u32 4294901760, %v16113_v50 }
 0x293   :  { %13255 = vmatpush3.bf16.msra.mxu0 %v16126_v23  ;;  %v19713_v3 = vand.u32 4294901760, %v16130_v22 }
 0x294   :  { %v3173_v16 = vsub.f32 %v16113_v50, %v20163_v61  ;;  %13257 = vmatprep.subr.bf16.mxu0 %v16147_v14  ;;  %v16175_v50 = vsub.f32 %v3069_v51, %v3097_v24  ;;  %v16188_v51 = vsub.f32 %v3071_v2, %v3103_v39 }
 0x295   :  { %12955 = vmatpush3.bf16.msra.mxu1 %v20159_v13  ;;  %v3204_v13 = vsub.f32 %v16128_v25, %v19711_v29  ;;  %v3211_v23 = vsub.f32 %v16130_v22, %v19713_v3  ;;  %v20165_v29 = vand.u32 4294901760, %v16124_v27 }
 0x296   :  { %12957 = vmatprep.subr.bf16.mxu1 %v20160_v56  ;;  %v3083_v56 = vsel %vm117_vm0, %v14622_v20, 0  ;;  %v3174_v52 = vand.u32 4294901760, %v3173_v16  ;;  %v19722_v39 = vand.u32 4294901760, %v16188_v51 }
 0x297   :  { %v3163_v20 = vsub.f32 %v16124_v27, %v20165_v29  ;;  %v3205_v38 = vand.u32 4294901760, %v3204_v13  ;;  %13259 = vmatpush3.bf16.msra.mxu0 %v16147_v14  ;;  %v3212_v3 = vand.u32 4294901760, %v3211_v23  ;;  %v16171_v12 = vand.u32 4294901760, %v3083_v56 }
 0x298   :  { %1805 = vmatmul.mubr.f32.vlgmr.msra.gmra.mrb[24].mxu1 %v15989_v41  ;;  %v19719_v23 = vand.u32 4294901760, %v16175_v50  ;;  %v16186_v13 = vsub.f32 %v3070_v36, %v3100_v54  ;;  %v20168_v54 = vld [vmem:[#allocation26_spill] sm:$0xff] }
 0x299   :  { %1811 = vmatprep.mubr.f32.mxu1 %v20161_v53  ;;  %12959 = vmatpush3.bf16.msra.mxu1 %v20162_v49  ;;  %v14623_v49 = vld [vmem:[#allocation4 + $0x18] sm:$0xff]  ;;  %v3164_v61 = vand.u32 4294901760, %v3163_v20  ;;  %v13260_v28 = vpack.c.bf16 %v3212_v3, %v3205_v38  ;;  %v16191_v24 = vsub.f32 %v3083_v56, %v16171_v12 }
 0x29a   :  { %12961 = vmatprep.subr.bf16.mxu1 %v20164_v63  ;;  %v3085_v37 = vsel %vm117_vm0, %v14623_v49, 0  ;;  %v19720_v63 = vand.u32 4294901760, %v16167_v26  ;;  %v20167_v49 = vld [vmem:[#allocation23_spill] sm:$0xff]  ;;  %v3225_v3 = vsub.f32 %v16175_v50, %v19719_v23  ;;  %v19721_v20 = vand.u32 4294901760, %v16186_v13 }
 0x29b   :  { %v16179_v29 = vand.u32 4294901760, %v3085_v37  ;;  %11568 = vmatprep.mubr.f32.mxu0 %v3164_v61  ;;  %13261 = vmatprep.subr.bf16.mxu0 %v13260_v28  ;;  %v16208_v61 = vsub.f32 %v3072_v17, %v3106_v60  ;;  %v20172_v17 = vld [vmem:[#allocation29_spill] sm:$0xff] }
 0x29c   :  { %1814 = vmatmul.mubr.f32.gmra.mrb[26].mxu1 %v15982_v47  ;;  %v3218_v16 = vsub.f32 %v16167_v26, %v19720_v63  ;;  %11569 = vmatmul.mubr.f32.vlgmr.msra.gmra.mrb[8].mxu0 %v3174_v52  ;;  %v20169_v52 = vld [vmem:[#allocation27_spill] sm:$0xff]  ;;  %v3226_v56 = vand.u32 4294901760, %v3225_v3  ;;  %v3232_v36 = vsub.f32 %v16186_v13, %v19721_v20  ;;  %v20170_v63 = vld [vmem:[#allocation28_spill] sm:$0xff]  ;;  %v20171_v3 = vand.u32 4294901760, %v15960_v32 }
 0x29d   :  { %1820 = vmatprep.mubr.f32.mxu1 %v15986_v59  ;;  %12963 = vmatpush3.bf16.msra.mxu1 %v20166_v10  ;;  %v16202_v2 = vsub.f32 %v3085_v37, %v16179_v29  ;;  %v19723_v37 = vand.u32 4294901760, %v16191_v24  ;;  %v19724_v20 = vand.u32 4294901760, %v16208_v61 }
 0x29e   :  { %12965 = vmatprep.subr.bf16.mxu1 %v20167_v49  ;;  %13263 = vmatpush3.bf16.msra.mxu0 %v13260_v28  ;;  %v3219_v38 = vand.u32 4294901760, %v3218_v16  ;;  %v3239_v28 = vsub.f32 %v16188_v51, %v19722_v39  ;;  %v3233_v23 = vand.u32 4294901760, %v3232_v36 }
 0x29f   :  { %v3183_v60 = vsub.f32 %v16191_v24, %v19723_v37  ;;  %v19725_v36 = vand.u32 4294901760, %v16202_v2 }
 0x2a0   :  { %1823 = vmatmul.mubr.f32.gmra.mrb[28].mxu1 %v16024_v40  ;;  %v13264_v16 = vpack.c.bf16 %v3226_v56, %v3219_v38  ;;  %v20173_v38 = vand.u32 4294901760, %v16136_v33 }
 0x2a1   :  { %1829 = vmatprep.mubr.f32.mxu1 %v16004_v8  ;;  %12967 = vmatpush3.bf16.msra.mxu1 %v20168_v54  ;;  %v3193_v37 = vsub.f32 %v16202_v2, %v19725_v36 }
 0x2a2   :  { %12969 = vmatprep.subr.bf16.mxu1 %v20169_v52  ;;  %v3240_v52 = vand.u32 4294901760, %v3239_v28  ;;  %13265 = vmatprep.subr.bf16.mxu0 %v13264_v16  ;;  %v16226_v56 = vsub.f32 %v16136_v33, %v20173_v38  ;;  %v3246_v28 = vsub.f32 %v16208_v61, %v19724_v20  ;;  %v20175_v33 = vld [vmem:[#allocation31_spill] sm:$0xff]  ;;  %v20177_v20 = vld [vmem:[#allocation33_spill] sm:$0xff] }
 0x2a3   :  { %13267 = vmatpush3.bf16.msra.mxu0 %v13264_v16 }
 0x2a4   :  { %1832 = vmatmul.mubr.f32.gmra.mrb[30].mxu1 %v16017_v48  ;;  %v13268_v32 = vpack.c.bf16 %v3240_v52, %v3233_v23  ;;  %v19726_v39 = vand.u32 4294901760, %v16226_v56  ;;  %v3247_v38 = vand.u32 4294901760, %v3246_v28  ;;  %v3194_v52 = vand.u32 4294901760, %v3193_v37  ;;  %v20178_v28 = vld [vmem:[#allocation34_spill] sm:$0xff] }
 0x2a5   :  { %12971 = vmatpush3.bf16.msra.mxu1 %v20170_v63  ;;  %1936 = vmatprep.mubr.f32.mxu1 %v20171_v3  ;;  %v3184_v3 = vand.u32 4294901760, %v3183_v60  ;;  %v20176_v60 = vld [vmem:[#allocation32_spill] sm:$0xff]  ;;  %v20180_v37 = vand.u32 4294901760, %v15648_v34  ;;  %v20185_v34 = vand.u32 4294901760, %v15661_v11  ;;  %v20190_v11 = vand.u32 4294901760, %v15672_v7 }
 0x2a6   :  { %12973 = vmatprep.subr.bf16.mxu1 %v20172_v17  ;;  %v20174_v17 = vld [vmem:[#allocation30_spill] sm:$0xff]  ;;  %13269 = vmatprep.subr.bf16.mxu0 %v13268_v32  ;;  %v3253_v23 = vsub.f32 %v16226_v56, %v19726_v39  ;;  %v20184_v39 = vand.u32 4294901760, %v15659_v42  ;;  %v20189_v42 = vand.u32 4294901760, %v15667_v9  ;;  %v20194_v9 = vand.u32 4294901760, %v15986_v59 }
 0x2a7   :  { %11571 = vmatprep.mubr.f32.mxu0 %v3184_v3  ;;  %13271 = vmatpush3.bf16.msra.mxu0 %v13268_v32  ;;  %v20179_v3 = vld [vmem:[#allocation35_spill] sm:$0xff]  ;;  %v20181_v32 = vand.u32 4294901760, %v15650_v35  ;;  %v20186_v35 = vand.u32 4294901760, %v15665_v15  ;;  %v20195_v7 = vand.u32 4294901760, %v15695_v0  ;;  %v20200_v59 = vand.u32 4294901760, %v16004_v8 }
 0x2a8   :  { %v3254_v16 = vand.u32 4294901760, %v3253_v23  ;;  %11572 = vmatmul.mubr.f32.gmra.mrb[10].mxu0 %v3194_v52  ;;  %v13280_v52 = vpack.c.bf16 %v16175_v50, %v16167_v26  ;;  %v12994_v15 = vpack.c.bf16 %v20190_v11, %v20189_v42  ;;  %v20201_v0 = vand.u32 4294901760, %v15709_v1  ;;  %v20215_v42 = vld [vmem:[#allocation38_spill] sm:$0xff] }
 0x2a9   :  { %12975 = vmatpush3.bf16.msra.mxu1 %v20174_v17  ;;  %11590 = vmatprep.mubr.f32.mxu0 %v16108_v46  ;;  %v12988_v23 = vpack.c.bf16 %v20181_v32, %v20180_v37  ;;  %v12992_v37 = vpack.c.bf16 %v20186_v35, %v20185_v34  ;;  %v13284_v32 = vpack.c.bf16 %v16188_v51, %v16186_v13  ;;  %v20206_v1 = vand.u32 4294901760, %v15723_v62  ;;  %v20209_v35 = vld [vmem:[#allocation36_spill] sm:$0xff] }
 0x2aa   :  { %12977 = vmatprep.subr.bf16.mxu1 %v20175_v33  ;;  %v13272_v36 = vpack.c.bf16 %v3254_v16, %v3247_v38  ;;  %v13276_v33 = vpack.c.bf16 %v16130_v22, %v16128_v25  ;;  %v20182_v38 = vld [vmem:[#allocation45_spill] sm:$0xff]  ;;  %v20183_v16 = vand.u32 4294901760, %v15657_v21  ;;  %v20188_v21 = vand.u32 4294901760, %v20161_v53 }
 0x2ab   :  { %v20193_v53 = vand.u32 4294901760, %v15982_v47  ;;  %v20199_v47 = vand.u32 4294901760, %v16024_v40  ;;  %v20205_v40 = vand.u32 4294901760, %v16017_v48  ;;  %v20212_v48 = vld [vmem:[#allocation58_spill] sm:$0xff] }
 0x2ac   :  { %13273 = vmatprep.subr.bf16.mxu0 %v13272_v36 }
 0x2ad   :  { %12979 = vmatpush3.bf16.msra.mxu1 %v20176_v60  ;;  %13275 = vmatpush3.bf16.msra.mxu0 %v13272_v36  ;;  %v12990_v36 = vpack.c.bf16 %v20184_v39, %v20183_v16  ;;  %v20191_v39 = vand.u32 4294901760, %v15691_v18  ;;  %v20196_v18 = vand.u32 4294901760, %v15697_v4  ;;  %v20202_v4 = vand.u32 4294901760, %v15711_v31 }
 0x2ae   :  { %12981 = vmatprep.subr.bf16.mxu1 %v20177_v20  ;;  %13277 = vmatprep.subr.bf16.mxu0 %v13276_v33  ;;  %v20207_v31 = vand.u32 4294901760, %v15725_v6  ;;  %v20216_v6 = vand.u32 4294901760, %v20215_v42  ;;  %v20247_v42 = vld [vmem:[#allocation25_spill] sm:$0xff] }
 0x2b0   :  { %11591 = vmatmul.mubr.f32.vlgmr.msra.gmra.mrb[8].mxu0 %v16098_v30  ;;  %v13006_v8 = vpack.c.bf16 %v20207_v31, %v20206_v1  ;;  %v20237_v31 = vand.u32 4294901760, %v16167_v26  ;;  %v20244_v26 = vand.u32 4294901760, %v16188_v51  ;;  %v20251_v51 = vand.u32 4294901760, %v16226_v56 }
 0x2b1   :  { %12983 = vmatpush3.bf16.msra.mxu1 %v20178_v28  ;;  %13279 = vmatpush3.bf16.msra.mxu0 %v13276_v33  ;;  %v20192_v33 = vand.u32 4294901760, %v15693_v57  ;;  %v12998_v57 = vpack.c.bf16 %v20196_v18, %v20195_v7  ;;  %v20225_v18 = vld [vmem:[#allocation42_spill] sm:$0xff] }
 0x2b2   :  { %12985 = vmatprep.subr.bf16.mxu1 %v20179_v3  ;;  %13281 = vmatprep.subr.bf16.mxu0 %v13280_v52 }
 0x2b3   :  { %11593 = vmatprep.mubr.f32.mxu0 %v16171_v12 }
 0x2b4   :  { %11594 = vmatmul.mubr.f32.gmra.mrb[10].mxu0 %v16179_v29 }
 0x2b5   :  { %12987 = vmatpush3.bf16.msra.mxu1 %v20182_v38  ;;  %v20187_v38 = vand.u32 4294901760, %v15989_v41  ;;  %13283 = vmatpush3.bf16.msra.mxu0 %v13280_v52  ;;  %v13288_v41 = vpack.c.bf16 %v16226_v56, %v16208_v61  ;;  %v20197_v52 = vand.u32 4294901760, %v15705_v45  ;;  %v20203_v45 = vand.u32 4294901760, %v15719_v58  ;;  %v16404_v56 = vld [vmem:[#allocation7 + $0x110] sm:$0xff] }
 0x2b6   :  { %12989 = vmatprep.subr.bf16.mxu1 %v12988_v23  ;;  %v12996_v23 = vpack.c.bf16 %v20192_v33, %v20191_v39  ;;  %13285 = vmatprep.subr.bf16.mxu0 %v13284_v32  ;;  %v20208_v58 = vand.u32 4294901760, %v15740_v44  ;;  %v20219_v39 = vld [vmem:[#allocation40_spill] sm:$0xff] }
 0x2b7   :  { %11612 = vmatprep.mubr.f32.mxu0 %v16124_v27  ;;  %v20220_v33 = vand.u32 4294901760, %v20219_v39  ;;  %v16418_v39 = vld [vmem:[#allocation7 + $0x128] sm:$0xff] }
 0x2b8   :  { %1940 = vmatmul.mubr.f32.vlgmr.msra.gmra.mrb[32].mxu1 %v20187_v38  ;;  %v20198_v38 = vand.u32 4294901760, %v15707_v43  ;;  %v20204_v43 = vand.u32 4294901760, %v15721_v5  ;;  %v20210_v5 = vand.u32 4294901760, %v20209_v35  ;;  %v20241_v35 = vand.u32 4294901760, %v16191_v24 }
 0x2b9   :  { %1947 = vmatprep.mubr.f32.mxu1 %v20188_v21  ;;  %12991 = vmatpush3.bf16.msra.mxu1 %v12990_v36  ;;  %v13002_v36 = vpack.c.bf16 %v20202_v4, %v20201_v0  ;;  %v20213_v21 = vld [vmem:[#allocation37_spill] sm:$0xff]  ;;  %v20232_v4 = vand.u32 4294901760, %v16130_v22 }
 0x2ba   :  { %12993 = vmatprep.subr.bf16.mxu1 %v12992_v37  ;;  %v13000_v16 = vpack.c.bf16 %v20198_v38, %v20197_v52  ;;  %13287 = vmatpush3.bf16.msra.mxu0 %v13284_v32  ;;  %v13004_v34 = vpack.c.bf16 %v20204_v43, %v20203_v45  ;;  %v13008_v37 = vpack.c.bf16 %v20210_v5, %v20208_v58  ;;  %v20211_v32 = vld [vmem:[#allocation59_spill] sm:$0xff]  ;;  %v20214_v62 = vand.u32 4294901760, %v20213_v21  ;;  %v20233_v45 = vld [vmem:[#allocation46_spill] sm:$0xff]  ;;  %v20242_v5 = vld [vmem:[#allocation53_spill] sm:$0xff] }
 0x2bb   :  { %13289 = vmatprep.subr.bf16.mxu0 %v13288_v41  ;;  %v20227_v38 = vld [vmem:[#allocation43_spill] sm:$0xff]  ;;  %v20234_v43 = vand.u32 4294901760, %v20233_v45  ;;  %v20240_v22 = vand.u32 4294901760, %v20211_v32  ;;  %v1203_v45 = vld [vmem:[#allocation2 + $0x28] sm:$0xff] }
 0x2bc   :  { %1951 = vmatmul.mubr.f32.gmra.mrb[34].mxu1 %v20193_v53  ;;  %v13010_v11 = vpack.c.bf16 %v20216_v6, %v20214_v62  ;;  %v20222_v53 = vld [vmem:[#allocation60_spill] sm:$0xff]  ;;  %v20246_v62 = vld [vmem:[#allocation21_spill] sm:$0xff] }
 0x2bd   :  { %1958 = vmatprep.mubr.f32.mxu1 %v20194_v9  ;;  %12995 = vmatpush3.bf16.msra.mxu1 %v12994_v15  ;;  %v20217_v15 = vld [vmem:[#allocation39_spill] sm:$0xff]  ;;  %v20223_v9 = vld [vmem:[#allocation41_spill] sm:$0xff] }
 0x2be   :  { %12997 = vmatprep.subr.bf16.mxu1 %v12996_v23  ;;  %13291 = vmatpush3.bf16.msra.mxu0 %v13288_v41  ;;  %v20218_v44 = vand.u32 4294901760, %v20217_v15  ;;  %v20221_v41 = vand.u32 4294901760, %v16124_v27  ;;  %v20224_v7 = vand.u32 4294901760, %v20223_v9  ;;  %v20231_v27 = vand.u32 4294901760, %v16128_v25  ;;  %v20239_v25 = vld [vmem:[#allocation24_spill] sm:$0xff]  ;;  %v20254_v15 = vld [vmem:[#allocation54_spill] sm:$0xff] }
 0x2bf   :  { %13293 = vmatprep.subr.bf16.mxu0 %v16095_v19  ;;  %v16435_v9 = vld [vmem:[#allocation7 + $0x130] sm:$0xff] }
 0x2c0   :  { %1962 = vmatmul.mubr.f32.gmra.mrb[36].mxu1 %v20199_v47  ;;  %v13012_v23 = vpack.c.bf16 %v20220_v33, %v20218_v44  ;;  %v20229_v47 = vld [vmem:[#allocation44_spill] sm:$0xff]  ;;  %v20255_v44 = vld [vmem:[#allocation27_spill] sm:$0xff]  ;;  %v20259_v33 = vld [vmem:[#allocation49_spill] sm:$0xff] }
 0x2c1   :  { %1969 = vmatprep.mubr.f32.mxu1 %v20200_v59  ;;  %12999 = vmatpush3.bf16.msra.mxu1 %v12998_v57  ;;  %v20226_v57 = vand.u32 4294901760, %v20225_v18  ;;  %v20230_v59 = vand.u32 4294901760, %v20229_v47  ;;  %v2311_v18 = vand.u32 4294901760, %v16435_v9 }
 0x2c2   :  { %13001 = vmatprep.subr.bf16.mxu1 %v13000_v16  ;;  %11613 = vmatmul.mubr.f32.vlgmr.msra.gmra.mrb[8].mxu0 %v20211_v32  ;;  %v20228_v16 = vand.u32 4294901760, %v20227_v38  ;;  %v20248_v32 = vand.u32 4294901760, %v16202_v2  ;;  %v16460_v38 = vld [vmem:[#allocation7 + $0x148] sm:$0xff] }
 0x2c3   :  { %13295 = vmatpush3.bf16.msra.mxu0 %v16095_v19  ;;  %11615 = vmatprep.mubr.f32.mxu0 %v16191_v24  ;;  %v13014_v52 = vpack.c.bf16 %v20226_v57, %v20224_v7  ;;  %v20249_v24 = vld [vmem:[#allocation51_spill] sm:$0xff] }
 0x2c4   :  { %1973 = vmatmul.mubr.f32.gmra.mrb[38].mxu1 %v20205_v40  ;;  %13297 = vmatprep.subr.bf16.mxu0 %v20212_v48  ;;  %v13016_v0 = vpack.c.bf16 %v20230_v59, %v20228_v16  ;;  %v16437_v7 = vld [vmem:[#allocation7 + $0x138] sm:$0xff] }
 0x2c5   :  { %13003 = vmatpush3.bf16.msra.mxu1 %v13002_v36  ;;  %2139 = vmatprep.mubr.f32.mxu1 %v15957_v55  ;;  %v13308_v36 = vpack.c.bf16 %v20232_v4, %v20231_v27  ;;  %v2314_v57 = vand.u32 4294901760, %v16437_v7  ;;  %v16475_v27 = vld [vmem:[#allocation7 + $0x158] sm:$0xff]  ;;  %v16480_v4 = vld [vmem:[#allocation7 + $0x160] sm:$0xff] }
 0x2c6   :  { %13005 = vmatprep.subr.bf16.mxu1 %v13004_v34  ;;  %11616 = vmatmul.mubr.f32.gmra.mrb[10].mxu0 %v16202_v2  ;;  %v20235_v34 = vld [vmem:[#allocation47_spill] sm:$0xff]  ;;  %v20253_v2 = vld [vmem:[#allocation57_spill] sm:$0xff] }
 0x2c7   :  { %13299 = vmatpush3.bf16.msra.mxu0 %v20212_v48  ;;  %11634 = vmatprep.mubr.f32.mxu0 %v20221_v41  ;;  %v20236_v40 = vand.u32 4294901760, %v20235_v34  ;;  %v20260_v41 = vld [vmem:[#allocation45_spill] sm:$0xff]  ;;  %v16466_v16 = vpack.c.bf16 %v2314_v57, %v2311_v18 }
 0x2c8   :  { %13301 = vmatprep.subr.bf16.mxu0 %v20222_v53 }
 0x2c9   :  { %13007 = vmatpush3.bf16.msra.mxu1 %v13006_v8  ;;  %v13018_v1 = vpack.c.bf16 %v20236_v40, %v20234_v43  ;;  %v20238_v8 = vand.u32 4294901760, %v16175_v50  ;;  %v20245_v50 = vld [vmem:[#allocation48_spill] sm:$0xff] }
 0x2ca   :  { %13009 = vmatprep.subr.bf16.mxu1 %v13008_v37  ;;  %v20243_v37 = vand.u32 4294901760, %v16186_v13  ;;  %v20250_v13 = vand.u32 4294901760, %v16208_v61  ;;  %v20256_v61 = vld [vmem:[#allocation56_spill] sm:$0xff] }
 0x2cb   :  { %13303 = vmatpush3.bf16.msra.mxu0 %v20222_v53  ;;  %v13312_v58 = vpack.c.bf16 %v20238_v8, %v20237_v31  ;;  %v2326_v31 = vand.u32 4294901760, %v16475_v27 }
 0x2cc   :  { %13305 = vmatprep.subr.bf16.mxu0 %v16147_v14  ;;  %v13316_v21 = vpack.c.bf16 %v20244_v26, %v20243_v37  ;;  %v13320_v6 = vpack.c.bf16 %v20251_v51, %v20250_v13  ;;  %v1209_v37 = vld [vmem:[#allocation2 + $0x58] sm:$0xff] }
 0x2cd   :  { %13011 = vmatpush3.bf16.msra.mxu1 %v13010_v11  ;;  %v20252_v11 = vld [vmem:[#allocation52_spill] sm:$0xff] }
 0x2ce   :  { %13013 = vmatprep.subr.bf16.mxu1 %v13012_v23  ;;  %v16421_v23 = vand.u32 4294901760, %v20259_v33 }
 0x2cf   :  { %13307 = vmatpush3.bf16.msra.mxu0 %v16147_v14 }
 0x2d0   :  { %13309 = vmatprep.subr.bf16.mxu0 %v13308_v36 }
 0x2d1   :  { %13015 = vmatpush3.bf16.msra.mxu1 %v13014_v52  ;;  %v16458_v52 = vld [vmem:[#allocation7 + $0x140] sm:$0xff] }
 0x2d2   :  { %13017 = vmatprep.subr.bf16.mxu1 %v13016_v0  ;;  %11635 = vmatmul.mubr.f32.vlgmr.msra.gmra.mrb[8].mxu0 %v20240_v22  ;;  %v2317_v47 = vand.u32 4294901760, %v16458_v52  ;;  %v16473_v0 = vld [vmem:[#allocation7 + $0x150] sm:$0xff]  ;;  %v16500_v22 = vand.u32 4294901760, %v1203_v45 }
 0x2d3   :  { %13311 = vmatpush3.bf16.msra.mxu0 %v13308_v36  ;;  %11637 = vmatprep.mubr.f32.mxu0 %v20241_v35  ;;  %v16482_v36 = vld [vmem:[#allocation7 + $0x168] sm:$0xff] }
 0x2d4   :  { %13313 = vmatprep.subr.bf16.mxu0 %v13312_v58  ;;  %v16536_v51 = vsub.f32 %v1203_v45, %v16500_v22  ;;  %v16603_v45 = vsub.f32 %v16458_v52, %v2317_v47 }
 0x2d5   :  { %13019 = vmatpush3.bf16.msra.mxu1 %v13018_v1  ;;  %v2323_v1 = vand.u32 4294901760, %v16473_v0 }
 0x2d6   :  { %13021 = vmatprep.subr.bf16.mxu1 %v20239_v25  ;;  %11638 = vmatmul.mubr.f32.gmra.mrb[10].mxu0 %v20248_v32  ;;  %v2332_v25 = vand.u32 4294901760, %v16482_v36  ;;  %v20261_v32 = vld [vmem:[#allocation55_spill] sm:$0xff] }
 0x2d7   :  { %13315 = vmatpush3.bf16.msra.mxu0 %v13312_v58  ;;  %11656 = vmatprep.mubr.f32.mxu0 %v16108_v46  ;;  %v2329_v58 = vand.u32 4294901760, %v16480_v4  ;;  %v16510_v26 = vpack.c.bf16 %v2326_v31, %v2323_v1 }
 0x2d8   :  { %2141 = vmatmul.mubr.f32.vlgmr.msra.gmra.mrb[40].mxu1 %v20242_v5  ;;  %13317 = vmatprep.subr.bf16.mxu0 %v13316_v21 }
 0x2d9   :  { %2146 = vmatprep.mubr.f32.mxu1 %v20245_v50  ;;  %13023 = vmatpush3.bf16.msra.mxu1 %v20246_v62  ;;  %v16533_v13 = vpack.c.bf16 %v2332_v25, %v2329_v58 }
 0x2da   :  { %13025 = vmatprep.subr.bf16.mxu1 %v20247_v42 }
 0x2db   :  { %13319 = vmatpush3.bf16.msra.mxu0 %v13316_v21  ;;  %v16512_v21 = vld [vmem:[#allocation7 + $0x170] sm:$0xff] }
 0x2dc   :  { %2148 = vmatmul.mubr.f32.gmra.mrb[42].mxu1 %v20249_v24  ;;  %13321 = vmatprep.subr.bf16.mxu0 %v13320_v6 }
 0x2dd   :  { %2153 = vmatprep.mubr.f32.mxu1 %v20252_v11  ;;  %13027 = vmatpush3.bf16.msra.mxu1 %v20166_v10  ;;  %v20257_v10 = vld [vmem:[#allocation29_spill] sm:$0xff] }
 0x2de   :  { %13029 = vmatprep.subr.bf16.mxu1 %v20167_v49  ;;  %v20258_v49 = vld [vmem:[#allocation31_spill] sm:$0xff] }
 0x2df   :  { %13323 = vmatpush3.bf16.msra.mxu0 %v13320_v6  ;;  %v16538_v6 = vand.u32 4294901760, %v1209_v37 }
 0x2e0   :  { %2155 = vmatmul.mubr.f32.gmra.mrb[44].mxu1 %v20253_v2  ;;  %13325 = vmatprep.subr.bf16.mxu0 %v16095_v19 }
 0x2e1   :  { %2160 = vmatprep.mubr.f32.mxu1 %v20254_v15  ;;  %13031 = vmatpush3.bf16.msra.mxu1 %v20168_v54  ;;  %v1242_v54 = vld [vmem:[#allocation7 + $0x100] sm:$0xff] }
 0x2e2   :  { %13033 = vmatprep.subr.bf16.mxu1 %v20255_v44  ;;  %11657 = vmatmul.mubr.f32.vlgmr.msra.gmra.mrb[8].mxu0 %v16098_v30 }
 0x2e3   :  { %13327 = vmatpush3.bf16.msra.mxu0 %v16095_v19  ;;  %11659 = vmatprep.mubr.f32.mxu0 %v16171_v12 }
 0x2e4   :  { %2162 = vmatmul.mubr.f32.gmra.mrb[46].mxu1 %v20256_v61  ;;  %13329 = vmatprep.subr.bf16.mxu0 %v20212_v48 }
 0x2e5   :  { %13035 = vmatpush3.bf16.msra.mxu1 %v20170_v63  ;;  %2264 = vmatprep.mubr.f32.mxu1 %v15957_v55  ;;  %v1243_v63 = vld [vmem:[#allocation7 + $0x108] sm:$0xff]  ;;  %v2293_v55 = vand.u32 4294901760, %v1242_v54 }
 0x2e6   :  { %13037 = vmatprep.subr.bf16.mxu1 %v20257_v10  ;;  %11660 = vmatmul.mubr.f32.gmra.mrb[10].mxu0 %v16179_v29  ;;  %v2296_v19 = vand.u32 4294901760, %v1243_v63 }
 0x2e7   :  { %13331 = vmatpush3.bf16.msra.mxu0 %v20212_v48  ;;  %11678 = vmatprep.mubr.f32.mxu0 %v16108_v46  ;;  %v16416_v48 = vld [vmem:[#allocation7 + $0x120] sm:$0xff]  ;;  %v16484_v43 = vsub.f32 %v1242_v54, %v2293_v55 }
 0x2e8   :  { %13333 = vmatprep.subr.bf16.mxu0 %v20222_v53  ;;  %v16412_v46 = vpack.c.bf16 %v2296_v19, %v2293_v55  ;;  %v16486_v34 = vsub.f32 %v1243_v63, %v2296_v19  ;;  %v2385_v55 = vand.u32 4294901760, %v16536_v51  ;;  %v16568_v19 = vsub.f32 %v16435_v9, %v2311_v18 }
 0x2e9   :  { %13039 = vmatpush3.bf16.msra.mxu1 %v20174_v17  ;;  %v16406_v17 = vld [vmem:[#allocation7 + $0x118] sm:$0xff]  ;;  %v2416_v35 = vand.u32 4294901760, %v16484_v43 }
 0x2ea   :  { %13041 = vmatprep.subr.bf16.mxu1 %v20258_v49  ;;  %v2386_v9 = vsub.f32 %v16536_v51, %v2385_v55 }
 0x2eb   :  { %13335 = vmatpush3.bf16.msra.mxu0 %v20222_v53  ;;  %v2308_v53 = vand.u32 4294901760, %v16418_v39 }
 0x2ec   :  { %13337 = vmatprep.subr.bf16.mxu0 %v16147_v14 }
 0x2ed   :  { %13043 = vmatpush3.bf16.msra.mxu1 %v20176_v60  ;;  %v2299_v60 = vand.u32 4294901760, %v16404_v56  ;;  %v16560_v54 = vsub.f32 %v16418_v39, %v2308_v53 }
 0x2ee   :  { %13045 = vmatprep.subr.bf16.mxu1 %v20177_v20  ;;  %v2302_v20 = vand.u32 4294901760, %v16406_v17 }
 0x2ef   :  { %13339 = vmatpush3.bf16.msra.mxu0 %v16147_v14  ;;  %v16441_v14 = vsub.f32 %v20259_v33, %v16421_v23  ;;  %v16519_v62 = vsub.f32 %v16404_v56, %v2299_v60  ;;  %v16571_v56 = vsub.f32 %v16437_v7, %v2314_v57  ;;  %v19727_v7 = vand.u32 4294901760, %v16568_v19 }
 0x2f0   :  { %v16524_v42 = vsub.f32 %v16406_v17, %v2302_v20 }
 0x2f1   :  { %13047 = vmatpush3.bf16.msra.mxu1 %v20178_v28  ;;  %v16430_v28 = vpack.c.bf16 %v2302_v20, %v2299_v60  ;;  %v19729_v18 = vand.u32 4294901760, %v16571_v56 }
 0x2f2   :  { %13049 = vmatprep.subr.bf16.mxu1 %v20179_v3  ;;  %v2305_v3 = vand.u32 4294901760, %v16416_v48  ;;  %11679 = vmatmul.mubr.f32.vlgmr.msra.gmra.mrb[8].mxu0 %v16098_v30  ;;  %v2437_v10 = vand.u32 4294901760, %v16524_v42 }
 0x2f3   :  { %11681 = vmatprep.mubr.f32.mxu0 %v16171_v12  ;;  %v2375_v12 = vand.u32 4294901760, %v16441_v14 }
 0x2f4   :  { %v16452_v30 = vpack.c.bf16 %v2308_v53, %v2305_v3  ;;  %v16555_v49 = vsub.f32 %v16416_v48, %v2305_v3  ;;  %v16581_v48 = vsub.f32 %v1209_v37, %v16538_v6  ;;  %v2438_v33 = vsub.f32 %v16524_v42, %v2437_v10 }
 0x2f5   :  { %13051 = vmatpush3.bf16.msra.mxu1 %v20260_v41  ;;  %v2376_v59 = vsub.f32 %v16441_v14, %v2375_v12  ;;  %v19728_v3 = vand.u32 4294901760, %v16560_v54 }
 0x2f6   :  { %13053 = vmatprep.subr.bf16.mxu1 %v16412_v46  ;;  %11682 = vmatmul.mubr.f32.gmra.mrb[10].mxu0 %v16179_v29  ;;  %v2320_v29 = vand.u32 4294901760, %v16460_v38  ;;  %v19730_v41 = vand.u32 4294901760, %v16555_v49 }
 0x2f7   :  { %v2377_v8 = vand.u32 4294901760, %v2376_v59  ;;  %v19731_v59 = vand.u32 4294901760, %v16581_v48 }
 0x2f8   :  { %2266 = vmatmul.mubr.f32.vlgmr.msra.gmra.mrb[48].mxu1 %v20242_v5  ;;  %v16493_v40 = vpack.c.bf16 %v2320_v29, %v2317_v47  ;;  %v2423_v5 = vand.u32 4294901760, %v16486_v34  ;;  %v2387_v47 = vand.u32 4294901760, %v2386_v9 }
 0x2f9   :  { %2271 = vmatprep.mubr.f32.mxu1 %v20245_v50  ;;  %13055 = vmatpush3.bf16.msra.mxu1 %v16412_v46  ;;  %v16514_v50 = vld [vmem:[#allocation7 + $0x178] sm:$0xff] }
 0x2fa   :  { %13057 = vmatprep.subr.bf16.mxu1 %v16430_v28  ;;  %v2424_v44 = vsub.f32 %v16486_v34, %v2423_v5 }
 0x2fc   :  { %2273 = vmatmul.mubr.f32.gmra.mrb[50].mxu1 %v20249_v24  ;;  %v16527_v24 = vand.u32 4294901760, %v20261_v32  ;;  %v2425_v20 = vand.u32 4294901760, %v2424_v44  ;;  %v2452_v44 = vsub.f32 %v16560_v54, %v19728_v3 }
 0x2fd   :  { %2278 = vmatprep.mubr.f32.mxu1 %v20252_v11  ;;  %13059 = vmatpush3.bf16.msra.mxu1 %v16430_v28  ;;  %v2335_v11 = vand.u32 4294901760, %v16512_v21 }
 0x2fe   :  { %13061 = vmatprep.subr.bf16.mxu1 %v16452_v30  ;;  %v16564_v63 = vsub.f32 %v20261_v32, %v16527_v24  ;;  %v2439_v32 = vand.u32 4294901760, %v2438_v33  ;;  %v16635_v33 = vsub.f32 %v16473_v0, %v2323_v1  ;;  %v2453_v3 = vand.u32 4294901760, %v2452_v44 }
 0x300   :  { %2280 = vmatmul.mubr.f32.gmra.mrb[52].mxu1 %v20253_v2  ;;  %v2338_v2 = vand.u32 4294901760, %v16514_v50  ;;  %v19732_v53 = vand.u32 4294901760, %v16564_v63 }
 0x301   :  { %2285 = vmatprep.mubr.f32.mxu1 %v20254_v15  ;;  %13063 = vmatpush3.bf16.msra.mxu1 %v16452_v30  ;;  %v2417_v15 = vsub.f32 %v16484_v43, %v2416_v35 }
 0x302   :  { %13065 = vmatprep.subr.bf16.mxu1 %v16466_v16  ;;  %v16578_v17 = vpack.c.bf16 %v2338_v2, %v2335_v11  ;;  %v2396_v52 = vsub.f32 %v16564_v63, %v19732_v53 }
 0x303   :  { %v2418_v60 = vand.u32 4294901760, %v2417_v15  ;;  %v2445_v15 = vsub.f32 %v16555_v49, %v19730_v41 }
 0x304   :  { %2287 = vmatmul.mubr.f32.gmra.mrb[54].mxu1 %v20256_v61  ;;  %v2430_v61 = vand.u32 4294901760, %v16519_v62  ;;  %v2397_v41 = vand.u32 4294901760, %v2396_v52 }
 0x305   :  { %13067 = vmatpush3.bf16.msra.mxu1 %v16466_v16  ;;  %11356 = vmatprep.mubr.f32.mxu1 %v2377_v8  ;;  %v13084_v57 = vpack.c.bf16 %v2425_v20, %v2418_v60  ;;  %v16608_v8 = vsub.f32 %v16460_v38, %v2320_v29  ;;  %v2459_v38 = vsub.f32 %v16568_v19, %v19727_v7  ;;  %v2472_v20 = vand.u32 4294901760, %v16603_v45 }
 0x306   :  { %13069 = vmatprep.subr.bf16.mxu1 %v16493_v40  ;;  %v2431_v39 = vsub.f32 %v16519_v62, %v2430_v61  ;;  %v2466_v29 = vsub.f32 %v16571_v56, %v19729_v18  ;;  %v2406_v60 = vsub.f32 %v16581_v48, %v19731_v59  ;;  %v2446_v7 = vand.u32 4294901760, %v2445_v15 }
 0x307   :  { %v16640_v18 = vsub.f32 %v16475_v27, %v2326_v31  ;;  %v2460_v59 = vand.u32 4294901760, %v2459_v38  ;;  %v2473_v0 = vsub.f32 %v16603_v45, %v2472_v20  ;;  %v16652_v27 = vsub.f32 %v16480_v4, %v2329_v58 }
 0x308   :  { %v2432_v37 = vand.u32 4294901760, %v2431_v39  ;;  %v2479_v39 = vand.u32 4294901760, %v16608_v8  ;;  %v2467_v53 = vand.u32 4294901760, %v2466_v29  ;;  %v2407_v31 = vand.u32 4294901760, %v2406_v60 }
 0x309   :  { %13071 = vmatpush3.bf16.msra.mxu1 %v16493_v40  ;;  %v2474_v44 = vand.u32 4294901760, %v2473_v0  ;;  %v19736_v58 = vand.u32 4294901760, %v16652_v27 }
 0x30a   :  { %13073 = vmatprep.subr.bf16.mxu1 %v16510_v26  ;;  %v13088_v9 = vpack.c.bf16 %v2439_v32, %v2432_v37  ;;  %v2480_v1 = vsub.f32 %v16608_v8, %v2479_v39  ;;  %v2486_v37 = vand.u32 4294901760, %v16635_v33  ;;  %v13092_v32 = vpack.c.bf16 %v2453_v3, %v2446_v7 }
 0x30b   :  { %v13096_v15 = vpack.c.bf16 %v2467_v53, %v2460_v59  ;;  %v16677_v53 = vsub.f32 %v16514_v50, %v2338_v2 }
 0x30c   :  { %v2481_v52 = vand.u32 4294901760, %v2480_v1  ;;  %v2487_v4 = vsub.f32 %v16635_v33, %v2486_v37 }
 0x30d   :  { %13075 = vmatpush3.bf16.msra.mxu1 %v16510_v26 }
 0x30e   :  { %13077 = vmatprep.subr.bf16.mxu1 %v16533_v13  ;;  %v13100_v7 = vpack.c.bf16 %v2481_v52, %v2474_v44  ;;  %v2488_v59 = vand.u32 4294901760, %v2487_v4 }
 0x311   :  { %13079 = vmatpush3.bf16.msra.mxu1 %v16533_v13 }
 0x312   :  { %13081 = vmatprep.subr.bf16.mxu1 %v16578_v17 }
 0x315   :  { %13083 = vmatpush3.bf16.msra.mxu1 %v16578_v17 }
 0x316   :  { %13085 = vmatprep.subr.bf16.mxu1 %v13084_v57 }
 0x318   :  { %11357 = vmatmul.mubr.f32.vlgmr.msra.gmra.mrb[56].mxu1 %v2387_v47  ;;  %v2501_v47 = vsub.f32 %v16652_v27, %v19736_v58 }
 0x319   :  { %11359 = vmatprep.mubr.f32.mxu1 %v2397_v41  ;;  %13087 = vmatpush3.bf16.msra.mxu1 %v13084_v57  ;;  %v2493_v41 = vand.u32 4294901760, %v16640_v18  ;;  %v16658_v57 = vsub.f32 %v16482_v36, %v2332_v25  ;;  %v16672_v25 = vsub.f32 %v16512_v21, %v2335_v11  ;;  %v19733_v11 = vand.u32 4294901760, %v16677_v53 }
 0x31a   :  { %13089 = vmatprep.subr.bf16.mxu1 %v13088_v9  ;;  %v2502_v50 = vand.u32 4294901760, %v2501_v47 }
 0x31b   :  { %v2494_v3 = vsub.f32 %v16640_v18, %v2493_v41  ;;  %v19735_v36 = vand.u32 4294901760, %v16658_v57  ;;  %v19734_v21 = vand.u32 4294901760, %v16672_v25  ;;  %v2522_v0 = vsub.f32 %v16677_v53, %v19733_v11 }
 0x31c   :  { %11360 = vmatmul.mubr.f32.gmra.mrb[58].mxu1 %v2407_v31 }
 0x31d   :  { %13091 = vmatpush3.bf16.msra.mxu1 %v13088_v9  ;;  %11394 = vmatprep.mubr.f32.mxu1 %v16421_v23  ;;  %v2495_v38 = vand.u32 4294901760, %v2494_v3  ;;  %v2508_v29 = vsub.f32 %v16658_v57, %v19735_v36  ;;  %v2515_v9 = vsub.f32 %v16672_v25, %v19734_v21 }
 0x31e   :  { %13093 = vmatprep.subr.bf16.mxu1 %v13092_v32 }
 0x31f   :  { %v13104_v2 = vpack.c.bf16 %v2495_v38, %v2488_v59  ;;  %v2509_v60 = vand.u32 4294901760, %v2508_v29  ;;  %v2516_v31 = vand.u32 4294901760, %v2515_v9  ;;  %v13116_v38 = vpack.c.bf16 %v16486_v34, %v16484_v43 }
 0x321   :  { %13095 = vmatpush3.bf16.msra.mxu1 %v13092_v32  ;;  %v13108_v1 = vpack.c.bf16 %v2509_v60, %v2502_v50  ;;  %v2523_v32 = vand.u32 4294901760, %v2522_v0  ;;  %v13120_v60 = vpack.c.bf16 %v16524_v42, %v16519_v62  ;;  %v20264_v62 = vand.u32 4294901760, %v16560_v54 }
 0x322   :  { %13097 = vmatprep.subr.bf16.mxu1 %v13096_v15 }
 0x323   :  { %v13112_v4 = vpack.c.bf16 %v2523_v32, %v2516_v31  ;;  %v13128_v31 = vpack.c.bf16 %v16571_v56, %v16568_v19  ;;  %v13132_v32 = vpack.c.bf16 %v16608_v8, %v16603_v45  ;;  %v20270_v8 = vand.u32 4294901760, %v16672_v25 }
 0x325   :  { %13099 = vmatpush3.bf16.msra.mxu1 %v13096_v15 }
 0x326   :  { %13101 = vmatprep.subr.bf16.mxu1 %v13100_v7 }
 0x329   :  { %13103 = vmatpush3.bf16.msra.mxu1 %v13100_v7 }
 0x32a   :  { %13105 = vmatprep.subr.bf16.mxu1 %v13104_v2 }
 0x32b   :  { %v9892_v44 = vpop.f32.mrb[8].mxu1 }
 0x32c   :  { %v9893_v52 = vpop.f32.mrb[9].mxu1 }
 0x32d   :  { %v9894_v15 = vadd.f32 %v9893_v52, %v9892_v44  ;;  %13107 = vmatpush3.bf16.msra.mxu1 %v13104_v2  ;;  %v13136_v44 = vpack.c.bf16 %v16640_v18, %v16635_v33  ;;  %v9856_v52 = vld [vmem:[%s19565_s6 + $0x1] ss:$0 sm:$0xff] }
 0x32e   :  { %13109 = vmatprep.subr.bf16.mxu1 %v13108_v1 }
 0x32f   :  { %v9895_v3 = vpop.f32.mrb[10].mxu1 }
 0x330   :  { %v9896_v59 = vpop.f32.mrb[11].mxu1 }
 0x331   :  { %13111 = vmatpush3.bf16.msra.mxu1 %v13108_v1  ;;  %v9897_v47 = vadd.f32 %v9896_v59, %v9895_v3  ;;  %v13124_v1 = vpack.c.bf16 %v16560_v54, %v16555_v49  ;;  %v13200_v54 = vpack.c.bf16 %v2493_v41, %v2486_v37 }
 0x332   :  { %13113 = vmatprep.subr.bf16.mxu1 %v13112_v4 }
 0x333   :  { %v9898_v29 = vpop.f32.mrb[12].mxu1 }
 0x334   :  { %v9899_v7 = vpop.f32.mrb[13].mxu1 }
 0x335   :  { %13115 = vmatpush3.bf16.msra.mxu1 %v13112_v4  ;;  %v9900_v50 = vadd.f32 %v9899_v7, %v9898_v29  ;;  %v13140_v4 = vpack.c.bf16 %v16658_v57, %v16652_v27  ;;  %v13144_v7 = vpack.c.bf16 %v16677_v53, %v16672_v25 }
 0x336   :  { %13117 = vmatprep.subr.bf16.mxu1 %v13116_v38 }
 0x337   :  { %v9901_v9 = vpop.f32.mrb[14].mxu1  ;;  %v1401_v36 = vadd.f32 %v9900_v50, %v9856_v52  ;;  %v3806_v50 = vld [vmem:[#allocation10] sm:$0xff] }
 0x338   :  { %11395 = vmatmul.mubr.f32.vlgmr.msra.gmra.mrb[56].mxu1 %v16500_v22  ;;  %v9902_v2 = vpop.f32.mrb[15].mxu1 }
 0x339   :  { %11397 = vmatprep.mubr.f32.mxu1 %v16527_v24  ;;  %13119 = vmatpush3.bf16.msra.mxu1 %v13116_v38  ;;  %v9903_v0 = vadd.f32 %v9902_v2, %v9901_v9  ;;  %v1371_v38 = vadd.f32 %v9894_v15, %v9856_v52 }
 0x33a   :  { %13121 = vmatprep.subr.bf16.mxu1 %v13120_v60 }
 0x33c   :  { %11398 = vmatmul.mubr.f32.gmra.mrb[58].mxu1 %v16538_v6 }
 0x33d   :  { %13123 = vmatpush3.bf16.msra.mxu1 %v13120_v60  ;;  %11432 = vmatprep.mubr.f32.mxu1 %v16441_v14 }
 0x33e   :  { %13125 = vmatprep.subr.bf16.mxu1 %v13124_v1 }
 0x341   :  { %13127 = vmatpush3.bf16.msra.mxu1 %v13124_v1  ;;  %v1386_v1 = vadd.f32 %v9897_v47, %v9856_v52 }
 0x342   :  { %13129 = vmatprep.subr.bf16.mxu1 %v13128_v31 }
 0x345   :  { %13131 = vmatpush3.bf16.msra.mxu1 %v13128_v31 }
 0x346   :  { %13133 = vmatprep.subr.bf16.mxu1 %v13132_v32 }
 0x349   :  { %13135 = vmatpush3.bf16.msra.mxu1 %v13132_v32 }
 0x34a   :  { %13137 = vmatprep.subr.bf16.mxu1 %v13136_v44 }
 0x34b   :  { %v9936_v3 = vpop.f32.mrb[16].mxu1 }
 0x34c   :  { %v9937_v59 = vpop.f32.mrb[17].mxu1 }
 0x34d   :  { %v9938_v29 = vadd.f32 %v9937_v59, %v9936_v3  ;;  %13139 = vmatpush3.bf16.msra.mxu1 %v13136_v44 }
 0x34e   :  { %13141 = vmatprep.subr.bf16.mxu1 %v13140_v4 }
 0x34f   :  { %v16716_v60 = vadd.f32 %v9938_v29, %v1371_v38  ;;  %v9939_v9 = vpop.f32.mrb[18].mxu1  ;;  %v1416_v38 = vadd.f32 %v9903_v0, %v9856_v52  ;;  %v3823_v29 = vld [vmem:[#allocation10 + $0x88] sm:$0xff] }
 0x350   :  { %v9940_v2 = vpop.f32.mrb[19].mxu1 }
 0x351   :  { %v9941_v31 = vadd.f32 %v9940_v2, %v9939_v9  ;;  %13143 = vmatpush3.bf16.msra.mxu1 %v13140_v4  ;;  %v3822_v4 = vld [vmem:[#allocation10 + $0x80] sm:$0xff]  ;;  %v3859_v2 = vand.u32 4294901760, %v3806_v50 }
 0x352   :  { %13145 = vmatprep.subr.bf16.mxu1 %v13144_v7 }
 0x353   :  { %v16718_v32 = vadd.f32 %v9941_v31, %v1386_v1  ;;  %v9942_v11 = vpop.f32.mrb[20].mxu1  ;;  %v3825_v31 = vld [vmem:[#allocation10 + $0x98] sm:$0xff] }
 0x354   :  { %v9943_v21 = vpop.f32.mrb[21].mxu1 }
 0x355   :  { %v9944_v15 = vadd.f32 %v9943_v21, %v9942_v11  ;;  %13147 = vmatpush3.bf16.msra.mxu1 %v13144_v7  ;;  %v3907_v21 = vand.u32 4294901760, %v3822_v4  ;;  %v3910_v11 = vand.u32 4294901760, %v3823_v29  ;;  %v3807_v7 = vld [vmem:[#allocation10 + $0x8] sm:$0xff] }
 0x356   :  { %13149 = vmatprep.subr.bf16.mxu1 %v16412_v46  ;;  %v3862_v1 = vand.u32 4294901760, %v3807_v7 }
 0x357   :  { %v16721_v44 = vadd.f32 %v9944_v15, %v1401_v36  ;;  %v9945_v3 = vpop.f32.mrb[22].mxu1  ;;  %v3824_v36 = vld [vmem:[#allocation10 + $0x90] sm:$0xff]  ;;  %v16728_v0 = vsub.f32 %v3822_v4, %v3907_v21  ;;  %v16730_v52 = vsub.f32 %v3823_v29, %v3910_v11  ;;  %v16746_v4 = vpack.c.bf16 %v3910_v11, %v3907_v21 }
 0x358   :  { %v9946_v59 = vpop.f32.mrb[23].mxu1  ;;  %11433 = vmatmul.mubr.f32.vlgmr.msra.gmra.mrb[56].mxu1 %v16536_v51  ;;  %v3913_v15 = vand.u32 4294901760, %v3824_v36  ;;  %v16737_v58 = vsub.f32 %v3807_v7, %v3862_v1  ;;  %v16751_v14 = vpack.c.bf16 %v3862_v1, %v3859_v2  ;;  %v13180_v1 = vpack.c.bf16 %v2423_v5, %v2416_v35 }
 0x359   :  { %v9947_v47 = vadd.f32 %v9946_v59, %v9945_v3  ;;  %11435 = vmatprep.mubr.f32.mxu1 %v16564_v63  ;;  %13151 = vmatpush3.bf16.msra.mxu1 %v16412_v46  ;;  %v3916_v3 = vand.u32 4294901760, %v3825_v31  ;;  %v16735_v59 = vsub.f32 %v3806_v50, %v3859_v2  ;;  %v20262_v35 = vand.u32 4294901760, %v16564_v63 }
 0x35a   :  { %13153 = vmatprep.subr.bf16.mxu1 %v16430_v28  ;;  %13341 = vmatprep.subr.bf16.mxu0 %v16746_v4  ;;  %v20263_v5 = vand.u32 4294901760, %v16555_v49  ;;  %v20266_v51 = vand.u32 4294901760, %v16568_v19  ;;  %v13196_v49 = vpack.c.bf16 %v2479_v39, %v2472_v20  ;;  %v20269_v19 = vand.u32 4294901760, %v16658_v57 }
 0x35b   :  { %v1669_v9 = vadd.f32 %v9947_v47, %v1416_v38  ;;  %v16739_v38 = vsub.f32 %v3824_v36, %v3913_v15  ;;  %v16742_v47 = vsub.f32 %v3825_v31, %v3916_v3  ;;  %13343 = vmatpush3.bf16.msra.mxu0 %v16751_v14  ;;  %v20271_v20 = vand.u32 4294901760, %v16677_v53 }
 0x35c   :  { %11436 = vmatmul.mubr.f32.gmra.mrb[58].mxu1 %v16581_v48 }
 0x35d   :  { %13155 = vmatpush3.bf16.msra.mxu1 %v16430_v28  ;;  %11470 = vmatprep.mubr.f32.mxu1 %v2375_v12  ;;  %v16753_v12 = vpack.c.bf16 %v3916_v3, %v3913_v15  ;;  %v13208_v39 = vpack.c.bf16 %v20271_v20, %v20270_v8 }
 0x35e   :  { %13157 = vmatprep.subr.bf16.mxu1 %v16452_v30 }
 0x35f   :  { %13345 = vmatprep.subr.bf16.mxu0 %v16753_v12 }
 0x361   :  { %13159 = vmatpush3.bf16.msra.mxu1 %v16452_v30 }
 0x362   :  { %13161 = vmatprep.subr.bf16.mxu1 %v16466_v16 }
 0x365   :  { %13163 = vmatpush3.bf16.msra.mxu1 %v16466_v16 }
 0x366   :  { %13165 = vmatprep.subr.bf16.mxu1 %v16493_v40 }
 0x369   :  { %13167 = vmatpush3.bf16.msra.mxu1 %v16493_v40 }
 0x36a   :  { %13169 = vmatprep.subr.bf16.mxu1 %v16510_v26 }
 0x36b   :  { %v9980_v29 = vpop.f32.mrb[24].mxu1 }
 0x36c   :  { %v9981_v21 = vpop.f32.mrb[25].mxu1 }
 0x36d   :  { %v9982_v11 = vadd.f32 %v9981_v21, %v9980_v29  ;;  %13171 = vmatpush3.bf16.msra.mxu1 %v16510_v26 }
 0x36e   :  { %13173 = vmatprep.subr.bf16.mxu1 %v16533_v13 }
 0x36f   :  { %v1807_v50 = vadd.f32 %v9982_v11, %v16716_v60  ;;  %v9983_v7 = vpop.f32.mrb[26].mxu1  ;;  %v13184_v60 = vpack.c.bf16 %v2437_v10, %v2430_v61  ;;  %v20265_v61 = vand.u32 4294901760, %v16581_v48  ;;  %v20267_v10 = vand.u32 4294901760, %v16571_v56 }
 0x370   :  { %v9984_v36 = vpop.f32.mrb[27].mxu1 }
 0x371   :  { %v9985_v2 = vadd.f32 %v9984_v36, %v9983_v7  ;;  %13175 = vmatpush3.bf16.msra.mxu1 %v16533_v13  ;;  %v13192_v63 = vpack.c.bf16 %v20267_v10, %v20266_v51  ;;  %v19737_v51 = vand.u32 4294901760, %v16742_v47 }
 0x372   :  { %13177 = vmatprep.subr.bf16.mxu1 %v16578_v17 }
 0x373   :  { %v1816_v31 = vadd.f32 %v9985_v2, %v16718_v32  ;;  %v9986_v15 = vpop.f32.mrb[28].mxu1  ;;  %v13188_v32 = vpack.c.bf16 %v20264_v62, %v20263_v5  ;;  %v16854_v5 = vld [vmem:[#allocation10 + $0xb8] sm:$0xff] }
 0x374   :  { %v9987_v3 = vpop.f32.mrb[29].mxu1 }
 0x375   :  { %v9988_v29 = vadd.f32 %v9987_v3, %v9986_v15  ;;  %13179 = vmatpush3.bf16.msra.mxu1 %v16578_v17  ;;  %v16830_v15 = vld [vmem:[#allocation10 + $0xa0] sm:$0xff]  ;;  %v16832_v3 = vld [vmem:[#allocation10 + $0xa8] sm:$0xff] }
 0x376   :  { %13181 = vmatprep.subr.bf16.mxu1 %v13180_v1 }
 0x377   :  { %v1825_v21 = vadd.f32 %v9988_v29, %v16721_v44  ;;  %v9989_v11 = vpop.f32.mrb[30].mxu1 }
 0x378   :  { %v9990_v43 = vpop.f32.mrb[31].mxu1  ;;  %11471 = vmatmul.mubr.f32.vlgmr.msra.gmra.mrb[56].mxu1 %v2385_v55  ;;  %v20268_v55 = vand.u32 4294901760, %v16652_v27 }
 0x379   :  { %v9991_v34 = vadd.f32 %v9990_v43, %v9989_v11  ;;  %11473 = vmatprep.mubr.f32.mxu1 %v20262_v35  ;;  %13183 = vmatpush3.bf16.msra.mxu1 %v13180_v1  ;;  %v16823_v1 = vld [vmem:[#allocation10 + $0x10] sm:$0xff]  ;;  %v16843_v11 = vld [vmem:[#allocation10 + $0x28] sm:$0xff]  ;;  %v19740_v43 = vand.u32 4294901760, %v16735_v59 }
 0x37a   :  { %13185 = vmatprep.subr.bf16.mxu1 %v13184_v60  ;;  %v13204_v56 = vpack.c.bf16 %v20269_v19, %v20268_v55  ;;  %v19745_v55 = vand.u32 4294901760, %v16854_v5 }
 0x37b   :  { %v1834_v42 = vadd.f32 %v9991_v34, %v1669_v9  ;;  %v19739_v34 = vand.u32 4294901760, %v16737_v58 }
 0x37c   :  { %11474 = vmatmul.mubr.f32.gmra.mrb[58].mxu1 %v20265_v61 }
 0x37d   :  { %13187 = vmatpush3.bf16.msra.mxu1 %v13184_v60  ;;  %11508 = vmatprep.mubr.f32.mxu1 %v16421_v23  ;;  %v19763_v60 = vand.u32 4294901760, %v16832_v3 }
 0x37e   :  { %13189 = vmatprep.subr.bf16.mxu1 %v13188_v32 }
 0x381   :  { %13191 = vmatpush3.bf16.msra.mxu1 %v13188_v32 }
 0x382   :  { %13193 = vmatprep.subr.bf16.mxu1 %v13192_v63 }
 0x385   :  { %13195 = vmatpush3.bf16.msra.mxu1 %v13192_v63  ;;  %v19761_v63 = vand.u32 4294901760, %v16843_v11 }
 0x386   :  { %13197 = vmatprep.subr.bf16.mxu1 %v13196_v49 }
 0x389   :  { %13199 = vmatpush3.bf16.msra.mxu1 %v13196_v49 }
 0x38a   :  { %13201 = vmatprep.subr.bf16.mxu1 %v13200_v54 }
 0x38b   :  { %v10024_v48 = vpop.f32.mrb[32].mxu1 }
 0x38c   :  { %v10025_v44 = vpop.f32.mrb[33].mxu1 }
 0x38d   :  { %v10026_v45 = vadd.f32 %v10025_v44, %v10024_v48  ;;  %13203 = vmatpush3.bf16.msra.mxu1 %v13200_v54  ;;  %v16881_v54 = vsub.f32 %v16832_v3, %v19763_v60  ;;  %v4026_v48 = vsub.f32 %v16737_v58, %v19739_v34  ;;  %v17064_v60 = vld [vmem:[#allocation10 + $0x58] sm:$0xff] }
 0x38e   :  { %13205 = vmatprep.subr.bf16.mxu1 %v13204_v56 }
 0x38f   :  { %v16806_v33 = vadd.f32 %v10026_v45, %v1807_v50  ;;  %v10027_v18 = vpop.f32.mrb[34].mxu1  ;;  %20275 = vst [vmem:[#allocation26_spill] sm:$0xff] %v16881_v54 }
 0x390   :  { %v10028_v37 = vpop.f32.mrb[35].mxu1 }
 0x391   :  { %v10029_v41 = vadd.f32 %v10028_v37, %v10027_v18  ;;  %13207 = vmatpush3.bf16.msra.mxu1 %v13204_v56  ;;  %v4019_v56 = vsub.f32 %v16735_v59, %v19740_v43 }
 0x392   :  { %13209 = vmatprep.subr.bf16.mxu1 %v13208_v39 }
 0x393   :  { %v16808_v27 = vadd.f32 %v10029_v41, %v1816_v31  ;;  %v10030_v57 = vpop.f32.mrb[36].mxu1  ;;  %v16826_v31 = vld [vmem:[#allocation10 + $0x18] sm:$0xff]  ;;  %v4152_v41 = vsub.f32 %v16742_v47, %v19737_v51 }
 0x394   :  { %v10031_v9 = vpop.f32.mrb[37].mxu1  ;;  %v3868_v29 = vand.u32 4294901760, %v16826_v31 }
 0x395   :  { %v10032_v7 = vadd.f32 %v10031_v9, %v10030_v57  ;;  %13211 = vmatpush3.bf16.msra.mxu1 %v13208_v39  ;;  %v16908_v9 = vsub.f32 %v16843_v11, %v19761_v63 }
 0x396   :  { %13213 = vmatprep.subr.bf16.mxu1 %v16412_v46  ;;  %v16866_v61 = vsub.f32 %v16826_v31, %v3868_v29 }
 0x397   :  { %v16811_v36 = vadd.f32 %v10032_v7, %v1825_v21  ;;  %v10033_v25 = vpop.f32.mrb[38].mxu1  ;;  %v16841_v21 = vld [vmem:[#allocation10 + $0x20] sm:$0xff]  ;;  %20277 = vst [vmem:[#allocation30_spill] sm:$0xff] %v16908_v9 }
 0x398   :  { %v10034_v53 = vpop.f32.mrb[39].mxu1  ;;  %11509 = vmatmul.mubr.f32.vlgmr.msra.gmra.mrb[56].mxu1 %v16500_v22  ;;  %20273 = vst [vmem:[#allocation22_spill] sm:$0xff] %v16866_v61  ;;  %v19762_v10 = vand.u32 4294901760, %v16841_v21  ;;  %v19743_v18 = vand.u32 4294901760, %v16866_v61 }
 0x399   :  { %v10035_v50 = vadd.f32 %v10034_v53, %v10033_v25  ;;  %11511 = vmatprep.mubr.f32.mxu1 %v16527_v24  ;;  %13215 = vmatpush3.bf16.msra.mxu1 %v16412_v46  ;;  %v3865_v46 = vand.u32 4294901760, %v16823_v1  ;;  %v16921_v53 = vsub.f32 %v16854_v5, %v19745_v55 }
 0x39a   :  { %13217 = vmatprep.subr.bf16.mxu1 %v16430_v28  ;;  %v16903_v57 = vsub.f32 %v16841_v21, %v19762_v10  ;;  %v4040_v43 = vsub.f32 %v16866_v61, %v19743_v18 }
 0x39b   :  { %v16817_v2 = vadd.f32 %v10035_v50, %v1834_v42  ;;  %v16850_v35 = vsub.f32 %v16823_v1, %v3865_v46  ;;  %v19738_v42 = vand.u32 4294901760, %v16739_v38  ;;  %20279 = vst [vmem:[#allocation33_spill] sm:$0xff] %v16921_v53 }
 0x39c   :  { %11512 = vmatmul.mubr.f32.gmra.mrb[58].mxu1 %v16538_v6  ;;  %20276 = vst [vmem:[#allocation28_spill] sm:$0xff] %v16903_v57  ;;  %v4041_v18 = vand.u32 4294901760, %v4040_v43 }
 0x39d   :  { %13219 = vmatpush3.bf16.msra.mxu1 %v16430_v28  ;;  %11546 = vmatprep.mubr.f32.mxu1 %v16421_v23  ;;  %v19742_v28 = vand.u32 4294901760, %v16728_v0  ;;  %v19741_v23 = vand.u32 4294901760, %v16730_v52  ;;  %20272 = vst [vmem:[#allocation50_spill] sm:$0xff] %v16850_v35  ;;  %v19744_v44 = vand.u32 4294901760, %v16850_v35  ;;  %v4145_v39 = vsub.f32 %v16739_v38, %v19738_v42 }
 0x39e   :  { %13221 = vmatprep.subr.bf16.mxu1 %v16452_v30  ;;  %v4027_v42 = vand.u32 4294901760, %v4026_v48 }
 0x39f   :  { %v4131_v62 = vsub.f32 %v16728_v0, %v19742_v28  ;;  %v4138_v32 = vsub.f32 %v16730_v52, %v19741_v23  ;;  %v4146_v34 = vand.u32 4294901760, %v4145_v39  ;;  %v4153_v28 = vand.u32 4294901760, %v4152_v41 }
 0x3a0   :  { %v19749_v39 = vand.u32 4294901760, %v16921_v53 }
 0x3a1   :  { %13223 = vmatpush3.bf16.msra.mxu1 %v16452_v30  ;;  %v19768_v30 = vand.u32 4294901760, %v16830_v15  ;;  %v4132_v8 = vand.u32 4294901760, %v4131_v62  ;;  %v4139_v20 = vand.u32 4294901760, %v4138_v32  ;;  %v4020_v32 = vand.u32 4294901760, %v4019_v56 }
 0x3a2   :  { %13225 = vmatprep.subr.bf16.mxu1 %v16466_v16  ;;  %v19751_v56 = vand.u32 4294901760, %v16908_v9  ;;  %v13376_v55 = vpack.c.bf16 %v4153_v28, %v4146_v34 }
 0x3a3   :  { %v16876_v49 = vsub.f32 %v16830_v15, %v19768_v30  ;;  %v13372_v51 = vpack.c.bf16 %v4139_v20, %v4132_v8 }
 0x3a5   :  { %13227 = vmatpush3.bf16.msra.mxu1 %v16466_v16  ;;  %v16852_v16 = vld [vmem:[#allocation10 + $0xb0] sm:$0xff]  ;;  %20274 = vst [vmem:[#allocation23_spill] sm:$0xff] %v16876_v49  ;;  %v19746_v7 = vand.u32 4294901760, %v16876_v49 }
 0x3a6   :  { %13229 = vmatprep.subr.bf16.mxu1 %v16493_v40 }
 0x3a7   :  { %v4159_v8 = vsub.f32 %v16876_v49, %v19746_v7 }
 0x3a9   :  { %13231 = vmatpush3.bf16.msra.mxu1 %v16493_v40  ;;  %v19748_v40 = vand.u32 4294901760, %v16852_v16 }
 0x3aa   :  { %13233 = vmatprep.subr.bf16.mxu1 %v16510_v26 }
 0x3ab   :  { %v10068_v19 = vpop.f32.mrb[40].mxu1  ;;  %v16916_v25 = vsub.f32 %v16852_v16, %v19748_v40  ;;  %v4160_v40 = vand.u32 4294901760, %v4159_v8 }
 0x3ac   :  { %v10069_v45 = vpop.f32.mrb[41].mxu1 }
 0x3ad   :  { %v10070_v37 = vadd.f32 %v10069_v45, %v10068_v19  ;;  %13235 = vmatpush3.bf16.msra.mxu1 %v16510_v26  ;;  %v19747_v26 = vand.u32 4294901760, %v16881_v54  ;;  %20278 = vst [vmem:[#allocation32_spill] sm:$0xff] %v16916_v25  ;;  %v4033_v19 = vsub.f32 %v16850_v35, %v19744_v44  ;;  %v19750_v20 = vand.u32 4294901760, %v16916_v25 }
 0x3ae   :  { %13237 = vmatprep.subr.bf16.mxu1 %v16533_v13 }
 0x3af   :  { %v16924_v50 = vadd.f32 %v10070_v37, %v16806_v33  ;;  %v10071_v62 = vpop.f32.mrb[42].mxu1  ;;  %v19753_v33 = vand.u32 4294901760, %v16903_v57  ;;  %v4166_v48 = vsub.f32 %v16881_v54, %v19747_v26  ;;  %v4054_v26 = vsub.f32 %v16908_v9, %v19751_v56  ;;  %v17038_v56 = vld [vmem:[#allocation10 + $0xd8] sm:$0xff] }
 0x3b0   :  { %v10072_v45 = vpop.f32.mrb[43].mxu1 }
 0x3b1   :  { %v10073_v23 = vadd.f32 %v10072_v45, %v10071_v62  ;;  %13239 = vmatpush3.bf16.msra.mxu1 %v16533_v13  ;;  %v13374_v62 = vpack.c.bf16 %v4027_v42, %v4020_v32  ;;  %v4034_v45 = vand.u32 4294901760, %v4033_v19  ;;  %v4047_v7 = vsub.f32 %v16903_v57, %v19753_v33 }
 0x3b2   :  { %13241 = vmatprep.subr.bf16.mxu1 %v16578_v17  ;;  %v4055_v19 = vand.u32 4294901760, %v4054_v26 }
 0x3b3   :  { %v2150_v13 = vadd.f32 %v10073_v23, %v16808_v27  ;;  %v10074_v37 = vpop.f32.mrb[44].mxu1  ;;  %v4167_v27 = vand.u32 4294901760, %v4166_v48  ;;  %v4173_v23 = vsub.f32 %v16916_v25, %v19750_v20  ;;  %v4048_v32 = vand.u32 4294901760, %v4047_v7  ;;  %v17036_v20 = vld [vmem:[#allocation10 + $0xd0] sm:$0xff] }
 0x3b4   :  { %v10075_v41 = vpop.f32.mrb[45].mxu1 }
 0x3b5   :  { %v10076_v44 = vadd.f32 %v10075_v41, %v10074_v37  ;;  %13243 = vmatpush3.bf16.msra.mxu1 %v16578_v17  ;;  %v4180_v17 = vsub.f32 %v16921_v53, %v19749_v39  ;;  %v13380_v8 = vpack.c.bf16 %v4167_v27, %v4160_v40  ;;  %v4174_v48 = vand.u32 4294901760, %v4173_v23 }
 0x3b6   :  { %13373 = vmatprep.subr.bf16.mxu1 %v13372_v51  ;;  %v13378_v51 = vpack.c.bf16 %v4041_v18, %v4034_v45 }
 0x3b7   :  { %v2157_v28 = vadd.f32 %v10076_v44, %v16811_v36  ;;  %v10077_v43 = vpop.f32.mrb[46].mxu1  ;;  %v4181_v37 = vand.u32 4294901760, %v4180_v17  ;;  %v13382_v36 = vpack.c.bf16 %v4055_v19, %v4048_v32 }
 0x3b8   :  { %v10078_v34 = vpop.f32.mrb[47].mxu1  ;;  %11547 = vmatmul.mubr.f32.vlgmr.msra.gmra.mrb[56].mxu1 %v16500_v22 }
 0x3b9   :  { %v10079_v42 = vadd.f32 %v10078_v34, %v10077_v43  ;;  %11549 = vmatprep.mubr.f32.mxu1 %v16527_v24  ;;  %13375 = vmatpush3.bf16.msra.mxu1 %v13374_v62  ;;  %v13384_v44 = vpack.c.bf16 %v4181_v37, %v4174_v48  ;;  %v16982_v48 = vld [vmem:[#allocation10 + $0x38] sm:$0xff] }
 0x3ba   :  { %13377 = vmatprep.subr.bf16.mxu1 %v13376_v55  ;;  %v19758_v37 = vand.u32 4294901760, %v16982_v48  ;;  %v20291_v49 = vand.u32 4294901760, %v16982_v48 }
 0x3bb   :  { %v2164_v41 = vadd.f32 %v10079_v42, %v16817_v2 }
 0x3bc   :  { %11550 = vmatmul.mubr.f32.gmra.mrb[58].mxu1 %v16538_v6 }
 0x3bd   :  { %13379 = vmatpush3.bf16.msra.mxu1 %v13378_v51 }
 0x3be   :  { %13381 = vmatprep.subr.bf16.mxu1 %v13380_v8  ;;  %v16980_v8 = vld [vmem:[#allocation10 + $0x30] sm:$0xff] }
 0x3c1   :  { %13383 = vmatpush3.bf16.msra.mxu1 %v13382_v36  ;;  %v16998_v36 = vld [vmem:[#allocation10 + $0xc8] sm:$0xff] }
 0x3c2   :  { %13385 = vmatprep.subr.bf16.mxu1 %v13384_v44 }
 0x3c5   :  { %v16963_v22 = vpop.f32.mrb[8].mxu0 }
 0x3c6   :  { %v16965_v24 = vpop.f32.mrb[9].mxu0 }
 0x3c9   :  { %v16967_v40 = vpop.f32.mrb[10].mxu0 }
 0x3ca   :  { %v16969_v26 = vpop.f32.mrb[11].mxu0 }
 0x3cb   :  { %v10112_v18 = vpop.f32.mrb[48].mxu1 }
 0x3cc   :  { %v10113_v7 = vpop.f32.mrb[49].mxu1 }
 0x3cd   :  { %v10114_v55 = vadd.f32 %v10113_v7, %v10112_v18  ;;  %v19755_v18 = vand.u32 4294901760, %v16998_v36  ;;  %v17002_v7 = vld [vmem:[#allocation10 + $0x40] sm:$0xff] }
 0x3cf   :  { %v10115_v2 = vpop.f32.mrb[50].mxu1  ;;  %v16972_v6 = vadd.f32 %v10114_v55, %v16924_v50  ;;  %v19759_v50 = vand.u32 4294901760, %v16980_v8  ;;  %v17004_v55 = vld [vmem:[#allocation10 + $0x48] sm:$0xff] }
 0x3d0   :  { %v10116_v62 = vpop.f32.mrb[51].mxu1 }
 0x3d1   :  { %v10117_v45 = vadd.f32 %v10116_v62, %v10115_v2 }
 0x3d3   :  { %v10118_v27 = vpop.f32.mrb[52].mxu1  ;;  %v16974_v23 = vadd.f32 %v10117_v45, %v2150_v13  ;;  %v16989_v13 = vsub.f32 %v16980_v8, %v19759_v50  ;;  %v19757_v45 = vand.u32 4294901760, %v17002_v7 }
 0x3d4   :  { %v10119_v17 = vpop.f32.mrb[53].mxu1 }
 0x3d5   :  { %v10120_v43 = vadd.f32 %v10119_v17, %v10118_v27  ;;  %v19752_v2 = vand.u32 4294901760, %v16989_v13  ;;  %v19760_v27 = vand.u32 4294901760, %v17004_v55 }
 0x3d7   :  { %v10121_v34 = vpop.f32.mrb[54].mxu1  ;;  %v16976_v42 = vadd.f32 %v10120_v43, %v2157_v28  ;;  %v16994_v28 = vsub.f32 %v16982_v48, %v19758_v37  ;;  %v17018_v43 = vsub.f32 %v16998_v36, %v19755_v18  ;;  %v17034_v39 = vsub.f32 %v17004_v55, %v19760_v27 }
 0x3d8   :  { %v10122_v51 = vpop.f32.mrb[55].mxu1  ;;  %v19767_v18 = vand.u32 4294901760, %v17038_v56 }
 0x3d9   :  { %v10123_v32 = vadd.f32 %v10122_v51, %v10121_v34  ;;  %v19754_v62 = vand.u32 4294901760, %v16994_v28  ;;  %v4061_v34 = vsub.f32 %v16989_v13, %v19752_v2  ;;  %v19765_v33 = vand.u32 4294901760, %v17018_v43 }
 0x3da   :  { %v19775_v50 = vand.u32 4294901760, %v17034_v39 }
 0x3db   :  { %v16978_v19 = vadd.f32 %v10123_v32, %v2164_v41  ;;  %v16996_v41 = vld [vmem:[#allocation10 + $0xc0] sm:$0xff]  ;;  %v4068_v51 = vsub.f32 %v16994_v28, %v19754_v62  ;;  %v17029_v32 = vsub.f32 %v17002_v7, %v19757_v45  ;;  %v19766_v62 = vand.u32 4294901760, %v17036_v20 }
 0x3dc   :  { %v19756_v44 = vand.u32 4294901760, %v16996_v41  ;;  %v4194_v63 = vsub.f32 %v17018_v43, %v19765_v33 }
 0x3dd   :  { %v4069_v45 = vand.u32 4294901760, %v4068_v51  ;;  %v19776_v37 = vand.u32 4294901760, %v17029_v32  ;;  %v17055_v10 = vsub.f32 %v17036_v20, %v19766_v62  ;;  %v17062_v51 = vld [vmem:[#allocation10 + $0x50] sm:$0xff] }
 0x3de   :  { %v17013_v17 = vsub.f32 %v16996_v41, %v19756_v44  ;;  %v4062_v44 = vand.u32 4294901760, %v4061_v34  ;;  %v17060_v34 = vsub.f32 %v17038_v56, %v19767_v18  ;;  %v4082_v18 = vsub.f32 %v17034_v39, %v19775_v50 }
 0x3df   :  { %v4075_v62 = vsub.f32 %v17029_v32, %v19776_v37  ;;  %v4195_v53 = vand.u32 4294901760, %v4194_v63  ;;  %v19778_v25 = vand.u32 4294901760, %v17055_v10  ;;  %v20281_v63 = vand.u32 4294901760, %v16832_v3 }
 0x3e0   :  { %v19764_v2 = vand.u32 4294901760, %v17013_v17  ;;  %v13386_v33 = vpack.c.bf16 %v4069_v45, %v4062_v44  ;;  %v19777_v9 = vand.u32 4294901760, %v17060_v34  ;;  %v4083_v31 = vand.u32 4294901760, %v4082_v18  ;;  %v17083_v44 = vld [vmem:[#allocation10 + $0xe0] sm:$0xff]  ;;  %v17085_v45 = vld [vmem:[#allocation10 + $0xe8] sm:$0xff] }
 0x3e1   :  { %v4076_v1 = vand.u32 4294901760, %v4075_v62  ;;  %v17099_v62 = vld [vmem:[#allocation10 + $0x60] sm:$0xff] }
 0x3e2   :  { %v4187_v27 = vsub.f32 %v17013_v17, %v19764_v2  ;;  %v17070_v2 = vpack.c.bf16 %v3868_v29, %v3865_v46  ;;  %13387 = vmatpush3.bf16.msra.mxu1 %v13386_v33  ;;  %v4201_v33 = vsub.f32 %v17055_v10, %v19778_v25  ;;  %v4208_v18 = vsub.f32 %v17060_v34, %v19777_v9  ;;  %v17101_v29 = vld [vmem:[#allocation10 + $0x68] sm:$0xff] }
 0x3e3   :  { %v20282_v46 = vand.u32 4294901760, %v16841_v21 }
 0x3e4   :  { %v4188_v30 = vand.u32 4294901760, %v4187_v27  ;;  %13347 = vmatpush3.bf16.msra.mxu0 %v17070_v2  ;;  %v20280_v27 = vand.u32 4294901760, %v16830_v15  ;;  %v20283_v15 = vand.u32 4294901760, %v16843_v11  ;;  %v4202_v25 = vand.u32 4294901760, %v4201_v33 }
 0x3e5   :  { %v4209_v21 = vand.u32 4294901760, %v4208_v18  ;;  %v3943_v11 = vand.u32 4294901760, %v17083_v44  ;;  %v20288_v33 = vand.u32 4294901760, %v16854_v5 }
 0x3e6   :  { %v17091_v50 = vpack.c.bf16 %v20281_v63, %v20280_v27  ;;  %v13388_v37 = vpack.c.bf16 %v4195_v53, %v4188_v30  ;;  %v17107_v3 = vpack.c.bf16 %v20283_v15, %v20282_v46  ;;  %v13390_v27 = vpack.c.bf16 %v4083_v31, %v4076_v1  ;;  %v3837_v31 = vld [vmem:[#allocation10 + $0xf8] sm:$0xff] }
 0x3e7   :  { %v20285_v30 = vand.u32 4294901760, %v17062_v51  ;;  %v20286_v63 = vand.u32 4294901760, %v17064_v60  ;;  %v3946_v46 = vand.u32 4294901760, %v17085_v45  ;;  %v3895_v15 = vand.u32 4294901760, %v17099_v62 }
 0x3e8   :  { %20284 = vst [vmem:[#allocation34_spill] sm:$0xff] %v17107_v3  ;;  %13349 = vmatprep.subr.bf16.mxu0 %v17091_v50  ;;  %13389 = vmatprep.subr.bf16.mxu1 %v13388_v37  ;;  %v20287_v37 = vand.u32 4294901760, %v16852_v16  ;;  %v13392_v57 = vpack.c.bf16 %v4209_v21, %v4202_v25  ;;  %v17136_v54 = vsub.f32 %v17083_v44, %v3943_v11  ;;  %v20290_v1 = vand.u32 4294901760, %v16980_v8 }
 0x3e9   :  { %v17112_v53 = vsub.f32 %v17062_v51, %v20285_v30  ;;  %v17117_v9 = vsub.f32 %v17064_v60, %v20286_v63  ;;  %13351 = vmatpush3.bf16.msra.mxu0 %v17107_v3  ;;  %13391 = vmatpush3.bf16.msra.mxu1 %v13390_v27  ;;  %v3898_v30 = vand.u32 4294901760, %v17101_v29  ;;  %v17127_v63 = vld [vmem:[#allocation10 + $0xf0] sm:$0xff]  ;;  %v17139_v27 = vsub.f32 %v17085_v45, %v3946_v46 }
 0x3ea   :  { %v17133_v18 = vpack.c.bf16 %v20288_v33, %v20287_v37  ;;  %v17145_v61 = vpack.c.bf16 %v20291_v49, %v20290_v1  ;;  %v17154_v44 = vsub.f32 %v17099_v62, %v3895_v15  ;;  %13393 = vmatprep.subr.bf16.mxu1 %v13392_v57  ;;  %v19793_v8 = vand.u32 4294901760, %v17136_v54 }
 0x3eb   :  { %v20293_v16 = vand.u32 4294901760, %v17112_v53  ;;  %v20294_v37 = vand.u32 4294901760, %v17117_v9  ;;  %v19796_v48 = vand.u32 4294901760, %v17139_v27  ;;  %v17160_v49 = vsub.f32 %v17101_v29, %v3898_v30 }
 0x3ec   :  { %20289 = vst [vmem:[#allocation35_spill] sm:$0xff] %v17133_v18  ;;  %20292 = vst [vmem:[#allocation36_spill] sm:$0xff] %v17145_v61  ;;  %13353 = vmatprep.subr.bf16.mxu0 %v17133_v18  ;;  %v3949_v45 = vand.u32 4294901760, %v17127_v63  ;;  %v3952_v62 = vand.u32 4294901760, %v3837_v31  ;;  %v20296_v57 = vand.u32 4294901760, %v16998_v36  ;;  %v4215_v29 = vsub.f32 %v17136_v54, %v19793_v8 }
 0x3ed   :  { %v4089_v5 = vsub.f32 %v17112_v53, %v20293_v16  ;;  %v4096_v25 = vsub.f32 %v17117_v9, %v20294_v37  ;;  %13355 = vmatpush3.bf16.msra.mxu0 %v17145_v61  ;;  %v20295_v16 = vand.u32 4294901760, %v16996_v41  ;;  %v4222_v18 = vsub.f32 %v17139_v27, %v19796_v48  ;;  %v3821_v48 = vld [vmem:[#allocation10 + $0x78] sm:$0xff] }
 0x3ee   :  { %v20297_v33 = vand.u32 4294901760, %v17002_v7  ;;  %v20298_v41 = vand.u32 4294901760, %v17004_v55  ;;  %v20299_v36 = vand.u32 4294901760, %v17154_v44  ;;  %v20301_v8 = vand.u32 4294901760, %v17038_v56 }
 0x3ef   :  { %v4090_v21 = vand.u32 4294901760, %v4089_v5  ;;  %v4097_v1 = vand.u32 4294901760, %v4096_v25  ;;  %v17169_v37 = vpack.c.bf16 %v20296_v57, %v20295_v16  ;;  %v19797_v5 = vand.u32 4294901760, %v17160_v49  ;;  %v3820_v25 = vld [vmem:[#allocation10 + $0x70] sm:$0xff] }
 0x3f0   :  { %v17182_v35 = vpack.c.bf16 %v20298_v41, %v20297_v33  ;;  %v4103_v16 = vsub.f32 %v17154_v44, %v20299_v36  ;;  %v20300_v57 = vand.u32 4294901760, %v17036_v20  ;;  %v17198_v55 = vsub.f32 %v17127_v63, %v3949_v45 }
 0x3f1   :  { %v13394_v61 = vpack.c.bf16 %v4097_v1, %v4090_v21  ;;  %13357 = vmatprep.subr.bf16.mxu0 %v17169_v37  ;;  %v4216_v21 = vand.u32 4294901760, %v4215_v29  ;;  %v4223_v1 = vand.u32 4294901760, %v4222_v18  ;;  %v4110_v7 = vsub.f32 %v17160_v49, %v19797_v5 }
 0x3f2   :  { %v17191_v3 = vpack.c.bf16 %v20301_v8, %v20300_v57  ;;  %13359 = vmatpush3.bf16.msra.mxu0 %v17182_v35  ;;  %v4104_v20 = vand.u32 4294901760, %v4103_v16  ;;  %v17201_v33 = vsub.f32 %v3837_v31, %v3952_v62  ;;  %v20302_v56 = vand.u32 4294901760, %v17062_v51 }
 0x3f3   :  { %13395 = vmatpush3.bf16.msra.mxu1 %v13394_v61  ;;  %v20303_v8 = vand.u32 4294901760, %v17064_v60  ;;  %v3901_v18 = vand.u32 4294901760, %v3820_v25  ;;  %v13396_v29 = vpack.c.bf16 %v4223_v1, %v4216_v21  ;;  %v4111_v36 = vand.u32 4294901760, %v4110_v7 }
 0x3f4   :  { %13361 = vmatprep.subr.bf16.mxu0 %v17191_v3  ;;  %v19801_v63 = vand.u32 4294901760, %v17198_v55  ;;  %v3904_v57 = vand.u32 4294901760, %v3821_v48  ;;  %v19800_v61 = vand.u32 4294901760, %v17201_v33  ;;  %v17214_v31 = vpack.c.bf16 %v3946_v46, %v3943_v11 }
 0x3f5   :  { %v17207_v41 = vpack.c.bf16 %v20303_v8, %v20302_v56  ;;  %v17212_v5 = vsub.f32 %v3820_v25, %v3901_v18  ;;  %13397 = vmatprep.subr.bf16.mxu1 %v13396_v29  ;;  %v13398_v51 = vpack.c.bf16 %v4111_v36, %v4104_v20  ;;  %v17226_v25 = vpack.c.bf16 %v3898_v30, %v3895_v15 }
 0x3f6   :  { %v4229_v60 = vsub.f32 %v17198_v55, %v19801_v63  ;;  %v17219_v16 = vsub.f32 %v3821_v48, %v3904_v57  ;;  %v4236_v21 = vsub.f32 %v17201_v33, %v19800_v61  ;;  %v17230_v7 = vpack.c.bf16 %v3952_v62, %v3949_v45 }
 0x3f7   :  { %13363 = vmatpush3.bf16.msra.mxu0 %v17207_v41  ;;  %v19799_v1 = vand.u32 4294901760, %v17212_v5  ;;  %13399 = vmatpush3.bf16.msra.mxu1 %v13398_v51  ;;  %v17239_v30 = vpack.c.bf16 %v3904_v57, %v3901_v18  ;;  %v13404_v45 = vpack.c.bf16 %v16730_v52, %v16728_v0 }
 0x3f8   :  { %v4230_v11 = vand.u32 4294901760, %v4229_v60  ;;  %v19798_v46 = vand.u32 4294901760, %v17219_v16  ;;  %13365 = vmatprep.subr.bf16.mxu0 %v17214_v31  ;;  %v4237_v48 = vand.u32 4294901760, %v4236_v21 }
 0x3f9   :  { %v4117_v20 = vsub.f32 %v17212_v5, %v19799_v1 }
 0x3fa   :  { %v4124_v56 = vsub.f32 %v17219_v16, %v19798_v46  ;;  %v13400_v8 = vpack.c.bf16 %v4237_v48, %v4230_v11 }
 0x3fb   :  { %v4118_v15 = vand.u32 4294901760, %v4117_v20  ;;  %13367 = vmatpush3.bf16.msra.mxu0 %v17226_v25 }
 0x3fc   :  { %v4125_v29 = vand.u32 4294901760, %v4124_v56  ;;  %13369 = vmatprep.subr.bf16.mxu0 %v17230_v7  ;;  %13401 = vmatprep.subr.bf16.mxu1 %v13400_v8  ;;  %v9857_v56 = vld [vmem:[%s19565_s6 + $0x2] ss:$0 sm:$0xff] }
 0x3fd   :  { %v14445_v1 = vadd.f32 %v9857_v56, %v16965_v24  ;;  %v14447_v24 = vadd.f32 %v9857_v56, %v16969_v26 }
 0x3fe   :  { %v13402_v62 = vpack.c.bf16 %v4125_v29, %v4118_v15 }
 0x3ff   :  { %13371 = vmatpush3.bf16.msra.mxu0 %v17239_v30 }
 0x400   :  { %13403 = vmatpush3.bf16.msra.mxu1 %v13402_v62  ;;  %13405 = vmatprep.subr.bf16.mxu0 %v13404_v45  ;;  %v14444_v62 = vadd.f32 %v16963_v22, %v9857_v56 }
 0x401   :  { %13437 = vmatprep.subr.bf16.mxu1 %v16746_v4 }
 0x48b   :  { %v11548_v8 = vpop.f32.mrb[56].mxu1 }
 0x48c   :  { %v14440_v15 = vadd.f32 %v11548_v8, %v16974_v23  ;;  %v3040_v29 = vpop.f32.mrb[57].mxu1  ;;  %v14446_v23 = vadd.f32 %v16967_v40, %v9857_v56 }
 0x48d   :  { %v14441_v45 = vadd.f32 %v3040_v29, %v16972_v6 }
 0x48e   :  { %v3063_v46 = vmax.f32 %v14440_v15, 0.0 }
 0x48f   :  { %v3062_v61 = vmax.f32 %v14441_v45, 0.0  ;;  %v11551_v63 = vpop.f32.mrb[58].mxu1 }
 0x490   :  { %v17271_v48 = vadd.f32 %v14444_v62, %v3063_v46  ;;  %v14442_v20 = vadd.f32 %v11551_v63, %v16978_v19  ;;  %v3052_v11 = vpop.f32.mrb[59].mxu1 }
 0x491   :  { %v17274_v21 = vadd.f32 %v14445_v1, %v3062_v61  ;;  %v14443_v60 = vadd.f32 %v3052_v11, %v16976_v42 }
 0x492   :  { %20304 = vst [vmem:[#allocation59_spill] sm:$0xff] %v17271_v48  ;;  %v3763_v6 = vrot.slane %v17271_v48, 7  ;;  %v19803_v22 = vrot.slane %v17271_v48, 1  ;;  %v3065_v8 = vmax.f32 %v14442_v20, 0.0  ;;  %v17299_v61 = vand.u32 4294901760, %v17271_v48 }
 0x493   :  { %20305 = vst [vmem:[#allocation58_spill] sm:$0xff] %v17274_v21  ;;  %v3762_v15 = vrot.slane %v17274_v21, 7  ;;  %v3064_v46 = vmax.f32 %v14443_v60, 0.0  ;;  %v17283_v29 = vand.u32 4294901760, %v17274_v21 }
 0x494   :  { %3775 = vst [vmem:[#allocation2 + $0x28] sm:$0x7f] %v19803_v22  ;;  %v17287_v19 = vadd.f32 %v14446_v23, %v3065_v8  ;;  %20309 = vst [vmem:[#allocation40_spill] sm:$0xff] %v17299_v61  ;;  %v17313_v45 = vsub.f32 %v17271_v48, %v17299_v61 }
 0x495   :  { %20306 = vst [vmem:[#allocation37_spill] sm:$0xff] %v17283_v29  ;;  %3767 = vst [vmem:[#allocation2] sm:$0xfe] %v3762_v15  ;;  %v17289_v40 = vadd.f32 %v14447_v24, %v3064_v46  ;;  %4240 = vmatprep.mubr.f32.mxu1 %v17283_v29  ;;  %v17294_v42 = vsub.f32 %v17274_v21, %v17283_v29  ;;  %v3764_v26 = vsel %vm141_vm3, %v3762_v15, %v3763_v6 }
 0x496   :  { %20307 = vst [vmem:[#allocation38_spill] sm:$0xff] %v17287_v19  ;;  %v19802_v63 = vrot.slane %v17287_v19, 1  ;;  %v17305_v11 = vand.u32 4294901760, %v3764_v26  ;;  %v3781_v56 = vrot.slane %v17287_v19, 7  ;;  %v19805_v46 = vand.u32 4294901760, %v17313_v45 }
 0x497   :  { %20308 = vst [vmem:[#allocation39_spill] sm:$0xff] %v17289_v40  ;;  %v3780_v1 = vrot.slane %v17289_v40, 7  ;;  %v19804_v60 = vand.u32 4294901760, %v17294_v42  ;;  %v17316_v62 = vand.u32 4294901760, %v17289_v40  ;;  %v17330_v22 = vand.u32 4294901760, %v17287_v19 }
 0x498   :  { %3793 = vst [vmem:[#allocation2 + $0x58] sm:$0x7f] %v19802_v63  ;;  %20310 = vst [vmem:[#allocation60_spill] sm:$0xff] %v17305_v11  ;;  %v17321_v24 = vsub.f32 %v3764_v26, %v17305_v11  ;;  %v3972_v51 = vsub.f32 %v17313_v45, %v19805_v46  ;;  %v13406_v46 = vpack.c.bf16 %v16737_v58, %v16735_v59 }
 0x499   :  { %3785 = vst [vmem:[#allocation2 + $0x30] sm:$0xfe] %v3780_v1  ;;  %v3957_v20 = vsub.f32 %v17294_v42, %v19804_v60  ;;  %20311 = vst [vmem:[#allocation41_spill] sm:$0xff] %v17316_v62  ;;  %v3782_v15 = vsel %vm141_vm3, %v3780_v1, %v3781_v56  ;;  %v17358_v60 = vsub.f32 %v17287_v19, %v17330_v22 }
 0x49a   :  { %20313 = vst [vmem:[#allocation43_spill] sm:$0xff] %v17330_v22  ;;  %v13408_v19 = vpack.c.bf16 %v16742_v47, %v16739_v38 }
 0x49b   :  { %v3958_v23 = vand.u32 4294901760, %v3957_v20  ;;  %v17334_v20 = vsub.f32 %v17289_v40, %v17316_v62 }
 0x49c   :  { %v3794_v6 = vld [vmem:[#allocation2] sm:$0xff] }
 0x49d   :  { %v17318_v8 = vand.u32 4294901760, %v3794_v6  ;;  %3959 = vmatprep.mubr.f32.mxu0 %v3958_v23 }
 0x49f   :  { %20312 = vst [vmem:[#allocation42_spill] sm:$0xff] %v17318_v8  ;;  %v17326_v63 = vsub.f32 %v3794_v6, %v17318_v8  ;;  %4242 = vmatmul.mubr.f32.vlgmr.msra.gmra.mrb[60].mxu1 %v17318_v8  ;;  %v17343_v6 = vand.u32 4294901760, %v3782_v15  ;;  %v20320_v8 = vld [vmem:[#allocation22_spill] sm:$0xff] }
 0x4a0   :  { %13439 = vmatpush3.bf16.msra.mxu1 %v16751_v14  ;;  %4247 = vmatprep.mubr.f32.mxu1 %v17299_v61  ;;  %v3800_v26 = vld [vmem:[#allocation2 + $0x30] sm:$0xff]  ;;  %v20323_v61 = vld [vmem:[#allocation23_spill] sm:$0xff] }
 0x4a1   :  { %13441 = vmatprep.subr.bf16.mxu1 %v16753_v12  ;;  %v19806_v1 = vand.u32 4294901760, %v17326_v63  ;;  %v17340_v56 = vand.u32 4294901760, %v3800_v26  ;;  %20315 = vst [vmem:[#allocation46_spill] sm:$0xff] %v17343_v6  ;;  %v17370_v40 = vsub.f32 %v3782_v15, %v17343_v6 }
 0x4a3   :  { %20314 = vst [vmem:[#allocation44_spill] sm:$0xff] %v17340_v56  ;;  %4249 = vmatmul.mubr.f32.gmra.mrb[62].mxu1 %v17305_v11  ;;  %v3963_v57 = vsub.f32 %v17326_v63, %v19806_v1  ;;  %v17354_v36 = vsub.f32 %v3800_v26, %v17340_v56  ;;  %v20316_v1 = vand.u32 4294901760, %v17321_v24  ;;  %v20317_v11 = vand.u32 4294901760, %v17334_v20  ;;  %v20319_v26 = vld [vmem:[#allocation50_spill] sm:$0xff] }
 0x4a4   :  { %13443 = vmatpush3.bf16.msra.mxu1 %v17070_v2  ;;  %4254 = vmatprep.mubr.f32.mxu1 %v17316_v62  ;;  %v3973_v62 = vand.u32 4294901760, %v3972_v51  ;;  %v13410_v15 = vpack.c.bf16 %v20320_v8, %v20319_v26  ;;  %v20328_v8 = vld [vmem:[#allocation30_spill] sm:$0xff] }
 0x4a5   :  { %13445 = vmatprep.subr.bf16.mxu1 %v17091_v50  ;;  %v3964_v23 = vand.u32 4294901760, %v3963_v57  ;;  %v3978_v18 = vsub.f32 %v17321_v24, %v20316_v1  ;;  %v3987_v57 = vsub.f32 %v17334_v20, %v20317_v11  ;;  %v20318_v1 = vld [vmem:[#allocation34_spill] sm:$0xff]  ;;  %v20322_v11 = vld [vmem:[#allocation35_spill] sm:$0xff] }
 0x4a7   :  { %3965 = vmatmul.mubr.f32.vlgmr.msra.gmra.mrb[12].mxu0 %v3964_v23  ;;  %4256 = vmatmul.mubr.f32.gmra.mrb[64].mxu1 %v17340_v56  ;;  %v3979_v48 = vand.u32 4294901760, %v3978_v18  ;;  %v20321_v23 = vand.u32 4294901760, %v17354_v36  ;;  %v3988_v29 = vand.u32 4294901760, %v3987_v57  ;;  %v20332_v57 = vand.u32 4294901760, %v17370_v40 }
 0x4a8   :  { %13407 = vmatpush3.bf16.msra.mxu0 %v13406_v46  ;;  %13447 = vmatpush3.bf16.msra.mxu1 %v20318_v1  ;;  %v20324_v46 = vld [vmem:[#allocation26_spill] sm:$0xff] }
 0x4a9   :  { %3974 = vmatprep.mubr.f32.mxu0 %v3973_v62  ;;  %4261 = vmatprep.mubr.f32.mxu1 %v17330_v22  ;;  %v3993_v51 = vsub.f32 %v17354_v36, %v20321_v23  ;;  %v13412_v21 = vpack.c.bf16 %v20324_v46, %v20323_v61  ;;  %v20325_v62 = vand.u32 4294901760, %v17358_v60  ;;  %v20326_v22 = vld [vmem:[#allocation36_spill] sm:$0xff] }
 0x4aa   :  { %13409 = vmatprep.subr.bf16.mxu0 %v13408_v19  ;;  %13449 = vmatprep.subr.bf16.mxu1 %v20322_v11  ;;  %v20327_v23 = vld [vmem:[#allocation28_spill] sm:$0xff]  ;;  %v20329_v19 = vand.u32 4294901760, %v17294_v42 }
 0x4ab   :  { %3980 = vmatmul.mubr.f32.gmra.mrb[14].mxu0 %v3979_v48  ;;  %4263 = vmatmul.mubr.f32.gmra.mrb[66].mxu1 %v17343_v6  ;;  %v4002_v18 = vsub.f32 %v17358_v60, %v20325_v62  ;;  %v13414_v56 = vpack.c.bf16 %v20328_v8, %v20327_v23  ;;  %v3994_v11 = vand.u32 4294901760, %v3993_v51  ;;  %v20330_v46 = vld [vmem:[#allocation32_spill] sm:$0xff]  ;;  %v20331_v48 = vld [vmem:[#allocation33_spill] sm:$0xff]  ;;  %v4008_v6 = vsub.f32 %v17370_v40, %v20332_v57 }
 0x4ac   :  { %13411 = vmatpush3.bf16.msra.mxu0 %v13410_v15  ;;  %13451 = vmatpush3.bf16.msra.mxu1 %v20326_v22  ;;  %v13416_v61 = vpack.c.bf16 %v20331_v48, %v20330_v46  ;;  %v20333_v51 = vpack.c.bf16 %v16994_v28, %v16989_v13  ;;  %v20340_v62 = vpack.c.bf16 %v17160_v49, %v17154_v44  ;;  %v20343_v57 = vand.u32 4294901760, %v16728_v0 }
 0x4ad   :  { %3989 = vmatprep.mubr.f32.mxu0 %v3988_v29  ;;  %4532 = vmatprep.mubr.f32.mxu1 %v20329_v19  ;;  %v4003_v15 = vand.u32 4294901760, %v4002_v18  ;;  %v4009_v29 = vand.u32 4294901760, %v4008_v6  ;;  %v20338_v6 = vpack.c.bf16 %v17139_v27, %v17136_v54  ;;  %v20341_v18 = vand.u32 4294901760, %v17313_v45 }
 0x4ae   :  { %13413 = vmatprep.subr.bf16.mxu0 %v13412_v21  ;;  %13453 = vmatprep.subr.bf16.mxu1 %v17169_v37  ;;  %v20334_v21 = vpack.c.bf16 %v17018_v43, %v17013_v17  ;;  %v20342_v19 = vpack.c.bf16 %v17201_v33, %v17198_v55  ;;  %v20348_v0 = vand.u32 4294901760, %v16735_v59  ;;  %v20355_v59 = vld [vmem:[#allocation22_spill] sm:$0xff] }
 0x4af   :  { %3995 = vmatmul.mubr.f32.gmra.mrb[16].mxu0 %v3994_v11  ;;  %v20339_v11 = vand.u32 4294901760, %v17326_v63 }
 0x4b0   :  { %13415 = vmatpush3.bf16.msra.mxu0 %v13414_v56  ;;  %13455 = vmatpush3.bf16.msra.mxu1 %v17182_v35  ;;  %v20336_v56 = vpack.c.bf16 %v17060_v34, %v17055_v10 }
 0x4b1   :  { %4004 = vmatprep.mubr.f32.mxu0 %v4003_v15  ;;  %13417 = vmatprep.subr.bf16.mxu0 %v13416_v61  ;;  %v20335_v61 = vpack.c.bf16 %v17034_v39, %v17029_v32 }
 0x4b2   :  { %13457 = vmatprep.subr.bf16.mxu1 %v17191_v3 }
 0x4b3   :  { %4010 = vmatmul.mubr.f32.gmra.mrb[18].mxu0 %v4009_v29  ;;  %v20345_v29 = vand.u32 4294901760, %v17321_v24 }
 0x4b4   :  { %13419 = vmatpush3.bf16.msra.mxu0 %v20333_v51  ;;  %13459 = vmatpush3.bf16.msra.mxu1 %v17207_v41  ;;  %v20346_v51 = vpack.c.bf16 %v17219_v16, %v17212_v5 }
 0x4b5   :  { %4398 = vmatprep.mubr.f32.mxu0 %v17294_v42  ;;  %13421 = vmatprep.subr.bf16.mxu0 %v20334_v21  ;;  %v20337_v42 = vpack.c.bf16 %v17117_v9, %v17112_v53 }
 0x4b6   :  { %13461 = vmatprep.subr.bf16.mxu1 %v17214_v31 }
 0x4b8   :  { %13423 = vmatpush3.bf16.msra.mxu0 %v20335_v61  ;;  %13463 = vmatpush3.bf16.msra.mxu1 %v17226_v25  ;;  %v20351_v61 = vand.u32 4294901760, %v16742_v47  ;;  %v20357_v47 = vld [vmem:[#allocation35_spill] sm:$0xff] }
 0x4b9   :  { %13425 = vmatprep.subr.bf16.mxu0 %v20336_v56  ;;  %13465 = vmatprep.subr.bf16.mxu1 %v17230_v7 }
 0x4bc   :  { %13427 = vmatpush3.bf16.msra.mxu0 %v20337_v42  ;;  %13467 = vmatpush3.bf16.msra.mxu1 %v17239_v30  ;;  %v20352_v42 = vand.u32 4294901760, %v17354_v36 }
 0x4bd   :  { %13429 = vmatprep.subr.bf16.mxu0 %v20338_v6  ;;  %13501 = vmatprep.subr.bf16.mxu1 %v16746_v4  ;;  %v20344_v4 = vand.u32 4294901760, %v16730_v52  ;;  %v20349_v52 = vand.u32 4294901760, %v16737_v58  ;;  %v20354_v58 = vand.u32 4294901760, %v20319_v26  ;;  %v20364_v26 = vand.u32 4294901760, %v20327_v23 }
 0x4bf   :  { %4536 = vmatmul.mubr.f32.vlgmr.msra.gmra.mrb[68].mxu1 %v20339_v11  ;;  %v13468_v15 = vpack.c.bf16 %v20344_v4, %v20343_v57  ;;  %v13470_v21 = vpack.c.bf16 %v20349_v52, %v20348_v0  ;;  %v20360_v11 = vld [vmem:[#allocation26_spill] sm:$0xff]  ;;  %v20367_v4 = vand.u32 4294901760, %v20331_v48 }
 0x4c0   :  { %13431 = vmatpush3.bf16.msra.mxu0 %v20340_v62  ;;  %4543 = vmatprep.mubr.f32.mxu1 %v20341_v18  ;;  %v20361_v62 = vand.u32 4294901760, %v20360_v11  ;;  %v17581_v11 = vld [vmem:[#allocation10 + $0x130] sm:$0xff] }
 0x4c1   :  { %13503 = vmatpush3.bf16.msra.mxu1 %v16751_v14  ;;  %13433 = vmatprep.subr.bf16.mxu0 %v20342_v19  ;;  %v20347_v14 = vand.u32 4294901760, %v17334_v20  ;;  %v20365_v19 = vand.u32 4294901760, %v20328_v8  ;;  %v20369_v8 = vand.u32 4294901760, %v16994_v28 }
 0x4c2   :  { %13505 = vmatprep.subr.bf16.mxu1 %v16753_v12  ;;  %v20350_v12 = vand.u32 4294901760, %v16739_v38  ;;  %v20356_v38 = vand.u32 4294901760, %v20355_v59  ;;  %v17566_v59 = vld [vmem:[#allocation10 + $0x120] sm:$0xff] }
 0x4c3   :  { %4547 = vmatmul.mubr.f32.gmra.mrb[70].mxu1 %v20345_v29  ;;  %v13478_v57 = vpack.c.bf16 %v20365_v19, %v20364_v26 }
 0x4c4   :  { %13435 = vmatpush3.bf16.msra.mxu0 %v20346_v51  ;;  %4554 = vmatprep.mubr.f32.mxu1 %v20347_v14  ;;  %v13472_v56 = vpack.c.bf16 %v20351_v61, %v20350_v12  ;;  %v20385_v14 = vld [vmem:[#allocation59_spill] sm:$0xff] }
 0x4c5   :  { %13507 = vmatpush3.bf16.msra.mxu1 %v17070_v2  ;;  %13469 = vmatprep.subr.bf16.mxu0 %v13468_v15  ;;  %v20353_v2 = vand.u32 4294901760, %v17358_v60  ;;  %v20386_v0 = vrot.slane %v20385_v14, 1  ;;  %v18066_v14 = vld [vmem:[#allocation12 + $0x150] sm:$0xff] }
 0x4c6   :  { %13509 = vmatprep.subr.bf16.mxu1 %v17091_v50  ;;  %v13474_v50 = vpack.c.bf16 %v20356_v38, %v20354_v58  ;;  %v20391_v58 = vld [vmem:[#allocation60_spill] sm:$0xff]  ;;  %v17568_v38 = vld [vmem:[#allocation10 + $0x128] sm:$0xff] }
 0x4c7   :  { %4401 = vmatmul.mubr.f32.vlgmr.msra.gmra.mrb[20].mxu0 %v17326_v63  ;;  %4558 = vmatmul.mubr.f32.gmra.mrb[72].mxu1 %v20352_v42  ;;  %v20358_v63 = vld [vmem:[#allocation23_spill] sm:$0xff] }
 0x4c8   :  { %4407 = vmatprep.mubr.f32.mxu0 %v17313_v45  ;;  %4565 = vmatprep.mubr.f32.mxu1 %v20353_v2  ;;  %v20359_v6 = vand.u32 4294901760, %v20358_v63  ;;  %v20362_v45 = vand.u32 4294901760, %v17370_v40 }
 0x4c9   :  { %13471 = vmatpush3.bf16.msra.mxu0 %v13470_v21  ;;  %13511 = vmatpush3.bf16.msra.mxu1 %v20318_v1  ;;  %v20363_v1 = vld [vmem:[#allocation37_spill] sm:$0xff]  ;;  %v20388_v21 = vld [vmem:[#allocation40_spill] sm:$0xff] }
 0x4ca   :  { %13473 = vmatprep.subr.bf16.mxu0 %v13472_v56  ;;  %13513 = vmatprep.subr.bf16.mxu1 %v20357_v47  ;;  %v13476_v18 = vpack.c.bf16 %v20361_v62, %v20359_v6  ;;  %v4904_v47 = vand.u32 4294901760, %v17568_v38  ;;  %v20393_v6 = vld [vmem:[#allocation44_spill] sm:$0xff]  ;;  %v17583_v62 = vld [vmem:[#allocation10 + $0x138] sm:$0xff] }
 0x4cb   :  { %4410 = vmatmul.mubr.f32.gmra.mrb[22].mxu0 %v17321_v24  ;;  %4569 = vmatmul.mubr.f32.gmra.mrb[74].mxu1 %v20362_v45  ;;  %v20366_v24 = vand.u32 4294901760, %v20330_v46  ;;  %v20371_v46 = vand.u32 4294901760, %v17018_v43  ;;  %v20375_v43 = vand.u32 4294901760, %v17060_v34  ;;  %v17532_v34 = vld [vmem:[#allocation10 + $0x108] sm:$0xff]  ;;  %v4910_v26 = vand.u32 4294901760, %v17583_v62 }
 0x4cc   :  { %4416 = vmatprep.mubr.f32.mxu0 %v17334_v20  ;;  %4860 = vmatprep.mubr.f32.mxu1 %v20363_v1  ;;  %v4892_v51 = vand.u32 4294901760, %v17532_v34 }
 0x4cd   :  { %13475 = vmatpush3.bf16.msra.mxu0 %v13474_v50  ;;  %13515 = vmatpush3.bf16.msra.mxu1 %v20326_v22  ;;  %v13480_v15 = vpack.c.bf16 %v20367_v4, %v20366_v24  ;;  %v20368_v22 = vand.u32 4294901760, %v16989_v13  ;;  %v20373_v13 = vand.u32 4294901760, %v17034_v39  ;;  %v20378_v39 = vand.u32 4294901760, %v17136_v54  ;;  %v17600_v24 = vld [vmem:[#allocation10 + $0x140] sm:$0xff]  ;;  %v17602_v4 = vld [vmem:[#allocation10 + $0x148] sm:$0xff] }
 0x4ce   :  { %13477 = vmatprep.subr.bf16.mxu0 %v13476_v18  ;;  %13517 = vmatprep.subr.bf16.mxu1 %v17169_v37  ;;  %v20370_v37 = vand.u32 4294901760, %v17013_v17  ;;  %v20374_v17 = vand.u32 4294901760, %v17055_v10  ;;  %v17530_v10 = vld [vmem:[#allocation10 + $0x100] sm:$0xff]  ;;  %v20383_v54 = vand.u32 4294901760, %v17198_v55  ;;  %v20389_v55 = vand.u32 4294901760, %v17212_v5  ;;  %v20392_v5 = vld [vmem:[#allocation41_spill] sm:$0xff] }
 0x4cf   :  { %4419 = vmatmul.mubr.f32.gmra.mrb[24].mxu0 %v17354_v36  ;;  %v13482_v20 = vpack.c.bf16 %v20369_v8, %v20368_v22  ;;  %v20376_v36 = vand.u32 4294901760, %v17112_v53  ;;  %v20382_v53 = vand.u32 4294901760, %v17160_v49  ;;  %v4889_v29 = vand.u32 4294901760, %v17530_v10  ;;  %v17552_v49 = vld [vmem:[#allocation10 + $0x118] sm:$0xff] }
 0x4d0   :  { %4425 = vmatprep.mubr.f32.mxu0 %v17358_v60  ;;  %v13484_v23 = vpack.c.bf16 %v20371_v46, %v20370_v37  ;;  %v20380_v60 = vld [vmem:[#allocation58_spill] sm:$0xff]  ;;  %v4898_v42 = vand.u32 4294901760, %v17552_v49  ;;  %v4901_v50 = vand.u32 4294901760, %v17566_v59  ;;  %v20394_v18 = vld [vmem:[#allocation43_spill] sm:$0xff]  ;;  %v4913_v8 = vand.u32 4294901760, %v17600_v24 }
 0x4d1   :  { %13479 = vmatpush3.bf16.msra.mxu0 %v13478_v57  ;;  %13519 = vmatpush3.bf16.msra.mxu1 %v17182_v35  ;;  %v20372_v35 = vand.u32 4294901760, %v17029_v32  ;;  %v20379_v32 = vand.u32 4294901760, %v17139_v27  ;;  %v3769_v48 = vrot.slane %v20380_v60, 1  ;;  %v20384_v27 = vand.u32 4294901760, %v17201_v33  ;;  %v20395_v57 = vld [vmem:[#allocation46_spill] sm:$0xff]  ;;  %v17621_v46 = vld [vmem:[#allocation10 + $0x158] sm:$0xff] }
 0x4d2   :  { %13481 = vmatprep.subr.bf16.mxu0 %v13480_v15  ;;  %13521 = vmatprep.subr.bf16.mxu1 %v17191_v3  ;;  %v13488_v3 = vpack.c.bf16 %v20375_v43, %v20374_v17  ;;  %v20390_v33 = vand.u32 4294901760, %v17219_v16  ;;  %v17559_v61 = vpack.c.bf16 %v4892_v51, %v4889_v29  ;;  %v17593_v45 = vpack.c.bf16 %v4904_v47, %v4901_v50  ;;  %v17619_v37 = vld [vmem:[#allocation10 + $0x150] sm:$0xff] }
 0x4d3   :  { %4428 = vmatmul.mubr.f32.gmra.mrb[26].mxu0 %v17370_v40  ;;  %v13486_v28 = vpack.c.bf16 %v20373_v13, %v20372_v35  ;;  %v3771_v52 = vsel %vm150_vm1, %v3769_v48, %v20386_v0  ;;  %v17625_v13 = vld [vmem:[#allocation10 + $0x160] sm:$0xff]  ;;  %v17631_v17 = vsub.f32 %v17530_v10, %v4889_v29  ;;  %v17634_v43 = vsub.f32 %v17532_v34, %v4892_v51  ;;  %v17671_v51 = vld [vmem:[#allocation10 + $0x178] sm:$0xff] }
 0x4d4   :  { %4735 = vmatprep.mubr.f32.mxu0 %v20363_v1  ;;  %v13498_v12 = vpack.c.bf16 %v20390_v33, %v20389_v55  ;;  %v17563_v2 = vand.u32 4294901760, %v3771_v52  ;;  %v4907_v1 = vand.u32 4294901760, %v17581_v11 }
 0x4d5   :  { %13483 = vmatpush3.bf16.msra.mxu0 %v13482_v20  ;;  %13523 = vmatpush3.bf16.msra.mxu1 %v17207_v41  ;;  %v20377_v41 = vand.u32 4294901760, %v17117_v9  ;;  %v20381_v9 = vand.u32 4294901760, %v17154_v44  ;;  %v17550_v44 = vld [vmem:[#allocation10 + $0x110] sm:$0xff]  ;;  %v4916_v20 = vand.u32 4294901760, %v17602_v4 }
 0x4d6   :  { %13485 = vmatprep.subr.bf16.mxu0 %v13484_v23  ;;  %13525 = vmatprep.subr.bf16.mxu1 %v17214_v31  ;;  %v13492_v31 = vpack.c.bf16 %v20379_v32, %v20378_v39  ;;  %v4895_v56 = vand.u32 4294901760, %v17550_v44  ;;  %v17577_v63 = vsub.f32 %v3771_v52, %v17563_v2  ;;  %v17611_v15 = vpack.c.bf16 %v4910_v26, %v4907_v1  ;;  %v20396_v23 = vld [vmem:[#allocation39_spill] sm:$0xff]  ;;  %v3799_v32 = vld [vmem:[#allocation2 + $0x28] sm:$0xff] }
 0x4d7   :  { %v13490_v40 = vpack.c.bf16 %v20377_v41, %v20376_v36  ;;  %v3787_v35 = vrot.slane %v20396_v23, 1  ;;  %v17641_v36 = vpack.c.bf16 %v4916_v20, %v4913_v8  ;;  %v4919_v41 = vand.u32 4294901760, %v17619_v37  ;;  %v3805_v52 = vld [vmem:[#allocation2 + $0x58] sm:$0xff] }
 0x4d8   :  { %v17572_v16 = vpack.c.bf16 %v4898_v42, %v4895_v56  ;;  %v4971_v19 = vand.u32 4294901760, %v17577_v63  ;;  %v4925_v39 = vand.u32 4294901760, %v17625_v13  ;;  %v17669_v29 = vand.u32 4294901760, %v3799_v32 }
 0x4d9   :  { %13487 = vmatpush3.bf16.msra.mxu0 %v13486_v28  ;;  %13527 = vmatpush3.bf16.msra.mxu1 %v17226_v25  ;;  %v13494_v25 = vpack.c.bf16 %v20382_v53, %v20381_v9  ;;  %v17628_v28 = vld [vmem:[#allocation10 + $0x168] sm:$0xff]  ;;  %v17652_v9 = vsub.f32 %v17550_v44, %v4895_v56  ;;  %v17655_v53 = vsub.f32 %v17552_v49, %v4898_v42  ;;  %v4934_v56 = vand.u32 4294901760, %v17671_v51 }
 0x4da   :  { %13489 = vmatprep.subr.bf16.mxu0 %v13488_v3  ;;  %13529 = vmatprep.subr.bf16.mxu1 %v17230_v7  ;;  %v13496_v7 = vpack.c.bf16 %v20384_v27, %v20383_v54  ;;  %v4972_v22 = vsub.f32 %v17577_v63, %v4971_v19  ;;  %v4928_v48 = vand.u32 4294901760, %v17628_v28  ;;  %v5019_v54 = vand.u32 4294901760, %v17634_v43 }
 0x4db   :  { %v19838_v44 = vand.u32 4294901760, %v17652_v9  ;;  %v19834_v49 = vand.u32 4294901760, %v17655_v53  ;;  %v17699_v42 = vsub.f32 %v3799_v32, %v17669_v29 }
 0x4dc   :  { %v4973_v3 = vand.u32 4294901760, %v4972_v22  ;;  %v5020_v33 = vsub.f32 %v17634_v43, %v5019_v54 }
 0x4dd   :  { %13491 = vmatpush3.bf16.msra.mxu0 %v13490_v40  ;;  %13531 = vmatpush3.bf16.msra.mxu1 %v17239_v30  ;;  %v20387_v30 = vld [vmem:[#allocation42_spill] sm:$0xff]  ;;  %v4922_v40 = vand.u32 4294901760, %v17621_v46 }
 0x4de   :  { %13493 = vmatprep.subr.bf16.mxu0 %v13492_v31  ;;  %v20397_v31 = vld [vmem:[#allocation38_spill] sm:$0xff] }
 0x4df   :  { %v20398_v10 = vrot.slane %v20397_v31, 1  ;;  %v17665_v27 = vpack.c.bf16 %v4922_v40, %v4919_v41 }
 0x4e0   :  { %4862 = vmatmul.mubr.f32.vlgmr.msra.gmra.mrb[76].mxu1 %v20387_v30 }
 0x4e1   :  { %13495 = vmatpush3.bf16.msra.mxu0 %v13494_v25  ;;  %4867 = vmatprep.mubr.f32.mxu1 %v20388_v21  ;;  %v3789_v34 = vsel %vm150_vm1, %v3787_v35, %v20398_v10  ;;  %v5012_v25 = vand.u32 4294901760, %v17631_v17 }
 0x4e2   :  { %13497 = vmatprep.subr.bf16.mxu0 %v13496_v7  ;;  %v17667_v7 = vld [vmem:[#allocation10 + $0x170] sm:$0xff]  ;;  %v17673_v0 = vand.u32 4294901760, %v3789_v34 }
 0x4e3   :  { %v5013_v55 = vsub.f32 %v17631_v17, %v5012_v25 }
 0x4e4   :  { %4869 = vmatmul.mubr.f32.gmra.mrb[78].mxu1 %v20391_v58 }
 0x4e5   :  { %13499 = vmatpush3.bf16.msra.mxu0 %v13498_v12  ;;  %4874 = vmatprep.mubr.f32.mxu1 %v20392_v5  ;;  %v17694_v12 = vsub.f32 %v17566_v59, %v4901_v50  ;;  %v5027_v59 = vsub.f32 %v17652_v9, %v19838_v44  ;;  %v5034_v50 = vsub.f32 %v17655_v53, %v19834_v49 }
 0x4e6   :  { %13533 = vmatprep.subr.bf16.mxu0 %v17559_v61 }
 0x4e7   :  { %v19831_v22 = vand.u32 4294901760, %v17694_v12  ;;  %v5035_v32 = vand.u32 4294901760, %v5034_v50 }
 0x4e8   :  { %4737 = vmatmul.mubr.f32.vlgmr.msra.gmra.mrb[28].mxu0 %v20387_v30  ;;  %4876 = vmatmul.mubr.f32.gmra.mrb[80].mxu1 %v20393_v6  ;;  %v17679_v30 = vpack.c.bf16 %v4928_v48, %v4925_v39 }
 0x4e9   :  { %4742 = vmatprep.mubr.f32.mxu0 %v20388_v21  ;;  %4881 = vmatprep.mubr.f32.mxu1 %v20394_v18  ;;  %v4931_v21 = vand.u32 4294901760, %v17667_v7 }
 0x4ea   :  { %13535 = vmatpush3.bf16.msra.mxu0 %v17559_v61 }
 0x4eb   :  { %13537 = vmatprep.subr.bf16.mxu0 %v17572_v16  ;;  %v17734_v35 = vpack.c.bf16 %v4934_v56, %v4931_v21 }
 0x4ec   :  { %4744 = vmatmul.mubr.f32.gmra.mrb[30].mxu0 %v20391_v58  ;;  %4883 = vmatmul.mubr.f32.gmra.mrb[82].mxu1 %v20395_v57  ;;  %v17701_v58 = vand.u32 4294901760, %v3805_v52 }
 0x4ed   :  { %4749 = vmatprep.mubr.f32.mxu0 %v20392_v5  ;;  %v17706_v5 = vsub.f32 %v17568_v38, %v4904_v47  ;;  %v17725_v38 = vsub.f32 %v17583_v62, %v4910_v26  ;;  %v5014_v47 = vand.u32 4294901760, %v5013_v55 }
 0x4ee   :  { %13539 = vmatpush3.bf16.msra.mxu0 %v17572_v16 }
 0x4ef   :  { %13541 = vmatprep.subr.bf16.mxu0 %v17593_v45  ;;  %v19833_v62 = vand.u32 4294901760, %v17706_v5 }
 0x4f0   :  { %4751 = vmatmul.mubr.f32.gmra.mrb[32].mxu0 %v20393_v6  ;;  %v17709_v6 = vsub.f32 %v3789_v34, %v17673_v0  ;;  %v19835_v34 = vand.u32 4294901760, %v17725_v38 }
 0x4f1   :  { %4756 = vmatprep.mubr.f32.mxu0 %v20394_v18  ;;  %v17720_v18 = vsub.f32 %v17581_v11, %v4907_v1  ;;  %v19832_v11 = vand.u32 4294901760, %v17699_v42  ;;  %v17738_v1 = vsub.f32 %v3805_v52, %v17701_v58  ;;  %v17751_v52 = vsub.f32 %v17600_v24, %v4913_v8 }
 0x4f2   :  { %13543 = vmatpush3.bf16.msra.mxu0 %v17593_v45  ;;  %v19837_v26 = vand.u32 4294901760, %v17709_v6 }
 0x4f3   :  { %13545 = vmatprep.subr.bf16.mxu0 %v17611_v15  ;;  %v19836_v10 = vand.u32 4294901760, %v17720_v18  ;;  %v5001_v50 = vand.u32 4294901760, %v17738_v1  ;;  %v5068_v49 = vand.u32 4294901760, %v17751_v52 }
 0x4f4   :  { %4758 = vmatmul.mubr.f32.gmra.mrb[34].mxu0 %v20395_v57  ;;  %v5021_v57 = vand.u32 4294901760, %v5020_v33  ;;  %v5041_v33 = vsub.f32 %v17694_v12, %v19831_v22  ;;  %v4992_v24 = vsub.f32 %v17709_v6, %v19837_v26 }
 0x4f5   :  { %11716 = vmatprep.mubr.f32.mxu0 %v4973_v3  ;;  %v5028_v3 = vand.u32 4294901760, %v5027_v59  ;;  %v4982_v59 = vsub.f32 %v17699_v42, %v19832_v11  ;;  %v5055_v22 = vsub.f32 %v17720_v18, %v19836_v10  ;;  %v5062_v11 = vsub.f32 %v17725_v38, %v19835_v34 }
 0x4f6   :  { %13547 = vmatpush3.bf16.msra.mxu0 %v17611_v15  ;;  %v13564_v55 = vpack.c.bf16 %v5021_v57, %v5014_v47  ;;  %v5048_v47 = vsub.f32 %v17706_v5, %v19833_v62  ;;  %v17764_v57 = vsub.f32 %v17602_v4, %v4916_v20  ;;  %v5042_v62 = vand.u32 4294901760, %v5041_v33 }
 0x4f7   :  { %13549 = vmatprep.subr.bf16.mxu0 %v17641_v36  ;;  %v13568_v8 = vpack.c.bf16 %v5035_v32, %v5028_v3  ;;  %v17780_v4 = vsub.f32 %v17619_v37, %v4919_v41  ;;  %v17785_v20 = vsub.f32 %v17621_v46, %v4922_v40  ;;  %v4983_v3 = vand.u32 4294901760, %v4982_v59 }
 0x4f8   :  { %v5002_v32 = vsub.f32 %v17738_v1, %v5001_v50  ;;  %v5049_v34 = vand.u32 4294901760, %v5048_v47  ;;  %v5075_v33 = vand.u32 4294901760, %v17764_v57  ;;  %v4993_v10 = vand.u32 4294901760, %v4992_v24 }
 0x4f9   :  { %v5056_v26 = vand.u32 4294901760, %v5055_v22  ;;  %v5063_v44 = vand.u32 4294901760, %v5062_v11  ;;  %v5069_v37 = vsub.f32 %v17751_v52, %v5068_v49  ;;  %v5082_v46 = vand.u32 4294901760, %v17780_v4 }
 0x4fa   :  { %13551 = vmatpush3.bf16.msra.mxu0 %v17641_v36  ;;  %v5089_v41 = vand.u32 4294901760, %v17785_v20  ;;  %v17799_v40 = vsub.f32 %v17625_v13, %v4925_v39  ;;  %v5003_v59 = vand.u32 4294901760, %v5002_v32  ;;  %v13572_v47 = vpack.c.bf16 %v5049_v34, %v5042_v62 }
 0x4fb   :  { %13553 = vmatprep.subr.bf16.mxu0 %v17665_v27  ;;  %v5076_v22 = vsub.f32 %v17764_v57, %v5075_v33  ;;  %v17807_v11 = vsub.f32 %v17628_v28, %v4928_v48  ;;  %v5083_v13 = vsub.f32 %v17780_v4, %v5082_v46  ;;  %v17821_v48 = vsub.f32 %v17667_v7, %v4931_v21 }
 0x4fc   :  { %v5090_v39 = vsub.f32 %v17785_v20, %v5089_v41  ;;  %v19842_v62 = vand.u32 4294901760, %v17799_v40 }
 0x4fd   :  { %v5077_v34 = vand.u32 4294901760, %v5076_v22  ;;  %v19841_v28 = vand.u32 4294901760, %v17807_v11  ;;  %v19840_v7 = vand.u32 4294901760, %v17821_v48 }
 0x4fe   :  { %13555 = vmatpush3.bf16.msra.mxu0 %v17665_v27  ;;  %v5091_v24 = vand.u32 4294901760, %v5090_v39  ;;  %v13596_v39 = vpack.c.bf16 %v17634_v43, %v17631_v17  ;;  %v20408_v17 = vand.u32 4294901760, %v17694_v12  ;;  %v20409_v43 = vand.u32 4294901760, %v17706_v5 }
 0x4ff   :  { %13557 = vmatprep.subr.bf16.mxu0 %v17679_v30  ;;  %v5104_v32 = vsub.f32 %v17807_v11, %v19841_v28 }
 0x502   :  { %13559 = vmatpush3.bf16.msra.mxu0 %v17679_v30 }
 0x503   :  { %13561 = vmatprep.subr.bf16.mxu0 %v17734_v35 }
 0x506   :  { %13563 = vmatpush3.bf16.msra.mxu0 %v17734_v35 }
 0x507   :  { %13565 = vmatprep.subr.bf16.mxu0 %v13564_v55 }
 0x509   :  { %11717 = vmatmul.mubr.f32.vlgmr.msra.gmra.mrb[36].mxu0 %v4983_v3 }
 0x50a   :  { %11719 = vmatprep.mubr.f32.mxu0 %v4993_v10  ;;  %13567 = vmatpush3.bf16.msra.mxu0 %v13564_v55  ;;  %v13576_v10 = vpack.c.bf16 %v5063_v44, %v5056_v26  ;;  %v5070_v55 = vand.u32 4294901760, %v5069_v37  ;;  %v17826_v44 = vsub.f32 %v17671_v51, %v4934_v56  ;;  %v5084_v26 = vand.u32 4294901760, %v5083_v13 }
 0x50b   :  { %13569 = vmatprep.subr.bf16.mxu0 %v13568_v8  ;;  %v5105_v37 = vand.u32 4294901760, %v5104_v32  ;;  %v13620_v32 = vpack.c.bf16 %v17807_v11, %v17799_v40 }
 0x50c   :  { %v13580_v3 = vpack.c.bf16 %v5077_v34, %v5070_v55  ;;  %v19839_v21 = vand.u32 4294901760, %v17826_v44  ;;  %v13584_v56 = vpack.c.bf16 %v5091_v24, %v5084_v26  ;;  %v13600_v34 = vpack.c.bf16 %v17655_v53, %v17652_v9 }
 0x50d   :  { %11720 = vmatmul.mubr.f32.gmra.mrb[38].mxu0 %v5003_v59  ;;  %v5111_v59 = vsub.f32 %v17821_v48, %v19840_v7  ;;  %v13604_v26 = vpack.c.bf16 %v17706_v5, %v17694_v12  ;;  %v13608_v24 = vpack.c.bf16 %v17725_v38, %v17720_v18  ;;  %v13676_v12 = vpack.c.bf16 %v5075_v33, %v5068_v49 }
 0x50e   :  { %13571 = vmatpush3.bf16.msra.mxu0 %v13568_v8  ;;  %11754 = vmatprep.mubr.f32.mxu0 %v17563_v2  ;;  %v5097_v8 = vsub.f32 %v17799_v40, %v19842_v62  ;;  %v20412_v33 = vand.u32 4294901760, %v17799_v40 }
 0x50f   :  { %13573 = vmatprep.subr.bf16.mxu0 %v13572_v47  ;;  %v5112_v55 = vand.u32 4294901760, %v5111_v59  ;;  %v5711_v59 = vld [vmem:[#allocation12] sm:$0xff] }
 0x510   :  { %v5098_v51 = vand.u32 4294901760, %v5097_v8  ;;  %v13612_v8 = vpack.c.bf16 %v17764_v57, %v17751_v52  ;;  %v9858_v52 = vld [vmem:[%s19565_s6 + $0x3] ss:$0 sm:$0xff] }
 0x512   :  { %13575 = vmatpush3.bf16.msra.mxu0 %v13572_v47  ;;  %v5118_v47 = vsub.f32 %v17826_v44, %v19839_v21  ;;  %v13588_v22 = vpack.c.bf16 %v5105_v37, %v5098_v51  ;;  %v13624_v51 = vpack.c.bf16 %v17826_v44, %v17821_v48  ;;  %v5728_v37 = vld [vmem:[#allocation12 + $0x88] sm:$0xff] }
 0x513   :  { %13577 = vmatprep.subr.bf16.mxu0 %v13576_v10 }
 0x514   :  { %v5119_v13 = vand.u32 4294901760, %v5118_v47 }
 0x516   :  { %13579 = vmatpush3.bf16.msra.mxu0 %v13576_v10  ;;  %v13592_v10 = vpack.c.bf16 %v5119_v13, %v5112_v55  ;;  %v5712_v55 = vld [vmem:[#allocation12 + $0x8] sm:$0xff]  ;;  %v5764_v13 = vand.u32 4294901760, %v5711_v59 }
 0x517   :  { %13581 = vmatprep.subr.bf16.mxu0 %v13580_v3 }
 0x518   :  { %v17880_v7 = vsub.f32 %v5711_v59, %v5764_v13 }
 0x51a   :  { %13583 = vmatpush3.bf16.msra.mxu0 %v13580_v3  ;;  %v13616_v3 = vpack.c.bf16 %v17785_v20, %v17780_v4 }
 0x51b   :  { %13585 = vmatprep.subr.bf16.mxu0 %v13584_v56 }
 0x51e   :  { %13587 = vmatpush3.bf16.msra.mxu0 %v13584_v56  ;;  %v5727_v56 = vld [vmem:[#allocation12 + $0x80] sm:$0xff] }
 0x51f   :  { %13589 = vmatprep.subr.bf16.mxu0 %v13588_v22  ;;  %v5812_v47 = vand.u32 4294901760, %v5727_v56 }
 0x522   :  { %13591 = vmatpush3.bf16.msra.mxu0 %v13588_v22  ;;  %v5815_v22 = vand.u32 4294901760, %v5728_v37 }
 0x523   :  { %13593 = vmatprep.subr.bf16.mxu0 %v13592_v10 }
 0x526   :  { %13595 = vmatpush3.bf16.msra.mxu0 %v13592_v10  ;;  %v5767_v10 = vand.u32 4294901760, %v5712_v55 }
 0x527   :  { %13597 = vmatprep.subr.bf16.mxu0 %v13596_v39 }
 0x528   :  { %v17878_v21 = vpack.c.bf16 %v5767_v10, %v5764_v13  ;;  %v17882_v28 = vsub.f32 %v5712_v55, %v5767_v10  ;;  %v20404_v13 = vand.u32 4294901760, %v17652_v9  ;;  %v20405_v10 = vand.u32 4294901760, %v17655_v53 }
 0x529   :  { %11755 = vmatmul.mubr.f32.vlgmr.msra.gmra.mrb[36].mxu0 %v17669_v29  ;;  %v20410_v9 = vand.u32 4294901760, %v17720_v18  ;;  %v20411_v53 = vand.u32 4294901760, %v17725_v38  ;;  %v13680_v18 = vpack.c.bf16 %v5089_v41, %v5082_v46 }
 0x52a   :  { %11757 = vmatprep.mubr.f32.mxu0 %v17673_v0  ;;  %13599 = vmatpush3.bf16.msra.mxu0 %v13596_v39  ;;  %v5729_v39 = vld [vmem:[#allocation12 + $0x90] sm:$0xff]  ;;  %20400 = vst [vmem:[#allocation24_spill] sm:$0xff] %v17878_v21 }
 0x52b   :  { %13601 = vmatprep.subr.bf16.mxu0 %v13600_v34 }
 0x52d   :  { %11758 = vmatmul.mubr.f32.gmra.mrb[38].mxu0 %v17701_v58 }
 0x52e   :  { %13603 = vmatpush3.bf16.msra.mxu0 %v13600_v34  ;;  %11792 = vmatprep.mubr.f32.mxu0 %v17577_v63  ;;  %v5730_v34 = vld [vmem:[#allocation12 + $0x98] sm:$0xff] }
 0x52f   :  { %13605 = vmatprep.subr.bf16.mxu0 %v13604_v26  ;;  %v5821_v63 = vand.u32 4294901760, %v5730_v34 }
 0x532   :  { %13607 = vmatpush3.bf16.msra.mxu0 %v13604_v26  ;;  %v5713_v26 = vld [vmem:[#allocation12 + $0x10] sm:$0xff] }
 0x533   :  { %13609 = vmatprep.subr.bf16.mxu0 %v13608_v24  ;;  %v5770_v62 = vand.u32 4294901760, %v5713_v26 }
 0x535   :  { %v17895_v59 = vsub.f32 %v5713_v26, %v5770_v62  ;;  %v20407_v26 = vand.u32 4294901760, %v17709_v6 }
 0x536   :  { %13611 = vmatpush3.bf16.msra.mxu0 %v13608_v24  ;;  %v17871_v24 = vpack.c.bf16 %v5815_v22, %v5812_v47 }
 0x537   :  { %13613 = vmatprep.subr.bf16.mxu0 %v13612_v8  ;;  %20403 = vst [vmem:[#allocation21_spill] sm:$0xff] %v17895_v59 }
 0x538   :  { %20399 = vst [vmem:[#allocation47_spill] sm:$0xff] %v17871_v24  ;;  %13725 = vmatprep.subr.bf16.mxu1 %v17871_v24 }
 0x539   :  { %13727 = vmatpush3.bf16.msra.mxu1 %v17878_v21  ;;  %v5740_v21 = vld [vmem:[#allocation12 + $0xe8] sm:$0xff] }
 0x53a   :  { %13615 = vmatpush3.bf16.msra.mxu0 %v13612_v8  ;;  %v17873_v8 = vsub.f32 %v5727_v56, %v5812_v47  ;;  %v17891_v47 = vsub.f32 %v5730_v34, %v5821_v63  ;;  %v20406_v34 = vand.u32 4294901760, %v17699_v42 }
 0x53b   :  { %13617 = vmatprep.subr.bf16.mxu0 %v13616_v3 }
 0x53e   :  { %13619 = vmatpush3.bf16.msra.mxu0 %v13616_v3  ;;  %v17875_v3 = vsub.f32 %v5728_v37, %v5815_v22 }
 0x53f   :  { %13621 = vmatprep.subr.bf16.mxu0 %v13620_v32 }
 0x542   :  { %13623 = vmatpush3.bf16.msra.mxu0 %v13620_v32  ;;  %v5818_v32 = vand.u32 4294901760, %v5729_v39 }
 0x543   :  { %13625 = vmatprep.subr.bf16.mxu0 %v13624_v51 }
 0x544   :  { %v17889_v37 = vpack.c.bf16 %v5821_v63, %v5818_v32  ;;  %v20413_v63 = vand.u32 4294901760, %v17807_v11 }
 0x546   :  { %13627 = vmatpush3.bf16.msra.mxu0 %v13624_v51  ;;  %v5714_v51 = vld [vmem:[#allocation12 + $0x18] sm:$0xff]  ;;  %20401 = vst [vmem:[#allocation53_spill] sm:$0xff] %v17889_v37  ;;  %13729 = vmatprep.subr.bf16.mxu1 %v17889_v37  ;;  %v5739_v37 = vld [vmem:[#allocation12 + $0xe0] sm:$0xff] }
 0x547   :  { %13629 = vmatprep.subr.bf16.mxu0 %v17559_v61  ;;  %v5773_v56 = vand.u32 4294901760, %v5714_v51 }
 0x549   :  { %11793 = vmatmul.mubr.f32.vlgmr.msra.gmra.mrb[36].mxu0 %v17699_v42  ;;  %v17893_v22 = vpack.c.bf16 %v5773_v56, %v5770_v62  ;;  %v17898_v55 = vsub.f32 %v5714_v51, %v5773_v56  ;;  %v13660_v62 = vpack.c.bf16 %v5019_v54, %v5012_v25  ;;  %v13668_v25 = vpack.c.bf16 %v20409_v43, %v20408_v17 }
 0x54a   :  { %11795 = vmatprep.mubr.f32.mxu0 %v17709_v6  ;;  %13631 = vmatpush3.bf16.msra.mxu0 %v17559_v61  ;;  %v13672_v54 = vpack.c.bf16 %v20411_v53, %v20410_v9  ;;  %v13684_v56 = vpack.c.bf16 %v20413_v63, %v20412_v33  ;;  %v17968_v33 = vld [vmem:[#allocation12 + $0x100] sm:$0xff]  ;;  %v17970_v63 = vld [vmem:[#allocation12 + $0x108] sm:$0xff] }
 0x54b   :  { %13633 = vmatprep.subr.bf16.mxu0 %v17572_v16  ;;  %20402 = vst [vmem:[#allocation48_spill] sm:$0xff] %v17893_v22  ;;  %13731 = vmatpush3.bf16.msra.mxu1 %v17893_v22 }
 0x54d   :  { %11796 = vmatmul.mubr.f32.gmra.mrb[38].mxu0 %v17738_v1 }
 0x54e   :  { %13635 = vmatpush3.bf16.msra.mxu0 %v17572_v16  ;;  %11830 = vmatprep.mubr.f32.mxu0 %v4971_v19  ;;  %v17885_v19 = vsub.f32 %v5729_v39, %v5818_v32  ;;  %v13664_v39 = vpack.c.bf16 %v20405_v10, %v20404_v13 }
 0x54f   :  { %13637 = vmatprep.subr.bf16.mxu0 %v17593_v45 }
 0x552   :  { %13639 = vmatpush3.bf16.msra.mxu0 %v17593_v45 }
 0x553   :  { %13641 = vmatprep.subr.bf16.mxu0 %v17611_v15 }
 0x556   :  { %13643 = vmatpush3.bf16.msra.mxu0 %v17611_v15 }
 0x557   :  { %13645 = vmatprep.subr.bf16.mxu0 %v17641_v36 }
 0x55a   :  { %13647 = vmatpush3.bf16.msra.mxu0 %v17641_v36 }
 0x55b   :  { %13649 = vmatprep.subr.bf16.mxu0 %v17665_v27 }
 0x55e   :  { %13651 = vmatpush3.bf16.msra.mxu0 %v17665_v27 }
 0x55f   :  { %13653 = vmatprep.subr.bf16.mxu0 %v17679_v30 }
 0x562   :  { %13655 = vmatpush3.bf16.msra.mxu0 %v17679_v30 }
 0x563   :  { %13657 = vmatprep.subr.bf16.mxu0 %v17734_v35 }
 0x566   :  { %13659 = vmatpush3.bf16.msra.mxu0 %v17734_v35 }
 0x567   :  { %13661 = vmatprep.subr.bf16.mxu0 %v13660_v62 }
 0x569   :  { %11831 = vmatmul.mubr.f32.vlgmr.msra.gmra.mrb[36].mxu0 %v20406_v34  ;;  %v20415_v34 = vand.u32 4294901760, %v17826_v44 }
 0x56a   :  { %11833 = vmatprep.mubr.f32.mxu0 %v20407_v26  ;;  %13663 = vmatpush3.bf16.msra.mxu0 %v13660_v62 }
 0x56b   :  { %13665 = vmatprep.subr.bf16.mxu0 %v13664_v39 }
 0x56d   :  { %11834 = vmatmul.mubr.f32.gmra.mrb[38].mxu0 %v5001_v50 }
 0x56e   :  { %13667 = vmatpush3.bf16.msra.mxu0 %v13664_v39  ;;  %11868 = vmatprep.mubr.f32.mxu0 %v17563_v2  ;;  %v20414_v39 = vand.u32 4294901760, %v17821_v48 }
 0x56f   :  { %13669 = vmatprep.subr.bf16.mxu0 %v13668_v25 }
 0x570   :  { %v13688_v26 = vpack.c.bf16 %v20415_v34, %v20414_v39  ;;  %v17976_v39 = vld [vmem:[#allocation12 + $0x110] sm:$0xff]  ;;  %v17978_v34 = vld [vmem:[#allocation12 + $0x118] sm:$0xff] }
 0x571   :  { %20416 = vst [vmem:[#allocation25_spill] sm:$0xff] %v17976_v39  ;;  %20417 = vst [vmem:[#allocation51_spill] sm:$0xff] %v17978_v34 }
 0x572   :  { %13671 = vmatpush3.bf16.msra.mxu0 %v13668_v25  ;;  %v10392_v42 = vpop.f32.mrb[60].mxu1 }
 0x573   :  { %13673 = vmatprep.subr.bf16.mxu0 %v13672_v54  ;;  %v10393_v6 = vpop.f32.mrb[61].mxu1 }
 0x574   :  { %v10394_v5 = vadd.f32 %v10393_v6, %v10392_v42 }
 0x576   :  { %13675 = vmatpush3.bf16.msra.mxu0 %v13672_v54  ;;  %v10395_v1 = vpop.f32.mrb[62].mxu1 }
 0x577   :  { %13677 = vmatprep.subr.bf16.mxu0 %v13676_v12  ;;  %v10396_v50 = vpop.f32.mrb[63].mxu1 }
 0x578   :  { %v10397_v38 = vadd.f32 %v10396_v50, %v10395_v1 }
 0x57a   :  { %13679 = vmatpush3.bf16.msra.mxu0 %v13676_v12  ;;  %v10348_v32 = vpop.f32.mrb[12].mxu0  ;;  %v10398_v51 = vpop.f32.mrb[64].mxu1 }
 0x57b   :  { %13681 = vmatprep.subr.bf16.mxu0 %v13680_v18  ;;  %v10349_v49 = vpop.f32.mrb[13].mxu0  ;;  %v10399_v57 = vpop.f32.mrb[65].mxu1 }
 0x57c   :  { %v10350_v4 = vadd.f32 %v10349_v49, %v10348_v32  ;;  %v10400_v62 = vadd.f32 %v10399_v57, %v10398_v51 }
 0x57e   :  { %v3967_v20 = vadd.f32 %v10350_v4, %v9858_v52  ;;  %13683 = vmatpush3.bf16.msra.mxu0 %v13680_v18  ;;  %v10351_v46 = vpop.f32.mrb[14].mxu0  ;;  %v10401_v41 = vpop.f32.mrb[66].mxu1 }
 0x57f   :  { %13685 = vmatprep.subr.bf16.mxu0 %v13684_v56  ;;  %v10352_v13 = vpop.f32.mrb[15].mxu0  ;;  %v10402_v10 = vpop.f32.mrb[67].mxu1 }
 0x580   :  { %v10353_v17 = vadd.f32 %v10352_v13, %v10351_v46  ;;  %v10403_v43 = vadd.f32 %v10402_v10, %v10401_v41  ;;  %v4244_v40 = vadd.f32 %v10394_v5, %v3967_v20  ;;  %v19849_v46 = vand.u32 4294901760, %v17970_v63 }
 0x582   :  { %v3982_v25 = vadd.f32 %v10353_v17, %v9858_v52  ;;  %13687 = vmatpush3.bf16.msra.mxu0 %v13684_v56  ;;  %v10354_v11 = vpop.f32.mrb[16].mxu0 }
 0x583   :  { %13689 = vmatprep.subr.bf16.mxu0 %v13688_v26  ;;  %v10355_v9 = vpop.f32.mrb[17].mxu0 }
 0x584   :  { %v10356_v53 = vadd.f32 %v10355_v9, %v10354_v11  ;;  %v4251_v54 = vadd.f32 %v10397_v38, %v3982_v25  ;;  %v19843_v25 = vand.u32 4294901760, %v17978_v34 }
 0x586   :  { %v3997_v42 = vadd.f32 %v10356_v53, %v9858_v52  ;;  %13691 = vmatpush3.bf16.msra.mxu0 %v13688_v26  ;;  %v10357_v6 = vpop.f32.mrb[18].mxu0 }
 0x587   :  { %13693 = vmatprep.subr.bf16.mxu0 %v17559_v61  ;;  %v10358_v12 = vpop.f32.mrb[19].mxu0 }
 0x588   :  { %v10359_v48 = vadd.f32 %v10358_v12, %v10357_v6  ;;  %v4258_v1 = vadd.f32 %v10400_v62, %v3997_v42 }
 0x589   :  { %11869 = vmatmul.mubr.f32.vlgmr.msra.gmra.mrb[36].mxu0 %v17669_v29 }
 0x58a   :  { %v4012_v44 = vadd.f32 %v10359_v48, %v9858_v52  ;;  %11871 = vmatprep.mubr.f32.mxu0 %v17673_v0  ;;  %13695 = vmatpush3.bf16.msra.mxu0 %v17559_v61 }
 0x58b   :  { %13697 = vmatprep.subr.bf16.mxu0 %v17572_v16 }
 0x58c   :  { %v4265_v5 = vadd.f32 %v10403_v43, %v4012_v44 }
 0x58d   :  { %11872 = vmatmul.mubr.f32.gmra.mrb[38].mxu0 %v17701_v58 }
 0x58e   :  { %13699 = vmatpush3.bf16.msra.mxu0 %v17572_v16  ;;  %11906 = vmatprep.mubr.f32.mxu0 %v17563_v2 }
 0x58f   :  { %13701 = vmatprep.subr.bf16.mxu0 %v17593_v45 }
 0x592   :  { %13703 = vmatpush3.bf16.msra.mxu0 %v17593_v45  ;;  %v10480_v50 = vpop.f32.mrb[68].mxu1 }
 0x593   :  { %v10481_v18 = vpop.f32.mrb[69].mxu1  ;;  %13705 = vmatprep.subr.bf16.mxu0 %v17611_v15 }
 0x594   :  { %v10482_v38 = vadd.f32 %v10481_v18, %v10480_v50 }
 0x596   :  { %13707 = vmatpush3.bf16.msra.mxu0 %v17611_v15  ;;  %v10483_v61 = vpop.f32.mrb[70].mxu1 }
 0x597   :  { %v10484_v32 = vpop.f32.mrb[71].mxu1  ;;  %13709 = vmatprep.subr.bf16.mxu0 %v17641_v36 }
 0x598   :  { %v10485_v51 = vadd.f32 %v10484_v32, %v10483_v61 }
 0x59a   :  { %13711 = vmatpush3.bf16.msra.mxu0 %v17641_v36  ;;  %v10436_v16 = vpop.f32.mrb[20].mxu0  ;;  %v10486_v2 = vpop.f32.mrb[72].mxu1  ;;  %v19850_v36 = vand.u32 4294901760, %v17968_v33 }
 0x59b   :  { %v10437_v52 = vpop.f32.mrb[21].mxu0  ;;  %v10487_v49 = vpop.f32.mrb[73].mxu1  ;;  %13713 = vmatprep.subr.bf16.mxu0 %v17665_v27 }
 0x59c   :  { %v10438_v45 = vadd.f32 %v10437_v52, %v10436_v16  ;;  %v10488_v57 = vadd.f32 %v10487_v49, %v10486_v2  ;;  %v17986_v43 = vpack.c.bf16 %v19849_v46, %v19850_v36 }
 0x59e   :  { %v4403_v15 = vadd.f32 %v10438_v45, %v4244_v40  ;;  %13715 = vmatpush3.bf16.msra.mxu0 %v17665_v27  ;;  %v10439_v56 = vpop.f32.mrb[22].mxu0  ;;  %v10489_v4 = vpop.f32.mrb[74].mxu1  ;;  %20418 = vst [vmem:[#allocation52_spill] sm:$0xff] %v17986_v43  ;;  %v19844_v40 = vand.u32 4294901760, %v17976_v39 }
 0x59f   :  { %v10440_v62 = vpop.f32.mrb[23].mxu0  ;;  %v10490_v20 = vpop.f32.mrb[75].mxu1  ;;  %13717 = vmatprep.subr.bf16.mxu0 %v17679_v30 }
 0x5a0   :  { %v10441_v41 = vadd.f32 %v10440_v62, %v10439_v56  ;;  %v10491_v13 = vadd.f32 %v10490_v20, %v10489_v4  ;;  %v4538_v10 = vadd.f32 %v10482_v38, %v4403_v15  ;;  %v17996_v42 = vpack.c.bf16 %v19843_v25, %v19844_v40 }
 0x5a2   :  { %v4412_v26 = vadd.f32 %v10441_v41, %v4251_v54  ;;  %13719 = vmatpush3.bf16.msra.mxu0 %v17679_v30  ;;  %v10442_v27 = vpop.f32.mrb[24].mxu0  ;;  %20419 = vst [vmem:[#allocation57_spill] sm:$0xff] %v17996_v42 }
 0x5a3   :  { %v10443_v17 = vpop.f32.mrb[25].mxu0  ;;  %13721 = vmatprep.subr.bf16.mxu0 %v17734_v35 }
 0x5a4   :  { %v10444_v11 = vadd.f32 %v10443_v17, %v10442_v27  ;;  %v4549_v9 = vadd.f32 %v10485_v51, %v4412_v26 }
 0x5a6   :  { %v4421_v53 = vadd.f32 %v10444_v11, %v4258_v1  ;;  %13723 = vmatpush3.bf16.msra.mxu0 %v17734_v35  ;;  %v10445_v30 = vpop.f32.mrb[26].mxu0 }
 0x5a7   :  { %v10446_v54 = vpop.f32.mrb[27].mxu0  ;;  %13917 = vmatprep.subr.bf16.mxu0 %v17986_v43 }
 0x5a8   :  { %v10447_v6 = vadd.f32 %v10446_v54, %v10445_v30  ;;  %v4560_v12 = vadd.f32 %v10488_v57, %v4421_v53  ;;  %v18012_v54 = vld [vmem:[#allocation12 + $0x120] sm:$0xff] }
 0x5a9   :  { %11907 = vmatmul.mubr.f32.vlgmr.msra.gmra.mrb[36].mxu0 %v17669_v29 }
 0x5aa   :  { %v4430_v48 = vadd.f32 %v10447_v6, %v4265_v5  ;;  %11909 = vmatprep.mubr.f32.mxu0 %v17673_v0  ;;  %13919 = vmatpush3.bf16.msra.mxu0 %v17986_v43  ;;  %v18014_v6 = vld [vmem:[#allocation12 + $0x128] sm:$0xff]  ;;  %v18096_v43 = vld [vmem:[#allocation12 + $0x160] sm:$0xff] }
 0x5ab   :  { %13921 = vmatprep.subr.bf16.mxu0 %v17996_v42 }
 0x5ac   :  { %v4571_v35 = vadd.f32 %v10491_v13, %v4430_v48  ;;  %v5731_v48 = vld [vmem:[#allocation12 + $0xa0] sm:$0xff] }
 0x5ad   :  { %11910 = vmatmul.mubr.f32.gmra.mrb[38].mxu0 %v17701_v58 }
 0x5ae   :  { %13923 = vmatpush3.bf16.msra.mxu0 %v17996_v42 }
 0x5b3   :  { %v10568_v1 = vpop.f32.mrb[76].mxu1 }
 0x5b4   :  { %v10569_v44 = vpop.f32.mrb[77].mxu1 }
 0x5b5   :  { %v10570_v50 = vadd.f32 %v10569_v44, %v10568_v1  ;;  %v19848_v1 = vand.u32 4294901760, %v18012_v54  ;;  %v19847_v44 = vand.u32 4294901760, %v18014_v6 }
 0x5b7   :  { %v10571_v18 = vpop.f32.mrb[78].mxu1 }
 0x5b8   :  { %v10572_v38 = vpop.f32.mrb[79].mxu1 }
 0x5b9   :  { %v10573_v61 = vadd.f32 %v10572_v38, %v10571_v18  ;;  %v5715_v18 = vld [vmem:[#allocation12 + $0x20] sm:$0xff]  ;;  %v5716_v38 = vld [vmem:[#allocation12 + $0x28] sm:$0xff] }
 0x5bb   :  { %v10524_v32 = vpop.f32.mrb[28].mxu0  ;;  %v10574_v29 = vpop.f32.mrb[80].mxu1 }
 0x5bc   :  { %v10525_v5 = vpop.f32.mrb[29].mxu0  ;;  %v10575_v51 = vpop.f32.mrb[81].mxu1 }
 0x5bd   :  { %v10526_v0 = vadd.f32 %v10525_v5, %v10524_v32  ;;  %v10576_v16 = vadd.f32 %v10575_v51, %v10574_v29  ;;  %v5779_v32 = vand.u32 4294901760, %v5716_v38  ;;  %v18026_v5 = vld [vmem:[#allocation12 + $0x130] sm:$0xff]  ;;  %v18028_v51 = vld [vmem:[#allocation12 + $0x138] sm:$0xff] }
 0x5bf   :  { %v4739_v2 = vadd.f32 %v10526_v0, %v4538_v10  ;;  %v10527_v52 = vpop.f32.mrb[30].mxu0  ;;  %v10577_v49 = vpop.f32.mrb[82].mxu1 }
 0x5c0   :  { %v10528_v45 = vpop.f32.mrb[31].mxu0  ;;  %v10578_v57 = vpop.f32.mrb[83].mxu1 }
 0x5c1   :  { %v10529_v58 = vadd.f32 %v10528_v45, %v10527_v52  ;;  %v10579_v15 = vadd.f32 %v10578_v57, %v10577_v49  ;;  %v18004_v56 = vadd.f32 %v10570_v50, %v4739_v2  ;;  %v5824_v50 = vand.u32 4294901760, %v5731_v48  ;;  %v5734_v2 = vld [vmem:[#allocation12 + $0xb8] sm:$0xff] }
 0x5c2   :  { %v19846_v52 = vand.u32 4294901760, %v18026_v5  ;;  %v19845_v49 = vand.u32 4294901760, %v18028_v51  ;;  %v5833_v57 = vand.u32 4294901760, %v5734_v2 }
 0x5c3   :  { %20420 = vst [vmem:[#allocation54_spill] sm:$0xff] %v18004_v56  ;;  %v4746_v4 = vadd.f32 %v10529_v58, %v4549_v9  ;;  %v10530_v62 = vpop.f32.mrb[32].mxu0  ;;  %v5732_v9 = vld [vmem:[#allocation12 + $0xa8] sm:$0xff]  ;;  %v5717_v58 = vld [vmem:[#allocation12 + $0x30] sm:$0xff]  ;;  %v18068_v60 = vsub.f32 %v5731_v48, %v5824_v50 }
 0x5c4   :  { %v10531_v20 = vpop.f32.mrb[33].mxu0 }
 0x5c5   :  { %v10532_v41 = vadd.f32 %v10531_v20, %v10530_v62  ;;  %v18006_v13 = vadd.f32 %v10573_v61, %v4746_v4  ;;  %v5776_v61 = vand.u32 4294901760, %v5715_v18  ;;  %v5782_v4 = vand.u32 4294901760, %v5717_v58 }
 0x5c6   :  { %v18042_v20 = vpack.c.bf16 %v19845_v49, %v19846_v52 }
 0x5c7   :  { %20421 = vst [vmem:[#allocation27_spill] sm:$0xff] %v18006_v13  ;;  %v4753_v26 = vadd.f32 %v10532_v41, %v4560_v12  ;;  %v10533_v27 = vpop.f32.mrb[34].mxu0  ;;  %v5827_v12 = vand.u32 4294901760, %v5732_v9  ;;  %v18030_v0 = vpack.c.bf16 %v5779_v32, %v5776_v61  ;;  %v18092_v42 = vsub.f32 %v5717_v58, %v5782_v4 }
 0x5c8   :  { %v10534_v17 = vpop.f32.mrb[35].mxu0  ;;  %20427 = vst [vmem:[#allocation55_spill] sm:$0xff] %v18042_v20 }
 0x5c9   :  { %v10535_v11 = vadd.f32 %v10534_v17, %v10533_v27  ;;  %v18008_v53 = vadd.f32 %v10576_v16, %v4753_v26  ;;  %v18024_v29 = vpack.c.bf16 %v5827_v12, %v5824_v50  ;;  %20426 = vst [vmem:[#allocation45_spill] sm:$0xff] %v18030_v0  ;;  %v5733_v16 = vld [vmem:[#allocation12 + $0xb0] sm:$0xff]  ;;  %v18046_v26 = vld [vmem:[#allocation12 + $0x140] sm:$0xff]  ;;  %v18048_v27 = vld [vmem:[#allocation12 + $0x148] sm:$0xff] }
 0x5ca   :  { %v5830_v45 = vand.u32 4294901760, %v5733_v16  ;;  %v19864_v25 = vand.u32 4294901760, %v18046_v26  ;;  %v19863_v40 = vand.u32 4294901760, %v18048_v27  ;;  %20434 = vst [vmem:[#allocation33_spill] sm:$0xff] %v18092_v42 }
 0x5cb   :  { %20422 = vst [vmem:[#allocation56_spill] sm:$0xff] %v18008_v53  ;;  %v4760_v10 = vadd.f32 %v10535_v11, %v4571_v35  ;;  %v18022_v35 = vpack.c.bf16 %v19847_v44, %v19848_v1  ;;  %20425 = vst [vmem:[#allocation49_spill] sm:$0xff] %v18024_v29  ;;  %13733 = vmatprep.subr.bf16.mxu1 %v18024_v29  ;;  %v5735_v11 = vld [vmem:[#allocation12 + $0xc0] sm:$0xff]  ;;  %v5720_v1 = vld [vmem:[#allocation12 + $0x48] sm:$0xff] }
 0x5cc   :  { %13735 = vmatpush3.bf16.msra.mxu1 %v18030_v0  ;;  %v18044_v41 = vpack.c.bf16 %v5833_v57, %v5830_v45  ;;  %v5836_v49 = vand.u32 4294901760, %v5735_v11  ;;  %v5719_v44 = vld [vmem:[#allocation12 + $0x40] sm:$0xff]  ;;  %v5791_v36 = vand.u32 4294901760, %v5720_v1  ;;  %v18062_v31 = vpack.c.bf16 %v19863_v40, %v19864_v25  ;;  %v18077_v29 = vld [vmem:[#allocation12 + $0x158] sm:$0xff] }
 0x5cd   :  { %v18010_v30 = vadd.f32 %v10579_v15, %v4760_v10  ;;  %20424 = vst [vmem:[#allocation31_spill] sm:$0xff] %v18022_v35  ;;  %13925 = vmatprep.subr.bf16.mxu0 %v18022_v35  ;;  %v5718_v15 = vld [vmem:[#allocation12 + $0x38] sm:$0xff]  ;;  %v5736_v10 = vld [vmem:[#allocation12 + $0xc8] sm:$0xff]  ;;  %v5788_v46 = vand.u32 4294901760, %v5719_v44  ;;  %v18074_v0 = vsub.f32 %v5716_v38, %v5779_v32  ;;  %v19883_v25 = vand.u32 4294901760, %v18077_v29 }
 0x5ce   :  { %13927 = vmatpush3.bf16.msra.mxu0 %v18022_v35  ;;  %v5785_v62 = vand.u32 4294901760, %v5718_v15  ;;  %20428 = vst [vmem:[#allocation34_spill] sm:$0xff] %v18044_v41  ;;  %13737 = vmatprep.subr.bf16.mxu1 %v18044_v41  ;;  %v5839_v52 = vand.u32 4294901760, %v5736_v10  ;;  %20430 = vst [vmem:[#allocation36_spill] sm:$0xff] %v18062_v31  ;;  %v18072_v41 = vsub.f32 %v5715_v18, %v5776_v61  ;;  %v5738_v35 = vld [vmem:[#allocation12 + $0xd8] sm:$0xff] }
 0x5cf   :  { %20423 = vst [vmem:[#allocation29_spill] sm:$0xff] %v18010_v30  ;;  %13929 = vmatprep.subr.bf16.mxu0 %v18042_v20  ;;  %v18080_v40 = vpack.c.bf16 %v5791_v36, %v5788_v46  ;;  %v5845_v50 = vand.u32 4294901760, %v5738_v35  ;;  %v18088_v22 = vsub.f32 %v5733_v16, %v5830_v45  ;;  %v18098_v24 = vsub.f32 %v5735_v11, %v5836_v49  ;;  %v5723_v16 = vld [vmem:[#allocation12 + $0x60] sm:$0xff]  ;;  %v18107_v45 = vld [vmem:[#allocation12 + $0x168] sm:$0xff] }
 0x5d0   :  { %v18050_v17 = vpack.c.bf16 %v5785_v62, %v5782_v4  ;;  %v18064_v23 = vpack.c.bf16 %v5839_v52, %v5836_v49  ;;  %v18102_v53 = vsub.f32 %v5719_v44, %v5788_v46  ;;  %v18104_v32 = vsub.f32 %v5720_v1, %v5791_v36 }
 0x5d1   :  { %20432 = vst [vmem:[#allocation30_spill] sm:$0xff] %v18080_v40  ;;  %20435 = vst [vmem:[#allocation22_spill] sm:$0xff] %v18098_v24  ;;  %v18111_v58 = vsub.f32 %v5738_v35, %v5845_v50  ;;  %v20444_v36 = vand.u32 4294901760, %v18066_v14  ;;  %v5848_v1 = vand.u32 4294901760, %v5739_v37  ;;  %v5851_v44 = vand.u32 4294901760, %v5740_v21 }
 0x5d2   :  { %20429 = vst [vmem:[#allocation50_spill] sm:$0xff] %v18050_v17  ;;  %13931 = vmatpush3.bf16.msra.mxu0 %v18042_v20  ;;  %13739 = vmatpush3.bf16.msra.mxu1 %v18050_v17  ;;  %20431 = vst [vmem:[#allocation28_spill] sm:$0xff] %v18064_v23  ;;  %v18070_v20 = vsub.f32 %v5732_v9, %v5827_v12  ;;  %v5737_v17 = vld [vmem:[#allocation12 + $0xd0] sm:$0xff]  ;;  %v5722_v12 = vld [vmem:[#allocation12 + $0x58] sm:$0xff]  ;;  %v5800_v35 = vand.u32 4294901760, %v5723_v16 }
 0x5d3   :  { %13933 = vmatprep.subr.bf16.mxu0 %v18062_v31  ;;  %13741 = vmatprep.subr.bf16.mxu1 %v18064_v23  ;;  %v5842_v48 = vand.u32 4294901760, %v5737_v17  ;;  %v5721_v9 = vld [vmem:[#allocation12 + $0x50] sm:$0xff]  ;;  %v5797_v61 = vand.u32 4294901760, %v5722_v12  ;;  %v18090_v23 = vsub.f32 %v5734_v2, %v5833_v57  ;;  %20437 = vst [vmem:[#allocation23_spill] sm:$0xff] %v18102_v53  ;;  %20438 = vst [vmem:[#allocation26_spill] sm:$0xff] %v18104_v32  ;;  %v5724_v2 = vld [vmem:[#allocation12 + $0x68] sm:$0xff] }
 0x5d4   :  { %v5794_v18 = vand.u32 4294901760, %v5721_v9  ;;  %20440 = vst [vmem:[#allocation42_spill] sm:$0xff] %v18111_v58  ;;  %v18123_v46 = vpack.c.bf16 %v19883_v25, %v20444_v36  ;;  %v18135_v36 = vld [vmem:[#allocation12 + $0x170] sm:$0xff]  ;;  %v18137_v25 = vld [vmem:[#allocation12 + $0x178] sm:$0xff] }
 0x5d5   :  { %v18084_v38 = vpack.c.bf16 %v5845_v50, %v5842_v48  ;;  %v18109_v57 = vsub.f32 %v5737_v17, %v5842_v48  ;;  %v18117_v4 = vsub.f32 %v5722_v12, %v5797_v61  ;;  %v5803_v17 = vand.u32 4294901760, %v5724_v2  ;;  %v5725_v48 = vld [vmem:[#allocation12 + $0x70] sm:$0xff]  ;;  %v5726_v50 = vld [vmem:[#allocation12 + $0x78] sm:$0xff] }
 0x5d6   :  { %13935 = vmatpush3.bf16.msra.mxu0 %v18062_v31  ;;  %13743 = vmatpush3.bf16.msra.mxu1 %v18080_v40  ;;  %v18094_v31 = vsub.f32 %v5718_v15, %v5785_v62  ;;  %v18100_v40 = vsub.f32 %v5736_v10, %v5839_v52  ;;  %v18113_v15 = vpack.c.bf16 %v5797_v61, %v5794_v18  ;;  %v5741_v52 = vld [vmem:[#allocation12 + $0xf0] sm:$0xff]  ;;  %v5742_v62 = vld [vmem:[#allocation12 + $0xf8] sm:$0xff]  ;;  %v5806_v34 = vand.u32 4294901760, %v5725_v48 }
 0x5d7   :  { %20433 = vst [vmem:[#allocation32_spill] sm:$0xff] %v18084_v38  ;;  %13745 = vmatprep.subr.bf16.mxu1 %v18084_v38  ;;  %20439 = vst [vmem:[#allocation37_spill] sm:$0xff] %v18109_v57  ;;  %v18115_v49 = vsub.f32 %v5721_v9, %v5794_v18  ;;  %13937 = vmatprep.subr.bf16.mxu0 %v18123_v46  ;;  %v18129_v9 = vpack.c.bf16 %v5851_v44, %v5848_v1  ;;  %v5854_v61 = vand.u32 4294901760, %v5741_v52 }
 0x5d8   :  { %20436 = vst [vmem:[#allocation35_spill] sm:$0xff] %v18100_v40  ;;  %20441 = vst [vmem:[#allocation40_spill] sm:$0xff] %v18113_v15  ;;  %v18131_v12 = vsub.f32 %v5739_v37, %v5848_v1  ;;  %v18133_v18 = vsub.f32 %v5740_v21, %v5851_v44  ;;  %v18140_v11 = vpack.c.bf16 %v5803_v17, %v5800_v35  ;;  %v20452_v38 = vand.u32 4294901760, %v18096_v43 }
 0x5d9   :  { %20442 = vst [vmem:[#allocation60_spill] sm:$0xff] %v18115_v49  ;;  %20443 = vst [vmem:[#allocation41_spill] sm:$0xff] %v18117_v4  ;;  %v18142_v10 = vsub.f32 %v5723_v16, %v5800_v35  ;;  %v20453_v37 = vand.u32 4294901760, %v18107_v45  ;;  %v5857_v21 = vand.u32 4294901760, %v5742_v62  ;;  %v18153_v44 = vsub.f32 %v5741_v52, %v5854_v61 }
 0x5da   :  { %20445 = vst [vmem:[#allocation44_spill] sm:$0xff] %v18123_v46  ;;  %13747 = vmatpush3.bf16.msra.mxu1 %v18113_v15  ;;  %20446 = vst [vmem:[#allocation43_spill] sm:$0xff] %v18129_v9  ;;  %13939 = vmatpush3.bf16.msra.mxu0 %v18123_v46  ;;  %v18144_v15 = vsub.f32 %v5724_v2, %v5803_v17  ;;  %v5809_v30 = vand.u32 4294901760, %v5726_v50  ;;  %v19899_v16 = vand.u32 4294901760, %v18135_v36  ;;  %v19896_v2 = vand.u32 4294901760, %v18137_v25 }
 0x5db   :  { %20447 = vst [vmem:[#allocation46_spill] sm:$0xff] %v18131_v12  ;;  %20448 = vst [vmem:[#allocation61_spill] sm:$0xff] %v18133_v18  ;;  %v18150_v1 = vpack.c.bf16 %v20453_v37, %v20452_v38  ;;  %13749 = vmatprep.subr.bf16.mxu1 %v18129_v9  ;;  %v19898_v35 = vand.u32 4294901760, %v17873_v8  ;;  %v19897_v38 = vand.u32 4294901760, %v17875_v3  ;;  %v18161_v17 = vpack.c.bf16 %v5857_v21, %v5854_v61 }
 0x5dc   :  { %20449 = vst [vmem:[#allocation62_spill] sm:$0xff] %v18140_v11  ;;  %20450 = vst [vmem:[#allocation63_spill] sm:$0xff] %v18142_v10  ;;  %v18163_v37 = vsub.f32 %v5742_v62, %v5857_v21  ;;  %v18165_v52 = vpack.c.bf16 %v5809_v30, %v5806_v34  ;;  %v18167_v9 = vsub.f32 %v5725_v48, %v5806_v34  ;;  %v19904_v34 = vand.u32 4294901760, %v17880_v7 }
 0x5dd   :  { %20451 = vst [vmem:[#allocation64_spill] sm:$0xff] %v18144_v15  ;;  %20454 = vst [vmem:[#allocation65_spill] sm:$0xff] %v18150_v1  ;;  %13941 = vmatprep.subr.bf16.mxu0 %v18150_v1  ;;  %v18176_v46 = vpack.c.bf16 %v19896_v2, %v19899_v16  ;;  %v6036_v61 = vsub.f32 %v17873_v8, %v19898_v35  ;;  %v6043_v62 = vsub.f32 %v17875_v3, %v19897_v38 }
 0x5de   :  { %20455 = vst [vmem:[#allocation66_spill] sm:$0xff] %v18153_v44  ;;  %13751 = vmatpush3.bf16.msra.mxu1 %v18140_v11  ;;  %20456 = vst [vmem:[#allocation67_spill] sm:$0xff] %v18161_v17  ;;  %13943 = vmatpush3.bf16.msra.mxu0 %v18150_v1  ;;  %v18170_v11 = vsub.f32 %v5726_v50, %v5809_v30  ;;  %v20462_v48 = vand.u32 4294901760, %v17968_v33  ;;  %v20464_v21 = vand.u32 4294901760, %v17970_v63  ;;  %v19911_v16 = vand.u32 4294901760, %v17885_v19 }
 0x5df   :  { %20457 = vst [vmem:[#allocation68_spill] sm:$0xff] %v18163_v37  ;;  %20458 = vst [vmem:[#allocation69_spill] sm:$0xff] %v18165_v52  ;;  %13753 = vmatprep.subr.bf16.mxu1 %v18161_v17  ;;  %13945 = vmatprep.subr.bf16.mxu0 %v18176_v46  ;;  %v6037_v38 = vand.u32 4294901760, %v6036_v61  ;;  %v6044_v35 = vand.u32 4294901760, %v6043_v62  ;;  %v19912_v30 = vand.u32 4294901760, %v17891_v47 }
 0x5e0   :  { %20459 = vst [vmem:[#allocation70_spill] sm:$0xff] %v18167_v9  ;;  %20460 = vst [vmem:[#allocation71_spill] sm:$0xff] %v18170_v11  ;;  %v18190_v50 = vsub.f32 %v17968_v33, %v20462_v48  ;;  %v18195_v2 = vsub.f32 %v17970_v63, %v20464_v21  ;;  %v5924_v33 = vsub.f32 %v17880_v7, %v19904_v34  ;;  %v20466_v48 = vand.u32 4294901760, %v17882_v28 }
 0x5e1   :  { %20461 = vst [vmem:[#allocation72_spill] sm:$0xff] %v18176_v46  ;;  %v13756_v61 = vpack.c.bf16 %v6044_v35, %v6037_v38  ;;  %v6050_v62 = vsub.f32 %v17885_v19, %v19911_v16  ;;  %v19915_v34 = vand.u32 4294901760, %v17895_v59 }
 0x5e2   :  { %20463 = vst [vmem:[#allocation73_spill] sm:$0xff] %v18190_v50  ;;  %20465 = vst [vmem:[#allocation74_spill] sm:$0xff] %v18195_v2  ;;  %13755 = vmatpush3.bf16.msra.mxu1 %v18165_v52  ;;  %v5931_v17 = vsub.f32 %v17882_v28, %v20466_v48  ;;  %v19913_v63 = vand.u32 4294901760, %v18190_v50  ;;  %v19914_v21 = vand.u32 4294901760, %v18195_v2  ;;  %13947 = vmatpush3.bf16.msra.mxu0 %v18176_v46  ;;  %v5925_v1 = vand.u32 4294901760, %v5924_v33 }
 0x5e3   :  { %v6057_v52 = vsub.f32 %v17891_v47, %v19912_v30  ;;  %13757 = vmatprep.subr.bf16.mxu1 %v13756_v61  ;;  %v6051_v38 = vand.u32 4294901760, %v6050_v62  ;;  %v5938_v16 = vsub.f32 %v17895_v59, %v19915_v34  ;;  %v19920_v30 = vand.u32 4294901760, %v17898_v55 }
 0x5e4   :  { %v5932_v39 = vand.u32 4294901760, %v5931_v17  ;;  %v6918_v48 = vsub.f32 %v18190_v50, %v19913_v63  ;;  %v6925_v35 = vsub.f32 %v18195_v2, %v19914_v21  ;;  %v19919_v62 = vand.u32 4294901760, %v18070_v20 }
 0x5e5   :  { %v6058_v46 = vand.u32 4294901760, %v6057_v52  ;;  %v5939_v63 = vand.u32 4294901760, %v5938_v16  ;;  %v5945_v21 = vsub.f32 %v17898_v55, %v19920_v30  ;;  %v19918_v52 = vand.u32 4294901760, %v18068_v60 }
 0x5e6   :  { %v18227_v56 = vpack.c.bf16 %v5932_v39, %v5925_v1  ;;  %v6919_v17 = vand.u32 4294901760, %v6918_v48  ;;  %v6926_v33 = vand.u32 4294901760, %v6925_v35  ;;  %v19923_v59 = vand.u32 4294901760, %v18072_v41 }
 0x5e7   :  { %v18229_v13 = vpack.c.bf16 %v6058_v46, %v6051_v38  ;;  %v5946_v34 = vand.u32 4294901760, %v5945_v21  ;;  %v19921_v39 = vand.u32 4294901760, %v18074_v0  ;;  %v6064_v46 = vsub.f32 %v18068_v60, %v19918_v52 }
 0x5e8   :  { %20467 = vst [vmem:[#allocation75_spill] sm:$0xff] %v18227_v56  ;;  %v18234_v61 = vpack.c.bf16 %v6926_v33, %v6919_v17  ;;  %v6071_v1 = vsub.f32 %v18070_v20, %v19919_v62  ;;  %v20469_v16 = vand.u32 4294901760, %v18012_v54  ;;  %v5952_v35 = vsub.f32 %v18072_v41, %v19923_v59 }
 0x5e9   :  { %20468 = vst [vmem:[#allocation76_spill] sm:$0xff] %v18229_v13  ;;  %v18252_v21 = vpack.c.bf16 %v5946_v34, %v5939_v63  ;;  %v5959_v38 = vsub.f32 %v18074_v0, %v19921_v39  ;;  %v6065_v17 = vand.u32 4294901760, %v6064_v46  ;;  %v20472_v13 = vand.u32 4294901760, %v18014_v6 }
 0x5ea   :  { %13949 = vmatprep.subr.bf16.mxu0 %v18234_v61  ;;  %v18250_v48 = vsub.f32 %v18012_v54, %v20469_v16  ;;  %v6072_v33 = vand.u32 4294901760, %v6071_v1  ;;  %v5953_v62 = vand.u32 4294901760, %v5952_v35  ;;  %v19922_v16 = vand.u32 4294901760, %v18088_v22 }
 0x5eb   :  { %20471 = vst [vmem:[#allocation78_spill] sm:$0xff] %v18252_v21  ;;  %v5960_v30 = vand.u32 4294901760, %v5959_v38  ;;  %v18264_v54 = vsub.f32 %v18014_v6, %v20472_v13  ;;  %v19924_v46 = vand.u32 4294901760, %v18090_v23  ;;  %v19927_v38 = vand.u32 4294901760, %v18092_v42 }
 0x5ec   :  { %20470 = vst [vmem:[#allocation77_spill] sm:$0xff] %v18250_v48  ;;  %v19925_v52 = vand.u32 4294901760, %v18250_v48  ;;  %v18266_v34 = vpack.c.bf16 %v6072_v33, %v6065_v17  ;;  %v6078_v13 = vsub.f32 %v18088_v22, %v19922_v16  ;;  %v19929_v17 = vand.u32 4294901760, %v18094_v31 }
 0x5ed   :  { %20473 = vst [vmem:[#allocation79_spill] sm:$0xff] %v18264_v54  ;;  %v18273_v1 = vpack.c.bf16 %v5960_v30, %v5953_v62  ;;  %v19926_v35 = vand.u32 4294901760, %v18264_v54  ;;  %v6085_v6 = vsub.f32 %v18090_v23, %v19924_v46  ;;  %v5966_v62 = vsub.f32 %v18092_v42, %v19927_v38 }
 0x5ee   :  { %20474 = vst [vmem:[#allocation80_spill] sm:$0xff] %v18266_v34  ;;  %v6946_v63 = vsub.f32 %v18250_v48, %v19925_v52  ;;  %v20476_v33 = vand.u32 4294901760, %v18026_v5  ;;  %v20478_v16 = vand.u32 4294901760, %v18028_v51  ;;  %v6079_v46 = vand.u32 4294901760, %v6078_v13 }
 0x5ef   :  { %20475 = vst [vmem:[#allocation81_spill] sm:$0xff] %v18273_v1  ;;  %v6953_v30 = vsub.f32 %v18264_v54, %v19926_v35  ;;  %v6086_v52 = vand.u32 4294901760, %v6085_v6  ;;  %v5973_v35 = vsub.f32 %v18094_v31, %v19929_v17  ;;  %v19928_v1 = vand.u32 4294901760, %v18098_v24 }
 0x5f0   :  { %v6947_v39 = vand.u32 4294901760, %v6946_v63  ;;  %v18293_v63 = vsub.f32 %v18026_v5, %v20476_v33  ;;  %v18298_v59 = vsub.f32 %v18028_v51, %v20478_v16  ;;  %v5967_v38 = vand.u32 4294901760, %v5966_v62 }
 0x5f1   :  { %v6954_v34 = vand.u32 4294901760, %v6953_v30  ;;  %v18306_v33 = vpack.c.bf16 %v6086_v52, %v6079_v46  ;;  %v5974_v56 = vand.u32 4294901760, %v5973_v35  ;;  %v6092_v51 = vsub.f32 %v18098_v24, %v19928_v1 }
 0x5f2   :  { %20477 = vst [vmem:[#allocation82_spill] sm:$0xff] %v18293_v63  ;;  %20479 = vst [vmem:[#allocation83_spill] sm:$0xff] %v18298_v59  ;;  %v19930_v21 = vand.u32 4294901760, %v18293_v63  ;;  %v19931_v5 = vand.u32 4294901760, %v18298_v59  ;;  %v19932_v16 = vand.u32 4294901760, %v18100_v40  ;;  %v19933_v52 = vand.u32 4294901760, %v18102_v53 }
 0x5f3   :  { %20480 = vst [vmem:[#allocation84_spill] sm:$0xff] %v18306_v33  ;;  %v18312_v13 = vpack.c.bf16 %v6954_v34, %v6947_v39  ;;  %v18321_v46 = vpack.c.bf16 %v5974_v56, %v5967_v38  ;;  %v6093_v35 = vand.u32 4294901760, %v6092_v51  ;;  %v19934_v39 = vand.u32 4294901760, %v18104_v32 }
 0x5f4   :  { %v6960_v6 = vsub.f32 %v18293_v63, %v19930_v21  ;;  %v6967_v30 = vsub.f32 %v18298_v59, %v19931_v5  ;;  %v6099_v62 = vsub.f32 %v18100_v40, %v19932_v16  ;;  %v5980_v17 = vsub.f32 %v18102_v53, %v19933_v52 }
 0x5f5   :  { %20481 = vst [vmem:[#allocation85_spill] sm:$0xff] %v18312_v13  ;;  %20482 = vst [vmem:[#allocation86_spill] sm:$0xff] %v18321_v46  ;;  %v20483_v21 = vand.u32 4294901760, %v18046_v26  ;;  %v5987_v38 = vsub.f32 %v18104_v32, %v19934_v39  ;;  %v20485_v51 = vand.u32 4294901760, %v18048_v27 }
 0x5f6   :  { %v6961_v34 = vand.u32 4294901760, %v6960_v6  ;;  %v6968_v1 = vand.u32 4294901760, %v6967_v30  ;;  %v6100_v56 = vand.u32 4294901760, %v6099_v62  ;;  %v19935_v6 = vand.u32 4294901760, %v18109_v57 }
 0x5f7   :  { %v18333_v5 = vsub.f32 %v18046_v26, %v20483_v21  ;;  %v18341_v16 = vsub.f32 %v18048_v27, %v20485_v51  ;;  %v5981_v52 = vand.u32 4294901760, %v5980_v17  ;;  %v19937_v26 = vand.u32 4294901760, %v18111_v58 }
 0x5f8   :  { %v18344_v30 = vpack.c.bf16 %v6968_v1, %v6961_v34  ;;  %v18348_v21 = vpack.c.bf16 %v6100_v56, %v6093_v35  ;;  %v5988_v62 = vand.u32 4294901760, %v5987_v38  ;;  %v6106_v39 = vsub.f32 %v18109_v57, %v19935_v6 }
 0x5f9   :  { %20484 = vst [vmem:[#allocation87_spill] sm:$0xff] %v18333_v5  ;;  %20486 = vst [vmem:[#allocation88_spill] sm:$0xff] %v18341_v16  ;;  %v19936_v46 = vand.u32 4294901760, %v18333_v5  ;;  %v19938_v33 = vand.u32 4294901760, %v18341_v16  ;;  %v6113_v1 = vsub.f32 %v18111_v58, %v19937_v26  ;;  %v19939_v17 = vand.u32 4294901760, %v18115_v49 }
 0x5fa   :  { %20487 = vst [vmem:[#allocation89_spill] sm:$0xff] %v18344_v30  ;;  %20488 = vst [vmem:[#allocation90_spill] sm:$0xff] %v18348_v21  ;;  %v19941_v35 = vand.u32 4294901760, %v18117_v4  ;;  %v18362_v34 = vpack.c.bf16 %v5988_v62, %v5981_v52  ;;  %v6107_v38 = vand.u32 4294901760, %v6106_v39  ;;  %v20490_v51 = vand.u32 4294901760, %v18066_v14 }
 0x5fb   :  { %v6974_v27 = vsub.f32 %v18333_v5, %v19936_v46  ;;  %v6981_v56 = vsub.f32 %v18341_v16, %v19938_v33  ;;  %v6114_v21 = vand.u32 4294901760, %v6113_v1  ;;  %v5994_v26 = vsub.f32 %v18115_v49, %v19939_v17 }
 0x5fc   :  { %20489 = vst [vmem:[#allocation91_spill] sm:$0xff] %v18362_v34  ;;  %v18370_v6 = vsub.f32 %v18066_v14, %v20490_v51  ;;  %v6001_v52 = vsub.f32 %v18117_v4, %v19941_v35  ;;  %v20492_v39 = vand.u32 4294901760, %v18077_v29  ;;  %v19943_v14 = vand.u32 4294901760, %v18131_v12 }
 0x5fd   :  { %v6975_v46 = vand.u32 4294901760, %v6974_v27  ;;  %v6982_v62 = vand.u32 4294901760, %v6981_v56  ;;  %v18385_v27 = vpack.c.bf16 %v6114_v21, %v6107_v38  ;;  %v5995_v1 = vand.u32 4294901760, %v5994_v26 }
 0x5fe   :  { %20491 = vst [vmem:[#allocation92_spill] sm:$0xff] %v18370_v6  ;;  %v19942_v34 = vand.u32 4294901760, %v18370_v6  ;;  %v18382_v33 = vsub.f32 %v18077_v29, %v20492_v39  ;;  %v6002_v51 = vand.u32 4294901760, %v6001_v52  ;;  %v19944_v17 = vand.u32 4294901760, %v18133_v18 }
 0x5ff   :  { %20494 = vst [vmem:[#allocation94_spill] sm:$0xff] %v18385_v27  ;;  %v18388_v30 = vpack.c.bf16 %v6982_v62, %v6975_v46  ;;  %v6120_v29 = vsub.f32 %v18131_v12, %v19943_v14  ;;  %v19946_v21 = vand.u32 4294901760, %v18142_v10  ;;  %v19949_v46 = vand.u32 4294901760, %v18144_v15 }
 0x600   :  { %20493 = vst [vmem:[#allocation93_spill] sm:$0xff] %v18382_v33  ;;  %v6988_v56 = vsub.f32 %v18370_v6, %v19942_v34  ;;  %v19945_v35 = vand.u32 4294901760, %v18382_v33  ;;  %v18397_v39 = vpack.c.bf16 %v6002_v51, %v5995_v1  ;;  %v6127_v26 = vsub.f32 %v18133_v18, %v19944_v17 }
 0x601   :  { %20495 = vst [vmem:[#allocation95_spill] sm:$0xff] %v18388_v30  ;;  %v6121_v62 = vand.u32 4294901760, %v6120_v29  ;;  %v20497_v34 = vand.u32 4294901760, %v18096_v43  ;;  %v6008_v51 = vsub.f32 %v18142_v10, %v19946_v21  ;;  %v6015_v17 = vsub.f32 %v18144_v15, %v19949_v46 }
 0x602   :  { %20496 = vst [vmem:[#allocation96_spill] sm:$0xff] %v18397_v39  ;;  %v6989_v38 = vand.u32 4294901760, %v6988_v56  ;;  %v6995_v52 = vsub.f32 %v18382_v33, %v19945_v35  ;;  %v6128_v1 = vand.u32 4294901760, %v6127_v26  ;;  %v20499_v56 = vand.u32 4294901760, %v18107_v45 }
 0x603   :  { %v18410_v14 = vsub.f32 %v18096_v43, %v20497_v34  ;;  %v19951_v43 = vand.u32 4294901760, %v18153_v44  ;;  %v19952_v34 = vand.u32 4294901760, %v18163_v37  ;;  %v6009_v27 = vand.u32 4294901760, %v6008_v51 }
 0x604   :  { %v18421_v39 = vsub.f32 %v18107_v45, %v20499_v56  ;;  %v6996_v29 = vand.u32 4294901760, %v6995_v52  ;;  %v18426_v26 = vpack.c.bf16 %v6128_v1, %v6121_v62  ;;  %v6016_v21 = vand.u32 4294901760, %v6015_v17 }
 0x605   :  { %20498 = vst [vmem:[#allocation97_spill] sm:$0xff] %v18410_v14  ;;  %v19950_v35 = vand.u32 4294901760, %v18410_v14  ;;  %v6134_v52 = vsub.f32 %v18153_v44, %v19951_v43  ;;  %v6141_v56 = vsub.f32 %v18163_v37, %v19952_v34  ;;  %v19955_v1 = vand.u32 4294901760, %v18170_v11 }
 0x606   :  { %20500 = vst [vmem:[#allocation98_spill] sm:$0xff] %v18421_v39  ;;  %20501 = vst [vmem:[#allocation99_spill] sm:$0xff] %v18426_v26  ;;  %v19954_v30 = vand.u32 4294901760, %v18421_v39  ;;  %v18429_v13 = vpack.c.bf16 %v6996_v29, %v6989_v38  ;;  %v18440_v62 = vpack.c.bf16 %v6016_v21, %v6009_v27  ;;  %v19953_v38 = vand.u32 4294901760, %v18167_v9 }
 0x607   :  { %v7002_v45 = vsub.f32 %v18410_v14, %v19950_v35  ;;  %v6135_v29 = vand.u32 4294901760, %v6134_v52  ;;  %v6142_v46 = vand.u32 4294901760, %v6141_v56  ;;  %v20502_v35 = vand.u32 4294901760, %v18135_v36 }
 0x608   :  { %v7009_v17 = vsub.f32 %v18421_v39, %v19954_v30  ;;  %v6022_v27 = vsub.f32 %v18167_v9, %v19953_v38  ;;  %v6029_v21 = vsub.f32 %v18170_v11, %v19955_v1  ;;  %v20504_v34 = vand.u32 4294901760, %v18137_v25 }
 0x609   :  { %v7003_v51 = vand.u32 4294901760, %v7002_v45  ;;  %v18450_v43 = vsub.f32 %v18135_v36, %v20502_v35  ;;  %v18463_v52 = vpack.c.bf16 %v6142_v46, %v6135_v29  ;;  %v18478_v46 = vpack.c.bf16 %v18195_v2, %v18190_v50  ;;  %v20506_v29 = vld [vmem:[#allocation21_spill] sm:$0xff] }
 0x60a   :  { %v7010_v26 = vand.u32 4294901760, %v7009_v17  ;;  %v18461_v45 = vsub.f32 %v18137_v25, %v20504_v34  ;;  %v6023_v38 = vand.u32 4294901760, %v6022_v27  ;;  %v6030_v30 = vand.u32 4294901760, %v6029_v21  ;;  %v20515_v2 = vld [vmem:[#allocation29_spill] sm:$0xff] }
 0x60b   :  { %20503 = vst [vmem:[#allocation100_spill] sm:$0xff] %v18450_v43  ;;  %v19956_v56 = vand.u32 4294901760, %v18450_v43  ;;  %v18495_v36 = vpack.c.bf16 %v18264_v54, %v18250_v48  ;;  %v18513_v34 = vpack.c.bf16 %v18341_v16, %v18333_v5  ;;  %v18521_v35 = vpack.c.bf16 %v18382_v33, %v18370_v6  ;;  %v20511_v6 = vld [vmem:[#allocation27_spill] sm:$0xff]  ;;  %v20512_v5 = vld [vmem:[#allocation54_spill] sm:$0xff] }
 0x60c   :  { %20505 = vst [vmem:[#allocation101_spill] sm:$0xff] %v18461_v45  ;;  %v18470_v17 = vpack.c.bf16 %v7010_v26, %v7003_v51  ;;  %v19957_v1 = vand.u32 4294901760, %v18461_v45  ;;  %v18484_v26 = vpack.c.bf16 %v6030_v30, %v6023_v38 }
 0x60d   :  { %v7016_v25 = vsub.f32 %v18450_v43, %v19956_v56  ;;  %20507 = vst [vmem:[#allocation21_spill] sm:$0xff] %v18513_v34  ;;  %20508 = vst [vmem:[#allocation102_spill] sm:$0xff] %v18521_v35  ;;  %v18537_v56 = vpack.c.bf16 %v18461_v45, %v18450_v43  ;;  %v20516_v43 = vld [vmem:[#allocation51_spill] sm:$0xff] }
 0x60e   :  { %v7023_v51 = vsub.f32 %v18461_v45, %v19957_v1  ;;  %v18503_v1 = vpack.c.bf16 %v18298_v59, %v18293_v63  ;;  %v20517_v9 = vand.u32 4294901760, %v20516_v43 }
 0x60f   :  { %v7017_v21 = vand.u32 4294901760, %v7016_v25  ;;  %20510 = vst [vmem:[#allocation104_spill] sm:$0xff] %v18537_v56 }
 0x610   :  { %v7024_v30 = vand.u32 4294901760, %v7023_v51 }
 0x612   :  { %v18509_v27 = vpack.c.bf16 %v7024_v30, %v7017_v21  ;;  %v18529_v30 = vpack.c.bf16 %v18421_v39, %v18410_v14  ;;  %v20513_v14 = vld [vmem:[#allocation25_spill] sm:$0xff] }
 0x613   :  { %v20514_v54 = vand.u32 4294901760, %v20513_v14 }
 0x614   :  { %20509 = vst [vmem:[#allocation103_spill] sm:$0xff] %v18529_v30 }
 0x615   :  { %v18544_v51 = vsub.f32 %v20513_v14, %v20514_v54 }
 0x617   :  { %v20524_v30 = vand.u32 4294901760, %v18544_v51 }
 0x67c   :  { %v11908_v33 = vpop.f32.mrb[36].mxu0 }
 0x67d   :  { %v14448_v25 = vadd.f32 %v11908_v33, %v20511_v6  ;;  %v5636_v16 = vpop.f32.mrb[37].mxu0  ;;  %v18550_v33 = vsub.f32 %v20516_v43, %v20517_v9 }
 0x67e   :  { %v14449_v21 = vadd.f32 %v5636_v16, %v20512_v5  ;;  %v20518_v16 = vld [vmem:[#allocation56_spill] sm:$0xff] }
 0x67f   :  { %v5659_v59 = vmax.f32 %v14448_v25, 0.0 }
 0x680   :  { %v5658_v63 = vmax.f32 %v14449_v21, 0.0  ;;  %v11911_v39 = vpop.f32.mrb[38].mxu0 }
 0x681   :  { %v5668_v48 = vrot.slane %v5659_v59, 7  ;;  %v5675_v38 = vrot.slane %v5659_v59, 1  ;;  %v14450_v50 = vadd.f32 %v11911_v39, %v20515_v2  ;;  %v5648_v45 = vpop.f32.mrb[39].mxu0  ;;  %v18555_v54 = vand.u32 4294901760, %v5659_v59 }
 0x682   :  { %v5667_v6 = vrot.slane %v5658_v63, 7  ;;  %v5674_v5 = vrot.slane %v5658_v63, 1  ;;  %v14451_v25 = vadd.f32 %v5648_v45, %v20518_v16  ;;  %v18553_v21 = vand.u32 4294901760, %v5658_v63 }
 0x683   :  { %5680 = vst [vmem:[#allocation2 + $0x28] sm:$0x7f] %v5675_v38  ;;  %v5661_v11 = vmax.f32 %v14450_v50, 0.0 }
 0x684   :  { %v5669_v14 = vsel %vm141_vm3, %v5667_v6, %v5668_v48  ;;  %5672 = vst [vmem:[#allocation2] sm:$0xfe] %v5667_v6  ;;  %v5676_v2 = vsel %vm150_vm1, %v5674_v5, %v5675_v38  ;;  %v5660_v39 = vmax.f32 %v14451_v25, 0.0  ;;  %v18560_v56 = vsub.f32 %v5658_v63, %v18553_v21 }
 0x685   :  { %v5686_v9 = vrot.slane %v5661_v11, 7  ;;  %v5693_v43 = vrot.slane %v5661_v11, 1  ;;  %v18562_v44 = vand.u32 4294901760, %v5676_v2  ;;  %v18568_v48 = vsub.f32 %v5659_v59, %v18555_v54 }
 0x686   :  { %20519 = vst [vmem:[#allocation27_spill] sm:$0xff] %v18560_v56  ;;  %v5685_v16 = vrot.slane %v5660_v39, 7  ;;  %v5692_v37 = vrot.slane %v5660_v39, 1  ;;  %v19986_v50 = vand.u32 4294901760, %v18560_v56  ;;  %v18578_v25 = vand.u32 4294901760, %v5669_v14 }
 0x687   :  { %5698 = vst [vmem:[#allocation2 + $0x58] sm:$0x7f] %v5693_v43  ;;  %20520 = vst [vmem:[#allocation54_spill] sm:$0xff] %v18568_v48  ;;  %v18571_v38 = vsub.f32 %v5676_v2, %v18562_v44  ;;  %v18581_v45 = vand.u32 4294901760, %v5660_v39  ;;  %v18611_v35 = vand.u32 4294901760, %v5661_v11  ;;  %v20530_v58 = vand.u32 4294901760, %v18568_v48 }
 0x688   :  { %v5687_v63 = vsel %vm141_vm3, %v5685_v16, %v5686_v9  ;;  %5690 = vst [vmem:[#allocation2 + $0x30] sm:$0xfe] %v5685_v16  ;;  %v5694_v6 = vsel %vm150_vm1, %v5692_v37, %v5693_v43  ;;  %v5862_v5 = vsub.f32 %v18560_v56, %v19986_v50  ;;  %20521 = vst [vmem:[#allocation25_spill] sm:$0xff] %v18578_v25  ;;  %v20525_v37 = vand.u32 4294901760, %v18550_v33 }
 0x689   :  { %v19996_v10 = vand.u32 4294901760, %v18571_v38  ;;  %20522 = vst [vmem:[#allocation29_spill] sm:$0xff] %v18581_v45  ;;  %v18583_v59 = vand.u32 4294901760, %v5694_v6  ;;  %v6932_v9 = vsub.f32 %v18544_v51, %v20524_v30  ;;  %v18603_v30 = vsub.f32 %v5669_v14, %v18578_v25  ;;  %20528 = vst [vmem:[#allocation106_spill] sm:$0xff] %v18611_v35 }
 0x68a   :  { %v5863_v15 = vand.u32 4294901760, %v5862_v5  ;;  %v5704_v2 = vld [vmem:[#allocation2 + $0x28] sm:$0xff]  ;;  %v6939_v43 = vsub.f32 %v18550_v33, %v20525_v37  ;;  %v18609_v50 = vsub.f32 %v5660_v39, %v18581_v45  ;;  %v5877_v14 = vsub.f32 %v18568_v48, %v20530_v58 }
 0x68b   :  { %20523 = vst [vmem:[#allocation51_spill] sm:$0xff] %v18583_v59  ;;  %v5699_v16 = vld [vmem:[#allocation2] sm:$0xff]  ;;  %v6877_v12 = vsub.f32 %v18571_v38, %v19996_v10  ;;  %v18595_v18 = vand.u32 4294901760, %v5704_v2  ;;  %v18598_v5 = vsub.f32 %v5694_v6, %v18583_v59  ;;  %v18627_v6 = vand.u32 4294901760, %v5687_v63 }
 0x68c   :  { %5864 = vmatprep.mubr.f32.mxu1 %v5863_v15  ;;  %v18600_v49 = vand.u32 4294901760, %v5699_v16  ;;  %v6933_v15 = vand.u32 4294901760, %v6932_v9  ;;  %v20535_v56 = vand.u32 4294901760, %v18603_v30 }
 0x68d   :  { %20526 = vst [vmem:[#allocation56_spill] sm:$0xff] %v18595_v18  ;;  %v6878_v4 = vand.u32 4294901760, %v6877_v12  ;;  %v18606_v37 = vsub.f32 %v5704_v2, %v18595_v18  ;;  %v6940_v2 = vand.u32 4294901760, %v6939_v43  ;;  %20533 = vst [vmem:[#allocation110_spill] sm:$0xff] %v18627_v6  ;;  %v18637_v43 = vsub.f32 %v5661_v11, %v18611_v35 }
 0x68e   :  { %v18614_v10 = vsub.f32 %v5699_v16, %v18600_v49  ;;  %v5710_v57 = vld [vmem:[#allocation2 + $0x58] sm:$0xff]  ;;  %v20534_v48 = vand.u32 4294901760, %v18598_v5  ;;  %v5883_v11 = vsub.f32 %v18603_v30, %v20535_v56 }
 0x68f   :  { %20527 = vst [vmem:[#allocation105_spill] sm:$0xff] %v18606_v37  ;;  %11944 = vmatprep.mubr.f32.mxu0 %v6878_v4  ;;  %v20012_v12 = vand.u32 4294901760, %v18606_v37  ;;  %v18621_v53 = vand.u32 4294901760, %v5710_v57  ;;  %v5705_v39 = vld [vmem:[#allocation2 + $0x30] sm:$0xff] }
 0x690   :  { %20529 = vst [vmem:[#allocation107_spill] sm:$0xff] %v18614_v10  ;;  %v20019_v32 = vand.u32 4294901760, %v18614_v10  ;;  %v18625_v34 = vand.u32 4294901760, %v5705_v39  ;;  %v6897_v24 = vsub.f32 %v18598_v5, %v20534_v48  ;;  %v20536_v48 = vand.u32 4294901760, %v18609_v50 }
 0x691   :  { %20531 = vst [vmem:[#allocation108_spill] sm:$0xff] %v18621_v53  ;;  %v6887_v9 = vsub.f32 %v18606_v37, %v20012_v12  ;;  %v18634_v4 = vsub.f32 %v5710_v57, %v18621_v53  ;;  %v13952_v37 = vpack.c.bf16 %v6940_v2, %v6933_v15  ;;  %v20024_v2 = vand.u32 4294901760, %v18637_v43 }
 0x692   :  { %20532 = vst [vmem:[#allocation109_spill] sm:$0xff] %v18625_v34  ;;  %v5868_v16 = vsub.f32 %v18614_v10, %v20019_v32  ;;  %v18646_v40 = vsub.f32 %v5705_v39, %v18625_v34  ;;  %v18654_v32 = vsub.f32 %v5687_v63, %v18627_v6  ;;  %v5878_v10 = vand.u32 4294901760, %v5877_v14  ;;  %v20538_v14 = vld [vmem:[#allocation76_spill] sm:$0xff] }
 0x693   :  { %v6888_v12 = vand.u32 4294901760, %v6887_v9  ;;  %v20022_v58 = vand.u32 4294901760, %v18634_v4  ;;  %v5892_v39 = vsub.f32 %v18609_v50, %v20536_v48  ;;  %v6898_v56 = vand.u32 4294901760, %v6897_v24 }
 0x694   :  { %v5869_v57 = vand.u32 4294901760, %v5868_v16  ;;  %v20025_v42 = vand.u32 4294901760, %v18646_v40  ;;  %v20537_v16 = vld [vmem:[#allocation75_spill] sm:$0xff]  ;;  %v20023_v48 = vand.u32 4294901760, %v18654_v32  ;;  %v5907_v24 = vsub.f32 %v18637_v43, %v20024_v2 }
 0x695   :  { %11945 = vmatmul.mubr.f32.vlgmr.msra.gmra.mrb[40].mxu0 %v6888_v12  ;;  %v6907_v15 = vsub.f32 %v18634_v4, %v20022_v58  ;;  %v5884_v12 = vand.u32 4294901760, %v5883_v11  ;;  %v5893_v58 = vand.u32 4294901760, %v5892_v39 }
 0x696   :  { %5870 = vmatmul.mubr.f32.vlgmr.msra.gmra.mrb[84].mxu1 %v5869_v57  ;;  %13951 = vmatpush3.bf16.msra.mxu0 %v18234_v61  ;;  %v5898_v9 = vsub.f32 %v18646_v40, %v20025_v42  ;;  %v20540_v61 = vld [vmem:[#allocation80_spill] sm:$0xff]  ;;  %v5913_v11 = vsub.f32 %v18654_v32, %v20023_v48  ;;  %v5908_v39 = vand.u32 4294901760, %v5907_v24  ;;  %v20549_v24 = vld [vmem:[#allocation94_spill] sm:$0xff]  ;;  %v20595_v42 = vld [vmem:[#allocation105_spill] sm:$0xff] }
 0x697   :  { %13759 = vmatpush3.bf16.msra.mxu1 %v20537_v16  ;;  %5879 = vmatprep.mubr.f32.mxu1 %v5878_v10  ;;  %v6908_v63 = vand.u32 4294901760, %v6907_v15  ;;  %v20539_v10 = vld [vmem:[#allocation78_spill] sm:$0xff]  ;;  %v20541_v15 = vld [vmem:[#allocation85_spill] sm:$0xff]  ;;  %v20591_v48 = vld [vmem:[#allocation52_spill] sm:$0xff] }
 0x698   :  { %13761 = vmatprep.subr.bf16.mxu1 %v20538_v14  ;;  %11947 = vmatprep.mubr.f32.mxu0 %v6898_v56  ;;  %v5899_v57 = vand.u32 4294901760, %v5898_v9  ;;  %v20542_v56 = vld [vmem:[#allocation81_spill] sm:$0xff]  ;;  %v20546_v14 = vld [vmem:[#allocation90_spill] sm:$0xff]  ;;  %v20548_v9 = vld [vmem:[#allocation91_spill] sm:$0xff] }
 0x699   :  { %13953 = vmatprep.subr.bf16.mxu0 %v13952_v37  ;;  %11948 = vmatmul.mubr.f32.gmra.mrb[42].mxu0 %v6908_v63  ;;  %v20544_v16 = vld [vmem:[#allocation89_spill] sm:$0xff]  ;;  %v20545_v63 = vld [vmem:[#allocation86_spill] sm:$0xff]  ;;  %v20592_v2 = vld [vmem:[#allocation107_spill] sm:$0xff] }
 0x69a   :  { %5885 = vmatmul.mubr.f32.gmra.mrb[86].mxu1 %v5884_v12  ;;  %13955 = vmatpush3.bf16.msra.mxu0 %v13952_v37  ;;  %v20543_v37 = vld [vmem:[#allocation84_spill] sm:$0xff]  ;;  %v20547_v12 = vld [vmem:[#allocation95_spill] sm:$0xff] }
 0x69b   :  { %13763 = vmatpush3.bf16.msra.mxu1 %v20539_v10  ;;  %5894 = vmatprep.mubr.f32.mxu1 %v5893_v58  ;;  %v5914_v58 = vand.u32 4294901760, %v5913_v11  ;;  %v20550_v10 = vld [vmem:[#allocation96_spill] sm:$0xff]  ;;  %v20559_v11 = vld [vmem:[#allocation33_spill] sm:$0xff] }
 0x69c   :  { %13765 = vmatprep.subr.bf16.mxu1 %v20540_v61  ;;  %11982 = vmatprep.mubr.f32.mxu0 %v18562_v44  ;;  %v20551_v61 = vld [vmem:[#allocation99_spill] sm:$0xff] }
 0x69d   :  { %13957 = vmatprep.subr.bf16.mxu0 %v20541_v15 }
 0x69e   :  { %5900 = vmatmul.mubr.f32.gmra.mrb[88].mxu1 %v5899_v57  ;;  %13959 = vmatpush3.bf16.msra.mxu0 %v20541_v15  ;;  %v20558_v57 = vpack.c.bf16 %v18090_v23, %v18088_v22  ;;  %v20561_v15 = vld [vmem:[#allocation27_spill] sm:$0xff] }
 0x69f   :  { %13767 = vmatpush3.bf16.msra.mxu1 %v20542_v56  ;;  %5909 = vmatprep.mubr.f32.mxu1 %v5908_v39  ;;  %v20560_v39 = vpack.c.bf16 %v18094_v31, %v20559_v11  ;;  %v20562_v56 = vld [vmem:[#allocation35_spill] sm:$0xff] }
 0x6a0   :  { %13769 = vmatprep.subr.bf16.mxu1 %v20543_v37  ;;  %13961 = vmatprep.subr.bf16.mxu0 %v20544_v16  ;;  %v20563_v37 = vld [vmem:[#allocation22_spill] sm:$0xff] }
 0x6a2   :  { %5915 = vmatmul.mubr.f32.gmra.mrb[90].mxu1 %v5914_v58  ;;  %13963 = vmatpush3.bf16.msra.mxu0 %v20544_v16  ;;  %v20564_v58 = vpack.c.bf16 %v20562_v56, %v20563_v37  ;;  %v20566_v16 = vld [vmem:[#allocation26_spill] sm:$0xff] }
 0x6a3   :  { %13771 = vmatpush3.bf16.msra.mxu1 %v20545_v63  ;;  %6145 = vmatprep.mubr.f32.mxu1 %v18553_v21  ;;  %v20567_v63 = vld [vmem:[#allocation23_spill] sm:$0xff] }
 0x6a4   :  { %13773 = vmatprep.subr.bf16.mxu1 %v20546_v14  ;;  %13965 = vmatprep.subr.bf16.mxu0 %v20547_v12  ;;  %v20568_v14 = vpack.c.bf16 %v20566_v16, %v20567_v63 }
 0x6a6   :  { %13967 = vmatpush3.bf16.msra.mxu0 %v20547_v12  ;;  %v20569_v12 = vld [vmem:[#allocation42_spill] sm:$0xff] }
 0x6a7   :  { %13775 = vmatpush3.bf16.msra.mxu1 %v20548_v9  ;;  %13969 = vmatprep.subr.bf16.mxu0 %v18429_v13  ;;  %v20570_v9 = vld [vmem:[#allocation37_spill] sm:$0xff] }
 0x6a8   :  { %13777 = vmatprep.subr.bf16.mxu1 %v20549_v24  ;;  %v20571_v24 = vpack.c.bf16 %v20569_v12, %v20570_v9 }
 0x6aa   :  { %13971 = vmatpush3.bf16.msra.mxu0 %v18429_v13  ;;  %v20552_v13 = vpack.c.bf16 %v17875_v3, %v17873_v8 }
 0x6ab   :  { %13779 = vmatpush3.bf16.msra.mxu1 %v20550_v10  ;;  %13973 = vmatprep.subr.bf16.mxu0 %v18470_v17  ;;  %v20572_v10 = vld [vmem:[#allocation102_spill] sm:$0xff] }
 0x6ac   :  { %13781 = vmatprep.subr.bf16.mxu1 %v20551_v61  ;;  %v20573_v61 = vld [vmem:[#allocation41_spill] sm:$0xff] }
 0x6ae   :  { %13975 = vmatpush3.bf16.msra.mxu0 %v18470_v17  ;;  %v13984_v17 = vpack.c.bf16 %v18550_v33, %v18544_v51 }
 0x6af   :  { %13783 = vmatpush3.bf16.msra.mxu1 %v18440_v62  ;;  %13977 = vmatprep.subr.bf16.mxu0 %v18509_v27  ;;  %v20553_v62 = vpack.c.bf16 %v17882_v28, %v17880_v7 }
 0x6b0   :  { %13785 = vmatprep.subr.bf16.mxu1 %v18463_v52  ;;  %v20554_v52 = vpack.c.bf16 %v17891_v47, %v17885_v19 }
 0x6b2   :  { %13979 = vmatpush3.bf16.msra.mxu0 %v18509_v27  ;;  %v20557_v27 = vpack.c.bf16 %v18074_v0, %v18072_v41 }
 0x6b3   :  { %13787 = vmatpush3.bf16.msra.mxu1 %v18484_v26  ;;  %13981 = vmatprep.subr.bf16.mxu0 %v18478_v46  ;;  %v20555_v26 = vpack.c.bf16 %v17898_v55, %v20506_v29 }
 0x6b4   :  { %13789 = vmatprep.subr.bf16.mxu1 %v20552_v13 }
 0x6b5   :  { %11983 = vmatmul.mubr.f32.vlgmr.msra.gmra.mrb[40].mxu0 %v18595_v18  ;;  %v20624_v18 = vld [vmem:[#allocation69_spill] sm:$0xff] }
 0x6b6   :  { %6147 = vmatmul.mubr.f32.vlgmr.msra.gmra.mrb[92].mxu1 %v18600_v49  ;;  %11985 = vmatprep.mubr.f32.mxu0 %v18583_v59 }
 0x6b7   :  { %6152 = vmatprep.mubr.f32.mxu1 %v18555_v54  ;;  %13791 = vmatpush3.bf16.msra.mxu1 %v20553_v62  ;;  %v20577_v62 = vld [vmem:[#allocation46_spill] sm:$0xff] }
 0x6b8   :  { %13983 = vmatpush3.bf16.msra.mxu0 %v18478_v46  ;;  %13793 = vmatprep.subr.bf16.mxu1 %v20554_v52  ;;  %v20556_v46 = vpack.c.bf16 %v18070_v20, %v18068_v60 }
 0x6b9   :  { %11986 = vmatmul.mubr.f32.gmra.mrb[42].mxu0 %v18621_v53  ;;  %13985 = vmatprep.subr.bf16.mxu0 %v13984_v17  ;;  %v20602_v53 = vld [vmem:[#allocation45_spill] sm:$0xff] }
 0x6ba   :  { %6154 = vmatmul.mubr.f32.gmra.mrb[94].mxu1 %v18578_v25  ;;  %12020 = vmatprep.mubr.f32.mxu0 %v18571_v38  ;;  %v20612_v25 = vld [vmem:[#allocation40_spill] sm:$0xff] }
 0x6bb   :  { %6159 = vmatprep.mubr.f32.mxu1 %v18581_v45  ;;  %13795 = vmatpush3.bf16.msra.mxu1 %v20555_v26  ;;  %v20579_v26 = vld [vmem:[#allocation103_spill] sm:$0xff]  ;;  %v20603_v45 = vld [vmem:[#allocation34_spill] sm:$0xff] }
 0x6bc   :  { %13987 = vmatpush3.bf16.msra.mxu0 %v13984_v17  ;;  %13797 = vmatprep.subr.bf16.mxu1 %v20556_v46  ;;  %v20576_v17 = vld [vmem:[#allocation61_spill] sm:$0xff]  ;;  %v20580_v46 = vld [vmem:[#allocation64_spill] sm:$0xff] }
 0x6bd   :  { %13989 = vmatprep.subr.bf16.mxu0 %v18495_v36  ;;  %v20578_v52 = vpack.c.bf16 %v20576_v17, %v20577_v62 }
 0x6be   :  { %6161 = vmatmul.mubr.f32.gmra.mrb[96].mxu1 %v18625_v34  ;;  %v20601_v34 = vld [vmem:[#allocation31_spill] sm:$0xff] }
 0x6bf   :  { %6166 = vmatprep.mubr.f32.mxu1 %v18611_v35  ;;  %13799 = vmatpush3.bf16.msra.mxu1 %v20557_v27  ;;  %v20581_v27 = vld [vmem:[#allocation63_spill] sm:$0xff]  ;;  %v20600_v35 = vand.u32 4294901760, %v18571_v38  ;;  %v20607_v38 = vld [vmem:[#allocation28_spill] sm:$0xff] }
 0x6c0   :  { %13991 = vmatpush3.bf16.msra.mxu0 %v18495_v36  ;;  %13801 = vmatprep.subr.bf16.mxu1 %v20558_v57  ;;  %v20565_v36 = vld [vmem:[#allocation21_spill] sm:$0xff]  ;;  %v20582_v57 = vpack.c.bf16 %v20580_v46, %v20581_v27 }
 0x6c1   :  { %13993 = vmatprep.subr.bf16.mxu0 %v18503_v1 }
 0x6c2   :  { %6168 = vmatmul.mubr.f32.gmra.mrb[98].mxu1 %v18627_v6  ;;  %v20599_v6 = vld [vmem:[#allocation49_spill] sm:$0xff] }
 0x6c3   :  { %13803 = vmatpush3.bf16.msra.mxu1 %v20560_v39  ;;  %6303 = vmatprep.mubr.f32.mxu1 %v20561_v15  ;;  %v20583_v39 = vld [vmem:[#allocation68_spill] sm:$0xff] }
 0x6c4   :  { %13995 = vmatpush3.bf16.msra.mxu0 %v18503_v1  ;;  %13805 = vmatprep.subr.bf16.mxu1 %v20564_v58  ;;  %v20574_v1 = vld [vmem:[#allocation60_spill] sm:$0xff]  ;;  %v20584_v58 = vld [vmem:[#allocation66_spill] sm:$0xff] }
 0x6c5   :  { %13997 = vmatprep.subr.bf16.mxu0 %v20565_v36  ;;  %v20575_v13 = vpack.c.bf16 %v20573_v61, %v20574_v1 }
 0x6c7   :  { %13807 = vmatpush3.bf16.msra.mxu1 %v20568_v14  ;;  %v20586_v14 = vld [vmem:[#allocation104_spill] sm:$0xff] }
 0x6c8   :  { %13999 = vmatpush3.bf16.msra.mxu0 %v20565_v36  ;;  %13809 = vmatprep.subr.bf16.mxu1 %v20571_v24  ;;  %v20585_v36 = vpack.c.bf16 %v20583_v39, %v20584_v58  ;;  %v20587_v24 = vld [vmem:[#allocation71_spill] sm:$0xff] }
 0x6c9   :  { %14001 = vmatprep.subr.bf16.mxu0 %v20572_v10 }
 0x6cb   :  { %13811 = vmatpush3.bf16.msra.mxu1 %v20575_v13 }
 0x6cc   :  { %14003 = vmatpush3.bf16.msra.mxu0 %v20572_v10  ;;  %13813 = vmatprep.subr.bf16.mxu1 %v20578_v52  ;;  %v20588_v10 = vld [vmem:[#allocation70_spill] sm:$0xff]  ;;  %v20590_v52 = vld [vmem:[#allocation47_spill] sm:$0xff] }
 0x6cd   :  { %14005 = vmatprep.subr.bf16.mxu0 %v20579_v26  ;;  %v20589_v13 = vpack.c.bf16 %v20587_v24, %v20588_v10 }
 0x6cf   :  { %13815 = vmatpush3.bf16.msra.mxu1 %v20582_v57  ;;  %v20593_v57 = vld [vmem:[#allocation54_spill] sm:$0xff] }
 0x6d0   :  { %14007 = vmatpush3.bf16.msra.mxu0 %v20579_v26  ;;  %13817 = vmatprep.subr.bf16.mxu1 %v20585_v36  ;;  %v20594_v26 = vld [vmem:[#allocation24_spill] sm:$0xff]  ;;  %v20596_v36 = vld [vmem:[#allocation53_spill] sm:$0xff] }
 0x6d1   :  { %14009 = vmatprep.subr.bf16.mxu0 %v20586_v14 }
 0x6d3   :  { %13819 = vmatpush3.bf16.msra.mxu1 %v20589_v13  ;;  %v20598_v13 = vld [vmem:[#allocation48_spill] sm:$0xff] }
 0x6d4   :  { %14011 = vmatpush3.bf16.msra.mxu0 %v20586_v14  ;;  %13821 = vmatprep.subr.bf16.mxu1 %v20590_v52  ;;  %v20597_v14 = vld [vmem:[#allocation57_spill] sm:$0xff] }
 0x6d5   :  { %14013 = vmatprep.subr.bf16.mxu0 %v20591_v48 }
 0x6d6   :  { %6306 = vmatmul.mubr.f32.vlgmr.msra.gmra.mrb[100].mxu1 %v20592_v2 }
 0x6d7   :  { %6312 = vmatprep.mubr.f32.mxu1 %v20593_v57  ;;  %13823 = vmatpush3.bf16.msra.mxu1 %v20594_v26 }
 0x6d8   :  { %12021 = vmatmul.mubr.f32.vlgmr.msra.gmra.mrb[40].mxu0 %v20595_v42  ;;  %13825 = vmatprep.subr.bf16.mxu1 %v20596_v36 }
 0x6d9   :  { %12023 = vmatprep.mubr.f32.mxu0 %v18598_v5  ;;  %14015 = vmatpush3.bf16.msra.mxu0 %v20591_v48 }
 0x6da   :  { %6315 = vmatmul.mubr.f32.gmra.mrb[102].mxu1 %v18603_v30  ;;  %14017 = vmatprep.subr.bf16.mxu0 %v20597_v14 }
 0x6db   :  { %6321 = vmatprep.mubr.f32.mxu1 %v18609_v50  ;;  %13827 = vmatpush3.bf16.msra.mxu1 %v20598_v13  ;;  %v20605_v13 = vld [vmem:[#allocation50_spill] sm:$0xff] }
 0x6dc   :  { %12024 = vmatmul.mubr.f32.gmra.mrb[42].mxu0 %v18634_v4  ;;  %13829 = vmatprep.subr.bf16.mxu1 %v20599_v6  ;;  %v20604_v6 = vld [vmem:[#allocation55_spill] sm:$0xff] }
 0x6dd   :  { %14019 = vmatpush3.bf16.msra.mxu0 %v20597_v14  ;;  %12058 = vmatprep.mubr.f32.mxu0 %v20600_v35  ;;  %v20606_v35 = vand.u32 4294901760, %v20561_v15  ;;  %v20608_v14 = vld [vmem:[#allocation36_spill] sm:$0xff]  ;;  %v20614_v15 = vld [vmem:[#allocation65_spill] sm:$0xff] }
 0x6de   :  { %6324 = vmatmul.mubr.f32.gmra.mrb[104].mxu1 %v18646_v40  ;;  %14021 = vmatprep.subr.bf16.mxu0 %v20601_v34 }
 0x6df   :  { %6330 = vmatprep.mubr.f32.mxu1 %v18637_v43  ;;  %13831 = vmatpush3.bf16.msra.mxu1 %v20602_v53  ;;  %v20609_v53 = vld [vmem:[#allocation30_spill] sm:$0xff] }
 0x6e0   :  { %13833 = vmatprep.subr.bf16.mxu1 %v20603_v45  ;;  %v20610_v45 = vld [vmem:[#allocation32_spill] sm:$0xff] }
 0x6e1   :  { %14023 = vmatpush3.bf16.msra.mxu0 %v20601_v34  ;;  %v20611_v34 = vld [vmem:[#allocation44_spill] sm:$0xff] }
 0x6e2   :  { %6333 = vmatmul.mubr.f32.gmra.mrb[106].mxu1 %v18654_v32  ;;  %14025 = vmatprep.subr.bf16.mxu0 %v20604_v6 }
 0x6e3   :  { %13835 = vmatpush3.bf16.msra.mxu1 %v20605_v13  ;;  %6437 = vmatprep.mubr.f32.mxu1 %v20606_v35  ;;  %v20613_v13 = vld [vmem:[#allocation43_spill] sm:$0xff]  ;;  %v20615_v35 = vld [vmem:[#allocation62_spill] sm:$0xff] }
 0x6e4   :  { %13837 = vmatprep.subr.bf16.mxu1 %v20607_v38  ;;  %v20616_v38 = vld [vmem:[#allocation67_spill] sm:$0xff] }
 0x6e5   :  { %14027 = vmatpush3.bf16.msra.mxu0 %v20604_v6 }
 0x6e6   :  { %14029 = vmatprep.subr.bf16.mxu0 %v20608_v14 }
 0x6e7   :  { %13839 = vmatpush3.bf16.msra.mxu1 %v20609_v53  ;;  %v20617_v53 = vand.u32 4294901760, %v17873_v8  ;;  %v20627_v8 = vand.u32 4294901760, %v17885_v19  ;;  %v20633_v19 = vand.u32 4294901760, %v20506_v29  ;;  %v20640_v29 = vld [vmem:[#allocation77_spill] sm:$0xff] }
 0x6e8   :  { %13841 = vmatprep.subr.bf16.mxu1 %v20610_v45  ;;  %v20618_v45 = vand.u32 4294901760, %v17875_v3  ;;  %v20628_v3 = vand.u32 4294901760, %v17891_v47  ;;  %v20634_v47 = vand.u32 4294901760, %v17898_v55  ;;  %v20641_v55 = vand.u32 4294901760, %v20640_v29 }
 0x6e9   :  { %14031 = vmatpush3.bf16.msra.mxu0 %v20608_v14  ;;  %v20619_v14 = vld [vmem:[#allocation72_spill] sm:$0xff] }
 0x6ea   :  { %14033 = vmatprep.subr.bf16.mxu0 %v20611_v34  ;;  %v13852_v6 = vpack.c.bf16 %v20618_v45, %v20617_v53  ;;  %v13856_v53 = vpack.c.bf16 %v20628_v3, %v20627_v8  ;;  %v20629_v45 = vand.u32 4294901760, %v20592_v2  ;;  %v20636_v2 = vand.u32 4294901760, %v18068_v60 }
 0x6eb   :  { %13843 = vmatpush3.bf16.msra.mxu1 %v20612_v25  ;;  %v20620_v25 = vld [vmem:[#allocation73_spill] sm:$0xff]  ;;  %v20645_v60 = vand.u32 4294901760, %v18072_v41  ;;  %v20649_v8 = vand.u32 4294901760, %v18090_v23  ;;  %v20651_v41 = vld [vmem:[#allocation82_spill] sm:$0xff]  ;;  %v20657_v23 = vand.u32 4294901760, %v18094_v31  ;;  %v20665_v31 = vand.u32 4294901760, %v20567_v63 }
 0x6ec   :  { %13845 = vmatprep.subr.bf16.mxu1 %v20613_v13  ;;  %v20621_v59 = vand.u32 4294901760, %v20620_v25  ;;  %v20622_v13 = vld [vmem:[#allocation74_spill] sm:$0xff]  ;;  %v20630_v25 = vand.u32 4294901760, %v18544_v51  ;;  %v20637_v51 = vand.u32 4294901760, %v18070_v20  ;;  %v20646_v20 = vand.u32 4294901760, %v18074_v0  ;;  %v20653_v0 = vld [vmem:[#allocation83_spill] sm:$0xff] }
 0x6ed   :  { %14035 = vmatpush3.bf16.msra.mxu0 %v20611_v34  ;;  %v20623_v36 = vand.u32 4294901760, %v20622_v13  ;;  %v20674_v63 = vand.u32 4294901760, %v20573_v61 }
 0x6ee   :  { %14037 = vmatprep.subr.bf16.mxu0 %v20614_v15  ;;  %v13860_v13 = vpack.c.bf16 %v20637_v51, %v20636_v2 }
 0x6ef   :  { %13847 = vmatpush3.bf16.msra.mxu1 %v20615_v35  ;;  %v14044_v34 = vpack.c.bf16 %v20623_v36, %v20621_v59  ;;  %v20625_v35 = vand.u32 4294901760, %v17880_v7  ;;  %v20631_v59 = vand.u32 4294901760, %v18550_v33  ;;  %v20635_v36 = vand.u32 4294901760, %v20595_v42 }
 0x6f0   :  { %13849 = vmatprep.subr.bf16.mxu1 %v20616_v38  ;;  %v20626_v38 = vand.u32 4294901760, %v17882_v28  ;;  %v20632_v28 = vand.u32 4294901760, %v20593_v57  ;;  %v20638_v33 = vand.u32 4294901760, %v18598_v5  ;;  %v20639_v57 = vand.u32 4294901760, %v18603_v30 }
 0x6f1   :  { %14039 = vmatpush3.bf16.msra.mxu0 %v20614_v15  ;;  %v14048_v7 = vpack.c.bf16 %v20631_v59, %v20630_v25  ;;  %v13862_v5 = vpack.c.bf16 %v20646_v20, %v20645_v60  ;;  %v20648_v30 = vand.u32 4294901760, %v18088_v22  ;;  %v20656_v22 = vand.u32 4294901760, %v20559_v11  ;;  %v20679_v60 = vld [vmem:[#allocation98_spill] sm:$0xff] }
 0x6f2   :  { %14041 = vmatprep.subr.bf16.mxu0 %v20619_v14  ;;  %v13854_v26 = vpack.c.bf16 %v20626_v38, %v20625_v35  ;;  %v20644_v35 = vand.u32 4294901760, %v18609_v50  ;;  %v20650_v50 = vand.u32 4294901760, %v18646_v40  ;;  %v20659_v40 = vand.u32 4294901760, %v20562_v56 }
 0x6f3   :  { %13851 = vmatpush3.bf16.msra.mxu1 %v20624_v18  ;;  %v13864_v3 = vpack.c.bf16 %v20649_v8, %v20648_v30  ;;  %v13866_v59 = vpack.c.bf16 %v20657_v23, %v20656_v22  ;;  %v20666_v11 = vand.u32 4294901760, %v20566_v16  ;;  %v20667_v56 = vand.u32 4294901760, %v20570_v9  ;;  %v20685_v8 = vld [vmem:[#allocation100_spill] sm:$0xff]  ;;  %v20700_v23 = vld [vmem:[#allocation49_spill] sm:$0xff] }
 0x6f4   :  { %13853 = vmatprep.subr.bf16.mxu1 %v13852_v6  ;;  %v13858_v6 = vpack.c.bf16 %v20634_v47, %v20633_v19  ;;  %v20660_v19 = vand.u32 4294901760, %v18654_v32  ;;  %v20661_v47 = vld [vmem:[#allocation87_spill] sm:$0xff]  ;;  %v20668_v32 = vand.u32 4294901760, %v20569_v12  ;;  %v20676_v9 = vand.u32 4294901760, %v20576_v17  ;;  %v20699_v22 = vld [vmem:[#allocation108_spill] sm:$0xff] }
 0x6f5   :  { %14043 = vmatpush3.bf16.msra.mxu0 %v20619_v14  ;;  %v20680_v20 = vand.u32 4294901760, %v20679_v60  ;;  %v20683_v30 = vand.u32 4294901760, %v20584_v58  ;;  %v20692_v58 = vld [vmem:[#allocation56_spill] sm:$0xff] }
 0x6f6   :  { %6441 = vmatmul.mubr.f32.vlgmr.msra.gmra.mrb[108].mxu1 %v20629_v45  ;;  %14045 = vmatprep.subr.bf16.mxu0 %v14044_v34  ;;  %v20654_v45 = vand.u32 4294901760, %v20653_v0  ;;  %v13872_v51 = vpack.c.bf16 %v20668_v32, %v20667_v56  ;;  %v20689_v0 = vand.u32 4294901760, %v20588_v10  ;;  %v20693_v10 = vld [vmem:[#allocation53_spill] sm:$0xff]  ;;  %v20717_v56 = vld [vmem:[#allocation67_spill] sm:$0xff]  ;;  %v20718_v32 = vmov 0.0|0.0  }
 0x6f7   :  { %6448 = vmatprep.mubr.f32.mxu1 %v20632_v28  ;;  %13855 = vmatpush3.bf16.msra.mxu1 %v13854_v26  ;;  %v20642_v26 = vld [vmem:[#allocation79_spill] sm:$0xff] }
 0x6f8   :  { %12059 = vmatmul.mubr.f32.vlgmr.msra.gmra.mrb[40].mxu0 %v20635_v36  ;;  %13857 = vmatprep.subr.bf16.mxu1 %v13856_v53  ;;  %v20643_v38 = vand.u32 4294901760, %v20642_v26  ;;  %v20652_v53 = vand.u32 4294901760, %v20651_v41  ;;  %v20673_v26 = vand.u32 4294901760, %v20574_v1  ;;  %v20682_v1 = vand.u32 4294901760, %v20580_v46 }
 0x6f9   :  { %12061 = vmatprep.mubr.f32.mxu0 %v20638_v33  ;;  %14047 = vmatpush3.bf16.msra.mxu0 %v14044_v34  ;;  %v20647_v34 = vand.u32 4294901760, %v18634_v4  ;;  %v20655_v4 = vand.u32 4294901760, %v18637_v43  ;;  %v20662_v43 = vand.u32 4294901760, %v20661_v47  ;;  %v20707_v47 = vld [vmem:[#allocation55_spill] sm:$0xff] }
 0x6fa   :  { %6452 = vmatmul.mubr.f32.gmra.mrb[110].mxu1 %v20639_v57  ;;  %14049 = vmatprep.subr.bf16.mxu0 %v14048_v7  ;;  %v14052_v42 = vpack.c.bf16 %v20643_v38, %v20641_v55  ;;  %v14056_v25 = vpack.c.bf16 %v20654_v45, %v20652_v53  ;;  %v20671_v57 = vld [vmem:[#allocation93_spill] sm:$0xff]  ;;  %v13874_v16 = vpack.c.bf16 %v20674_v63, %v20673_v26  ;;  %v20675_v38 = vand.u32 4294901760, %v20577_v62  ;;  %v9859_v63 = vld [vmem:[%s19565_s6 + $0x4] ss:$0 sm:$0xff] }
 0x6fb   :  { %6459 = vmatprep.mubr.f32.mxu1 %v20644_v35  ;;  %13859 = vmatpush3.bf16.msra.mxu1 %v13858_v6  ;;  %v20663_v6 = vld [vmem:[#allocation88_spill] sm:$0xff]  ;;  %v20672_v29 = vand.u32 4294901760, %v20671_v57  ;;  %v20684_v62 = vand.u32 4294901760, %v20583_v39  ;;  %v20695_v45 = vld [vmem:[#allocation25_spill] sm:$0xff] }
 0x6fc   :  { %12062 = vmatmul.mubr.f32.gmra.mrb[42].mxu0 %v20647_v34  ;;  %13861 = vmatprep.subr.bf16.mxu1 %v13860_v13  ;;  %v20664_v36 = vand.u32 4294901760, %v20663_v6  ;;  %v20669_v13 = vld [vmem:[#allocation92_spill] sm:$0xff]  ;;  %v13876_v12 = vpack.c.bf16 %v20676_v9, %v20675_v38  ;;  %v20681_v34 = vand.u32 4294901760, %v20581_v27  ;;  %v20690_v27 = vand.u32 4294901760, %v20587_v24  ;;  %v20694_v24 = vld [vmem:[#allocation51_spill] sm:$0xff] }
 0x6fd   :  { %14051 = vmatpush3.bf16.msra.mxu0 %v14048_v7  ;;  %12096 = vmatprep.mubr.f32.mxu0 %v18562_v44  ;;  %v20658_v7 = vand.u32 4294901760, %v20563_v37  ;;  %v13870_v37 = vpack.c.bf16 %v20666_v11, %v20665_v31  ;;  %v20670_v33 = vand.u32 4294901760, %v20669_v13  ;;  %v13880_v17 = vpack.c.bf16 %v20684_v62, %v20683_v30  ;;  %v20691_v39 = vld [vmem:[#allocation24_spill] sm:$0xff] }
 0x6fe   :  { %6463 = vmatmul.mubr.f32.gmra.mrb[112].mxu1 %v20650_v50  ;;  %14053 = vmatprep.subr.bf16.mxu0 %v14052_v42  ;;  %v14060_v2 = vpack.c.bf16 %v20664_v36, %v20662_v43  ;;  %v13878_v61 = vpack.c.bf16 %v20682_v1, %v20681_v34  ;;  %v20687_v50 = vld [vmem:[#allocation101_spill] sm:$0xff]  ;;  %v13882_v46 = vpack.c.bf16 %v20690_v27, %v20689_v0  ;;  %v20708_v43 = vld [vmem:[#allocation50_spill] sm:$0xff]  ;;  %v20710_v6 = vld [vmem:[#allocation36_spill] sm:$0xff]  ;;  %v20719_v0 = vmov 0.0  }
 0x6ff   :  { %6470 = vmatprep.mubr.f32.mxu1 %v20655_v4  ;;  %13863 = vmatpush3.bf16.msra.mxu1 %v13862_v5  ;;  %v13868_v28 = vpack.c.bf16 %v20659_v40, %v20658_v7  ;;  %v14064_v55 = vpack.c.bf16 %v20672_v29, %v20670_v33  ;;  %v20688_v41 = vand.u32 4294901760, %v20687_v50  ;;  %v20698_v4 = vld [vmem:[#allocation48_spill] sm:$0xff]  ;;  %v20702_v7 = vld [vmem:[#allocation31_spill] sm:$0xff]  ;;  %v20704_v40 = vld [vmem:[#allocation45_spill] sm:$0xff] }
 0x700   :  { %13865 = vmatprep.subr.bf16.mxu1 %v13864_v3  ;;  %v20686_v3 = vand.u32 4294901760, %v20685_v8  ;;  %v20711_v36 = vld [vmem:[#allocation30_spill] sm:$0xff]  ;;  %v20713_v31 = vld [vmem:[#allocation44_spill] sm:$0xff] }
 0x701   :  { %14055 = vmatpush3.bf16.msra.mxu0 %v14052_v42  ;;  %v20677_v42 = vld [vmem:[#allocation97_spill] sm:$0xff]  ;;  %v20714_v11 = vld [vmem:[#allocation40_spill] sm:$0xff] }
 0x702   :  { %6474 = vmatmul.mubr.f32.gmra.mrb[114].mxu1 %v20660_v19  ;;  %14057 = vmatprep.subr.bf16.mxu0 %v14056_v25  ;;  %v20678_v35 = vand.u32 4294901760, %v20677_v42  ;;  %v14072_v53 = vpack.c.bf16 %v20688_v41, %v20686_v3  ;;  %v20706_v19 = vld [vmem:[#allocation110_spill] sm:$0xff] }
 0x703   :  { %13867 = vmatpush3.bf16.msra.mxu1 %v13866_v59  ;;  %6640 = vmatprep.mubr.f32.mxu1 %v18553_v21  ;;  %v20701_v59 = vld [vmem:[#allocation109_spill] sm:$0xff] }
 0x704   :  { %13869 = vmatprep.subr.bf16.mxu1 %v13868_v28  ;;  %v14068_v5 = vpack.c.bf16 %v20680_v20, %v20678_v35  ;;  %v20705_v28 = vld [vmem:[#allocation34_spill] sm:$0xff] }
 0x705   :  { %14059 = vmatpush3.bf16.msra.mxu0 %v14056_v25  ;;  %v20697_v25 = vld [vmem:[#allocation29_spill] sm:$0xff] }
 0x706   :  { %14061 = vmatprep.subr.bf16.mxu0 %v14060_v2 }
 0x707   :  { %13871 = vmatpush3.bf16.msra.mxu1 %v13870_v37  ;;  %v20715_v37 = vld [vmem:[#allocation43_spill] sm:$0xff] }
 0x708   :  { %13873 = vmatprep.subr.bf16.mxu1 %v13872_v51 }
 0x709   :  { %14063 = vmatpush3.bf16.msra.mxu0 %v14060_v2  ;;  %v20712_v2 = vld [vmem:[#allocation32_spill] sm:$0xff] }
 0x70a   :  { %14065 = vmatprep.subr.bf16.mxu0 %v14064_v55 }
 0x70b   :  { %13875 = vmatpush3.bf16.msra.mxu1 %v13874_v16 }
 0x70c   :  { %13877 = vmatprep.subr.bf16.mxu1 %v13876_v12 }
 0x70d   :  { %14067 = vmatpush3.bf16.msra.mxu0 %v14064_v55 }
 0x70e   :  { %14069 = vmatprep.subr.bf16.mxu0 %v14068_v5 }
 0x70f   :  { %13879 = vmatpush3.bf16.msra.mxu1 %v13878_v61 }
 0x710   :  { %13881 = vmatprep.subr.bf16.mxu1 %v13880_v17 }
 0x711   :  { %14071 = vmatpush3.bf16.msra.mxu0 %v14068_v5 }
 0x712   :  { %14073 = vmatprep.subr.bf16.mxu0 %v14072_v53 }
 0x713   :  { %13883 = vmatpush3.bf16.msra.mxu1 %v13882_v46 }
 0x714   :  { %13885 = vmatprep.subr.bf16.mxu1 %v20590_v52  ;;  %v20696_v52 = vld [vmem:[#allocation57_spill] sm:$0xff] }
 0x715   :  { %14075 = vmatpush3.bf16.msra.mxu0 %v14072_v53 }
 0x716   :  { %6642 = vmatmul.mubr.f32.vlgmr.msra.gmra.mrb[116].mxu1 %v18600_v49  ;;  %14077 = vmatprep.subr.bf16.mxu0 %v20591_v48 }
 0x717   :  { %6647 = vmatprep.mubr.f32.mxu1 %v18555_v54  ;;  %13887 = vmatpush3.bf16.msra.mxu1 %v20691_v39 }
 0x718   :  { %12097 = vmatmul.mubr.f32.vlgmr.msra.gmra.mrb[40].mxu0 %v20692_v58  ;;  %13889 = vmatprep.subr.bf16.mxu1 %v20693_v10 }
 0x719   :  { %12099 = vmatprep.mubr.f32.mxu0 %v20694_v24  ;;  %14079 = vmatpush3.bf16.msra.mxu0 %v20591_v48  ;;  %v20703_v48 = vld [vmem:[#allocation106_spill] sm:$0xff] }
 0x71a   :  { %6649 = vmatmul.mubr.f32.gmra.mrb[118].mxu1 %v20695_v45  ;;  %14081 = vmatprep.subr.bf16.mxu0 %v20696_v52 }
 0x71b   :  { %6654 = vmatprep.mubr.f32.mxu1 %v20697_v25  ;;  %13891 = vmatpush3.bf16.msra.mxu1 %v20698_v4 }
 0x71c   :  { %12100 = vmatmul.mubr.f32.gmra.mrb[42].mxu0 %v20699_v22  ;;  %13893 = vmatprep.subr.bf16.mxu1 %v20700_v23 }
 0x71d   :  { %14083 = vmatpush3.bf16.msra.mxu0 %v20696_v52  ;;  %12134 = vmatprep.mubr.f32.mxu0 %v18562_v44  ;;  %v20709_v44 = vld [vmem:[#allocation28_spill] sm:$0xff] }
 0x71e   :  { %6656 = vmatmul.mubr.f32.gmra.mrb[120].mxu1 %v20701_v59  ;;  %14085 = vmatprep.subr.bf16.mxu0 %v20702_v7 }
 0x71f   :  { %6661 = vmatprep.mubr.f32.mxu1 %v20703_v48  ;;  %13895 = vmatpush3.bf16.msra.mxu1 %v20704_v40 }
 0x720   :  { %13897 = vmatprep.subr.bf16.mxu1 %v20705_v28 }
 0x721   :  { %14087 = vmatpush3.bf16.msra.mxu0 %v20702_v7 }
 0x722   :  { %6663 = vmatmul.mubr.f32.gmra.mrb[122].mxu1 %v20706_v19  ;;  %14089 = vmatprep.subr.bf16.mxu0 %v20707_v47 }
 0x723   :  { %13899 = vmatpush3.bf16.msra.mxu1 %v20708_v43  ;;  %6765 = vmatprep.mubr.f32.mxu1 %v18553_v21  ;;  %v20716_v21 = vld [vmem:[#allocation62_spill] sm:$0xff] }
 0x724   :  { %13901 = vmatprep.subr.bf16.mxu1 %v20709_v44 }
 0x725   :  { %14091 = vmatpush3.bf16.msra.mxu0 %v20707_v47 }
 0x726   :  { %14093 = vmatprep.subr.bf16.mxu0 %v20710_v6 }
 0x727   :  { %13903 = vmatpush3.bf16.msra.mxu1 %v20711_v36 }
 0x728   :  { %13905 = vmatprep.subr.bf16.mxu1 %v20712_v2 }
 0x729   :  { %14095 = vmatpush3.bf16.msra.mxu0 %v20710_v6 }
 0x72a   :  { %14097 = vmatprep.subr.bf16.mxu0 %v20713_v31 }
 0x72b   :  { %13907 = vmatpush3.bf16.msra.mxu1 %v20714_v11 }
 0x72c   :  { %13909 = vmatprep.subr.bf16.mxu1 %v20715_v37 }
 0x72d   :  { %14099 = vmatpush3.bf16.msra.mxu0 %v20713_v31 }
 0x72e   :  { %14101 = vmatprep.subr.bf16.mxu0 %v20614_v15 }
 0x72f   :  { %13911 = vmatpush3.bf16.msra.mxu1 %v20716_v21 }
 0x730   :  { %13913 = vmatprep.subr.bf16.mxu1 %v20717_v56 }
 0x731   :  { %14103 = vmatpush3.bf16.msra.mxu0 %v20614_v15 }
 0x732   :  { %14105 = vmatprep.subr.bf16.mxu0 %v20619_v14 }
 0x733   :  { %13915 = vmatpush3.bf16.msra.mxu1 %v20624_v18 }
 0x734   :  { %14111 = vmatprep.subr.bf16.mxu1 %v20718_v32 }
 0x735   :  { %14107 = vmatpush3.bf16.msra.mxu0 %v20619_v14 }
 0x736   :  { %6767 = vmatmul.mubr.f32.vlgmr.msra.gmra.mrb[124].mxu1 %v18600_v49  ;;  %14108 = vmatprep.subr.bf16.mxu0 %v20718_v32 }
 0x737   :  { %6772 = vmatprep.mubr.f32.mxu1 %v18555_v54 }
 0x738   :  { %12135 = vmatmul.mubr.f32.vlgmr.msra.gmra.mrb[40].mxu0 %v20692_v58 }
 0x739   :  { %12137 = vmatprep.mubr.f32.mxu0 %v20694_v24 }
 0x73a   :  { %6774 = vmatmul.mubr.f32.gmra.mrb[126].mxu1 %v20695_v45 }
 0x73b   :  { %6779 = vmatprep.mubr.f32.mxu1 %v20697_v25 }
 0x73c   :  { %12138 = vmatmul.mubr.f32.gmra.mrb[42].mxu0 %v20699_v22 }
 0x73d   :  { %12144 = vmatprep.mubr.msk.f32.mxu0 %vm14798_vm6, %v20719_v0 }
 0x73e   :  { %6781 = vmatmul.mubr.f32.gmra.mrb[128].mxu1 %v20701_v59 }
 0x73f   :  { %6786 = vmatprep.mubr.f32.mxu1 %v20703_v48 }
 0x742   :  { %6788 = vmatmul.mubr.f32.gmra.mrb[130].mxu1 %v20706_v19 }
 0x743   :  { %12151 = vmatprep.mubr.msk.f32.mxu1 %vm14798_vm6, %v20719_v0 }
 0x769   :  { %v10732_v49 = vpop.f32.mrb[84].mxu1 }
 0x76a   :  { %v10733_v18 = vpop.f32.mrb[85].mxu1 }
 0x76b   :  { %v10734_v14 = vadd.f32 %v10733_v18, %v10732_v49 }
 0x76d   :  { %v10735_v54 = vpop.f32.mrb[86].mxu1  ;;  %v5872_v9 = vadd.f32 %v10734_v14, %v9859_v63 }
 0x76e   :  { %v10736_v15 = vpop.f32.mrb[87].mxu1 }
 0x76f   :  { %v10737_v51 = vadd.f32 %v10736_v15, %v10735_v54 }
 0x771   :  { %v10738_v13 = vpop.f32.mrb[88].mxu1  ;;  %v5887_v20 = vadd.f32 %v10737_v51, %v9859_v63 }
 0x772   :  { %v10739_v33 = vpop.f32.mrb[89].mxu1 }
 0x773   :  { %v10740_v57 = vadd.f32 %v10739_v33, %v10738_v13 }
 0x775   :  { %v10741_v29 = vpop.f32.mrb[90].mxu1  ;;  %v5902_v30 = vadd.f32 %v10740_v57, %v9859_v63 }
 0x776   :  { %v10742_v55 = vpop.f32.mrb[91].mxu1 }
 0x777   :  { %v10743_v26 = vadd.f32 %v10742_v55, %v10741_v29 }
 0x779   :  { %v5917_v50 = vadd.f32 %v10743_v26, %v9859_v63 }
 0x789   :  { %v10776_v16 = vpop.f32.mrb[92].mxu1 }
 0x78a   :  { %v10777_v38 = vpop.f32.mrb[93].mxu1 }
 0x78b   :  { %v10778_v12 = vadd.f32 %v10777_v38, %v10776_v16 }
 0x78d   :  { %v6149_v42 = vadd.f32 %v10778_v12, %v5872_v9  ;;  %v10779_v35 = vpop.f32.mrb[94].mxu1 }
 0x78e   :  { %v10780_v60 = vpop.f32.mrb[95].mxu1 }
 0x78f   :  { %v10781_v5 = vadd.f32 %v10780_v60, %v10779_v35  ;;  %v7575_v60 = vld [vmem:[%s19566_s7] sm:$0xff] }
 0x791   :  { %v6156_v34 = vadd.f32 %v10781_v5, %v5887_v20  ;;  %v10782_v1 = vpop.f32.mrb[96].mxu1  ;;  %v7578_v5 = vsel %vm7576_vm7, %v7575_v60, 0 }
 0x792   :  { %v10783_v61 = vpop.f32.mrb[97].mxu1 }
 0x793   :  { %v10784_v62 = vadd.f32 %v10783_v61, %v10782_v1 }
 0x795   :  { %v6163_v17 = vadd.f32 %v10784_v62, %v5902_v30  ;;  %v10785_v8 = vpop.f32.mrb[98].mxu1  ;;  %v19009_v62 = vand.u32 4294901760, %v7578_v5 }
 0x796   :  { %v10786_v3 = vpop.f32.mrb[99].mxu1 }
 0x797   :  { %v10787_v41 = vadd.f32 %v10786_v3, %v10785_v8 }
 0x799   :  { %v6170_v53 = vadd.f32 %v10787_v41, %v5917_v50 }
 0x7a9   :  { %v10820_v27 = vpop.f32.mrb[100].mxu1 }
 0x7aa   :  { %v10821_v46 = vpop.f32.mrb[101].mxu1 }
 0x7ab   :  { %v10822_v39 = vadd.f32 %v10821_v46, %v10820_v27  ;;  %v19012_v46 = vsub.f32 %v7578_v5, %v19009_v62 }
 0x7ad   :  { %v6308_v58 = vadd.f32 %v10822_v39, %v6149_v42  ;;  %v10823_v10 = vpop.f32.mrb[102].mxu1 }
 0x7ae   :  { %v10824_v24 = vpop.f32.mrb[103].mxu1 }
 0x7af   :  { %v10825_v45 = vadd.f32 %v10824_v24, %v10823_v10 }
 0x7b1   :  { %v6317_v52 = vadd.f32 %v10825_v45, %v6156_v34  ;;  %v10826_v25 = vpop.f32.mrb[104].mxu1  ;;  %v20720_v45 = vld [vmem:[#allocation58_spill] sm:$0xff] }
 0x7b2   :  { %v10827_v4 = vpop.f32.mrb[105].mxu1 }
 0x7b3   :  { %v10828_v22 = vadd.f32 %v10827_v4, %v10826_v25 }
 0x7b5   :  { %v6326_v23 = vadd.f32 %v10828_v22, %v6163_v17  ;;  %v10829_v59 = vpop.f32.mrb[106].mxu1  ;;  %v19016_v22 = vand.u32 4294901760, %v19012_v46 }
 0x7b6   :  { %v10830_v7 = vpop.f32.mrb[107].mxu1 }
 0x7b7   :  { %v10831_v48 = vadd.f32 %v10830_v7, %v10829_v59 }
 0x7b9   :  { %v6335_v40 = vadd.f32 %v10831_v48, %v6170_v53 }
 0x7c9   :  { %v10864_v28 = vpop.f32.mrb[108].mxu1 }
 0x7ca   :  { %v10865_v19 = vpop.f32.mrb[109].mxu1 }
 0x7cb   :  { %v10866_v47 = vadd.f32 %v10865_v19, %v10864_v28  ;;  %v20721_v19 = vld [vmem:[#allocation59_spill] sm:$0xff] }
 0x7cd   :  { %v6443_v43 = vadd.f32 %v10866_v47, %v6308_v58  ;;  %v10867_v44 = vpop.f32.mrb[110].mxu1 }
 0x7ce   :  { %v10868_v6 = vpop.f32.mrb[111].mxu1 }
 0x7cf   :  { %v10869_v36 = vadd.f32 %v10868_v6, %v10867_v44  ;;  %v7650_v6 = vsub.f32 %v19012_v46, %v19016_v22 }
 0x7d1   :  { %v6454_v2 = vadd.f32 %v10869_v36, %v6317_v52  ;;  %v10870_v31 = vpop.f32.mrb[112].mxu1 }
 0x7d2   :  { %v10871_v11 = vpop.f32.mrb[113].mxu1 }
 0x7d3   :  { %v10872_v37 = vadd.f32 %v10871_v11, %v10870_v31 }
 0x7d5   :  { %v6465_v21 = vadd.f32 %v10872_v37, %v6326_v23  ;;  %v10873_v56 = vpop.f32.mrb[114].mxu1  ;;  %v20722_v37 = vld [vmem:[#allocation39_spill] sm:$0xff] }
 0x7d6   :  { %v10874_v49 = vpop.f32.mrb[115].mxu1 }
 0x7d7   :  { %v10875_v18 = vadd.f32 %v10874_v49, %v10873_v56 }
 0x7d9   :  { %v6476_v14 = vadd.f32 %v10875_v18, %v6335_v40 }
 0x7e9   :  { %v10908_v54 = vpop.f32.mrb[116].mxu1 }
 0x7ea   :  { %v10909_v15 = vpop.f32.mrb[117].mxu1 }
 0x7eb   :  { %v10910_v51 = vadd.f32 %v10909_v15, %v10908_v54 }
 0x7ed   :  { %v6644_v13 = vadd.f32 %v10910_v51, %v6443_v43  ;;  %v10911_v33 = vpop.f32.mrb[118].mxu1 }
 0x7ee   :  { %v10912_v57 = vpop.f32.mrb[119].mxu1 }
 0x7ef   :  { %v10913_v29 = vadd.f32 %v10912_v57, %v10911_v33  ;;  %v20723_v57 = vld [vmem:[#allocation38_spill] sm:$0xff] }
 0x7f1   :  { %v6651_v55 = vadd.f32 %v10913_v29, %v6454_v2  ;;  %v10914_v26 = vpop.f32.mrb[120].mxu1 }
 0x7f2   :  { %v10915_v63 = vpop.f32.mrb[121].mxu1 }
 0x7f3   :  { %v10916_v16 = vadd.f32 %v10915_v63, %v10914_v26 }
 0x7f5   :  { %v6658_v38 = vadd.f32 %v10916_v16, %v6465_v21  ;;  %v10917_v9 = vpop.f32.mrb[122].mxu1 }
 0x7f6   :  { %v10918_v12 = vpop.f32.mrb[123].mxu1 }
 0x7f7   :  { %v10919_v42 = vadd.f32 %v10918_v12, %v10917_v9 }
 0x7f9   :  { %v6665_v35 = vadd.f32 %v10919_v42, %v6476_v14  ;;  %v7651_v14 = vand.u32 4294901760, %v7650_v6 }
 0x809   :  { %v10952_v20 = vpop.f32.mrb[124].mxu1 }
 0x80a   :  { %v10953_v34 = vpop.f32.mrb[125].mxu1 }
 0x80b   :  { %v10954_v1 = vadd.f32 %v10953_v34, %v10952_v20  ;;  %v12136_v61 = vpop.f32.mrb[40].mxu0 }
 0x80c   :  { %v7541_v30 = vpop.f32.mrb[41].mxu0 }
 0x80d   :  { %v6769_v17 = vadd.f32 %v10954_v1, %v6644_v13  ;;  %v10955_v8 = vpop.f32.mrb[126].mxu1 }
 0x80e   :  { %v10956_v3 = vpop.f32.mrb[127].mxu1 }
 0x80f   :  { %v14453_v50 = vadd.f32 %v7541_v30, %v6769_v17  ;;  %v10957_v41 = vadd.f32 %v10956_v3, %v10955_v8  ;;  %v12139_v53 = vpop.f32.mrb[42].mxu0  ;;  %v8039_v3 = vld [vmem:[%s19567_s8] sm:$0xff] }
 0x810   :  { %v7553_v27 = vpop.f32.mrb[43].mxu0 }
 0x811   :  { %v7563_v39 = vmax.f32 %v14453_v50, 0.0  ;;  %v6776_v58 = vadd.f32 %v10957_v41, %v6651_v55  ;;  %v10958_v10 = vpop.f32.mrb[128].mxu1  ;;  %v8040_v50 = vld [vmem:[%s19567_s8 + $0x8] sm:$0xff]  ;;  %v8041_v41 = vld [vmem:[%s19567_s8 + $0x10] sm:$0xff] }
 0x812   :  { %v10959_v24 = vpop.f32.mrb[129].mxu1 }
 0x813   :  { %v7567_v52 = vadd.f32 %v7563_v39, %v20720_v45  ;;  %v14452_v25 = vadd.f32 %v12136_v61, %v6776_v58  ;;  %v10960_v4 = vadd.f32 %v10959_v24, %v10958_v10  ;;  %v8043_v39 = vld [vmem:[%s19567_s8 + $0x20] sm:$0xff]  ;;  %v8044_v58 = vld [vmem:[%s19567_s8 + $0x28] sm:$0xff] }
 0x814   :  { %v8068_v24 = vand.u32 4294901760, %v8043_v39  ;;  %v8071_v45 = vand.u32 4294901760, %v8044_v58 }
 0x815   :  { %7571 = vst [vmem:[#allocation14] sm:$0xff] %v7567_v52  ;;  %v7581_v23 = vand.u32 4294901760, %v7567_v52  ;;  %v7564_v59 = vmax.f32 %v14452_v25, 0.0  ;;  %v6783_v7 = vadd.f32 %v10960_v4, %v6658_v38  ;;  %v10961_v48 = vpop.f32.mrb[130].mxu1  ;;  %v8046_v25 = vld [vmem:[%s19567_s8 + $0x38] sm:$0xff]  ;;  %v8047_v4 = vld [vmem:[%s19567_s8 + $0x40] sm:$0xff] }
 0x816   :  { %v10962_v40 = vpop.f32.mrb[131].mxu1  ;;  %v8080_v6 = vand.u32 4294901760, %v8047_v4 }
 0x817   :  { %v7659_v28 = vsub.f32 %v7567_v52, %v7581_v23  ;;  %v7568_v47 = vadd.f32 %v7564_v59, %v20721_v19  ;;  %v14455_v43 = vadd.f32 %v7553_v27, %v6783_v7  ;;  %v10963_v44 = vadd.f32 %v10962_v40, %v10961_v48  ;;  %v8045_v52 = vld [vmem:[%s19567_s8 + $0x30] sm:$0xff]  ;;  %v8048_v48 = vld [vmem:[%s19567_s8 + $0x48] sm:$0xff] }
 0x818   :  { %v8059_v27 = vand.u32 4294901760, %v8040_v50  ;;  %v19111_v19 = vsub.f32 %v8043_v39, %v8068_v24 }
 0x819   :  { %7572 = vst [vmem:[#allocation14 + $0x8] sm:$0xff] %v7568_v47  ;;  %v7565_v36 = vmax.f32 %v14455_v43, 0.0  ;;  %v6790_v2 = vadd.f32 %v10963_v44, %v6665_v35  ;;  %v7584_v31 = vand.u32 4294901760, %v7568_v47  ;;  %v7660_v11 = vand.u32 4294901760, %v7659_v28 }
 0x81a   :  { %v19100_v59 = vsub.f32 %v8040_v50, %v8059_v27  ;;  %v8074_v43 = vand.u32 4294901760, %v8045_v52  ;;  %v8077_v44 = vand.u32 4294901760, %v8046_v25 }
 0x81b   :  { %v7569_v21 = vadd.f32 %v7565_v36, %v20722_v37  ;;  %v14454_v56 = vadd.f32 %v12139_v53, %v6790_v2  ;;  %v14109_v49 = vpack.c.bf16 %v7584_v31, %v7581_v23  ;;  %v7666_v18 = vsub.f32 %v7568_v47, %v7584_v31 }
 0x81c   :  { %v7661_v54 = vsub.f32 %v7659_v28, %v7660_v11  ;;  %v8056_v53 = vand.u32 4294901760, %v8039_v3  ;;  %v19115_v47 = vsub.f32 %v8044_v58, %v8071_v45  ;;  %v8083_v36 = vand.u32 4294901760, %v8048_v48 }
 0x81d   :  { %7573 = vst [vmem:[#allocation14 + $0x10] sm:$0xff] %v7569_v21  ;;  %v7566_v15 = vmax.f32 %v14454_v56, 0.0  ;;  %14110 = vmatpush3.bf16.msra.mxu0 %v14109_v49  ;;  %v7667_v51 = vand.u32 4294901760, %v7666_v18  ;;  %v8702_v13 = vand.u32 4294901760, %v7569_v21  ;;  %v14115_v33 = vpack.c.bf16 %v7666_v18, %v7659_v28 }
 0x81e   :  { %14270 = vmatprep.subr.bf16.mxu0 %v20718_v32  ;;  %v7662_v16 = vand.u32 4294901760, %v7661_v54  ;;  %v19098_v23 = vsub.f32 %v8039_v3, %v8056_v53  ;;  %v19119_v2 = vsub.f32 %v8045_v52, %v8074_v43  ;;  %v19121_v31 = vsub.f32 %v8046_v25, %v8077_v44 }
 0x81f   :  { %v7570_v29 = vadd.f32 %v7566_v15, %v20723_v57  ;;  %v7668_v55 = vsub.f32 %v7666_v18, %v7667_v51  ;;  %v8780_v26 = vsub.f32 %v7569_v21, %v8702_v13  ;;  %v14121_v63 = vpack.c.bf16 %v7667_v51, %v7660_v11  ;;  %v8049_v18 = vld [vmem:[%s19567_s8 + $0x50] sm:$0xff] }
 0x820   :  { %12145 = vmatmul.mubr.f32.vlgmr.msra.gmra.mrb[44].mxu0 %v7651_v14  ;;  %v19123_v11 = vsub.f32 %v8047_v4, %v8080_v6  ;;  %v19125_v37 = vsub.f32 %v8048_v48, %v8083_v36  ;;  %v19128_v21 = vpack.c.bf16 %v8071_v45, %v8068_v24  ;;  %v19134_v56 = vpack.c.bf16 %v8077_v44, %v8074_v43 }
 0x821   :  { %7574 = vst [vmem:[#allocation14 + $0x18] sm:$0xff] %v7570_v29  ;;  %v7669_v38 = vand.u32 4294901760, %v7668_v55  ;;  %v8705_v9 = vand.u32 4294901760, %v7570_v29  ;;  %12396 = vmatprep.mubr.msk.f32.mxu0 %vm14798_vm6, %v20719_v0  ;;  %v8781_v12 = vand.u32 4294901760, %v8780_v26  ;;  %v8086_v54 = vand.u32 4294901760, %v8049_v18 }
 0x822   :  { %v8191_v4 = vand.u32 4294901760, %v19119_v2  ;;  %v8198_v48 = vand.u32 4294901760, %v19121_v31 }
 0x823   :  { %v14112_v42 = vpack.c.bf16 %v7669_v38, %v7662_v16  ;;  %v14271_v35 = vpack.c.bf16 %v8705_v9, %v8702_v13  ;;  %v8787_v60 = vsub.f32 %v7570_v29, %v8705_v9  ;;  %v8782_v20 = vsub.f32 %v8780_v26, %v8781_v12  ;;  %v8051_v13 = vld [vmem:[%s19567_s8 + $0x60] sm:$0xff] }
 0x824   :  { %v8092_v57 = vand.u32 4294901760, %v8051_v13  ;;  %v8149_v9 = vand.u32 4294901760, %v19098_v23  ;;  %v8192_v44 = vsub.f32 %v19119_v2, %v8191_v4 }
 0x825   :  { %14113 = vmatpush3.bf16.msra.mxu1 %v14112_v42  ;;  %14272 = vmatpush3.bf16.msra.mxu0 %v14271_v35  ;;  %v8788_v5 = vand.u32 4294901760, %v8787_v60  ;;  %v14277_v34 = vpack.c.bf16 %v8787_v60, %v8780_v26  ;;  %v8783_v30 = vand.u32 4294901760, %v8782_v20  ;;  %v8053_v26 = vld [vmem:[%s19567_s8 + $0x70] sm:$0xff]  ;;  %v19179_v42 = vsub.f32 %v8049_v18, %v8086_v54 }
 0x826   :  { %14114 = vmatprep.subr.bf16.mxu1 %v20718_v32  ;;  %14273 = vmatprep.subr.bf16.mxu0 %v20718_v32  ;;  %v8098_v16 = vand.u32 4294901760, %v8053_v26 }
 0x827   :  { %v8789_v1 = vsub.f32 %v8787_v60, %v8788_v5  ;;  %v14283_v61 = vpack.c.bf16 %v8788_v5, %v8781_v12  ;;  %v8156_v12 = vand.u32 4294901760, %v19100_v59  ;;  %v19183_v60 = vsub.f32 %v8051_v13, %v8092_v57 }
 0x828   :  { %12152 = vmatmul.mubr.f32.vlgmr.msra.gmra.mrb[132].mxu1 %v19009_v62  ;;  %12397 = vmatmul.mubr.f32.vlgmr.msra.gmra.mrb[46].mxu0 %v7651_v14  ;;  %v8050_v14 = vld [vmem:[%s19567_s8 + $0x58] sm:$0xff]  ;;  %v19213_v39 = vsub.f32 %v8053_v26, %v8098_v16  ;;  %v20052_v26 = vand.u32 4294901760, %v19179_v42 }
 0x829   :  { %14116 = vmatpush3.bf16.msra.mxu1 %v14115_v33  ;;  %v8790_v17 = vand.u32 4294901760, %v8789_v1  ;;  %12158 = vmatprep.mubr.msk.f32.mxu1 %vm14798_vm6, %v20719_v0  ;;  %v8089_v15 = vand.u32 4294901760, %v8050_v14  ;;  %v8052_v33 = vld [vmem:[%s19567_s8 + $0x68] sm:$0xff]  ;;  %v8157_v1 = vsub.f32 %v19100_v59, %v8156_v12 }
 0x82a   :  { %14117 = vmatprep.subr.bf16.mxu1 %v20718_v32  ;;  %12403 = vmatprep.mubr.msk.f32.mxu0 %vm14798_vm6, %v20719_v0  ;;  %v8095_v29 = vand.u32 4294901760, %v8052_v33 }
 0x82b   :  { %v14274_v8 = vpack.c.bf16 %v8790_v17, %v8783_v30  ;;  %v19155_v51 = vpack.c.bf16 %v8089_v15, %v8086_v54  ;;  %v8158_v30 = vand.u32 4294901760, %v8157_v1  ;;  %v8212_v54 = vand.u32 4294901760, %v19125_v37 }
 0x82c   :  { %v19167_v55 = vpack.c.bf16 %v8095_v29, %v8092_v57  ;;  %v19185_v20 = vsub.f32 %v8052_v33, %v8095_v29 }
 0x82d   :  { %14275 = vmatpush3.bf16.msra.mxu0 %v14274_v8  ;;  %v8213_v33 = vsub.f32 %v19125_v37, %v8212_v54 }
 0x82e   :  { %14276 = vmatprep.subr.bf16.mxu0 %v20718_v32 }
 0x82f   :  { %v8214_v29 = vand.u32 4294901760, %v8213_v33 }
 0x830   :  { %12159 = vmatmul.mubr.f32.vlgmr.msra.gmra.mrb[132].mxu1 %v19012_v46  ;;  %12404 = vmatmul.mubr.f32.vlgmr.msra.gmra.mrb[46].mxu0 %v19009_v62 }
 0x831   :  { %14119 = vmatpush3.bf16.msra.mxu1 %v14109_v49  ;;  %14278 = vmatpush3.bf16.msra.mxu0 %v14277_v34  ;;  %v8150_v34 = vsub.f32 %v19098_v23, %v8149_v9 }
 0x832   :  { %12165 = vmatprep.mubr.msk.f32.mxu1 %vm14798_vm6, %v20719_v0  ;;  %14120 = vmatprep.subr.bf16.mxu1 %v20718_v32 }
 0x833   :  { %12410 = vmatprep.mubr.msk.f32.mxu0 %vm14798_vm6, %v20719_v0  ;;  %14279 = vmatprep.subr.bf16.mxu0 %v20718_v32 }
 0x838   :  { %12166 = vmatmul.mubr.f32.vlgmr.msra.gmra.mrb[132].mxu1 %v19016_v22  ;;  %12411 = vmatmul.mubr.f32.vlgmr.msra.gmra.mrb[46].mxu0 %v19012_v46  ;;  %v8062_v46 = vand.u32 4294901760, %v8041_v41 }
 0x839   :  { %14122 = vmatpush3.bf16.msra.mxu1 %v14121_v63  ;;  %14281 = vmatpush3.bf16.msra.mxu0 %v14271_v35  ;;  %v8054_v63 = vld [vmem:[%s19567_s8 + $0x78] sm:$0xff] }
 0x83a   :  { %12172 = vmatprep.mubr.msk.f32.mxu1 %vm14798_vm6, %v20719_v0  ;;  %14123 = vmatprep.subr.bf16.mxu1 %v20718_v32  ;;  %v19102_v7 = vsub.f32 %v8041_v41, %v8062_v46  ;;  %v8101_v38 = vand.u32 4294901760, %v8054_v63 }
 0x83b   :  { %12417 = vmatprep.mubr.msk.f32.mxu0 %vm14798_vm6, %v20719_v0  ;;  %14282 = vmatprep.subr.bf16.mxu0 %v20718_v32 }
 0x83c   :  { %v19188_v5 = vpack.c.bf16 %v8101_v38, %v8098_v16  ;;  %v8163_v17 = vand.u32 4294901760, %v19102_v7  ;;  %v19215_v58 = vsub.f32 %v8054_v63, %v8101_v38  ;;  %v8220_v38 = vsub.f32 %v19179_v42, %v20052_v26 }
 0x83e   :  { %v8164_v50 = vsub.f32 %v19102_v7, %v8163_v17  ;;  %v8221_v1 = vand.u32 4294901760, %v8220_v38  ;;  %v19285_v38 = vpack.c.bf16 %v19115_v47, %v19111_v19 }
 0x840   :  { %12173 = vmatmul.mubr.f32.vlgmr.msra.gmra.mrb[132].mxu1 %v19009_v62  ;;  %12418 = vmatmul.mubr.f32.vlgmr.msra.gmra.mrb[46].mxu0 %v19016_v22  ;;  %v19096_v22 = vpack.c.bf16 %v8059_v27, %v8056_v53  ;;  %v8165_v53 = vand.u32 4294901760, %v8164_v50  ;;  %v20049_v50 = vand.u32 4294901760, %v19185_v20 }
 0x841   :  { %14125 = vmatpush3.bf16.msra.mxu1 %v14109_v49  ;;  %14284 = vmatpush3.bf16.msra.mxu0 %v14283_v61  ;;  %v19140_v49 = vpack.c.bf16 %v8083_v36, %v8080_v6  ;;  %v8151_v61 = vand.u32 4294901760, %v8150_v34  ;;  %v8199_v6 = vsub.f32 %v19121_v31, %v8198_v48  ;;  %v8193_v36 = vand.u32 4294901760, %v8192_v44 }
 0x842   :  { %12179 = vmatprep.mubr.msk.f32.mxu1 %vm14798_vm6, %v20719_v0  ;;  %12424 = vmatprep.mubr.msk.f32.mxu0 %vm14798_vm6, %v20719_v0 }
 0x843   :  { %14285 = vmatprep.subr.bf16.mxu0 %v20718_v32  ;;  %14126 = vmatprep.subr.bf16.mxu1 %v20718_v32  ;;  %v19203_v3 = vpack.c.bf16 %v8158_v30, %v8151_v61  ;;  %v8200_v18 = vand.u32 4294901760, %v8199_v6  ;;  %v20050_v30 = vand.u32 4294901760, %v19183_v60 }
 0x848   :  { %12180 = vmatmul.mubr.f32.vlgmr.msra.gmra.mrb[132].mxu1 %v19009_v62  ;;  %12425 = vmatmul.mubr.f32.vlgmr.msra.gmra.mrb[46].mxu0 %v19009_v62 }
 0x849   :  { %14287 = vmatpush3.bf16.msra.mxu0 %v14271_v35  ;;  %12431 = vmatprep.mubr.msk.f32.mxu0 %vm14798_vm6, %v20719_v0  ;;  %v19181_v35 = vsub.f32 %v8050_v14, %v8089_v15  ;;  %v8205_v14 = vand.u32 4294901760, %v19123_v11  ;;  %v19237_v15 = vpack.c.bf16 %v8200_v18, %v8193_v36 }
 0x84a   :  { %14288 = vmatprep.subr.bf16.mxu0 %v20718_v32  ;;  %12214 = vmatprep.mubr.msk.f32.mxu1 %vm14798_vm6, %v20719_v0 }
 0x84b   :  { %14128 = vmatpush3.bf16.msra.mxu1 %v19096_v22  ;;  %v8206_v13 = vsub.f32 %v19123_v11, %v8205_v14  ;;  %v20051_v63 = vand.u32 4294901760, %v19181_v35 }
 0x84c   :  { %14129 = vmatprep.subr.bf16.mxu1 %v20718_v32 }
 0x84d   :  { %v8207_v57 = vand.u32 4294901760, %v8206_v13  ;;  %v8227_v34 = vsub.f32 %v19181_v35, %v20051_v63 }
 0x84f   :  { %v19247_v16 = vpack.c.bf16 %v8214_v29, %v8207_v57  ;;  %v8228_v61 = vand.u32 4294901760, %v8227_v34  ;;  %v19277_v57 = vpack.c.bf16 %v19100_v59, %v19098_v23  ;;  %v19289_v34 = vpack.c.bf16 %v19121_v31, %v19119_v2 }
 0x850   :  { %12432 = vmatmul.mubr.f32.vlgmr.msra.gmra.mrb[46].mxu0 %v19009_v62  ;;  %v8042_v62 = vld [vmem:[%s19567_s8 + $0x18] sm:$0xff]  ;;  %v14232_v59 = vpack.c.bf16 %v8198_v48, %v8191_v4  ;;  %v20726_v2 = vand.u32 4294901760, %v19183_v60  ;;  %v20727_v31 = vand.u32 4294901760, %v19185_v20  ;;  %s14799_s8 = smov [#allocation14]  }
 0x851   :  { %12466 = vmatprep.mubr.msk.f32.mxu0 %vm14798_vm6, %v20719_v0  ;;  %v8065_v10 = vand.u32 4294901760, %v8042_v62  ;;  %14290 = vmatpush3.bf16.msra.mxu0 %v19096_v22  ;;  %s9837_s3 = sshll.u32 %s14799_s8, 4  ;;  %s9838_s3 = int_to_ptr.vmem [resolvable:$true] %s9837_s3 }
 0x852   :  { %14291 = vmatprep.subr.bf16.mxu0 %v20718_v32  ;;  %s14734_s22 = scalar_lea.vmem %s9838_s3, 512  ;;  %p14739_p13 = scmp.lt.s32.totalorder %s9838_s3, %s9838_s3 }
 0x853   :  { %v19107_v40 = vpack.c.bf16 %v8065_v10, %v8062_v46  ;;  %v19109_v28 = vsub.f32 %v8042_v62, %v8065_v10  ;;  %v8177_v62 = vand.u32 4294901760, %v19111_v19  ;;  %v8184_v46 = vand.u32 4294901760, %v19115_v47  ;;  %p14735_p12 = scmp.ne.s32.totalorder %s9838_s3, %s14734_s22  ;;  %p14740_p0 = scmp.lt.s32.totalorder %s14734_s22, %s14734_s22 }
 0x855   :  { %14131 = vmatpush3.bf16.msra.mxu1 %v19107_v40  ;;  %14293 = vmatpush3.bf16.msra.mxu0 %v19107_v40  ;;  %v8170_v8 = vand.u32 4294901760, %v19109_v28  ;;  %v8178_v24 = vsub.f32 %v19111_v19, %v8177_v62  ;;  %v8185_v45 = vsub.f32 %v19115_v47, %v8184_v46  ;;  %v19281_v29 = vpack.c.bf16 %v19109_v28, %v19102_v7  ;;  %p14741_p1 = por %p14740_p0, %p14739_p13 }
 0x856   :  { %14132 = vmatprep.subr.bf16.mxu1 %v20718_v32  ;;  %14294 = vmatprep.subr.bf16.mxu0 %v20718_v32  ;;  %v14229_v23 = vpack.c.bf16 %v8184_v46, %v8177_v62  ;;  %v14235_v7 = vpack.c.bf16 %v8212_v54, %v8205_v14  ;;  %v20725_v19 = vand.u32 4294901760, %v19181_v35 }
 0x857   :  { %v8171_v41 = vsub.f32 %v19109_v28, %v8170_v8  ;;  %v8179_v52 = vand.u32 4294901760, %v8178_v24  ;;  %v8186_v25 = vand.u32 4294901760, %v8185_v45  ;;  %v20724_v28 = vand.u32 4294901760, %v19179_v42  ;;  %p14742_p2 = pnand %p14741_p1, %p14735_p12 }
 0x859   :  { %14134 = vmatpush3.bf16.msra.mxu1 %v19128_v21  ;;  %14296 = vmatpush3.bf16.msra.mxu0 %v19128_v21  ;;  %v8172_v27 = vand.u32 4294901760, %v8171_v41  ;;  %v19227_v43 = vpack.c.bf16 %v8186_v25, %v8179_v52  ;;  %v19257_v41 = vpack.c.bf16 %v8228_v61, %v8221_v1  ;;  %v20048_v52 = vand.u32 4294901760, %v19213_v39 }
 0x85a   :  { %14135 = vmatprep.subr.bf16.mxu1 %v20718_v32  ;;  %14297 = vmatprep.subr.bf16.mxu0 %v20718_v32  ;;  %v20047_v25 = vand.u32 4294901760, %v19215_v58  ;;  %v19293_v1 = vpack.c.bf16 %v19125_v37, %v19123_v11  ;;  %v19297_v61 = vpack.c.bf16 %v19181_v35, %v19179_v42  ;;  %v14238_v47 = vpack.c.bf16 %v20725_v19, %v20724_v28 }
 0x85b   :  { %v19217_v10 = vpack.c.bf16 %v8172_v27, %v8165_v53  ;;  %v8234_v53 = vsub.f32 %v19183_v60, %v20050_v30  ;;  %v8241_v27 = vsub.f32 %v19185_v20, %v20049_v50  ;;  %v8248_v6 = vsub.f32 %v19213_v39, %v20048_v52 }
 0x85c   :  { %v8255_v36 = vsub.f32 %v19215_v58, %v20047_v25  ;;  %v14241_v11 = vpack.c.bf16 %v20727_v31, %v20726_v2  ;;  %v20728_v37 = vand.u32 4294901760, %v19213_v39 }
 0x85d   :  { %14137 = vmatpush3.bf16.msra.mxu1 %v19134_v56  ;;  %14299 = vmatpush3.bf16.msra.mxu0 %v19134_v56  ;;  %v8235_v24 = vand.u32 4294901760, %v8234_v53  ;;  %v8242_v45 = vand.u32 4294901760, %v8241_v27  ;;  %v8249_v18 = vand.u32 4294901760, %v8248_v6  ;;  %v19301_v53 = vpack.c.bf16 %v19185_v20, %v19183_v60 }
 0x85e   :  { %14138 = vmatprep.subr.bf16.mxu1 %v20718_v32  ;;  %14300 = vmatprep.subr.bf16.mxu0 %v20718_v32  ;;  %v8256_v13 = vand.u32 4294901760, %v8255_v36  ;;  %v19305_v27 = vpack.c.bf16 %v19215_v58, %v19213_v39 }
 0x85f   :  { %v14169_v44 = vpack.c.bf16 %v8242_v45, %v8235_v24 }
 0x860   :  { %v19273_v33 = vpack.c.bf16 %v8256_v13, %v8249_v18 }
 0x861   :  { %14140 = vmatpush3.bf16.msra.mxu1 %v19140_v49  ;;  %14302 = vmatpush3.bf16.msra.mxu0 %v19140_v49 }
 0x862   :  { %14141 = vmatprep.subr.bf16.mxu1 %v20718_v32  ;;  %14303 = vmatprep.subr.bf16.mxu0 %v20718_v32 }
 0x865   :  { %14143 = vmatpush3.bf16.msra.mxu1 %v19155_v51  ;;  %14305 = vmatpush3.bf16.msra.mxu0 %v19155_v51 }
 0x866   :  { %14144 = vmatprep.subr.bf16.mxu1 %v20718_v32  ;;  %14306 = vmatprep.subr.bf16.mxu0 %v20718_v32 }
 0x869   :  { %14146 = vmatpush3.bf16.msra.mxu1 %v19167_v55  ;;  %14308 = vmatpush3.bf16.msra.mxu0 %v19167_v55 }
 0x86a   :  { %14147 = vmatprep.subr.bf16.mxu1 %v20718_v32  ;;  %14309 = vmatprep.subr.bf16.mxu0 %v20718_v32 }
 0x86d   :  { %14149 = vmatpush3.bf16.msra.mxu1 %v19188_v5  ;;  %14311 = vmatpush3.bf16.msra.mxu0 %v19188_v5 }
 0x86e   :  { %14150 = vmatprep.subr.bf16.mxu1 %v20718_v32  ;;  %14312 = vmatprep.subr.bf16.mxu0 %v20718_v32 }
 0x8f3   :  { %v7653_v24 = vpop.f32.mrb[44].mxu0 }
 0x8f4   :  { %v12146_v45 = vpop.f32.mrb[45].mxu0 }
 0x91b   :  { %v8035_v6 = vpop.f32.mrb[132].mxu1 }
 0x91c   :  { %v14456_v36 = vadd.f32 %v8035_v6, %v7653_v24  ;;  %v12181_v18 = vpop.f32.mrb[133].mxu1 }
 0x91e   :  { %v19307_v13 = vand.u32 4294901760, %v14456_v36 }
 0x920   :  { %v19310_v25 = vsub.f32 %v14456_v36, %v19307_v13 }
 0x922   :  { %v8138_v52 = vand.u32 4294901760, %v19310_v25 }
 0x923   :  { %v9156_v50 = vpop.f32.mrb[46].mxu0 }
 0x924   :  { %v8139_v30 = vsub.f32 %v19310_v25, %v8138_v52  ;;  %v19316_v63 = vand.u32 4294901760, %v9156_v50  ;;  %v12433_v26 = vpop.f32.mrb[47].mxu0 }
 0x926   :  { %v19319_v45 = vsub.f32 %v9156_v50, %v19316_v63  ;;  %v8140_v24 = vand.u32 4294901760, %v8139_v30 }
 0x928   :  { %v9259_v6 = vand.u32 4294901760, %v19319_v45  ;;  %12215 = vmatmul.mubr.f32.vlgmr.msra.gmra.mrb[134].mxu1 %v8140_v24 }
 0x929   :  { %14152 = vmatpush3.bf16.msra.mxu1 %v19203_v3  ;;  %12249 = vmatprep.mubr.msk.f32.mxu1 %vm14798_vm6, %v20719_v0 }
 0x92a   :  { %v9260_v36 = vsub.f32 %v19319_v45, %v9259_v6  ;;  %14153 = vmatprep.subr.bf16.mxu1 %v20718_v32 }
 0x92c   :  { %v9261_v18 = vand.u32 4294901760, %v9260_v36 }
 0x92d   :  { %14155 = vmatpush3.bf16.msra.mxu1 %v19217_v10 }
 0x92e   :  { %12467 = vmatmul.mubr.f32.vlgmr.msra.gmra.mrb[48].mxu0 %v9261_v18  ;;  %14156 = vmatprep.subr.bf16.mxu1 %v20718_v32 }
 0x92f   :  { %14314 = vmatpush3.bf16.msra.mxu0 %v19203_v3  ;;  %12501 = vmatprep.mubr.msk.f32.mxu0 %vm14798_vm6, %v20719_v0  ;;  %v14223_v3 = vpack.c.bf16 %v8156_v12, %v8149_v9  ;;  %v20729_v9 = vand.u32 4294901760, %v19215_v58 }
 0x930   :  { %14315 = vmatprep.subr.bf16.mxu0 %v20718_v32 }
 0x931   :  { %14158 = vmatpush3.bf16.msra.mxu1 %v19227_v43  ;;  %v14244_v12 = vpack.c.bf16 %v20729_v9, %v20728_v37 }
 0x932   :  { %14159 = vmatprep.subr.bf16.mxu1 %v20718_v32 }
 0x933   :  { %14317 = vmatpush3.bf16.msra.mxu0 %v19217_v10  ;;  %v14226_v10 = vpack.c.bf16 %v8170_v8, %v8163_v17 }
 0x934   :  { %14318 = vmatprep.subr.bf16.mxu0 %v20718_v32 }
 0x935   :  { %14161 = vmatpush3.bf16.msra.mxu1 %v19237_v15 }
 0x936   :  { %14162 = vmatprep.subr.bf16.mxu1 %v20718_v32 }
 0x937   :  { %14320 = vmatpush3.bf16.msra.mxu0 %v19227_v43 }
 0x938   :  { %14321 = vmatprep.subr.bf16.mxu0 %v20718_v32 }
 0x939   :  { %14164 = vmatpush3.bf16.msra.mxu1 %v19247_v16 }
 0x93a   :  { %14165 = vmatprep.subr.bf16.mxu1 %v20718_v32 }
 0x93b   :  { %14323 = vmatpush3.bf16.msra.mxu0 %v19237_v15 }
 0x93c   :  { %14324 = vmatprep.subr.bf16.mxu0 %v20718_v32 }
 0x93d   :  { %14167 = vmatpush3.bf16.msra.mxu1 %v19257_v41 }
 0x93e   :  { %14168 = vmatprep.subr.bf16.mxu1 %v20718_v32 }
 0x93f   :  { %14326 = vmatpush3.bf16.msra.mxu0 %v19247_v16 }
 0x940   :  { %14327 = vmatprep.subr.bf16.mxu0 %v20718_v32 }
 0x941   :  { %14170 = vmatpush3.bf16.msra.mxu1 %v14169_v44 }
 0x942   :  { %14171 = vmatprep.subr.bf16.mxu1 %v20718_v32 }
 0x943   :  { %14329 = vmatpush3.bf16.msra.mxu0 %v19257_v41 }
 0x944   :  { %14330 = vmatprep.subr.bf16.mxu0 %v20718_v32 }
 0x945   :  { %14173 = vmatpush3.bf16.msra.mxu1 %v19273_v33 }
 0x946   :  { %14174 = vmatprep.subr.bf16.mxu1 %v20718_v32 }
 0x947   :  { %14332 = vmatpush3.bf16.msra.mxu0 %v14169_v44 }
 0x948   :  { %12250 = vmatmul.mubr.f32.vlgmr.msra.gmra.mrb[134].mxu1 %v19307_v13  ;;  %14333 = vmatprep.subr.bf16.mxu0 %v20718_v32 }
 0x949   :  { %14176 = vmatpush3.bf16.msra.mxu1 %v19277_v57  ;;  %12284 = vmatprep.mubr.msk.f32.mxu1 %vm14798_vm6, %v20719_v0 }
 0x94a   :  { %14177 = vmatprep.subr.bf16.mxu1 %v20718_v32 }
 0x94b   :  { %14335 = vmatpush3.bf16.msra.mxu0 %v19273_v33 }
 0x94c   :  { %14336 = vmatprep.subr.bf16.mxu0 %v20718_v32 }
 0x94d   :  { %14179 = vmatpush3.bf16.msra.mxu1 %v19281_v29 }
 0x94e   :  { %12502 = vmatmul.mubr.f32.vlgmr.msra.gmra.mrb[48].mxu0 %v19316_v63  ;;  %14180 = vmatprep.subr.bf16.mxu1 %v20718_v32 }
 0x94f   :  { %14338 = vmatpush3.bf16.msra.mxu0 %v19277_v57  ;;  %12536 = vmatprep.mubr.msk.f32.mxu0 %vm14798_vm6, %v20719_v0 }
 0x950   :  { %14339 = vmatprep.subr.bf16.mxu0 %v20718_v32 }
 0x951   :  { %14182 = vmatpush3.bf16.msra.mxu1 %v19285_v38 }
 0x952   :  { %14183 = vmatprep.subr.bf16.mxu1 %v20718_v32 }
 0x953   :  { %14341 = vmatpush3.bf16.msra.mxu0 %v19281_v29 }
 0x954   :  { %14342 = vmatprep.subr.bf16.mxu0 %v20718_v32 }
 0x955   :  { %14185 = vmatpush3.bf16.msra.mxu1 %v19289_v34 }
 0x956   :  { %14186 = vmatprep.subr.bf16.mxu1 %v20718_v32 }
 0x957   :  { %14344 = vmatpush3.bf16.msra.mxu0 %v19285_v38 }
 0x958   :  { %14345 = vmatprep.subr.bf16.mxu0 %v20718_v32 }
 0x959   :  { %14188 = vmatpush3.bf16.msra.mxu1 %v19293_v1 }
 0x95a   :  { %14189 = vmatprep.subr.bf16.mxu1 %v20718_v32 }
 0x95b   :  { %14347 = vmatpush3.bf16.msra.mxu0 %v19289_v34 }
 0x95c   :  { %14348 = vmatprep.subr.bf16.mxu0 %v20718_v32 }
 0x95d   :  { %14191 = vmatpush3.bf16.msra.mxu1 %v19297_v61 }
 0x95e   :  { %14192 = vmatprep.subr.bf16.mxu1 %v20718_v32 }
 0x95f   :  { %14350 = vmatpush3.bf16.msra.mxu0 %v19293_v1 }
 0x960   :  { %14351 = vmatprep.subr.bf16.mxu0 %v20718_v32 }
 0x961   :  { %14194 = vmatpush3.bf16.msra.mxu1 %v19301_v53 }
 0x962   :  { %14195 = vmatprep.subr.bf16.mxu1 %v20718_v32 }
 0x963   :  { %14353 = vmatpush3.bf16.msra.mxu0 %v19297_v61 }
 0x964   :  { %14354 = vmatprep.subr.bf16.mxu0 %v20718_v32 }
 0x965   :  { %14197 = vmatpush3.bf16.msra.mxu1 %v19305_v27 }
 0x966   :  { %14198 = vmatprep.subr.bf16.mxu1 %v20718_v32 }
 0x967   :  { %14356 = vmatpush3.bf16.msra.mxu0 %v19301_v53 }
 0x968   :  { %12285 = vmatmul.mubr.f32.vlgmr.msra.gmra.mrb[134].mxu1 %v19310_v25  ;;  %14357 = vmatprep.subr.bf16.mxu0 %v20718_v32 }
 0x969   :  { %14200 = vmatpush3.bf16.msra.mxu1 %v19096_v22  ;;  %12319 = vmatprep.mubr.msk.f32.mxu1 %vm14798_vm6, %v20719_v0 }
 0x96a   :  { %14201 = vmatprep.subr.bf16.mxu1 %v20718_v32 }
 0x96b   :  { %14359 = vmatpush3.bf16.msra.mxu0 %v19305_v27 }
 0x96c   :  { %14360 = vmatprep.subr.bf16.mxu0 %v20718_v32 }
 0x96d   :  { %14203 = vmatpush3.bf16.msra.mxu1 %v19107_v40 }
 0x96e   :  { %12537 = vmatmul.mubr.f32.vlgmr.msra.gmra.mrb[48].mxu0 %v19319_v45  ;;  %14204 = vmatprep.subr.bf16.mxu1 %v20718_v32 }
 0x96f   :  { %14362 = vmatpush3.bf16.msra.mxu0 %v19096_v22  ;;  %12571 = vmatprep.mubr.msk.f32.mxu0 %vm14798_vm6, %v20719_v0 }
 0x970   :  { %14363 = vmatprep.subr.bf16.mxu0 %v20718_v32 }
 0x971   :  { %14206 = vmatpush3.bf16.msra.mxu1 %v19128_v21 }
 0x972   :  { %14207 = vmatprep.subr.bf16.mxu1 %v20718_v32 }
 0x973   :  { %14365 = vmatpush3.bf16.msra.mxu0 %v19107_v40 }
 0x974   :  { %14366 = vmatprep.subr.bf16.mxu0 %v20718_v32 }
 0x975   :  { %14209 = vmatpush3.bf16.msra.mxu1 %v19134_v56 }
 0x976   :  { %14210 = vmatprep.subr.bf16.mxu1 %v20718_v32 }
 0x977   :  { %14368 = vmatpush3.bf16.msra.mxu0 %v19128_v21 }
 0x978   :  { %14369 = vmatprep.subr.bf16.mxu0 %v20718_v32 }
 0x979   :  { %14212 = vmatpush3.bf16.msra.mxu1 %v19140_v49 }
 0x97a   :  { %14213 = vmatprep.subr.bf16.mxu1 %v20718_v32 }
 0x97b   :  { %14371 = vmatpush3.bf16.msra.mxu0 %v19134_v56 }
 0x97c   :  { %14372 = vmatprep.subr.bf16.mxu0 %v20718_v32 }
 0x97d   :  { %14215 = vmatpush3.bf16.msra.mxu1 %v19155_v51 }
 0x97e   :  { %14216 = vmatprep.subr.bf16.mxu1 %v20718_v32 }
 0x97f   :  { %14374 = vmatpush3.bf16.msra.mxu0 %v19140_v49 }
 0x980   :  { %14375 = vmatprep.subr.bf16.mxu0 %v20718_v32 }
 0x981   :  { %14218 = vmatpush3.bf16.msra.mxu1 %v19167_v55 }
 0x982   :  { %14219 = vmatprep.subr.bf16.mxu1 %v20718_v32 }
 0x983   :  { %14377 = vmatpush3.bf16.msra.mxu0 %v19155_v51 }
 0x984   :  { %14378 = vmatprep.subr.bf16.mxu0 %v20718_v32 }
 0x985   :  { %14221 = vmatpush3.bf16.msra.mxu1 %v19188_v5 }
 0x986   :  { %14222 = vmatprep.subr.bf16.mxu1 %v20718_v32 }
 0x987   :  { %14380 = vmatpush3.bf16.msra.mxu0 %v19167_v55 }
 0x988   :  { %12320 = vmatmul.mubr.f32.vlgmr.msra.gmra.mrb[134].mxu1 %v8138_v52  ;;  %14381 = vmatprep.subr.bf16.mxu0 %v20718_v32 }
 0x989   :  { %14224 = vmatpush3.bf16.msra.mxu1 %v14223_v3  ;;  %12354 = vmatprep.mubr.msk.f32.mxu1 %vm14798_vm6, %v20719_v0 }
 0x98a   :  { %14225 = vmatprep.subr.bf16.mxu1 %v20718_v32 }
 0x98b   :  { %14383 = vmatpush3.bf16.msra.mxu0 %v19188_v5 }
 0x98c   :  { %14384 = vmatprep.subr.bf16.mxu0 %v20718_v32 }
 0x98d   :  { %14227 = vmatpush3.bf16.msra.mxu1 %v14226_v10 }
 0x98e   :  { %12572 = vmatmul.mubr.f32.vlgmr.msra.gmra.mrb[48].mxu0 %v9259_v6  ;;  %14228 = vmatprep.subr.bf16.mxu1 %v20718_v32 }
 0x98f   :  { %14386 = vmatpush3.bf16.msra.mxu0 %v14223_v3  ;;  %12606 = vmatprep.mubr.msk.f32.mxu0 %vm14798_vm6, %v20719_v0 }
 0x990   :  { %14387 = vmatprep.subr.bf16.mxu0 %v20718_v32 }
 0x991   :  { %14230 = vmatpush3.bf16.msra.mxu1 %v14229_v23 }
 0x992   :  { %14231 = vmatprep.subr.bf16.mxu1 %v20718_v32 }
 0x993   :  { %14389 = vmatpush3.bf16.msra.mxu0 %v14226_v10 }
 0x994   :  { %14390 = vmatprep.subr.bf16.mxu0 %v20718_v32 }
 0x995   :  { %14233 = vmatpush3.bf16.msra.mxu1 %v14232_v59 }
 0x996   :  { %14234 = vmatprep.subr.bf16.mxu1 %v20718_v32 }
 0x997   :  { %14392 = vmatpush3.bf16.msra.mxu0 %v14229_v23 }
 0x998   :  { %14393 = vmatprep.subr.bf16.mxu0 %v20718_v32 }
 0x999   :  { %14236 = vmatpush3.bf16.msra.mxu1 %v14235_v7 }
 0x99a   :  { %14237 = vmatprep.subr.bf16.mxu1 %v20718_v32 }
 0x99b   :  { %14395 = vmatpush3.bf16.msra.mxu0 %v14232_v59 }
 0x99c   :  { %14396 = vmatprep.subr.bf16.mxu0 %v20718_v32 }
 0x99d   :  { %14239 = vmatpush3.bf16.msra.mxu1 %v14238_v47 }
 0x99e   :  { %14240 = vmatprep.subr.bf16.mxu1 %v20718_v32 }
 0x99f   :  { %14398 = vmatpush3.bf16.msra.mxu0 %v14235_v7 }
 0x9a0   :  { %14399 = vmatprep.subr.bf16.mxu0 %v20718_v32 }
 0x9a1   :  { %14242 = vmatpush3.bf16.msra.mxu1 %v14241_v11 }
 0x9a2   :  { %14243 = vmatprep.subr.bf16.mxu1 %v20718_v32 }
 0x9a3   :  { %14401 = vmatpush3.bf16.msra.mxu0 %v14238_v47 }
 0x9a4   :  { %14402 = vmatprep.subr.bf16.mxu0 %v20718_v32 }
 0x9a5   :  { %14245 = vmatpush3.bf16.msra.mxu1 %v14244_v12 }
 0x9a6   :  { %14246 = vmatprep.subr.bf16.mxu1 %v20718_v32 }
 0x9a7   :  { %14404 = vmatpush3.bf16.msra.mxu0 %v14241_v11 }
 0x9a8   :  { %12355 = vmatmul.mubr.f32.vlgmr.msra.gmra.mrb[134].mxu1 %v19307_v13  ;;  %14405 = vmatprep.subr.bf16.mxu0 %v20718_v32 }
 0x9a9   :  { %14248 = vmatpush3.bf16.msra.mxu1 %v19096_v22  ;;  %12389 = vmatprep.mubr.msk.f32.mxu1 %vm14798_vm6, %v20719_v0 }
 0x9aa   :  { %14249 = vmatprep.subr.bf16.mxu1 %v20718_v32 }
 0x9ab   :  { %14407 = vmatpush3.bf16.msra.mxu0 %v14244_v12 }
 0x9ac   :  { %14408 = vmatprep.subr.bf16.mxu0 %v20718_v32 }
 0x9ad   :  { %14251 = vmatpush3.bf16.msra.mxu1 %v19107_v40 }
 0x9ae   :  { %12607 = vmatmul.mubr.f32.vlgmr.msra.gmra.mrb[48].mxu0 %v19316_v63  ;;  %14252 = vmatprep.subr.bf16.mxu1 %v20718_v32 }
 0x9af   :  { %14410 = vmatpush3.bf16.msra.mxu0 %v19096_v22  ;;  %12641 = vmatprep.mubr.msk.f32.mxu0 %vm14798_vm6, %v20719_v0 }
 0x9b0   :  { %14411 = vmatprep.subr.bf16.mxu0 %v20718_v32 }
 0x9b1   :  { %14254 = vmatpush3.bf16.msra.mxu1 %v19128_v21 }
 0x9b2   :  { %14255 = vmatprep.subr.bf16.mxu1 %v20718_v32 }
 0x9b3   :  { %14413 = vmatpush3.bf16.msra.mxu0 %v19107_v40 }
 0x9b4   :  { %14414 = vmatprep.subr.bf16.mxu0 %v20718_v32 }
 0x9b5   :  { %14257 = vmatpush3.bf16.msra.mxu1 %v19134_v56 }
 0x9b6   :  { %14258 = vmatprep.subr.bf16.mxu1 %v20718_v32 }
 0x9b7   :  { %14416 = vmatpush3.bf16.msra.mxu0 %v19128_v21 }
 0x9b8   :  { %14417 = vmatprep.subr.bf16.mxu0 %v20718_v32 }
 0x9b9   :  { %14260 = vmatpush3.bf16.msra.mxu1 %v19140_v49 }
 0x9ba   :  { %14261 = vmatprep.subr.bf16.mxu1 %v20718_v32 }
 0x9bb   :  { %14419 = vmatpush3.bf16.msra.mxu0 %v19134_v56 }
 0x9bc   :  { %14420 = vmatprep.subr.bf16.mxu0 %v20718_v32 }
 0x9bd   :  { %14263 = vmatpush3.bf16.msra.mxu1 %v19155_v51 }
 0x9be   :  { %14264 = vmatprep.subr.bf16.mxu1 %v20718_v32 }
 0x9bf   :  { %14422 = vmatpush3.bf16.msra.mxu0 %v19140_v49 }
 0x9c0   :  { %14423 = vmatprep.subr.bf16.mxu0 %v20718_v32 }
 0x9c1   :  { %14266 = vmatpush3.bf16.msra.mxu1 %v19167_v55 }
 0x9c2   :  { %14267 = vmatprep.subr.bf16.mxu1 %v20718_v32 }
 0x9c3   :  { %14425 = vmatpush3.bf16.msra.mxu0 %v19155_v51 }
 0x9c4   :  { %14426 = vmatprep.subr.bf16.mxu0 %v20718_v32 }
 0x9c5   :  { %14269 = vmatpush3.bf16.msra.mxu1 %v19188_v5 }
 0x9c7   :  { %14428 = vmatpush3.bf16.msra.mxu0 %v19167_v55 }
 0x9c8   :  { %12390 = vmatmul.mubr.f32.vlgmr.msra.gmra.mrb[134].mxu1 %v19307_v13  ;;  %14429 = vmatprep.subr.bf16.mxu0 %v20718_v32 }
 0x9cb   :  { %14431 = vmatpush3.bf16.msra.mxu0 %v19188_v5 }
 0x9ce   :  { %12642 = vmatmul.mubr.f32.vlgmr.msra.gmra.mrb[48].mxu0 %v19316_v63 }
 0x9cf   :  { %14745 = shalt.err (!%p14742_p2)
}
 0x9d0   :  { %s14746_s17 = scalar_lea.hbm %s19569_s10, 512 }
 0x9d1   :  { %p14747_p3 = scmp.ne.s32.totalorder %s19569_s10, %s14746_s17  ;;  %p14750_p4 = scmp.lt.u32.totalorder %s14746_s17, %s19569_s10 }
 0x9d3   :  { %p14752_p5 = pnand %p14750_p4, %p14747_p3 }
 0x9d5   :  { %14755 = shalt.err (!%p14752_p5)
}
 0x9d6   :  { %9843 = dma.vmem_to_hbm [thread:$0]  %s9838_s3, 512, %s19569_s10, [#allocation15], %s14790_s25, %s14790_s25, %s14791_s26  }
 0x9d7   :  { %s14800_s0 = smov [#allocation13]  }
 0x9d8   :  { %s9828_s20 = sshll.u32 %s14800_s0, 4  ;;  %s9829_s20 = int_to_ptr.vmem [resolvable:$true] %s9828_s20 }
 0x9d9   :  { %s14756_s23 = scalar_lea.vmem %s9829_s20, 128  ;;  %p14761_p7 = scmp.lt.s32.totalorder %s9829_s20, %s9829_s20 }
 0x9da   :  { %p14757_p6 = scmp.ne.s32.totalorder %s9829_s20, %s14756_s23  ;;  %p14762_p8 = scmp.lt.s32.totalorder %s14756_s23, %s14756_s23 }
 0x9dc   :  { %p14763_p9 = por %p14762_p8, %p14761_p7 }
 0x9de   :  { %p14764_p10 = pnand %p14763_p9, %p14757_p6 }
 0xa9b   :  { %v8692_v32 = vpop.f32.mrb[134].mxu1 }
 0xa9c   :  { %8696 = vst.msk [vmem:[#allocation13] sm:$0xff] %vm117_vm0, %v8692_v32  ;;  %v12391_v0 = vpop.f32.mrb[135].mxu1 }
 0xaa1   :  { %v9813_v22 = vpop.f32.mrb[48].mxu0 }
 0xaa2   :  { %9818 = vrot.lane.b32.xlu0 %v9813_v22, %s14797_s5  ;;  %v12643_v40 = vpop.f32.mrb[49].mxu0 }
 0xb14   :  { %v9819_v21 = vpop.permute.xlu0 %9818 }
 0xb15   :  { %9821 = vst.msk [vmem:[#allocation13] sm:$0xff] %vm138_vm4, %v9819_v21 }
 0xb16   :  { %14767 = shalt.err (!%p14764_p10)
}
 0xb17   :  { %s14768_s26 = scalar_lea.hbm %s19568_s9, 128 }
 0xb18   :  { %p14769_p11 = scmp.ne.s32.totalorder %s19568_s9, %s14768_s26  ;;  %p14772_p12 = scmp.lt.u32.totalorder %s14768_s26, %s19568_s9 }
 0xb1a   :  { %p14774_p13 = pnand %p14772_p12, %p14769_p11 }
 0xb1c   :  { %14777 = shalt.err (!%p14774_p13)
}
 0xb1d   :  { %9831 = dma.vmem_to_hbm [thread:$0]  %s9829_s20, 128, %s19568_s9, [#allocation6]  }
 0xb1e   :  { %14784 = dma.done.wait [#allocation6], 128  }
 0xb1f   :  { %14785 = vsyncadd [#allocation6], 4294967168 }
 0xb20   :  { %14786 = dma.done.wait [#allocation15], 512  }
 0xb21   :  { %14787 = vsyncadd [#allocation15], 4294966784 }
 0xb22   :  { %9850 = vsyncpa [#allocation5], 1 }
 0xb23   :  { %9851 = vsyncpa [#allocation8], 1 }
 0xb24   :  { %9852 = vsyncpa [#allocation11], 1 }
 0xb25   :  { %9853 = vsyncpa [#allocation6], 1 }
 0xb26   :  { %9854 = vsyncpa [#allocation15], 1 }

</bundles_post_ra>
